<compile_context>
chip_gen: v6e
topology: v6e:2x2x1
jax: 0.10.0
libtpu: 0.0.40
codegen_flags: <defaults>
</compile_context>

<pallas_src>
import functools

import jax
import jax.numpy as jnp
from jax.experimental import pallas as pl
from jax.experimental.pallas import tpu as pltpu


# ------------------------------ Pallas kernel --------------------------------


def _encoder_kernel(x_ref, wih1_ref, whh1_ref, bx1_ref, bh1_ref,
                    wih2_ref, whh2_ref, bx2_ref, bh2_ref,
                    out_ref, h1_ref, h2_ref, acc_ref,
                    *, hidden_pad, t_blk, inv_seq_len):
    """Fused 2-layer GRU + mean over the sequence.

    x_ref    : (t_blk, b_tile, D_pad)  time-major input block
    wih*_ref : (in_pad, 3*H_pad)       packed input weights   [r | z | n]
    whh*_ref : (H_pad, 3*H_pad)        packed recurrent weights
    bx*_ref  : (1, 3*H_pad)            biases added to x-projection
                                       [b_ih_r+b_hh_r | b_ih_z+b_hh_z | b_ih_n]
    bh*_ref  : (1, 3*H_pad)            biases added to h-projection
                                       [0 | 0 | b_hh_n]
    out_ref  : (b_tile, H_pad)         mean over time of layer-2 hidden states
    h1/h2/acc: persistent VMEM scratch (b_tile, H_pad)
    """
    t = pl.program_id(1)
    H = hidden_pad

    @pl.when(t == 0)
    def _init():
        h1_ref[...] = jnp.zeros_like(h1_ref)
        h2_ref[...] = jnp.zeros_like(h2_ref)
        acc_ref[...] = jnp.zeros_like(acc_ref)

    # Small bias rows: load once per grid step (cheap, sublane-broadcast adds).
    bx1 = bx1_ref[...]
    bh1 = bh1_ref[...]
    bx2 = bx2_ref[...]
    bh2 = bh2_ref[...]

    def cell(x_in, h, wih_ref, whh_ref, bx, bh):
        # One fused (in, 3H) matmul for the input path, one for the recurrence.
        g = jnp.dot(x_in, wih_ref[...], preferred_element_type=jnp.float32) + bx
        gh = jnp.dot(h, whh_ref[...], preferred_element_type=jnp.float32) + bh
        r = jax.nn.sigmoid(g[:, 0:H] + gh[:, 0:H])
        z = jax.nn.sigmoid(g[:, H:2 * H] + gh[:, H:2 * H])
        n = jnp.tanh(g[:, 2 * H:3 * H] + r * gh[:, 2 * H:3 * H])
        return (1.0 - z) * n + z * h

    h1 = h1_ref[...]
    h2 = h2_ref[...]
    acc = acc_ref[...]
    # Fully-unrolled static time block: gives the scheduler visibility to
    # overlap gate VPU/EUP math of step i with the MXU work of step i+1.
    for i in range(t_blk):
        x_t = x_ref[i]                       # (b_tile, D_pad)
        h1 = cell(x_t, h1, wih1_ref, whh1_ref, bx1, bh1)
        h2 = cell(h1, h2, wih2_ref, whh2_ref, bx2, bh2)
        acc = acc + h2
    h1_ref[...] = h1
    h2_ref[...] = h2
    acc_ref[...] = acc

    @pl.when(t == pl.num_programs(1) - 1)
    def _finalize():
        out_ref[...] = acc * inv_seq_len


# -------------------------------- Wrapper -------------------------------------


def _round_up(v, m):
    return ((v + m - 1) // m) * m


def _pick_time_block(seq_len):
    for cand in (8, 4, 2, 1):
        if seq_len % cand == 0:
            return cand
    return 1


def _pack_gru_params(w_ih, w_hh, b_ih, b_hh, *, in_pad, hid_pad):
    """Pack torch-style GRU params to fused, padded (in, 3H)/(H, 3H) matrices.

    w_ih: (3, in, H), w_hh: (3, H, H), b_ih/b_hh: (3, 1, H); gate order (r,z,n).
    """
    H = w_hh.shape[-1]

    def pad_w(w, rows):
        return jnp.pad(w, ((0, rows - w.shape[0]), (0, hid_pad - H)))

    def pad_b(b):
        return jnp.pad(b, ((0, 0), (0, hid_pad - H)))

    wih_cat = jnp.concatenate([pad_w(w_ih[g], in_pad) for g in range(3)], axis=1)
    whh_cat = jnp.concatenate([pad_w(w_hh[g], hid_pad) for g in range(3)], axis=1)
    # Fold b_ih + b_hh for r and z; keep b_hh_n on the recurrent path (it sits
    # inside r * (h @ W_hn + b_hn) in torch.nn.GRU).
    bx = jnp.concatenate([pad_b(b_ih[0] + b_hh[0]),
                          pad_b(b_ih[1] + b_hh[1]),
                          pad_b(b_ih[2])], axis=1)
    zeros = jnp.zeros((1, hid_pad), jnp.float32)
    bh = jnp.concatenate([zeros, zeros, pad_b(b_hh[2])], axis=1)
    return wih_cat, whh_cat, bx, bh


def encoder_forward(x, params):
    """x: (B, T, D) -> (B, H), matching Encoder.forward semantics."""
    B, T, D = x.shape
    H = params["block1"][1].shape[-1]

    D_pad = _round_up(D, 128)
    H_pad = _round_up(H, 128)
    B_pad = _round_up(B, 8)
    b_tile = min(B_pad, 128)
    B_pad = _round_up(B_pad, b_tile)
    t_blk = _pick_time_block(T)
    G3 = 3 * H_pad

    wih1, whh1, bx1, bh1 = _pack_gru_params(*params["block1"],
                                            in_pad=D_pad, hid_pad=H_pad)
    wih2, whh2, bx2, bh2 = _pack_gru_params(*params["block2"],
                                            in_pad=H_pad, hid_pad=H_pad)

    # Pad batch/features and go time-major so every streamed x block is a
    # lane-dense (8,128)-aligned tile.
    x_p = jnp.pad(x, ((0, B_pad - B), (0, 0), (0, D_pad - D)))
    x_tm = jnp.transpose(x_p, (1, 0, 2))            # (T, B_pad, D_pad)

    kernel = functools.partial(_encoder_kernel, hidden_pad=H_pad,
                               t_blk=t_blk, inv_seq_len=1.0 / T)

    const_w = lambda b, t: (0, 0)                   # weights: resident, fetched once

    out_p = pl.pallas_call(
        kernel,
        out_shape=jax.ShapeDtypeStruct((B_pad, H_pad), jnp.float32),
        grid_spec=pltpu.PrefetchScalarGridSpec(
            num_scalar_prefetch=0,
            grid=(B_pad // b_tile, T // t_blk),
            in_specs=[
                pl.BlockSpec((t_blk, b_tile, D_pad), lambda b, t: (t, b, 0)),
                pl.BlockSpec((D_pad, G3), const_w),   # wih1
                pl.BlockSpec((H_pad, G3), const_w),   # whh1
                pl.BlockSpec((1, G3), const_w),       # bx1
                pl.BlockSpec((1, G3), const_w),       # bh1
                pl.BlockSpec((H_pad, G3), const_w),   # wih2
                pl.BlockSpec((H_pad, G3), const_w),   # whh2
                pl.BlockSpec((1, G3), const_w),       # bx2
                pl.BlockSpec((1, G3), const_w),       # bh2
            ],
            out_specs=pl.BlockSpec((b_tile, H_pad), lambda b, t: (b, 0)),
            scratch_shapes=[
                pltpu.VMEM((b_tile, H_pad), jnp.float32),   # h1 state
                pltpu.VMEM((b_tile, H_pad), jnp.float32),   # h2 state
                pltpu.VMEM((b_tile, H_pad), jnp.float32),   # running sum of h2
            ],
        ),
        compiler_params=pltpu.CompilerParams(
            dimension_semantics=("parallel", "arbitrary"),
            vmem_limit_bytes=32 * 1024 * 1024,
        ),
    )(x_tm, wih1, whh1, bx1, bh1, wih2, whh2, bx2, bh2)

    return out_p[:B, :H]


# ------------------------- Deterministic params ------------------------------


def init_gru_params(key, input_sz, hidden_sz):
    """Mimics torch.nn.GRU reset_parameters: U(-1/sqrt(H), 1/sqrt(H))."""
    k = 1.0 / float(hidden_sz) ** 0.5
    k0, k1, k2, k3 = jax.random.split(key, 4)
    w_ih = jax.random.uniform(k0, (3, input_sz, hidden_sz), jnp.float32, -k, k)
    w_hh = jax.random.uniform(k1, (3, hidden_sz, hidden_sz), jnp.float32, -k, k)
    b_ih = jax.random.uniform(k2, (3, 1, hidden_sz), jnp.float32, -k, k)
    b_hh = jax.random.uniform(k3, (3, 1, hidden_sz), jnp.float32, -k, k)
    return (w_ih, w_hh, b_ih, b_hh)


# ---------------------------- Pure-JAX reference -----------------------------


def gru_ref(x, w_ih, w_hh, b_ih, b_hh):
    B, T, D = x.shape
    H = w_hh.shape[-1]
    x_tm = jnp.transpose(x, (1, 0, 2))  # (T, B, D)

    def cell(h, x_t):
        r = jax.nn.sigmoid(x_t @ w_ih[0] + b_ih[0] + h @ w_hh[0] + b_hh[0])
        z = jax.nn.sigmoid(x_t @ w_ih[1] + b_ih[1] + h @ w_hh[1] + b_hh[1])
        n = jnp.tanh(x_t @ w_ih[2] + b_ih[2] + r * (h @ w_hh[2] + b_hh[2]))
        h_new = (1.0 - z) * n + z * h
        return h_new, h_new

    h0 = jnp.zeros((B, H), jnp.float32)
    _, ys = jax.lax.scan(cell, h0, x_tm)          # (T, B, H)
    return jnp.transpose(ys, (1, 0, 2))           # (B, T, H)


def encoder_ref(x, params):
    h1 = gru_ref(x, *params["block1"])
    h2 = gru_ref(h1, *params["block2"])
    return jnp.mean(h2, axis=1)                   # torch.mean(..., dim=1)


# --------------------------------- main --------------------------------------


if __name__ == "__main__":
    B, T, D, H = 2, 8, 4, 32

    key = jax.random.PRNGKey(0)
    kx, kb1, kb2 = jax.random.split(key, 3)
    x = jax.random.normal(kx, (B, T, D), jnp.float32)
    params = {
        "block1": init_gru_params(kb1, D, H),
        "block2": init_gru_params(kb2, H, H),
    }

    out = jax.block_until_ready(encoder_forward(x, params))
    ref = jax.block_until_ready(encoder_ref(x, params))

    assert out.shape == (B, H), out.shape
    assert out.dtype == jnp.float32
    max_err = float(jnp.max(jnp.abs(out - ref)))
    assert max_err < 1e-3, f"mismatch vs reference: {max_err}"

    print("KERNEL_OK")
</pallas_src>

<mosaic_0001>
module attributes {stable_mosaic.version = 11 : i64} {
  func.func @_encoder_kernel(%arg0: i32, %arg1: i32, %arg2: memref<8x8x128xf32, #tpu.memory_space<vmem>>, %arg3: memref<128x384xf32, #tpu.memory_space<vmem>>, %arg4: memref<128x384xf32, #tpu.memory_space<vmem>>, %arg5: memref<1x384xf32, #tpu.memory_space<vmem>>, %arg6: memref<1x384xf32, #tpu.memory_space<vmem>>, %arg7: memref<128x384xf32, #tpu.memory_space<vmem>>, %arg8: memref<128x384xf32, #tpu.memory_space<vmem>>, %arg9: memref<1x384xf32, #tpu.memory_space<vmem>>, %arg10: memref<1x384xf32, #tpu.memory_space<vmem>>, %arg11: memref<8x128xf32, #tpu.memory_space<vmem>>, %arg12: memref<8x128xf32, #tpu.memory_space<vmem>>, %arg13: memref<8x128xf32, #tpu.memory_space<vmem>>, %arg14: memref<8x128xf32, #tpu.memory_space<vmem>>) attributes {dimension_semantics = [#tpu.dimension_semantics<parallel>, #tpu.dimension_semantics<arbitrary>], iteration_bounds = array<i64: 1, 1>, scalar_prefetch = 0 : i64, scratch_operands = 3 : i64, tpu.core_type = #tpu.core_type<tc>, window_params = [{transform_indices = @transform_0, window_bounds = array<i64: 8, 8, 128>}, {pipeline_mode = #tpu.pipeline_mode<synchronous>, transform_indices = @transform_1, window_bounds = array<i64: 128, 384>}, {pipeline_mode = #tpu.pipeline_mode<synchronous>, transform_indices = @transform_2, window_bounds = array<i64: 128, 384>}, {pipeline_mode = #tpu.pipeline_mode<synchronous>, transform_indices = @transform_3, window_bounds = array<i64: 1, 384>}, {pipeline_mode = #tpu.pipeline_mode<synchronous>, transform_indices = @transform_4, window_bounds = array<i64: 1, 384>}, {pipeline_mode = #tpu.pipeline_mode<synchronous>, transform_indices = @transform_5, window_bounds = array<i64: 128, 384>}, {pipeline_mode = #tpu.pipeline_mode<synchronous>, transform_indices = @transform_6, window_bounds = array<i64: 128, 384>}, {pipeline_mode = #tpu.pipeline_mode<synchronous>, transform_indices = @transform_7, window_bounds = array<i64: 1, 384>}, {pipeline_mode = #tpu.pipeline_mode<synchronous>, transform_indices = @transform_8, window_bounds = array<i64: 1, 384>}, {transform_indices = @transform_9, window_bounds = array<i64: 8, 128>}]} {
    %c0_i32 = arith.constant 0 : i32
    %0 = arith.cmpi eq, %arg1, %c0_i32 : i32
    %1 = arith.extui %0 : i1 to i32
    %c0_i32_0 = arith.constant 0 : i32
    %2 = arith.cmpi ne, %1, %c0_i32_0 : i32
    scf.if %2 {
      %cst_182 = arith.constant 0.000000e+00 : f32
      %584 = vector.broadcast %cst_182 : f32 to vector<8x128xf32>
      %c0_183 = arith.constant 0 : index
      %c0_184 = arith.constant 0 : index
      %585 = vector.load %arg12[%c0_183, %c0_184] : memref<8x128xf32, #tpu.memory_space<vmem>>, vector<8x128xf32>
      tpu.vector_store %arg12[%c0_183, %c0_184], %584 {strides = array<i32>} : memref<8x128xf32, #tpu.memory_space<vmem>>, vector<8x128xf32>,
      %cst_185 = arith.constant 0.000000e+00 : f32
      %586 = vector.broadcast %cst_185 : f32 to vector<8x128xf32>
      %c0_186 = arith.constant 0 : index
      %c0_187 = arith.constant 0 : index
      %587 = vector.load %arg13[%c0_186, %c0_187] : memref<8x128xf32, #tpu.memory_space<vmem>>, vector<8x128xf32>
      tpu.vector_store %arg13[%c0_186, %c0_187], %586 {strides = array<i32>} : memref<8x128xf32, #tpu.memory_space<vmem>>, vector<8x128xf32>,
      %cst_188 = arith.constant 0.000000e+00 : f32
      %588 = vector.broadcast %cst_188 : f32 to vector<8x128xf32>
      %c0_189 = arith.constant 0 : index
      %c0_190 = arith.constant 0 : index
      %589 = vector.load %arg14[%c0_189, %c0_190] : memref<8x128xf32, #tpu.memory_space<vmem>>, vector<8x128xf32>
      tpu.vector_store %arg14[%c0_189, %c0_190], %588 {strides = array<i32>} : memref<8x128xf32, #tpu.memory_space<vmem>>, vector<8x128xf32>,
    } else {
    }
    %c0 = arith.constant 0 : index
    %c0_1 = arith.constant 0 : index
    %3 = vector.load %arg5[%c0, %c0_1] : memref<1x384xf32, #tpu.memory_space<vmem>>, vector<1x384xf32>
    %c0_2 = arith.constant 0 : index
    %c0_3 = arith.constant 0 : index
    %4 = vector.load %arg6[%c0_2, %c0_3] : memref<1x384xf32, #tpu.memory_space<vmem>>, vector<1x384xf32>
    %c0_4 = arith.constant 0 : index
    %c0_5 = arith.constant 0 : index
    %5 = vector.load %arg9[%c0_4, %c0_5] : memref<1x384xf32, #tpu.memory_space<vmem>>, vector<1x384xf32>
    %c0_6 = arith.constant 0 : index
    %c0_7 = arith.constant 0 : index
    %6 = vector.load %arg10[%c0_6, %c0_7] : memref<1x384xf32, #tpu.memory_space<vmem>>, vector<1x384xf32>
    %c0_8 = arith.constant 0 : index
    %c0_9 = arith.constant 0 : index
    %7 = vector.load %arg12[%c0_8, %c0_9] : memref<8x128xf32, #tpu.memory_space<vmem>>, vector<8x128xf32>
    %c0_10 = arith.constant 0 : index
    %c0_11 = arith.constant 0 : index
    %8 = vector.load %arg13[%c0_10, %c0_11] : memref<8x128xf32, #tpu.memory_space<vmem>>, vector<8x128xf32>
    %c0_12 = arith.constant 0 : index
    %c0_13 = arith.constant 0 : index
    %9 = vector.load %arg14[%c0_12, %c0_13] : memref<8x128xf32, #tpu.memory_space<vmem>>, vector<8x128xf32>
    %c0_14 = arith.constant 0 : index
    %c0_15 = arith.constant 0 : index
    %c0_16 = arith.constant 0 : index
    %10 = vector.load %arg2[%c0_14, %c0_15, %c0_16] : memref<8x8x128xf32, #tpu.memory_space<vmem>>, vector<1x8x128xf32>
    %11 = vector.shape_cast %10 : vector<1x8x128xf32> to vector<8x128xf32>
    %c0_17 = arith.constant 0 : index
    %c0_18 = arith.constant 0 : index
    %12 = vector.load %arg3[%c0_17, %c0_18] : memref<128x384xf32, #tpu.memory_space<vmem>>, vector<128x384xf32>
    %cst = arith.constant dense<0.000000e+00> : vector<8x384xf32>
    %13 = tpu.matmul %11, %12, %cst {dimension_numbers = #tpu.dot_dimension_numbers<[1], [0], [0], [1], [0, 0, 1, 1], [], []>} : vector<8x128xf32>, vector<128x384xf32>, vector<8x384xf32> -> vector<8x384xf32>
    %14 = vector.broadcast %3 : vector<1x384xf32> to vector<8x384xf32>
    %15 = arith.addf %13, %14 : vector<8x384xf32>
    %c0_19 = arith.constant 0 : index
    %c0_20 = arith.constant 0 : index
    %16 = vector.load %arg4[%c0_19, %c0_20] : memref<128x384xf32, #tpu.memory_space<vmem>>, vector<128x384xf32>
    %cst_21 = arith.constant dense<0.000000e+00> : vector<8x384xf32>
    %17 = tpu.matmul %7, %16, %cst_21 {dimension_numbers = #tpu.dot_dimension_numbers<[1], [0], [0], [1], [0, 0, 1, 1], [], []>} : vector<8x128xf32>, vector<128x384xf32>, vector<8x384xf32> -> vector<8x384xf32>
    %18 = vector.broadcast %4 : vector<1x384xf32> to vector<8x384xf32>
    %19 = arith.addf %17, %18 : vector<8x384xf32>
    %20 = vector.extract_strided_slice %15 {offsets = [0, 0], sizes = [8, 128], strides = [1, 1]} : vector<8x384xf32> to vector<8x128xf32>
    %21 = vector.extract_strided_slice %19 {offsets = [0, 0], sizes = [8, 128], strides = [1, 1]} : vector<8x384xf32> to vector<8x128xf32>
    %22 = arith.addf %20, %21 : vector<8x128xf32>
    %23 = arith.negf %22 : vector<8x128xf32>
    %24 = math.exp %23 : vector<8x128xf32>
    %cst_22 = arith.constant 1.000000e+00 : f32
    %25 = vector.broadcast %cst_22 : f32 to vector<8x128xf32>
    %26 = arith.addf %25, %24 : vector<8x128xf32>
    %27 = arith.divf %25, %26 : vector<8x128xf32>
    %28 = vector.extract_strided_slice %15 {offsets = [0, 128], sizes = [8, 128], strides = [1, 1]} : vector<8x384xf32> to vector<8x128xf32>
    %29 = vector.extract_strided_slice %19 {offsets = [0, 128], sizes = [8, 128], strides = [1, 1]} : vector<8x384xf32> to vector<8x128xf32>
    %30 = arith.addf %28, %29 : vector<8x128xf32>
    %31 = arith.negf %30 : vector<8x128xf32>
    %32 = math.exp %31 : vector<8x128xf32>
    %cst_23 = arith.constant 1.000000e+00 : f32
    %33 = vector.broadcast %cst_23 : f32 to vector<8x128xf32>
    %34 = arith.addf %33, %32 : vector<8x128xf32>
    %35 = arith.divf %33, %34 : vector<8x128xf32>
    %36 = vector.extract_strided_slice %15 {offsets = [0, 256], sizes = [8, 128], strides = [1, 1]} : vector<8x384xf32> to vector<8x128xf32>
    %37 = vector.extract_strided_slice %19 {offsets = [0, 256], sizes = [8, 128], strides = [1, 1]} : vector<8x384xf32> to vector<8x128xf32>
    %38 = arith.mulf %27, %37 : vector<8x128xf32>
    %39 = arith.addf %36, %38 : vector<8x128xf32>
    %40 = math.tanh %39 : vector<8x128xf32>
    %cst_24 = arith.constant 1.000000e+00 : f32
    %41 = vector.broadcast %cst_24 : f32 to vector<8x128xf32>
    %42 = arith.subf %41, %35 : vector<8x128xf32>
    %43 = arith.mulf %42, %40 : vector<8x128xf32>
    %44 = arith.mulf %35, %7 : vector<8x128xf32>
    %45 = arith.addf %43, %44 : vector<8x128xf32>
    %c0_25 = arith.constant 0 : index
    %c0_26 = arith.constant 0 : index
    %46 = vector.load %arg7[%c0_25, %c0_26] : memref<128x384xf32, #tpu.memory_space<vmem>>, vector<128x384xf32>
    %cst_27 = arith.constant dense<0.000000e+00> : vector<8x384xf32>
    %47 = tpu.matmul %45, %46, %cst_27 {dimension_numbers = #tpu.dot_dimension_numbers<[1], [0], [0], [1], [0, 0, 1, 1], [], []>} : vector<8x128xf32>, vector<128x384xf32>, vector<8x384xf32> -> vector<8x384xf32>
    %48 = vector.broadcast %5 : vector<1x384xf32> to vector<8x384xf32>
    %49 = arith.addf %47, %48 : vector<8x384xf32>
    %c0_28 = arith.constant 0 : index
    %c0_29 = arith.constant 0 : index
    %50 = vector.load %arg8[%c0_28, %c0_29] : memref<128x384xf32, #tpu.memory_space<vmem>>, vector<128x384xf32>
    %cst_30 = arith.constant dense<0.000000e+00> : vector<8x384xf32>
    %51 = tpu.matmul %8, %50, %cst_30 {dimension_numbers = #tpu.dot_dimension_numbers<[1], [0], [0], [1], [0, 0, 1, 1], [], []>} : vector<8x128xf32>, vector<128x384xf32>, vector<8x384xf32> -> vector<8x384xf32>
    %52 = vector.broadcast %6 : vector<1x384xf32> to vector<8x384xf32>
    %53 = arith.addf %51, %52 : vector<8x384xf32>
    %54 = vector.extract_strided_slice %49 {offsets = [0, 0], sizes = [8, 128], strides = [1, 1]} : vector<8x384xf32> to vector<8x128xf32>
    %55 = vector.extract_strided_slice %53 {offsets = [0, 0], sizes = [8, 128], strides = [1, 1]} : vector<8x384xf32> to vector<8x128xf32>
    %56 = arith.addf %54, %55 : vector<8x128xf32>
    %57 = arith.negf %56 : vector<8x128xf32>
    %58 = math.exp %57 : vector<8x128xf32>
    %cst_31 = arith.constant 1.000000e+00 : f32
    %59 = vector.broadcast %cst_31 : f32 to vector<8x128xf32>
    %60 = arith.addf %59, %58 : vector<8x128xf32>
    %61 = arith.divf %59, %60 : vector<8x128xf32>
    %62 = vector.extract_strided_slice %49 {offsets = [0, 128], sizes = [8, 128], strides = [1, 1]} : vector<8x384xf32> to vector<8x128xf32>
    %63 = vector.extract_strided_slice %53 {offsets = [0, 128], sizes = [8, 128], strides = [1, 1]} : vector<8x384xf32> to vector<8x128xf32>
    %64 = arith.addf %62, %63 : vector<8x128xf32>
    %65 = arith.negf %64 : vector<8x128xf32>
    %66 = math.exp %65 : vector<8x128xf32>
    %cst_32 = arith.constant 1.000000e+00 : f32
    %67 = vector.broadcast %cst_32 : f32 to vector<8x128xf32>
    %68 = arith.addf %67, %66 : vector<8x128xf32>
    %69 = arith.divf %67, %68 : vector<8x128xf32>
    %70 = vector.extract_strided_slice %49 {offsets = [0, 256], sizes = [8, 128], strides = [1, 1]} : vector<8x384xf32> to vector<8x128xf32>
    %71 = vector.extract_strided_slice %53 {offsets = [0, 256], sizes = [8, 128], strides = [1, 1]} : vector<8x384xf32> to vector<8x128xf32>
    %72 = arith.mulf %61, %71 : vector<8x128xf32>
    %73 = arith.addf %70, %72 : vector<8x128xf32>
    %74 = math.tanh %73 : vector<8x128xf32>
    %cst_33 = arith.constant 1.000000e+00 : f32
    %75 = vector.broadcast %cst_33 : f32 to vector<8x128xf32>
    %76 = arith.subf %75, %69 : vector<8x128xf32>
    %77 = arith.mulf %76, %74 : vector<8x128xf32>
    %78 = arith.mulf %69, %8 : vector<8x128xf32>
    %79 = arith.addf %77, %78 : vector<8x128xf32>
    %80 = arith.addf %9, %79 : vector<8x128xf32>
    %c1 = arith.constant 1 : index
    %c0_34 = arith.constant 0 : index
    %c0_35 = arith.constant 0 : index
    %81 = vector.load %arg2[%c1, %c0_34, %c0_35] : memref<8x8x128xf32, #tpu.memory_space<vmem>>, vector<1x8x128xf32>
    %82 = vector.shape_cast %81 : vector<1x8x128xf32> to vector<8x128xf32>
    %c0_36 = arith.constant 0 : index
    %c0_37 = arith.constant 0 : index
    %83 = vector.load %arg3[%c0_36, %c0_37] : memref<128x384xf32, #tpu.memory_space<vmem>>, vector<128x384xf32>
    %cst_38 = arith.constant dense<0.000000e+00> : vector<8x384xf32>
    %84 = tpu.matmul %82, %83, %cst_38 {dimension_numbers = #tpu.dot_dimension_numbers<[1], [0], [0], [1], [0, 0, 1, 1], [], []>} : vector<8x128xf32>, vector<128x384xf32>, vector<8x384xf32> -> vector<8x384xf32>
    %85 = vector.broadcast %3 : vector<1x384xf32> to vector<8x384xf32>
    %86 = arith.addf %84, %85 : vector<8x384xf32>
    %c0_39 = arith.constant 0 : index
    %c0_40 = arith.constant 0 : index
    %87 = vector.load %arg4[%c0_39, %c0_40] : memref<128x384xf32, #tpu.memory_space<vmem>>, vector<128x384xf32>
    %cst_41 = arith.constant dense<0.000000e+00> : vector<8x384xf32>
    %88 = tpu.matmul %45, %87, %cst_41 {dimension_numbers = #tpu.dot_dimension_numbers<[1], [0], [0], [1], [0, 0, 1, 1], [], []>} : vector<8x128xf32>, vector<128x384xf32>, vector<8x384xf32> -> vector<8x384xf32>
    %89 = vector.broadcast %4 : vector<1x384xf32> to vector<8x384xf32>
    %90 = arith.addf %88, %89 : vector<8x384xf32>
    %91 = vector.extract_strided_slice %86 {offsets = [0, 0], sizes = [8, 128], strides = [1, 1]} : vector<8x384xf32> to vector<8x128xf32>
    %92 = vector.extract_strided_slice %90 {offsets = [0, 0], sizes = [8, 128], strides = [1, 1]} : vector<8x384xf32> to vector<8x128xf32>
    %93 = arith.addf %91, %92 : vector<8x128xf32>
    %94 = arith.negf %93 : vector<8x128xf32>
    %95 = math.exp %94 : vector<8x128xf32>
    %cst_42 = arith.constant 1.000000e+00 : f32
    %96 = vector.broadcast %cst_42 : f32 to vector<8x128xf32>
    %97 = arith.addf %96, %95 : vector<8x128xf32>
    %98 = arith.divf %96, %97 : vector<8x128xf32>
    %99 = vector.extract_strided_slice %86 {offsets = [0, 128], sizes = [8, 128], strides = [1, 1]} : vector<8x384xf32> to vector<8x128xf32>
    %100 = vector.extract_strided_slice %90 {offsets = [0, 128], sizes = [8, 128], strides = [1, 1]} : vector<8x384xf32> to vector<8x128xf32>
    %101 = arith.addf %99, %100 : vector<8x128xf32>
    %102 = arith.negf %101 : vector<8x128xf32>
    %103 = math.exp %102 : vector<8x128xf32>
    %cst_43 = arith.constant 1.000000e+00 : f32
    %104 = vector.broadcast %cst_43 : f32 to vector<8x128xf32>
    %105 = arith.addf %104, %103 : vector<8x128xf32>
    %106 = arith.divf %104, %105 : vector<8x128xf32>
    %107 = vector.extract_strided_slice %86 {offsets = [0, 256], sizes = [8, 128], strides = [1, 1]} : vector<8x384xf32> to vector<8x128xf32>
    %108 = vector.extract_strided_slice %90 {offsets = [0, 256], sizes = [8, 128], strides = [1, 1]} : vector<8x384xf32> to vector<8x128xf32>
    %109 = arith.mulf %98, %108 : vector<8x128xf32>
    %110 = arith.addf %107, %109 : vector<8x128xf32>
    %111 = math.tanh %110 : vector<8x128xf32>
    %cst_44 = arith.constant 1.000000e+00 : f32
    %112 = vector.broadcast %cst_44 : f32 to vector<8x128xf32>
    %113 = arith.subf %112, %106 : vector<8x128xf32>
    %114 = arith.mulf %113, %111 : vector<8x128xf32>
    %115 = arith.mulf %106, %45 : vector<8x128xf32>
    %116 = arith.addf %114, %115 : vector<8x128xf32>
    %c0_45 = arith.constant 0 : index
    %c0_46 = arith.constant 0 : index
    %117 = vector.load %arg7[%c0_45, %c0_46] : memref<128x384xf32, #tpu.memory_space<vmem>>, vector<128x384xf32>
    %cst_47 = arith.constant dense<0.000000e+00> : vector<8x384xf32>
    %118 = tpu.matmul %116, %117, %cst_47 {dimension_numbers = #tpu.dot_dimension_numbers<[1], [0], [0], [1], [0, 0, 1, 1], [], []>} : vector<8x128xf32>, vector<128x384xf32>, vector<8x384xf32> -> vector<8x384xf32>
    %119 = vector.broadcast %5 : vector<1x384xf32> to vector<8x384xf32>
    %120 = arith.addf %118, %119 : vector<8x384xf32>
    %c0_48 = arith.constant 0 : index
    %c0_49 = arith.constant 0 : index
    %121 = vector.load %arg8[%c0_48, %c0_49] : memref<128x384xf32, #tpu.memory_space<vmem>>, vector<128x384xf32>
    %cst_50 = arith.constant dense<0.000000e+00> : vector<8x384xf32>
    %122 = tpu.matmul %79, %121, %cst_50 {dimension_numbers = #tpu.dot_dimension_numbers<[1], [0], [0], [1], [0, 0, 1, 1], [], []>} : vector<8x128xf32>, vector<128x384xf32>, vector<8x384xf32> -> vector<8x384xf32>
    %123 = vector.broadcast %6 : vector<1x384xf32> to vector<8x384xf32>
    %124 = arith.addf %122, %123 : vector<8x384xf32>
    %125 = vector.extract_strided_slice %120 {offsets = [0, 0], sizes = [8, 128], strides = [1, 1]} : vector<8x384xf32> to vector<8x128xf32>
    %126 = vector.extract_strided_slice %124 {offsets = [0, 0], sizes = [8, 128], strides = [1, 1]} : vector<8x384xf32> to vector<8x128xf32>
    %127 = arith.addf %125, %126 : vector<8x128xf32>
    %128 = arith.negf %127 : vector<8x128xf32>
    %129 = math.exp %128 : vector<8x128xf32>
    %cst_51 = arith.constant 1.000000e+00 : f32
    %130 = vector.broadcast %cst_51 : f32 to vector<8x128xf32>
    %131 = arith.addf %130, %129 : vector<8x128xf32>
    %132 = arith.divf %130, %131 : vector<8x128xf32>
    %133 = vector.extract_strided_slice %120 {offsets = [0, 128], sizes = [8, 128], strides = [1, 1]} : vector<8x384xf32> to vector<8x128xf32>
    %134 = vector.extract_strided_slice %124 {offsets = [0, 128], sizes = [8, 128], strides = [1, 1]} : vector<8x384xf32> to vector<8x128xf32>
    %135 = arith.addf %133, %134 : vector<8x128xf32>
    %136 = arith.negf %135 : vector<8x128xf32>
    %137 = math.exp %136 : vector<8x128xf32>
    %cst_52 = arith.constant 1.000000e+00 : f32
    %138 = vector.broadcast %cst_52 : f32 to vector<8x128xf32>
    %139 = arith.addf %138, %137 : vector<8x128xf32>
    %140 = arith.divf %138, %139 : vector<8x128xf32>
    %141 = vector.extract_strided_slice %120 {offsets = [0, 256], sizes = [8, 128], strides = [1, 1]} : vector<8x384xf32> to vector<8x128xf32>
    %142 = vector.extract_strided_slice %124 {offsets = [0, 256], sizes = [8, 128], strides = [1, 1]} : vector<8x384xf32> to vector<8x128xf32>
    %143 = arith.mulf %132, %142 : vector<8x128xf32>
    %144 = arith.addf %141, %143 : vector<8x128xf32>
    %145 = math.tanh %144 : vector<8x128xf32>
    %cst_53 = arith.constant 1.000000e+00 : f32
    %146 = vector.broadcast %cst_53 : f32 to vector<8x128xf32>
    %147 = arith.subf %146, %140 : vector<8x128xf32>
    %148 = arith.mulf %147, %145 : vector<8x128xf32>
    %149 = arith.mulf %140, %79 : vector<8x128xf32>
    %150 = arith.addf %148, %149 : vector<8x128xf32>
    %151 = arith.addf %80, %150 : vector<8x128xf32>
    %c2 = arith.constant 2 : index
    %c0_54 = arith.constant 0 : index
    %c0_55 = arith.constant 0 : index
    %152 = vector.load %arg2[%c2, %c0_54, %c0_55] : memref<8x8x128xf32, #tpu.memory_space<vmem>>, vector<1x8x128xf32>
    %153 = vector.shape_cast %152 : vector<1x8x128xf32> to vector<8x128xf32>
    %c0_56 = arith.constant 0 : index
    %c0_57 = arith.constant 0 : index
    %154 = vector.load %arg3[%c0_56, %c0_57] : memref<128x384xf32, #tpu.memory_space<vmem>>, vector<128x384xf32>
    %cst_58 = arith.constant dense<0.000000e+00> : vector<8x384xf32>
    %155 = tpu.matmul %153, %154, %cst_58 {dimension_numbers = #tpu.dot_dimension_numbers<[1], [0], [0], [1], [0, 0, 1, 1], [], []>} : vector<8x128xf32>, vector<128x384xf32>, vector<8x384xf32> -> vector<8x384xf32>
    %156 = vector.broadcast %3 : vector<1x384xf32> to vector<8x384xf32>
    %157 = arith.addf %155, %156 : vector<8x384xf32>
    %c0_59 = arith.constant 0 : index
    %c0_60 = arith.constant 0 : index
    %158 = vector.load %arg4[%c0_59, %c0_60] : memref<128x384xf32, #tpu.memory_space<vmem>>, vector<128x384xf32>
    %cst_61 = arith.constant dense<0.000000e+00> : vector<8x384xf32>
    %159 = tpu.matmul %116, %158, %cst_61 {dimension_numbers = #tpu.dot_dimension_numbers<[1], [0], [0], [1], [0, 0, 1, 1], [], []>} : vector<8x128xf32>, vector<128x384xf32>, vector<8x384xf32> -> vector<8x384xf32>
    %160 = vector.broadcast %4 : vector<1x384xf32> to vector<8x384xf32>
    %161 = arith.addf %159, %160 : vector<8x384xf32>
    %162 = vector.extract_strided_slice %157 {offsets = [0, 0], sizes = [8, 128], strides = [1, 1]} : vector<8x384xf32> to vector<8x128xf32>
    %163 = vector.extract_strided_slice %161 {offsets = [0, 0], sizes = [8, 128], strides = [1, 1]} : vector<8x384xf32> to vector<8x128xf32>
    %164 = arith.addf %162, %163 : vector<8x128xf32>
    %165 = arith.negf %164 : vector<8x128xf32>
    %166 = math.exp %165 : vector<8x128xf32>
    %cst_62 = arith.constant 1.000000e+00 : f32
    %167 = vector.broadcast %cst_62 : f32 to vector<8x128xf32>
    %168 = arith.addf %167, %166 : vector<8x128xf32>
    %169 = arith.divf %167, %168 : vector<8x128xf32>
    %170 = vector.extract_strided_slice %157 {offsets = [0, 128], sizes = [8, 128], strides = [1, 1]} : vector<8x384xf32> to vector<8x128xf32>
    %171 = vector.extract_strided_slice %161 {offsets = [0, 128], sizes = [8, 128], strides = [1, 1]} : vector<8x384xf32> to vector<8x128xf32>
    %172 = arith.addf %170, %171 : vector<8x128xf32>
    %173 = arith.negf %172 : vector<8x128xf32>
    %174 = math.exp %173 : vector<8x128xf32>
    %cst_63 = arith.constant 1.000000e+00 : f32
    %175 = vector.broadcast %cst_63 : f32 to vector<8x128xf32>
    %176 = arith.addf %175, %174 : vector<8x128xf32>
    %177 = arith.divf %175, %176 : vector<8x128xf32>
    %178 = vector.extract_strided_slice %157 {offsets = [0, 256], sizes = [8, 128], strides = [1, 1]} : vector<8x384xf32> to vector<8x128xf32>
    %179 = vector.extract_strided_slice %161 {offsets = [0, 256], sizes = [8, 128], strides = [1, 1]} : vector<8x384xf32> to vector<8x128xf32>
    %180 = arith.mulf %169, %179 : vector<8x128xf32>
    %181 = arith.addf %178, %180 : vector<8x128xf32>
    %182 = math.tanh %181 : vector<8x128xf32>
    %cst_64 = arith.constant 1.000000e+00 : f32
    %183 = vector.broadcast %cst_64 : f32 to vector<8x128xf32>
    %184 = arith.subf %183, %177 : vector<8x128xf32>
    %185 = arith.mulf %184, %182 : vector<8x128xf32>
    %186 = arith.mulf %177, %116 : vector<8x128xf32>
    %187 = arith.addf %185, %186 : vector<8x128xf32>
    %c0_65 = arith.constant 0 : index
    %c0_66 = arith.constant 0 : index
    %188 = vector.load %arg7[%c0_65, %c0_66] : memref<128x384xf32, #tpu.memory_space<vmem>>, vector<128x384xf32>
    %cst_67 = arith.constant dense<0.000000e+00> : vector<8x384xf32>
    %189 = tpu.matmul %187, %188, %cst_67 {dimension_numbers = #tpu.dot_dimension_numbers<[1], [0], [0], [1], [0, 0, 1, 1], [], []>} : vector<8x128xf32>, vector<128x384xf32>, vector<8x384xf32> -> vector<8x384xf32>
    %190 = vector.broadcast %5 : vector<1x384xf32> to vector<8x384xf32>
    %191 = arith.addf %189, %190 : vector<8x384xf32>
    %c0_68 = arith.constant 0 : index
    %c0_69 = arith.constant 0 : index
    %192 = vector.load %arg8[%c0_68, %c0_69] : memref<128x384xf32, #tpu.memory_space<vmem>>, vector<128x384xf32>
    %cst_70 = arith.constant dense<0.000000e+00> : vector<8x384xf32>
    %193 = tpu.matmul %150, %192, %cst_70 {dimension_numbers = #tpu.dot_dimension_numbers<[1], [0], [0], [1], [0, 0, 1, 1], [], []>} : vector<8x128xf32>, vector<128x384xf32>, vector<8x384xf32> -> vector<8x384xf32>
    %194 = vector.broadcast %6 : vector<1x384xf32> to vector<8x384xf32>
    %195 = arith.addf %193, %194 : vector<8x384xf32>
    %196 = vector.extract_strided_slice %191 {offsets = [0, 0], sizes = [8, 128], strides = [1, 1]} : vector<8x384xf32> to vector<8x128xf32>
    %197 = vector.extract_strided_slice %195 {offsets = [0, 0], sizes = [8, 128], strides = [1, 1]} : vector<8x384xf32> to vector<8x128xf32>
    %198 = arith.addf %196, %197 : vector<8x128xf32>
    %199 = arith.negf %198 : vector<8x128xf32>
    %200 = math.exp %199 : vector<8x128xf32>
    %cst_71 = arith.constant 1.000000e+00 : f32
    %201 = vector.broadcast %cst_71 : f32 to vector<8x128xf32>
    %202 = arith.addf %201, %200 : vector<8x128xf32>
    %203 = arith.divf %201, %202 : vector<8x128xf32>
    %204 = vector.extract_strided_slice %191 {offsets = [0, 128], sizes = [8, 128], strides = [1, 1]} : vector<8x384xf32> to vector<8x128xf32>
    %205 = vector.extract_strided_slice %195 {offsets = [0, 128], sizes = [8, 128], strides = [1, 1]} : vector<8x384xf32> to vector<8x128xf32>
    %206 = arith.addf %204, %205 : vector<8x128xf32>
    %207 = arith.negf %206 : vector<8x128xf32>
    %208 = math.exp %207 : vector<8x128xf32>
    %cst_72 = arith.constant 1.000000e+00 : f32
    %209 = vector.broadcast %cst_72 : f32 to vector<8x128xf32>
    %210 = arith.addf %209, %208 : vector<8x128xf32>
    %211 = arith.divf %209, %210 : vector<8x128xf32>
    %212 = vector.extract_strided_slice %191 {offsets = [0, 256], sizes = [8, 128], strides = [1, 1]} : vector<8x384xf32> to vector<8x128xf32>
    %213 = vector.extract_strided_slice %195 {offsets = [0, 256], sizes = [8, 128], strides = [1, 1]} : vector<8x384xf32> to vector<8x128xf32>
    %214 = arith.mulf %203, %213 : vector<8x128xf32>
    %215 = arith.addf %212, %214 : vector<8x128xf32>
    %216 = math.tanh %215 : vector<8x128xf32>
    %cst_73 = arith.constant 1.000000e+00 : f32
    %217 = vector.broadcast %cst_73 : f32 to vector<8x128xf32>
    %218 = arith.subf %217, %211 : vector<8x128xf32>
    %219 = arith.mulf %218, %216 : vector<8x128xf32>
    %220 = arith.mulf %211, %150 : vector<8x128xf32>
    %221 = arith.addf %219, %220 : vector<8x128xf32>
    %222 = arith.addf %151, %221 : vector<8x128xf32>
    %c3 = arith.constant 3 : index
    %c0_74 = arith.constant 0 : index
    %c0_75 = arith.constant 0 : index
    %223 = vector.load %arg2[%c3, %c0_74, %c0_75] : memref<8x8x128xf32, #tpu.memory_space<vmem>>, vector<1x8x128xf32>
    %224 = vector.shape_cast %223 : vector<1x8x128xf32> to vector<8x128xf32>
    %c0_76 = arith.constant 0 : index
    %c0_77 = arith.constant 0 : index
    %225 = vector.load %arg3[%c0_76, %c0_77] : memref<128x384xf32, #tpu.memory_space<vmem>>, vector<128x384xf32>
    %cst_78 = arith.constant dense<0.000000e+00> : vector<8x384xf32>
    %226 = tpu.matmul %224, %225, %cst_78 {dimension_numbers = #tpu.dot_dimension_numbers<[1], [0], [0], [1], [0, 0, 1, 1], [], []>} : vector<8x128xf32>, vector<128x384xf32>, vector<8x384xf32> -> vector<8x384xf32>
    %227 = vector.broadcast %3 : vector<1x384xf32> to vector<8x384xf32>
    %228 = arith.addf %226, %227 : vector<8x384xf32>
    %c0_79 = arith.constant 0 : index
    %c0_80 = arith.constant 0 : index
    %229 = vector.load %arg4[%c0_79, %c0_80] : memref<128x384xf32, #tpu.memory_space<vmem>>, vector<128x384xf32>
    %cst_81 = arith.constant dense<0.000000e+00> : vector<8x384xf32>
    %230 = tpu.matmul %187, %229, %cst_81 {dimension_numbers = #tpu.dot_dimension_numbers<[1], [0], [0], [1], [0, 0, 1, 1], [], []>} : vector<8x128xf32>, vector<128x384xf32>, vector<8x384xf32> -> vector<8x384xf32>
    %231 = vector.broadcast %4 : vector<1x384xf32> to vector<8x384xf32>
    %232 = arith.addf %230, %231 : vector<8x384xf32>
    %233 = vector.extract_strided_slice %228 {offsets = [0, 0], sizes = [8, 128], strides = [1, 1]} : vector<8x384xf32> to vector<8x128xf32>
    %234 = vector.extract_strided_slice %232 {offsets = [0, 0], sizes = [8, 128], strides = [1, 1]} : vector<8x384xf32> to vector<8x128xf32>
    %235 = arith.addf %233, %234 : vector<8x128xf32>
    %236 = arith.negf %235 : vector<8x128xf32>
    %237 = math.exp %236 : vector<8x128xf32>
    %cst_82 = arith.constant 1.000000e+00 : f32
    %238 = vector.broadcast %cst_82 : f32 to vector<8x128xf32>
    %239 = arith.addf %238, %237 : vector<8x128xf32>
    %240 = arith.divf %238, %239 : vector<8x128xf32>
    %241 = vector.extract_strided_slice %228 {offsets = [0, 128], sizes = [8, 128], strides = [1, 1]} : vector<8x384xf32> to vector<8x128xf32>
    %242 = vector.extract_strided_slice %232 {offsets = [0, 128], sizes = [8, 128], strides = [1, 1]} : vector<8x384xf32> to vector<8x128xf32>
    %243 = arith.addf %241, %242 : vector<8x128xf32>
    %244 = arith.negf %243 : vector<8x128xf32>
    %245 = math.exp %244 : vector<8x128xf32>
    %cst_83 = arith.constant 1.000000e+00 : f32
    %246 = vector.broadcast %cst_83 : f32 to vector<8x128xf32>
    %247 = arith.addf %246, %245 : vector<8x128xf32>
    %248 = arith.divf %246, %247 : vector<8x128xf32>
    %249 = vector.extract_strided_slice %228 {offsets = [0, 256], sizes = [8, 128], strides = [1, 1]} : vector<8x384xf32> to vector<8x128xf32>
    %250 = vector.extract_strided_slice %232 {offsets = [0, 256], sizes = [8, 128], strides = [1, 1]} : vector<8x384xf32> to vector<8x128xf32>
    %251 = arith.mulf %240, %250 : vector<8x128xf32>
    %252 = arith.addf %249, %251 : vector<8x128xf32>
    %253 = math.tanh %252 : vector<8x128xf32>
    %cst_84 = arith.constant 1.000000e+00 : f32
    %254 = vector.broadcast %cst_84 : f32 to vector<8x128xf32>
    %255 = arith.subf %254, %248 : vector<8x128xf32>
    %256 = arith.mulf %255, %253 : vector<8x128xf32>
    %257 = arith.mulf %248, %187 : vector<8x128xf32>
    %258 = arith.addf %256, %257 : vector<8x128xf32>
    %c0_85 = arith.constant 0 : index
    %c0_86 = arith.constant 0 : index
    %259 = vector.load %arg7[%c0_85, %c0_86] : memref<128x384xf32, #tpu.memory_space<vmem>>, vector<128x384xf32>
    %cst_87 = arith.constant dense<0.000000e+00> : vector<8x384xf32>
    %260 = tpu.matmul %258, %259, %cst_87 {dimension_numbers = #tpu.dot_dimension_numbers<[1], [0], [0], [1], [0, 0, 1, 1], [], []>} : vector<8x128xf32>, vector<128x384xf32>, vector<8x384xf32> -> vector<8x384xf32>
    %261 = vector.broadcast %5 : vector<1x384xf32> to vector<8x384xf32>
    %262 = arith.addf %260, %261 : vector<8x384xf32>
    %c0_88 = arith.constant 0 : index
    %c0_89 = arith.constant 0 : index
    %263 = vector.load %arg8[%c0_88, %c0_89] : memref<128x384xf32, #tpu.memory_space<vmem>>, vector<128x384xf32>
    %cst_90 = arith.constant dense<0.000000e+00> : vector<8x384xf32>
    %264 = tpu.matmul %221, %263, %cst_90 {dimension_numbers = #tpu.dot_dimension_numbers<[1], [0], [0], [1], [0, 0, 1, 1], [], []>} : vector<8x128xf32>, vector<128x384xf32>, vector<8x384xf32> -> vector<8x384xf32>
    %265 = vector.broadcast %6 : vector<1x384xf32> to vector<8x384xf32>
    %266 = arith.addf %264, %265 : vector<8x384xf32>
    %267 = vector.extract_strided_slice %262 {offsets = [0, 0], sizes = [8, 128], strides = [1, 1]} : vector<8x384xf32> to vector<8x128xf32>
    %268 = vector.extract_strided_slice %266 {offsets = [0, 0], sizes = [8, 128], strides = [1, 1]} : vector<8x384xf32> to vector<8x128xf32>
    %269 = arith.addf %267, %268 : vector<8x128xf32>
    %270 = arith.negf %269 : vector<8x128xf32>
    %271 = math.exp %270 : vector<8x128xf32>
    %cst_91 = arith.constant 1.000000e+00 : f32
    %272 = vector.broadcast %cst_91 : f32 to vector<8x128xf32>
    %273 = arith.addf %272, %271 : vector<8x128xf32>
    %274 = arith.divf %272, %273 : vector<8x128xf32>
    %275 = vector.extract_strided_slice %262 {offsets = [0, 128], sizes = [8, 128], strides = [1, 1]} : vector<8x384xf32> to vector<8x128xf32>
    %276 = vector.extract_strided_slice %266 {offsets = [0, 128], sizes = [8, 128], strides = [1, 1]} : vector<8x384xf32> to vector<8x128xf32>
    %277 = arith.addf %275, %276 : vector<8x128xf32>
    %278 = arith.negf %277 : vector<8x128xf32>
    %279 = math.exp %278 : vector<8x128xf32>
    %cst_92 = arith.constant 1.000000e+00 : f32
    %280 = vector.broadcast %cst_92 : f32 to vector<8x128xf32>
    %281 = arith.addf %280, %279 : vector<8x128xf32>
    %282 = arith.divf %280, %281 : vector<8x128xf32>
    %283 = vector.extract_strided_slice %262 {offsets = [0, 256], sizes = [8, 128], strides = [1, 1]} : vector<8x384xf32> to vector<8x128xf32>
    %284 = vector.extract_strided_slice %266 {offsets = [0, 256], sizes = [8, 128], strides = [1, 1]} : vector<8x384xf32> to vector<8x128xf32>
    %285 = arith.mulf %274, %284 : vector<8x128xf32>
    %286 = arith.addf %283, %285 : vector<8x128xf32>
    %287 = math.tanh %286 : vector<8x128xf32>
    %cst_93 = arith.constant 1.000000e+00 : f32
    %288 = vector.broadcast %cst_93 : f32 to vector<8x128xf32>
    %289 = arith.subf %288, %282 : vector<8x128xf32>
    %290 = arith.mulf %289, %287 : vector<8x128xf32>
    %291 = arith.mulf %282, %221 : vector<8x128xf32>
    %292 = arith.addf %290, %291 : vector<8x128xf32>
    %293 = arith.addf %222, %292 : vector<8x128xf32>
    %c4 = arith.constant 4 : index
    %c0_94 = arith.constant 0 : index
    %c0_95 = arith.constant 0 : index
    %294 = vector.load %arg2[%c4, %c0_94, %c0_95] : memref<8x8x128xf32, #tpu.memory_space<vmem>>, vector<1x8x128xf32>
    %295 = vector.shape_cast %294 : vector<1x8x128xf32> to vector<8x128xf32>
    %c0_96 = arith.constant 0 : index
    %c0_97 = arith.constant 0 : index
    %296 = vector.load %arg3[%c0_96, %c0_97] : memref<128x384xf32, #tpu.memory_space<vmem>>, vector<128x384xf32>
    %cst_98 = arith.constant dense<0.000000e+00> : vector<8x384xf32>
    %297 = tpu.matmul %295, %296, %cst_98 {dimension_numbers = #tpu.dot_dimension_numbers<[1], [0], [0], [1], [0, 0, 1, 1], [], []>} : vector<8x128xf32>, vector<128x384xf32>, vector<8x384xf32> -> vector<8x384xf32>
    %298 = vector.broadcast %3 : vector<1x384xf32> to vector<8x384xf32>
    %299 = arith.addf %297, %298 : vector<8x384xf32>
    %c0_99 = arith.constant 0 : index
    %c0_100 = arith.constant 0 : index
    %300 = vector.load %arg4[%c0_99, %c0_100] : memref<128x384xf32, #tpu.memory_space<vmem>>, vector<128x384xf32>
    %cst_101 = arith.constant dense<0.000000e+00> : vector<8x384xf32>
    %301 = tpu.matmul %258, %300, %cst_101 {dimension_numbers = #tpu.dot_dimension_numbers<[1], [0], [0], [1], [0, 0, 1, 1], [], []>} : vector<8x128xf32>, vector<128x384xf32>, vector<8x384xf32> -> vector<8x384xf32>
    %302 = vector.broadcast %4 : vector<1x384xf32> to vector<8x384xf32>
    %303 = arith.addf %301, %302 : vector<8x384xf32>
    %304 = vector.extract_strided_slice %299 {offsets = [0, 0], sizes = [8, 128], strides = [1, 1]} : vector<8x384xf32> to vector<8x128xf32>
    %305 = vector.extract_strided_slice %303 {offsets = [0, 0], sizes = [8, 128], strides = [1, 1]} : vector<8x384xf32> to vector<8x128xf32>
    %306 = arith.addf %304, %305 : vector<8x128xf32>
    %307 = arith.negf %306 : vector<8x128xf32>
    %308 = math.exp %307 : vector<8x128xf32>
    %cst_102 = arith.constant 1.000000e+00 : f32
    %309 = vector.broadcast %cst_102 : f32 to vector<8x128xf32>
    %310 = arith.addf %309, %308 : vector<8x128xf32>
    %311 = arith.divf %309, %310 : vector<8x128xf32>
    %312 = vector.extract_strided_slice %299 {offsets = [0, 128], sizes = [8, 128], strides = [1, 1]} : vector<8x384xf32> to vector<8x128xf32>
    %313 = vector.extract_strided_slice %303 {offsets = [0, 128], sizes = [8, 128], strides = [1, 1]} : vector<8x384xf32> to vector<8x128xf32>
    %314 = arith.addf %312, %313 : vector<8x128xf32>
    %315 = arith.negf %314 : vector<8x128xf32>
    %316 = math.exp %315 : vector<8x128xf32>
    %cst_103 = arith.constant 1.000000e+00 : f32
    %317 = vector.broadcast %cst_103 : f32 to vector<8x128xf32>
    %318 = arith.addf %317, %316 : vector<8x128xf32>
    %319 = arith.divf %317, %318 : vector<8x128xf32>
    %320 = vector.extract_strided_slice %299 {offsets = [0, 256], sizes = [8, 128], strides = [1, 1]} : vector<8x384xf32> to vector<8x128xf32>
    %321 = vector.extract_strided_slice %303 {offsets = [0, 256], sizes = [8, 128], strides = [1, 1]} : vector<8x384xf32> to vector<8x128xf32>
    %322 = arith.mulf %311, %321 : vector<8x128xf32>
    %323 = arith.addf %320, %322 : vector<8x128xf32>
    %324 = math.tanh %323 : vector<8x128xf32>
    %cst_104 = arith.constant 1.000000e+00 : f32
    %325 = vector.broadcast %cst_104 : f32 to vector<8x128xf32>
    %326 = arith.subf %325, %319 : vector<8x128xf32>
    %327 = arith.mulf %326, %324 : vector<8x128xf32>
    %328 = arith.mulf %319, %258 : vector<8x128xf32>
    %329 = arith.addf %327, %328 : vector<8x128xf32>
    %c0_105 = arith.constant 0 : index
    %c0_106 = arith.constant 0 : index
    %330 = vector.load %arg7[%c0_105, %c0_106] : memref<128x384xf32, #tpu.memory_space<vmem>>, vector<128x384xf32>
    %cst_107 = arith.constant dense<0.000000e+00> : vector<8x384xf32>
    %331 = tpu.matmul %329, %330, %cst_107 {dimension_numbers = #tpu.dot_dimension_numbers<[1], [0], [0], [1], [0, 0, 1, 1], [], []>} : vector<8x128xf32>, vector<128x384xf32>, vector<8x384xf32> -> vector<8x384xf32>
    %332 = vector.broadcast %5 : vector<1x384xf32> to vector<8x384xf32>
    %333 = arith.addf %331, %332 : vector<8x384xf32>
    %c0_108 = arith.constant 0 : index
    %c0_109 = arith.constant 0 : index
    %334 = vector.load %arg8[%c0_108, %c0_109] : memref<128x384xf32, #tpu.memory_space<vmem>>, vector<128x384xf32>
    %cst_110 = arith.constant dense<0.000000e+00> : vector<8x384xf32>
    %335 = tpu.matmul %292, %334, %cst_110 {dimension_numbers = #tpu.dot_dimension_numbers<[1], [0], [0], [1], [0, 0, 1, 1], [], []>} : vector<8x128xf32>, vector<128x384xf32>, vector<8x384xf32> -> vector<8x384xf32>
    %336 = vector.broadcast %6 : vector<1x384xf32> to vector<8x384xf32>
    %337 = arith.addf %335, %336 : vector<8x384xf32>
    %338 = vector.extract_strided_slice %333 {offsets = [0, 0], sizes = [8, 128], strides = [1, 1]} : vector<8x384xf32> to vector<8x128xf32>
    %339 = vector.extract_strided_slice %337 {offsets = [0, 0], sizes = [8, 128], strides = [1, 1]} : vector<8x384xf32> to vector<8x128xf32>
    %340 = arith.addf %338, %339 : vector<8x128xf32>
    %341 = arith.negf %340 : vector<8x128xf32>
    %342 = math.exp %341 : vector<8x128xf32>
    %cst_111 = arith.constant 1.000000e+00 : f32
    %343 = vector.broadcast %cst_111 : f32 to vector<8x128xf32>
    %344 = arith.addf %343, %342 : vector<8x128xf32>
    %345 = arith.divf %343, %344 : vector<8x128xf32>
    %346 = vector.extract_strided_slice %333 {offsets = [0, 128], sizes = [8, 128], strides = [1, 1]} : vector<8x384xf32> to vector<8x128xf32>
    %347 = vector.extract_strided_slice %337 {offsets = [0, 128], sizes = [8, 128], strides = [1, 1]} : vector<8x384xf32> to vector<8x128xf32>
    %348 = arith.addf %346, %347 : vector<8x128xf32>
    %349 = arith.negf %348 : vector<8x128xf32>
    %350 = math.exp %349 : vector<8x128xf32>
    %cst_112 = arith.constant 1.000000e+00 : f32
    %351 = vector.broadcast %cst_112 : f32 to vector<8x128xf32>
    %352 = arith.addf %351, %350 : vector<8x128xf32>
    %353 = arith.divf %351, %352 : vector<8x128xf32>
    %354 = vector.extract_strided_slice %333 {offsets = [0, 256], sizes = [8, 128], strides = [1, 1]} : vector<8x384xf32> to vector<8x128xf32>
    %355 = vector.extract_strided_slice %337 {offsets = [0, 256], sizes = [8, 128], strides = [1, 1]} : vector<8x384xf32> to vector<8x128xf32>
    %356 = arith.mulf %345, %355 : vector<8x128xf32>
    %357 = arith.addf %354, %356 : vector<8x128xf32>
    %358 = math.tanh %357 : vector<8x128xf32>
    %cst_113 = arith.constant 1.000000e+00 : f32
    %359 = vector.broadcast %cst_113 : f32 to vector<8x128xf32>
    %360 = arith.subf %359, %353 : vector<8x128xf32>
    %361 = arith.mulf %360, %358 : vector<8x128xf32>
    %362 = arith.mulf %353, %292 : vector<8x128xf32>
    %363 = arith.addf %361, %362 : vector<8x128xf32>
    %364 = arith.addf %293, %363 : vector<8x128xf32>
    %c5 = arith.constant 5 : index
    %c0_114 = arith.constant 0 : index
    %c0_115 = arith.constant 0 : index
    %365 = vector.load %arg2[%c5, %c0_114, %c0_115] : memref<8x8x128xf32, #tpu.memory_space<vmem>>, vector<1x8x128xf32>
    %366 = vector.shape_cast %365 : vector<1x8x128xf32> to vector<8x128xf32>
    %c0_116 = arith.constant 0 : index
    %c0_117 = arith.constant 0 : index
    %367 = vector.load %arg3[%c0_116, %c0_117] : memref<128x384xf32, #tpu.memory_space<vmem>>, vector<128x384xf32>
    %cst_118 = arith.constant dense<0.000000e+00> : vector<8x384xf32>
    %368 = tpu.matmul %366, %367, %cst_118 {dimension_numbers = #tpu.dot_dimension_numbers<[1], [0], [0], [1], [0, 0, 1, 1], [], []>} : vector<8x128xf32>, vector<128x384xf32>, vector<8x384xf32> -> vector<8x384xf32>
    %369 = vector.broadcast %3 : vector<1x384xf32> to vector<8x384xf32>
    %370 = arith.addf %368, %369 : vector<8x384xf32>
    %c0_119 = arith.constant 0 : index
    %c0_120 = arith.constant 0 : index
    %371 = vector.load %arg4[%c0_119, %c0_120] : memref<128x384xf32, #tpu.memory_space<vmem>>, vector<128x384xf32>
    %cst_121 = arith.constant dense<0.000000e+00> : vector<8x384xf32>
    %372 = tpu.matmul %329, %371, %cst_121 {dimension_numbers = #tpu.dot_dimension_numbers<[1], [0], [0], [1], [0, 0, 1, 1], [], []>} : vector<8x128xf32>, vector<128x384xf32>, vector<8x384xf32> -> vector<8x384xf32>
    %373 = vector.broadcast %4 : vector<1x384xf32> to vector<8x384xf32>
    %374 = arith.addf %372, %373 : vector<8x384xf32>
    %375 = vector.extract_strided_slice %370 {offsets = [0, 0], sizes = [8, 128], strides = [1, 1]} : vector<8x384xf32> to vector<8x128xf32>
    %376 = vector.extract_strided_slice %374 {offsets = [0, 0], sizes = [8, 128], strides = [1, 1]} : vector<8x384xf32> to vector<8x128xf32>
    %377 = arith.addf %375, %376 : vector<8x128xf32>
    %378 = arith.negf %377 : vector<8x128xf32>
    %379 = math.exp %378 : vector<8x128xf32>
    %cst_122 = arith.constant 1.000000e+00 : f32
    %380 = vector.broadcast %cst_122 : f32 to vector<8x128xf32>
    %381 = arith.addf %380, %379 : vector<8x128xf32>
    %382 = arith.divf %380, %381 : vector<8x128xf32>
    %383 = vector.extract_strided_slice %370 {offsets = [0, 128], sizes = [8, 128], strides = [1, 1]} : vector<8x384xf32> to vector<8x128xf32>
    %384 = vector.extract_strided_slice %374 {offsets = [0, 128], sizes = [8, 128], strides = [1, 1]} : vector<8x384xf32> to vector<8x128xf32>
    %385 = arith.addf %383, %384 : vector<8x128xf32>
    %386 = arith.negf %385 : vector<8x128xf32>
    %387 = math.exp %386 : vector<8x128xf32>
    %cst_123 = arith.constant 1.000000e+00 : f32
    %388 = vector.broadcast %cst_123 : f32 to vector<8x128xf32>
    %389 = arith.addf %388, %387 : vector<8x128xf32>
    %390 = arith.divf %388, %389 : vector<8x128xf32>
    %391 = vector.extract_strided_slice %370 {offsets = [0, 256], sizes = [8, 128], strides = [1, 1]} : vector<8x384xf32> to vector<8x128xf32>
    %392 = vector.extract_strided_slice %374 {offsets = [0, 256], sizes = [8, 128], strides = [1, 1]} : vector<8x384xf32> to vector<8x128xf32>
    %393 = arith.mulf %382, %392 : vector<8x128xf32>
    %394 = arith.addf %391, %393 : vector<8x128xf32>
    %395 = math.tanh %394 : vector<8x128xf32>
    %cst_124 = arith.constant 1.000000e+00 : f32
    %396 = vector.broadcast %cst_124 : f32 to vector<8x128xf32>
    %397 = arith.subf %396, %390 : vector<8x128xf32>
    %398 = arith.mulf %397, %395 : vector<8x128xf32>
    %399 = arith.mulf %390, %329 : vector<8x128xf32>
    %400 = arith.addf %398, %399 : vector<8x128xf32>
    %c0_125 = arith.constant 0 : index
    %c0_126 = arith.constant 0 : index
    %401 = vector.load %arg7[%c0_125, %c0_126] : memref<128x384xf32, #tpu.memory_space<vmem>>, vector<128x384xf32>
    %cst_127 = arith.constant dense<0.000000e+00> : vector<8x384xf32>
    %402 = tpu.matmul %400, %401, %cst_127 {dimension_numbers = #tpu.dot_dimension_numbers<[1], [0], [0], [1], [0, 0, 1, 1], [], []>} : vector<8x128xf32>, vector<128x384xf32>, vector<8x384xf32> -> vector<8x384xf32>
    %403 = vector.broadcast %5 : vector<1x384xf32> to vector<8x384xf32>
    %404 = arith.addf %402, %403 : vector<8x384xf32>
    %c0_128 = arith.constant 0 : index
    %c0_129 = arith.constant 0 : index
    %405 = vector.load %arg8[%c0_128, %c0_129] : memref<128x384xf32, #tpu.memory_space<vmem>>, vector<128x384xf32>
    %cst_130 = arith.constant dense<0.000000e+00> : vector<8x384xf32>
    %406 = tpu.matmul %363, %405, %cst_130 {dimension_numbers = #tpu.dot_dimension_numbers<[1], [0], [0], [1], [0, 0, 1, 1], [], []>} : vector<8x128xf32>, vector<128x384xf32>, vector<8x384xf32> -> vector<8x384xf32>
    %407 = vector.broadcast %6 : vector<1x384xf32> to vector<8x384xf32>
    %408 = arith.addf %406, %407 : vector<8x384xf32>
    %409 = vector.extract_strided_slice %404 {offsets = [0, 0], sizes = [8, 128], strides = [1, 1]} : vector<8x384xf32> to vector<8x128xf32>
    %410 = vector.extract_strided_slice %408 {offsets = [0, 0], sizes = [8, 128], strides = [1, 1]} : vector<8x384xf32> to vector<8x128xf32>
    %411 = arith.addf %409, %410 : vector<8x128xf32>
    %412 = arith.negf %411 : vector<8x128xf32>
    %413 = math.exp %412 : vector<8x128xf32>
    %cst_131 = arith.constant 1.000000e+00 : f32
    %414 = vector.broadcast %cst_131 : f32 to vector<8x128xf32>
    %415 = arith.addf %414, %413 : vector<8x128xf32>
    %416 = arith.divf %414, %415 : vector<8x128xf32>
    %417 = vector.extract_strided_slice %404 {offsets = [0, 128], sizes = [8, 128], strides = [1, 1]} : vector<8x384xf32> to vector<8x128xf32>
    %418 = vector.extract_strided_slice %408 {offsets = [0, 128], sizes = [8, 128], strides = [1, 1]} : vector<8x384xf32> to vector<8x128xf32>
    %419 = arith.addf %417, %418 : vector<8x128xf32>
    %420 = arith.negf %419 : vector<8x128xf32>
    %421 = math.exp %420 : vector<8x128xf32>
    %cst_132 = arith.constant 1.000000e+00 : f32
    %422 = vector.broadcast %cst_132 : f32 to vector<8x128xf32>
    %423 = arith.addf %422, %421 : vector<8x128xf32>
    %424 = arith.divf %422, %423 : vector<8x128xf32>
    %425 = vector.extract_strided_slice %404 {offsets = [0, 256], sizes = [8, 128], strides = [1, 1]} : vector<8x384xf32> to vector<8x128xf32>
    %426 = vector.extract_strided_slice %408 {offsets = [0, 256], sizes = [8, 128], strides = [1, 1]} : vector<8x384xf32> to vector<8x128xf32>
    %427 = arith.mulf %416, %426 : vector<8x128xf32>
    %428 = arith.addf %425, %427 : vector<8x128xf32>
    %429 = math.tanh %428 : vector<8x128xf32>
    %cst_133 = arith.constant 1.000000e+00 : f32
    %430 = vector.broadcast %cst_133 : f32 to vector<8x128xf32>
    %431 = arith.subf %430, %424 : vector<8x128xf32>
    %432 = arith.mulf %431, %429 : vector<8x128xf32>
    %433 = arith.mulf %424, %363 : vector<8x128xf32>
    %434 = arith.addf %432, %433 : vector<8x128xf32>
    %435 = arith.addf %364, %434 : vector<8x128xf32>
    %c6 = arith.constant 6 : index
    %c0_134 = arith.constant 0 : index
    %c0_135 = arith.constant 0 : index
    %436 = vector.load %arg2[%c6, %c0_134, %c0_135] : memref<8x8x128xf32, #tpu.memory_space<vmem>>, vector<1x8x128xf32>
    %437 = vector.shape_cast %436 : vector<1x8x128xf32> to vector<8x128xf32>
    %c0_136 = arith.constant 0 : index
    %c0_137 = arith.constant 0 : index
    %438 = vector.load %arg3[%c0_136, %c0_137] : memref<128x384xf32, #tpu.memory_space<vmem>>, vector<128x384xf32>
    %cst_138 = arith.constant dense<0.000000e+00> : vector<8x384xf32>
    %439 = tpu.matmul %437, %438, %cst_138 {dimension_numbers = #tpu.dot_dimension_numbers<[1], [0], [0], [1], [0, 0, 1, 1], [], []>} : vector<8x128xf32>, vector<128x384xf32>, vector<8x384xf32> -> vector<8x384xf32>
    %440 = vector.broadcast %3 : vector<1x384xf32> to vector<8x384xf32>
    %441 = arith.addf %439, %440 : vector<8x384xf32>
    %c0_139 = arith.constant 0 : index
    %c0_140 = arith.constant 0 : index
    %442 = vector.load %arg4[%c0_139, %c0_140] : memref<128x384xf32, #tpu.memory_space<vmem>>, vector<128x384xf32>
    %cst_141 = arith.constant dense<0.000000e+00> : vector<8x384xf32>
    %443 = tpu.matmul %400, %442, %cst_141 {dimension_numbers = #tpu.dot_dimension_numbers<[1], [0], [0], [1], [0, 0, 1, 1], [], []>} : vector<8x128xf32>, vector<128x384xf32>, vector<8x384xf32> -> vector<8x384xf32>
    %444 = vector.broadcast %4 : vector<1x384xf32> to vector<8x384xf32>
    %445 = arith.addf %443, %444 : vector<8x384xf32>
    %446 = vector.extract_strided_slice %441 {offsets = [0, 0], sizes = [8, 128], strides = [1, 1]} : vector<8x384xf32> to vector<8x128xf32>
    %447 = vector.extract_strided_slice %445 {offsets = [0, 0], sizes = [8, 128], strides = [1, 1]} : vector<8x384xf32> to vector<8x128xf32>
    %448 = arith.addf %446, %447 : vector<8x128xf32>
    %449 = arith.negf %448 : vector<8x128xf32>
    %450 = math.exp %449 : vector<8x128xf32>
    %cst_142 = arith.constant 1.000000e+00 : f32
    %451 = vector.broadcast %cst_142 : f32 to vector<8x128xf32>
    %452 = arith.addf %451, %450 : vector<8x128xf32>
    %453 = arith.divf %451, %452 : vector<8x128xf32>
    %454 = vector.extract_strided_slice %441 {offsets = [0, 128], sizes = [8, 128], strides = [1, 1]} : vector<8x384xf32> to vector<8x128xf32>
    %455 = vector.extract_strided_slice %445 {offsets = [0, 128], sizes = [8, 128], strides = [1, 1]} : vector<8x384xf32> to vector<8x128xf32>
    %456 = arith.addf %454, %455 : vector<8x128xf32>
    %457 = arith.negf %456 : vector<8x128xf32>
    %458 = math.exp %457 : vector<8x128xf32>
    %cst_143 = arith.constant 1.000000e+00 : f32
    %459 = vector.broadcast %cst_143 : f32 to vector<8x128xf32>
    %460 = arith.addf %459, %458 : vector<8x128xf32>
    %461 = arith.divf %459, %460 : vector<8x128xf32>
    %462 = vector.extract_strided_slice %441 {offsets = [0, 256], sizes = [8, 128], strides = [1, 1]} : vector<8x384xf32> to vector<8x128xf32>
    %463 = vector.extract_strided_slice %445 {offsets = [0, 256], sizes = [8, 128], strides = [1, 1]} : vector<8x384xf32> to vector<8x128xf32>
    %464 = arith.mulf %453, %463 : vector<8x128xf32>
    %465 = arith.addf %462, %464 : vector<8x128xf32>
    %466 = math.tanh %465 : vector<8x128xf32>
    %cst_144 = arith.constant 1.000000e+00 : f32
    %467 = vector.broadcast %cst_144 : f32 to vector<8x128xf32>
    %468 = arith.subf %467, %461 : vector<8x128xf32>
    %469 = arith.mulf %468, %466 : vector<8x128xf32>
    %470 = arith.mulf %461, %400 : vector<8x128xf32>
    %471 = arith.addf %469, %470 : vector<8x128xf32>
    %c0_145 = arith.constant 0 : index
    %c0_146 = arith.constant 0 : index
    %472 = vector.load %arg7[%c0_145, %c0_146] : memref<128x384xf32, #tpu.memory_space<vmem>>, vector<128x384xf32>
    %cst_147 = arith.constant dense<0.000000e+00> : vector<8x384xf32>
    %473 = tpu.matmul %471, %472, %cst_147 {dimension_numbers = #tpu.dot_dimension_numbers<[1], [0], [0], [1], [0, 0, 1, 1], [], []>} : vector<8x128xf32>, vector<128x384xf32>, vector<8x384xf32> -> vector<8x384xf32>
    %474 = vector.broadcast %5 : vector<1x384xf32> to vector<8x384xf32>
    %475 = arith.addf %473, %474 : vector<8x384xf32>
    %c0_148 = arith.constant 0 : index
    %c0_149 = arith.constant 0 : index
    %476 = vector.load %arg8[%c0_148, %c0_149] : memref<128x384xf32, #tpu.memory_space<vmem>>, vector<128x384xf32>
    %cst_150 = arith.constant dense<0.000000e+00> : vector<8x384xf32>
    %477 = tpu.matmul %434, %476, %cst_150 {dimension_numbers = #tpu.dot_dimension_numbers<[1], [0], [0], [1], [0, 0, 1, 1], [], []>} : vector<8x128xf32>, vector<128x384xf32>, vector<8x384xf32> -> vector<8x384xf32>
    %478 = vector.broadcast %6 : vector<1x384xf32> to vector<8x384xf32>
    %479 = arith.addf %477, %478 : vector<8x384xf32>
    %480 = vector.extract_strided_slice %475 {offsets = [0, 0], sizes = [8, 128], strides = [1, 1]} : vector<8x384xf32> to vector<8x128xf32>
    %481 = vector.extract_strided_slice %479 {offsets = [0, 0], sizes = [8, 128], strides = [1, 1]} : vector<8x384xf32> to vector<8x128xf32>
    %482 = arith.addf %480, %481 : vector<8x128xf32>
    %483 = arith.negf %482 : vector<8x128xf32>
    %484 = math.exp %483 : vector<8x128xf32>
    %cst_151 = arith.constant 1.000000e+00 : f32
    %485 = vector.broadcast %cst_151 : f32 to vector<8x128xf32>
    %486 = arith.addf %485, %484 : vector<8x128xf32>
    %487 = arith.divf %485, %486 : vector<8x128xf32>
    %488 = vector.extract_strided_slice %475 {offsets = [0, 128], sizes = [8, 128], strides = [1, 1]} : vector<8x384xf32> to vector<8x128xf32>
    %489 = vector.extract_strided_slice %479 {offsets = [0, 128], sizes = [8, 128], strides = [1, 1]} : vector<8x384xf32> to vector<8x128xf32>
    %490 = arith.addf %488, %489 : vector<8x128xf32>
    %491 = arith.negf %490 : vector<8x128xf32>
    %492 = math.exp %491 : vector<8x128xf32>
    %cst_152 = arith.constant 1.000000e+00 : f32
    %493 = vector.broadcast %cst_152 : f32 to vector<8x128xf32>
    %494 = arith.addf %493, %492 : vector<8x128xf32>
    %495 = arith.divf %493, %494 : vector<8x128xf32>
    %496 = vector.extract_strided_slice %475 {offsets = [0, 256], sizes = [8, 128], strides = [1, 1]} : vector<8x384xf32> to vector<8x128xf32>
    %497 = vector.extract_strided_slice %479 {offsets = [0, 256], sizes = [8, 128], strides = [1, 1]} : vector<8x384xf32> to vector<8x128xf32>
    %498 = arith.mulf %487, %497 : vector<8x128xf32>
    %499 = arith.addf %496, %498 : vector<8x128xf32>
    %500 = math.tanh %499 : vector<8x128xf32>
    %cst_153 = arith.constant 1.000000e+00 : f32
    %501 = vector.broadcast %cst_153 : f32 to vector<8x128xf32>
    %502 = arith.subf %501, %495 : vector<8x128xf32>
    %503 = arith.mulf %502, %500 : vector<8x128xf32>
    %504 = arith.mulf %495, %434 : vector<8x128xf32>
    %505 = arith.addf %503, %504 : vector<8x128xf32>
    %506 = arith.addf %435, %505 : vector<8x128xf32>
    %c7 = arith.constant 7 : index
    %c0_154 = arith.constant 0 : index
    %c0_155 = arith.constant 0 : index
    %507 = vector.load %arg2[%c7, %c0_154, %c0_155] : memref<8x8x128xf32, #tpu.memory_space<vmem>>, vector<1x8x128xf32>
    %508 = vector.shape_cast %507 : vector<1x8x128xf32> to vector<8x128xf32>
    %c0_156 = arith.constant 0 : index
    %c0_157 = arith.constant 0 : index
    %509 = vector.load %arg3[%c0_156, %c0_157] : memref<128x384xf32, #tpu.memory_space<vmem>>, vector<128x384xf32>
    %cst_158 = arith.constant dense<0.000000e+00> : vector<8x384xf32>
    %510 = tpu.matmul %508, %509, %cst_158 {dimension_numbers = #tpu.dot_dimension_numbers<[1], [0], [0], [1], [0, 0, 1, 1], [], []>} : vector<8x128xf32>, vector<128x384xf32>, vector<8x384xf32> -> vector<8x384xf32>
    %511 = vector.broadcast %3 : vector<1x384xf32> to vector<8x384xf32>
    %512 = arith.addf %510, %511 : vector<8x384xf32>
    %c0_159 = arith.constant 0 : index
    %c0_160 = arith.constant 0 : index
    %513 = vector.load %arg4[%c0_159, %c0_160] : memref<128x384xf32, #tpu.memory_space<vmem>>, vector<128x384xf32>
    %cst_161 = arith.constant dense<0.000000e+00> : vector<8x384xf32>
    %514 = tpu.matmul %471, %513, %cst_161 {dimension_numbers = #tpu.dot_dimension_numbers<[1], [0], [0], [1], [0, 0, 1, 1], [], []>} : vector<8x128xf32>, vector<128x384xf32>, vector<8x384xf32> -> vector<8x384xf32>
    %515 = vector.broadcast %4 : vector<1x384xf32> to vector<8x384xf32>
    %516 = arith.addf %514, %515 : vector<8x384xf32>
    %517 = vector.extract_strided_slice %512 {offsets = [0, 0], sizes = [8, 128], strides = [1, 1]} : vector<8x384xf32> to vector<8x128xf32>
    %518 = vector.extract_strided_slice %516 {offsets = [0, 0], sizes = [8, 128], strides = [1, 1]} : vector<8x384xf32> to vector<8x128xf32>
    %519 = arith.addf %517, %518 : vector<8x128xf32>
    %520 = arith.negf %519 : vector<8x128xf32>
    %521 = math.exp %520 : vector<8x128xf32>
    %cst_162 = arith.constant 1.000000e+00 : f32
    %522 = vector.broadcast %cst_162 : f32 to vector<8x128xf32>
    %523 = arith.addf %522, %521 : vector<8x128xf32>
    %524 = arith.divf %522, %523 : vector<8x128xf32>
    %525 = vector.extract_strided_slice %512 {offsets = [0, 128], sizes = [8, 128], strides = [1, 1]} : vector<8x384xf32> to vector<8x128xf32>
    %526 = vector.extract_strided_slice %516 {offsets = [0, 128], sizes = [8, 128], strides = [1, 1]} : vector<8x384xf32> to vector<8x128xf32>
    %527 = arith.addf %525, %526 : vector<8x128xf32>
    %528 = arith.negf %527 : vector<8x128xf32>
    %529 = math.exp %528 : vector<8x128xf32>
    %cst_163 = arith.constant 1.000000e+00 : f32
    %530 = vector.broadcast %cst_163 : f32 to vector<8x128xf32>
    %531 = arith.addf %530, %529 : vector<8x128xf32>
    %532 = arith.divf %530, %531 : vector<8x128xf32>
    %533 = vector.extract_strided_slice %512 {offsets = [0, 256], sizes = [8, 128], strides = [1, 1]} : vector<8x384xf32> to vector<8x128xf32>
    %534 = vector.extract_strided_slice %516 {offsets = [0, 256], sizes = [8, 128], strides = [1, 1]} : vector<8x384xf32> to vector<8x128xf32>
    %535 = arith.mulf %524, %534 : vector<8x128xf32>
    %536 = arith.addf %533, %535 : vector<8x128xf32>
    %537 = math.tanh %536 : vector<8x128xf32>
    %cst_164 = arith.constant 1.000000e+00 : f32
    %538 = vector.broadcast %cst_164 : f32 to vector<8x128xf32>
    %539 = arith.subf %538, %532 : vector<8x128xf32>
    %540 = arith.mulf %539, %537 : vector<8x128xf32>
    %541 = arith.mulf %532, %471 : vector<8x128xf32>
    %542 = arith.addf %540, %541 : vector<8x128xf32>
    %c0_165 = arith.constant 0 : index
    %c0_166 = arith.constant 0 : index
    %543 = vector.load %arg7[%c0_165, %c0_166] : memref<128x384xf32, #tpu.memory_space<vmem>>, vector<128x384xf32>
    %cst_167 = arith.constant dense<0.000000e+00> : vector<8x384xf32>
    %544 = tpu.matmul %542, %543, %cst_167 {dimension_numbers = #tpu.dot_dimension_numbers<[1], [0], [0], [1], [0, 0, 1, 1], [], []>} : vector<8x128xf32>, vector<128x384xf32>, vector<8x384xf32> -> vector<8x384xf32>
    %545 = vector.broadcast %5 : vector<1x384xf32> to vector<8x384xf32>
    %546 = arith.addf %544, %545 : vector<8x384xf32>
    %c0_168 = arith.constant 0 : index
    %c0_169 = arith.constant 0 : index
    %547 = vector.load %arg8[%c0_168, %c0_169] : memref<128x384xf32, #tpu.memory_space<vmem>>, vector<128x384xf32>
    %cst_170 = arith.constant dense<0.000000e+00> : vector<8x384xf32>
    %548 = tpu.matmul %505, %547, %cst_170 {dimension_numbers = #tpu.dot_dimension_numbers<[1], [0], [0], [1], [0, 0, 1, 1], [], []>} : vector<8x128xf32>, vector<128x384xf32>, vector<8x384xf32> -> vector<8x384xf32>
    %549 = vector.broadcast %6 : vector<1x384xf32> to vector<8x384xf32>
    %550 = arith.addf %548, %549 : vector<8x384xf32>
    %551 = vector.extract_strided_slice %546 {offsets = [0, 0], sizes = [8, 128], strides = [1, 1]} : vector<8x384xf32> to vector<8x128xf32>
    %552 = vector.extract_strided_slice %550 {offsets = [0, 0], sizes = [8, 128], strides = [1, 1]} : vector<8x384xf32> to vector<8x128xf32>
    %553 = arith.addf %551, %552 : vector<8x128xf32>
    %554 = arith.negf %553 : vector<8x128xf32>
    %555 = math.exp %554 : vector<8x128xf32>
    %cst_171 = arith.constant 1.000000e+00 : f32
    %556 = vector.broadcast %cst_171 : f32 to vector<8x128xf32>
    %557 = arith.addf %556, %555 : vector<8x128xf32>
    %558 = arith.divf %556, %557 : vector<8x128xf32>
    %559 = vector.extract_strided_slice %546 {offsets = [0, 128], sizes = [8, 128], strides = [1, 1]} : vector<8x384xf32> to vector<8x128xf32>
    %560 = vector.extract_strided_slice %550 {offsets = [0, 128], sizes = [8, 128], strides = [1, 1]} : vector<8x384xf32> to vector<8x128xf32>
    %561 = arith.addf %559, %560 : vector<8x128xf32>
    %562 = arith.negf %561 : vector<8x128xf32>
    %563 = math.exp %562 : vector<8x128xf32>
    %cst_172 = arith.constant 1.000000e+00 : f32
    %564 = vector.broadcast %cst_172 : f32 to vector<8x128xf32>
    %565 = arith.addf %564, %563 : vector<8x128xf32>
    %566 = arith.divf %564, %565 : vector<8x128xf32>
    %567 = vector.extract_strided_slice %546 {offsets = [0, 256], sizes = [8, 128], strides = [1, 1]} : vector<8x384xf32> to vector<8x128xf32>
    %568 = vector.extract_strided_slice %550 {offsets = [0, 256], sizes = [8, 128], strides = [1, 1]} : vector<8x384xf32> to vector<8x128xf32>
    %569 = arith.mulf %558, %568 : vector<8x128xf32>
    %570 = arith.addf %567, %569 : vector<8x128xf32>
    %571 = math.tanh %570 : vector<8x128xf32>
    %cst_173 = arith.constant 1.000000e+00 : f32
    %572 = vector.broadcast %cst_173 : f32 to vector<8x128xf32>
    %573 = arith.subf %572, %566 : vector<8x128xf32>
    %574 = arith.mulf %573, %571 : vector<8x128xf32>
    %575 = arith.mulf %566, %505 : vector<8x128xf32>
    %576 = arith.addf %574, %575 : vector<8x128xf32>
    %577 = arith.addf %506, %576 : vector<8x128xf32>
    %c0_174 = arith.constant 0 : index
    %c0_175 = arith.constant 0 : index
    %578 = vector.load %arg12[%c0_174, %c0_175] : memref<8x128xf32, #tpu.memory_space<vmem>>, vector<8x128xf32>
    tpu.vector_store %arg12[%c0_174, %c0_175], %542 {strides = array<i32>} : memref<8x128xf32, #tpu.memory_space<vmem>>, vector<8x128xf32>,
    %c0_176 = arith.constant 0 : index
    %c0_177 = arith.constant 0 : index
    %579 = vector.load %arg13[%c0_176, %c0_177] : memref<8x128xf32, #tpu.memory_space<vmem>>, vector<8x128xf32>
    tpu.vector_store %arg13[%c0_176, %c0_177], %576 {strides = array<i32>} : memref<8x128xf32, #tpu.memory_space<vmem>>, vector<8x128xf32>,
    %c0_178 = arith.constant 0 : index
    %c0_179 = arith.constant 0 : index
    %580 = vector.load %arg14[%c0_178, %c0_179] : memref<8x128xf32, #tpu.memory_space<vmem>>, vector<8x128xf32>
    tpu.vector_store %arg14[%c0_178, %c0_179], %577 {strides = array<i32>} : memref<8x128xf32, #tpu.memory_space<vmem>>, vector<8x128xf32>,
    %c0_i32_180 = arith.constant 0 : i32
    %581 = arith.cmpi eq, %arg1, %c0_i32_180 : i32
    %582 = arith.extui %581 : i1 to i32
    %c0_i32_181 = arith.constant 0 : i32
    %583 = arith.cmpi ne, %582, %c0_i32_181 : i32
    scf.if %583 {
      %cst_182 = arith.constant 1.250000e-01 : f32
      %584 = vector.broadcast %cst_182 : f32 to vector<8x128xf32>
      %585 = arith.mulf %577, %584 : vector<8x128xf32>
      %c0_183 = arith.constant 0 : index
      %c0_184 = arith.constant 0 : index
      %586 = vector.load %arg11[%c0_183, %c0_184] : memref<8x128xf32, #tpu.memory_space<vmem>>, vector<8x128xf32>
      tpu.vector_store %arg11[%c0_183, %c0_184], %585 {strides = array<i32>} : memref<8x128xf32, #tpu.memory_space<vmem>>, vector<8x128xf32>,
    } else {
    }
    return
  }
  func.func @transform_0(%arg0: i32, %arg1: i32) -> (i32, i32, i32) {
    %c0_i32 = arith.constant 0 : i32
    %c0_i32_0 = arith.constant 0 : i32
    return %arg1, %arg0, %c0_i32 : i32, i32, i32
  }
  func.func @transform_1(%arg0: i32, %arg1: i32) -> (i32, i32) {
    %c0_i32 = arith.constant 0 : i32
    %c0_i32_0 = arith.constant 0 : i32
    %c0_i32_1 = arith.constant 0 : i32
    return %c0_i32, %c0_i32_0 : i32, i32
  }
  func.func @transform_2(%arg0: i32, %arg1: i32) -> (i32, i32) {
    %c0_i32 = arith.constant 0 : i32
    %c0_i32_0 = arith.constant 0 : i32
    %c0_i32_1 = arith.constant 0 : i32
    return %c0_i32, %c0_i32_0 : i32, i32
  }
  func.func @transform_3(%arg0: i32, %arg1: i32) -> (i32, i32) {
    %c0_i32 = arith.constant 0 : i32
    %c0_i32_0 = arith.constant 0 : i32
    %c0_i32_1 = arith.constant 0 : i32
    return %c0_i32, %c0_i32_0 : i32, i32
  }
  func.func @transform_4(%arg0: i32, %arg1: i32) -> (i32, i32) {
    %c0_i32 = arith.constant 0 : i32
    %c0_i32_0 = arith.constant 0 : i32
    %c0_i32_1 = arith.constant 0 : i32
    return %c0_i32, %c0_i32_0 : i32, i32
  }
  func.func @transform_5(%arg0: i32, %arg1: i32) -> (i32, i32) {
    %c0_i32 = arith.constant 0 : i32
    %c0_i32_0 = arith.constant 0 : i32
    %c0_i32_1 = arith.constant 0 : i32
    return %c0_i32, %c0_i32_0 : i32, i32
  }
  func.func @transform_6(%arg0: i32, %arg1: i32) -> (i32, i32) {
    %c0_i32 = arith.constant 0 : i32
    %c0_i32_0 = arith.constant 0 : i32
    %c0_i32_1 = arith.constant 0 : i32
    return %c0_i32, %c0_i32_0 : i32, i32
  }
  func.func @transform_7(%arg0: i32, %arg1: i32) -> (i32, i32) {
    %c0_i32 = arith.constant 0 : i32
    %c0_i32_0 = arith.constant 0 : i32
    %c0_i32_1 = arith.constant 0 : i32
    return %c0_i32, %c0_i32_0 : i32, i32
  }
  func.func @transform_8(%arg0: i32, %arg1: i32) -> (i32, i32) {
    %c0_i32 = arith.constant 0 : i32
    %c0_i32_0 = arith.constant 0 : i32
    %c0_i32_1 = arith.constant 0 : i32
    return %c0_i32, %c0_i32_0 : i32, i32
  }
  func.func @transform_9(%arg0: i32, %arg1: i32) -> (i32, i32) {
    %c0_i32 = arith.constant 0 : i32
    %c0_i32_0 = arith.constant 0 : i32
    return %arg0, %c0_i32 : i32, i32
  }
}

</mosaic_0001>

<bundles_post_ra>
// kernel: tpu_custom_call.1
= control target key start
LH: loop header
LB: loop body
LE: loop exit
PB: predicated region body
PF: predicated region fallthrough
CT: control target
= control target key end

     0   :  { %14 = vsyncpa [#allocation6], 0  ;;  %s11829_s0 = inlined_call_operand.hbm [shape: f32[8,8,128], index: 0, kind: input, shape index: {}]   ;;  %s11830_s1 = inlined_call_operand.hbm [shape: f32[128,384], index: 1, kind: input, shape index: {}]   ;;  %s11831_s2 = inlined_call_operand.hbm [shape: f32[128,384], index: 2, kind: input, shape index: {}]   ;;  %s11832_s3 = inlined_call_operand.vmem [shape: f32[1,384], index: 3, kind: input, shape index: {}]   ;;  %s11833_s4 = inlined_call_operand.vmem [shape: f32[1,384], index: 4, kind: input, shape index: {}]   ;;  %s11834_s5 = inlined_call_operand.hbm [shape: f32[128,384], index: 5, kind: input, shape index: {}]   ;;  %s11835_s6 = inlined_call_operand.hbm [shape: f32[128,384], index: 6, kind: input, shape index: {}]   ;;  %s11836_s7 = inlined_call_operand.vmem [shape: f32[1,384], index: 7, kind: input, shape index: {}]   ;;  %s11837_s8 = inlined_call_operand.vmem [shape: f32[1,384], index: 8, kind: input, shape index: {}]   ;;  %s11838_s9 = inlined_call_operand.hbm [shape: f32[8,128], index: 9, kind: output, shape index: {}]  }
   0x1   :  { %15 = vsyncpa [#allocation9], 0 }
   0x2   :  { %16 = vsyncpa [#allocation12], 0 }
   0x3   :  { %17 = vsyncpa [#allocation7], 0  ;;  %s7853_s30 = smov [#allocation8]  }
   0x4   :  { %s35_s10 = sshll.u32 %s7853_s30, 4  ;;  %s36_s10 = int_to_ptr.vmem [resolvable:$true] %s35_s10 }
   0x5   :  { %s7733_s11 = scalar_lea.vmem %s36_s10, 6144  ;;  %p7738_p1 = scmp.lt.s32.totalorder %s36_s10, %s36_s10 }
   0x6   :  { %p7734_p0 = scmp.ne.s32.totalorder %s36_s10, %s7733_s11  ;;  %p7739_p2 = scmp.lt.s32.totalorder %s7733_s11, %s7733_s11 }
   0x8   :  { %p7740_p3 = por %p7739_p2, %p7738_p1 }
   0xa   :  { %p7741_p4 = pnand %p7740_p3, %p7734_p0 }
   0xc   :  { %7744 = shalt.err (!%p7741_p4)
}
   0xd   :  { %s7854_s12 = smov 384   ;;  %s7855_s13 = smov 24  }
   0xe   :  { %41 = dma.hbm_to_vmem [thread:$0]  %s11830_s1, 6144, %s36_s10, [#allocation9], %s7854_s12, %s7854_s12, %s7855_s13  }
   0xf   :  { %s7856_s16 = smov [#allocation11]   ;;  %s7857_s18 = smov [#allocation5]  }
  0x10   :  { %s63_s17 = sshll.u32 %s7856_s16, 4  ;;  %s23_s19 = sshll.u32 %s7857_s18, 4  ;;  %s64_s17 = int_to_ptr.vmem [resolvable:$true] %s63_s17  ;;  %s24_s19 = int_to_ptr.vmem [resolvable:$true] %s23_s19 }
  0x11   :  { %s7753_s20 = scalar_lea.vmem %s64_s17, 6144  ;;  %p7758_p6 = scmp.lt.s32.totalorder %s64_s17, %s64_s17 }
  0x12   :  { %p7754_p5 = scmp.ne.s32.totalorder %s64_s17, %s7753_s20  ;;  %p7759_p7 = scmp.lt.s32.totalorder %s7753_s20, %s7753_s20 }
  0x14   :  { %p7760_p8 = por %p7759_p7, %p7758_p6 }
  0x16   :  { %p7761_p9 = pnand %p7760_p8, %p7754_p5 }
  0x18   :  { %7764 = shalt.err (!%p7761_p9)
}
  0x19   :  { %69 = dma.hbm_to_vmem [thread:$0]  %s11834_s5, 6144, %s64_s17, [#allocation12], %s7854_s12, %s7854_s12, %s7855_s13  }
  0x1a   :  { %s7773_s1 = scalar_lea.vmem %s24_s19, 1024  ;;  %p7778_p11 = scmp.lt.s32.totalorder %s24_s19, %s24_s19 }
  0x1b   :  { %p7774_p10 = scmp.ne.s32.totalorder %s24_s19, %s7773_s1  ;;  %p7779_p12 = scmp.lt.s32.totalorder %s7773_s1, %s7773_s1 }
  0x1d   :  { %p7780_p13 = por %p7779_p12, %p7778_p11 }
  0x1f   :  { %p7781_p0 = pnand %p7780_p13, %p7774_p10 }
  0x21   :  { %7784 = shalt.err (!%p7781_p0)
}
  0x22   :  { %s7858_s23 = smov 128   ;;  %s7859_s24 = smov 8  }
  0x23   :  { %29 = dma.hbm_to_vmem [thread:$0]  %s11829_s0, 1024, %s24_s19, [#allocation6], %s7858_s23, %s7858_s23, %s7859_s24  }
  0x24   :  { %s7860_s27 = smov [#allocation10]   ;;  %s7861_s29 = smov [#allocation13]  }
  0x25   :  { %s47_s28 = sshll.u32 %s7860_s27, 4  ;;  %s75_s30 = sshll.u32 %s7861_s29, 4  ;;  %s48_s28 = int_to_ptr.vmem [resolvable:$true] %s47_s28  ;;  %s76_s30 = int_to_ptr.vmem [resolvable:$true] %s75_s30 }
  0x26   :  { %s7793_s5 = scalar_lea.vmem %s48_s28, 6144  ;;  %p7798_p2 = scmp.lt.s32.totalorder %s48_s28, %s48_s28 }
  0x27   :  { %p7794_p1 = scmp.ne.s32.totalorder %s48_s28, %s7793_s5  ;;  %p7799_p3 = scmp.lt.s32.totalorder %s7793_s5, %s7793_s5 }
  0x29   :  { %p7800_p4 = por %p7799_p3, %p7798_p2 }
  0x2b   :  { %p7801_p5 = pnand %p7800_p4, %p7794_p1 }
  0x2d   :  { %7804 = shalt.err (!%p7801_p5)
}
  0x2e   :  { %53 = dma.hbm_to_vmem [thread:$0]  %s11831_s2, 6144, %s48_s28, [#allocation9], %s7854_s12, %s7854_s12, %s7855_s13  }
  0x2f   :  { %s7813_s0 = scalar_lea.vmem %s76_s30, 6144  ;;  %p7818_p7 = scmp.lt.s32.totalorder %s76_s30, %s76_s30 }
  0x30   :  { %p7814_p6 = scmp.ne.s32.totalorder %s76_s30, %s7813_s0  ;;  %p7819_p8 = scmp.lt.s32.totalorder %s7813_s0, %s7813_s0 }
  0x32   :  { %p7820_p9 = por %p7819_p8, %p7818_p7 }
  0x34   :  { %p7821_p10 = pnand %p7820_p9, %p7814_p6 }
  0x36   :  { %7824 = shalt.err (!%p7821_p10)
}
  0x37   :  { %81 = dma.hbm_to_vmem [thread:$0]  %s11835_s6, 6144, %s76_s30, [#allocation12], %s7854_s12, %s7854_s12, %s7855_s13  }
  0x38   :  { %7845 = dma.done.wait [#allocation6], 1024  }
  0x39   :  { %7846 = vsyncadd [#allocation6], 4294966272 }
  0x3a   :  { %7847 = dma.done.wait [#allocation9], 12288  }
  0x3b   :  { %7848 = vsyncadd [#allocation9], 4294955008 }
  0x3c   :  { %7849 = dma.done.wait [#allocation12], 12288  }
  0x3d   :  { %7850 = vsyncadd [#allocation12], 4294955008  ;;  %v11916_v0 = vmov 0.0   ;;  %vm7863_vm0 = vmmov 0   ;;  %v7946_v1 = vld [vmem:[#allocation8 + $0x170] sm:$0xff]  ;;  %v161_v2 = vld [vmem:[#allocation8 + $0x168] sm:$0xff] }
  0x3e   :  { %244 = vmatprep.mubr.f32.mxu0 %v11916_v0  ;;  %5843 = vmatprep.subr.mxu1 %v11916_v0  ;;  %v159_v3 = vld [vmem:[#allocation8 + $0x158] sm:$0xff]  ;;  %v158_v4 = vld [vmem:[#allocation8 + $0x150] sm:$0xff]  ;;  %v156_v5 = vld [vmem:[#allocation8 + $0x140] sm:$0xff] }
  0x3f   :  { %5875 = vmatprep.mubr.msk.f32.mxu1 %vm7863_vm0, %v11916_v0  ;;  %180 = vmatprep.subr.mxu0 %v7946_v1  ;;  %v155_v6 = vld [vmem:[#allocation8 + $0x138] sm:$0xff]  ;;  %v153_v7 = vld [vmem:[#allocation8 + $0x128] sm:$0xff]  ;;  %v152_v8 = vld [vmem:[#allocation8 + $0x120] sm:$0xff] }
  0x40   :  { %181 = vmatpush1.msra.mxu0 %v161_v2  ;;  %v150_v9 = vld [vmem:[#allocation8 + $0x110] sm:$0xff]  ;;  %v149_v10 = vld [vmem:[#allocation8 + $0x108] sm:$0xff]  ;;  %v147_v11 = vld [vmem:[#allocation8 + $0xf8] sm:$0xff] }
  0x41   :  { %182 = vmatprep.subr.mxu0 %v159_v3  ;;  %v146_v12 = vld [vmem:[#allocation8 + $0xf0] sm:$0xff]  ;;  %v144_v13 = vld [vmem:[#allocation8 + $0xe0] sm:$0xff]  ;;  %v143_v14 = vld [vmem:[#allocation8 + $0xd8] sm:$0xff] }
  0x42   :  { %183 = vmatpush1.msra.mxu0 %v158_v4  ;;  %v7949_v15 = vld [vmem:[#allocation8 + $0x178] sm:$0xff]  ;;  %v141_v16 = vld [vmem:[#allocation8 + $0xc8] sm:$0xff]  ;;  %v7952_v17 = vld [vmem:[#allocation8 + $0x160] sm:$0xff] }
  0x43   :  { %184 = vmatprep.subr.mxu0 %v156_v5  ;;  %5844 = vmatpush3.msra.mxu1 %v7949_v15  ;;  %v7954_v18 = vld [vmem:[#allocation8 + $0xc0] sm:$0xff]  ;;  %v7957_v19 = vld [vmem:[#allocation8 + $0x148] sm:$0xff]  ;;  %v7959_v20 = vld [vmem:[#allocation8 + $0xb0] sm:$0xff] }
  0x44   :  { %185 = vmatpush1.msra.mxu0 %v155_v6  ;;  %5845 = vmatprep.subr.mxu1 %v11916_v0  ;;  %v7962_v21 = vld [vmem:[#allocation8 + $0xa8] sm:$0xff]  ;;  %v7965_v22 = vld [vmem:[#allocation8 + $0x130] sm:$0xff]  ;;  %v7968_v23 = vld [vmem:[#allocation8 + $0x98] sm:$0xff] }
  0x45   :  { %186 = vmatprep.subr.mxu0 %v153_v7  ;;  %5846 = vmatpush3.msra.mxu1 %v7952_v17  ;;  %v7972_v24 = vld [vmem:[#allocation8 + $0x90] sm:$0xff]  ;;  %v7975_v25 = vld [vmem:[#allocation8 + $0x118] sm:$0xff]  ;;  %v7978_v26 = vld [vmem:[#allocation8 + $0x80] sm:$0xff] }
  0x46   :  { %187 = vmatpush1.msra.mxu0 %v152_v8  ;;  %5847 = vmatprep.subr.mxu1 %v11916_v0  ;;  %v7982_v27 = vld [vmem:[#allocation8 + $0x78] sm:$0xff]  ;;  %v7985_v28 = vld [vmem:[#allocation8 + $0x100] sm:$0xff]  ;;  %v7988_v29 = vld [vmem:[#allocation8 + $0x68] sm:$0xff] }
  0x47   :  { %188 = vmatprep.subr.mxu0 %v150_v9  ;;  %5848 = vmatpush3.msra.mxu1 %v7957_v19  ;;  %v7992_v30 = vld [vmem:[#allocation8 + $0x60] sm:$0xff]  ;;  %v7995_v31 = vld [vmem:[#allocation8 + $0xe8] sm:$0xff]  ;;  %v7998_v32 = vld [vmem:[#allocation8 + $0x50] sm:$0xff] }
  0x48   :  { %189 = vmatpush1.msra.mxu0 %v149_v10  ;;  %5849 = vmatprep.subr.mxu1 %v11916_v0  ;;  %v8002_v33 = vld [vmem:[#allocation8 + $0x48] sm:$0xff]  ;;  %v8005_v34 = vld [vmem:[#allocation8 + $0xd0] sm:$0xff]  ;;  %v8008_v35 = vld [vmem:[#allocation8 + $0x38] sm:$0xff] }
  0x49   :  { %190 = vmatprep.subr.mxu0 %v147_v11  ;;  %5850 = vmatpush3.msra.mxu1 %v7965_v22  ;;  %v8012_v36 = vld [vmem:[#allocation8 + $0x30] sm:$0xff]  ;;  %v8015_v37 = vld [vmem:[#allocation8 + $0xb8] sm:$0xff]  ;;  %v8018_v38 = vld [vmem:[#allocation8 + $0x20] sm:$0xff] }
  0x4a   :  { %191 = vmatpush1.msra.mxu0 %v146_v12  ;;  %5851 = vmatprep.subr.mxu1 %v11916_v0  ;;  %v8022_v39 = vld [vmem:[#allocation8 + $0x18] sm:$0xff]  ;;  %v8025_v40 = vld [vmem:[#allocation8 + $0xa0] sm:$0xff]  ;;  %v8028_v41 = vld [vmem:[#allocation8 + $0x8] sm:$0xff] }
  0x4b   :  { %192 = vmatprep.subr.mxu0 %v144_v13  ;;  %5852 = vmatpush3.msra.mxu1 %v7975_v25  ;;  %v8032_v42 = vld [vmem:[#allocation8] sm:$0xff]  ;;  %v8035_v43 = vld [vmem:[#allocation8 + $0x88] sm:$0xff]  ;;  %v8038_v45 = vld [vmem:[#allocation10 + $0x170] sm:$0xff] }
  0x4c   :  { %193 = vmatpush1.msra.mxu0 %v143_v14  ;;  %5853 = vmatprep.subr.mxu1 %v11916_v0  ;;  %v115_v44 = vld [vmem:[#allocation5] sm:$0xff]  ;;  %v8042_v46 = vld [vmem:[#allocation10 + $0x168] sm:$0xff]  ;;  %v8046_v47 = vld [vmem:[#allocation10 + $0x158] sm:$0xff] }
  0x4d   :  { %194 = vmatprep.subr.mxu0 %v141_v16  ;;  %5854 = vmatpush3.msra.mxu1 %v7985_v28  ;;  %v8049_v48 = vld [vmem:[#allocation8 + $0x70] sm:$0xff]  ;;  %v8055_v50 = vld [vmem:[#allocation10 + $0x140] sm:$0xff]  ;;  %v8058_v51 = vld [vmem:[#allocation8 + $0x58] sm:$0xff] }
  0x4e   :  { %195 = vmatpush1.msra.mxu0 %v7954_v18  ;;  %5855 = vmatprep.subr.mxu1 %v11916_v0  ;;  %v8052_v49 = vld [vmem:[#allocation10 + $0x150] sm:$0xff]  ;;  %v8061_v52 = vld [vmem:[#allocation10 + $0x138] sm:$0xff]  ;;  %v8065_v53 = vld [vmem:[#allocation10 + $0x128] sm:$0xff] }
  0x4f   :  { %196 = vmatprep.subr.mxu0 %v7959_v20  ;;  %5856 = vmatpush3.msra.mxu1 %v7995_v31  ;;  %12392 = vst [vmem:[#allocation19_spill] sm:$0xff] %v8065_v53  ;;  %v8068_v54 = vld [vmem:[#allocation8 + $0x40] sm:$0xff]  ;;  %v8075_v56 = vld [vmem:[#allocation10 + $0x110] sm:$0xff]  ;;  %v8078_v57 = vld [vmem:[#allocation8 + $0x28] sm:$0xff] }
  0x50   :  { %197 = vmatpush1.msra.mxu0 %v7962_v21  ;;  %5857 = vmatprep.subr.mxu1 %v11916_v0  ;;  %v8071_v55 = vld [vmem:[#allocation10 + $0x120] sm:$0xff]  ;;  %12394 = vst [vmem:[#allocation21_spill] sm:$0xff] %v8075_v56  ;;  %v8081_v58 = vld [vmem:[#allocation10 + $0x108] sm:$0xff]  ;;  %v8085_v59 = vld [vmem:[#allocation10 + $0xf8] sm:$0xff] }
  0x51   :  { %198 = vmatprep.subr.mxu0 %v7968_v23  ;;  %5858 = vmatpush3.msra.mxu1 %v8005_v34  ;;  %12393 = vst [vmem:[#allocation20_spill] sm:$0xff] %v8071_v55  ;;  %12395 = vst [vmem:[#allocation22_spill] sm:$0xff] %v8081_v58  ;;  %v8088_v60 = vld [vmem:[#allocation8 + $0x10] sm:$0xff]  ;;  %v8095_v62 = vld [vmem:[#allocation10 + $0xe0] sm:$0xff] }
  0x52   :  { %199 = vmatpush1.msra.mxu0 %v7972_v24  ;;  %5859 = vmatprep.subr.mxu1 %v11916_v0  ;;  %12396 = vst [vmem:[#allocation23_spill] sm:$0xff] %v8085_v59  ;;  %v8091_v61 = vld [vmem:[#allocation10 + $0xf0] sm:$0xff]  ;;  %12398 = vst [vmem:[#allocation25_spill] sm:$0xff] %v8095_v62  ;;  %v8099_v63 = vld [vmem:[#allocation10 + $0xd8] sm:$0xff] }
  0x53   :  { %200 = vmatprep.subr.mxu0 %v7978_v26  ;;  %5860 = vmatpush3.msra.mxu1 %v8015_v37  ;;  %12397 = vst [vmem:[#allocation24_spill] sm:$0xff] %v8091_v61  ;;  %12399 = vst [vmem:[#allocation26_spill] sm:$0xff] %v8099_v63  ;;  %v8103_v2 = vld [vmem:[#allocation10 + $0xc8] sm:$0xff]  ;;  %v8106_v3 = vld [vmem:[#allocation10 + $0x178] sm:$0xff] }
  0x54   :  { %201 = vmatpush1.msra.mxu0 %v7982_v27  ;;  %5861 = vmatprep.subr.mxu1 %v11916_v0  ;;  %12400 = vst [vmem:[#allocation27_spill] sm:$0xff] %v8103_v2  ;;  %v8109_v4 = vld [vmem:[#allocation10 + $0xc0] sm:$0xff]  ;;  %v8113_v5 = vld [vmem:[#allocation10 + $0xb0] sm:$0xff]  ;;  %v8118_v7 = vld [vmem:[#allocation10 + $0xa8] sm:$0xff] }
  0x55   :  { %202 = vmatprep.subr.mxu0 %v7988_v29  ;;  %5862 = vmatpush3.msra.mxu1 %v8025_v40  ;;  %12401 = vst [vmem:[#allocation28_spill] sm:$0xff] %v8109_v4  ;;  %12402 = vst [vmem:[#allocation29_spill] sm:$0xff] %v8113_v5  ;;  %v8115_v6 = vld [vmem:[#allocation10 + $0x160] sm:$0xff]  ;;  %v8122_v8 = vld [vmem:[#allocation10 + $0x98] sm:$0xff] }
  0x56   :  { %203 = vmatpush1.msra.mxu0 %v7992_v30  ;;  %5863 = vmatprep.subr.mxu1 %v11916_v0  ;;  %12403 = vst [vmem:[#allocation30_spill] sm:$0xff] %v8118_v7  ;;  %12404 = vst [vmem:[#allocation31_spill] sm:$0xff] %v8122_v8  ;;  %v8125_v9 = vld [vmem:[#allocation10 + $0x148] sm:$0xff]  ;;  %v8128_v10 = vld [vmem:[#allocation10 + $0x90] sm:$0xff] }
  0x57   :  { %204 = vmatprep.subr.mxu0 %v7998_v32  ;;  %5864 = vmatpush3.msra.mxu1 %v8035_v43  ;;  %12405 = vst [vmem:[#allocation32_spill] sm:$0xff] %v8125_v9  ;;  %12406 = vst [vmem:[#allocation33_spill] sm:$0xff] %v8128_v10  ;;  %v8132_v11 = vld [vmem:[#allocation10 + $0x80] sm:$0xff]  ;;  %v8135_v12 = vld [vmem:[#allocation10 + $0x130] sm:$0xff] }
  0x58   :  { %205 = vmatpush1.msra.mxu0 %v8002_v33  ;;  %5865 = vmatprep.subr.mxu1 %v11916_v0  ;;  %12407 = vst [vmem:[#allocation34_spill] sm:$0xff] %v8132_v11  ;;  %12408 = vst [vmem:[#allocation35_spill] sm:$0xff] %v8135_v12  ;;  %v8138_v13 = vld [vmem:[#allocation10 + $0x78] sm:$0xff]  ;;  %v8142_v14 = vld [vmem:[#allocation10 + $0x68] sm:$0xff] }
  0x59   :  { %206 = vmatprep.subr.mxu0 %v8008_v35  ;;  %5866 = vmatpush3.msra.mxu1 %v8049_v48  ;;  %12409 = vst [vmem:[#allocation36_spill] sm:$0xff] %v8138_v13  ;;  %12410 = vst [vmem:[#allocation37_spill] sm:$0xff] %v8142_v14  ;;  %v8145_v16 = vld [vmem:[#allocation10 + $0x118] sm:$0xff] }
  0x5a   :  { %207 = vmatpush1.msra.mxu0 %v8012_v36  ;;  %5867 = vmatprep.subr.mxu1 %v11916_v0  ;;  %12411 = vst [vmem:[#allocation38_spill] sm:$0xff] %v8145_v16 }
  0x5b   :  { %208 = vmatprep.subr.mxu0 %v8018_v38  ;;  %5868 = vmatpush3.msra.mxu1 %v8058_v51 }
  0x5c   :  { %209 = vmatpush1.msra.mxu0 %v8022_v39  ;;  %5869 = vmatprep.subr.mxu1 %v11916_v0 }
  0x5d   :  { %210 = vmatprep.subr.mxu0 %v8028_v41  ;;  %5870 = vmatpush3.msra.mxu1 %v8068_v54 }
  0x5e   :  { %211 = vmatpush1.msra.mxu0 %v8032_v42  ;;  %5871 = vmatprep.subr.mxu1 %v11916_v0 }
  0x5f   :  { %245 = vmatmul.mubr.f32.vlgmr.msra.gmra.mxu0 %v115_v44  ;;  %385 = vmatprep.subr.mxu0 %v8038_v45 }
  0x60   :  { %386 = vmatpush1.msra.mxu0 %v8042_v46  ;;  %5872 = vmatpush3.msra.mxu1 %v8078_v57 }
  0x61   :  { %387 = vmatprep.subr.mxu0 %v8046_v47  ;;  %5873 = vmatprep.subr.mxu1 %v11916_v0 }
  0x62   :  { %388 = vmatpush1.msra.mxu0 %v8052_v49  ;;  %5874 = vmatpush3.msra.mxu1 %v8088_v60 }
  0x63   :  { %389 = vmatprep.subr.mxu0 %v8055_v50  ;;  %449 = vmatprep.mubr.f32.mxu0 %v11916_v0 }
  0x64   :  { %390 = vmatpush1.msra.mxu0 %v8061_v52  ;;  %5878 = vmatprep.subr.mxu1 %v11916_v0 }
  0x65   :  { %391 = vmatprep.subr.mxu0 %v8065_v53  ;;  %5876 = vmatmul.mubr.f32.vlgmr.msra.gmra.mxu1 %v115_v44  ;;  %v8148_v44 = vld [vmem:[#allocation10 + $0x60] sm:$0xff] }
  0x66   :  { %392 = vmatpush1.msra.mxu0 %v8071_v55  ;;  %5879 = vmatpush3.msra.mxu1 %v8106_v3  ;;  %12412 = vst [vmem:[#allocation39_spill] sm:$0xff] %v8148_v44 }
  0x67   :  { %393 = vmatprep.subr.mxu0 %v8075_v56  ;;  %5880 = vmatprep.subr.mxu1 %v11916_v0 }
  0x68   :  { %394 = vmatpush1.msra.mxu0 %v8081_v58  ;;  %5881 = vmatpush3.msra.mxu1 %v8115_v6 }
  0x69   :  { %395 = vmatprep.subr.mxu0 %v8085_v59  ;;  %5882 = vmatprep.subr.mxu1 %v11916_v0 }
  0x6a   :  { %396 = vmatpush1.msra.mxu0 %v8091_v61  ;;  %5883 = vmatpush3.msra.mxu1 %v8125_v9 }
  0x6b   :  { %397 = vmatprep.subr.mxu0 %v8095_v62  ;;  %5884 = vmatprep.subr.mxu1 %v11916_v0 }
  0x6c   :  { %398 = vmatpush1.msra.mxu0 %v8099_v63  ;;  %5885 = vmatpush3.msra.mxu1 %v8135_v12 }
  0x6d   :  { %399 = vmatprep.subr.mxu0 %v8103_v2  ;;  %5886 = vmatprep.subr.mxu1 %v11916_v0  ;;  %v8185_v2 = vld [vmem:[#allocation10 + $0xb8] sm:$0xff] }
  0x6e   :  { %400 = vmatpush1.msra.mxu0 %v8109_v4  ;;  %5887 = vmatpush3.msra.mxu1 %v8145_v16  ;;  %v8175_v4 = vld [vmem:[#allocation10 + $0xd0] sm:$0xff]  ;;  %12423 = vst [vmem:[#allocation50_spill] sm:$0xff] %v8185_v2 }
  0x6f   :  { %401 = vmatprep.subr.mxu0 %v8113_v5  ;;  %5888 = vmatprep.subr.mxu1 %v11916_v0  ;;  %v8165_v5 = vld [vmem:[#allocation10 + $0xe8] sm:$0xff]  ;;  %12420 = vst [vmem:[#allocation47_spill] sm:$0xff] %v8175_v4 }
  0x70   :  { %402 = vmatpush1.msra.mxu0 %v8118_v7  ;;  %v8155_v7 = vld [vmem:[#allocation10 + $0x100] sm:$0xff]  ;;  %12417 = vst [vmem:[#allocation44_spill] sm:$0xff] %v8165_v5  ;;  %5910 = vmatprep.mubr.msk.f32.mxu1 %vm7863_vm0, %v11916_v0 }
  0x71   :  { %403 = vmatprep.subr.mxu0 %v8122_v8  ;;  %v8152_v8 = vld [vmem:[#allocation10 + $0x50] sm:$0xff]  ;;  %12414 = vst [vmem:[#allocation41_spill] sm:$0xff] %v8155_v7  ;;  %5889 = vmatpush3.msra.mxu1 %v8155_v7 }
  0x72   :  { %404 = vmatpush1.msra.mxu0 %v8128_v10  ;;  %12413 = vst [vmem:[#allocation40_spill] sm:$0xff] %v8152_v8  ;;  %v8158_v10 = vld [vmem:[#allocation10 + $0x48] sm:$0xff]  ;;  %5890 = vmatprep.subr.mxu1 %v11916_v0 }
  0x73   :  { %405 = vmatprep.subr.mxu0 %v8132_v11  ;;  %12415 = vst [vmem:[#allocation42_spill] sm:$0xff] %v8158_v10  ;;  %v8162_v11 = vld [vmem:[#allocation10 + $0x38] sm:$0xff]  ;;  %5891 = vmatpush3.msra.mxu1 %v8165_v5  ;;  %v8337_v5 = vld [vmem:[#allocation11 + $0x68] sm:$0xff] }
  0x74   :  { %406 = vmatpush1.msra.mxu0 %v8138_v13  ;;  %12416 = vst [vmem:[#allocation43_spill] sm:$0xff] %v8162_v11  ;;  %v8168_v13 = vld [vmem:[#allocation10 + $0x30] sm:$0xff]  ;;  %5892 = vmatprep.subr.mxu1 %v11916_v0  ;;  %12465 = vst [vmem:[#allocation92_spill] sm:$0xff] %v8337_v5 }
  0x75   :  { %407 = vmatprep.subr.mxu0 %v8142_v14  ;;  %12418 = vst [vmem:[#allocation45_spill] sm:$0xff] %v8168_v13  ;;  %v8172_v14 = vld [vmem:[#allocation10 + $0x20] sm:$0xff]  ;;  %5893 = vmatpush3.msra.mxu1 %v8175_v4  ;;  %v8250_v4 = vld [vmem:[#allocation11 + $0x148] sm:$0xff] }
  0x76   :  { %408 = vmatpush1.msra.mxu0 %v8148_v44  ;;  %12419 = vst [vmem:[#allocation46_spill] sm:$0xff] %v8172_v14  ;;  %v8178_v44 = vld [vmem:[#allocation10 + $0x18] sm:$0xff]  ;;  %5894 = vmatprep.subr.mxu1 %v11916_v0  ;;  %12439 = vst [vmem:[#allocation66_spill] sm:$0xff] %v8250_v4 }
  0x77   :  { %409 = vmatprep.subr.mxu0 %v8152_v8  ;;  %12421 = vst [vmem:[#allocation48_spill] sm:$0xff] %v8178_v44  ;;  %v8182_v8 = vld [vmem:[#allocation10 + $0x8] sm:$0xff]  ;;  %5895 = vmatpush3.msra.mxu1 %v8185_v2  ;;  %v8248_v2 = vld [vmem:[#allocation11 + $0x140] sm:$0xff] }
  0x78   :  { %410 = vmatpush1.msra.mxu0 %v8158_v10  ;;  %12422 = vst [vmem:[#allocation49_spill] sm:$0xff] %v8182_v8  ;;  %v8188_v10 = vld [vmem:[#allocation10] sm:$0xff]  ;;  %5896 = vmatprep.subr.mxu1 %v11916_v0  ;;  %12438 = vst [vmem:[#allocation65_spill] sm:$0xff] %v8248_v2 }
  0x79   :  { %411 = vmatprep.subr.mxu0 %v8162_v11  ;;  %12424 = vst [vmem:[#allocation51_spill] sm:$0xff] %v8188_v10  ;;  %v8193_v11 = vld [vmem:[#allocation10 + $0xa0] sm:$0xff] }
  0x7a   :  { %412 = vmatpush1.msra.mxu0 %v8168_v13  ;;  %12425 = vst [vmem:[#allocation52_spill] sm:$0xff] %v8193_v11  ;;  %v8199_v13 = vld [vmem:[#allocation10 + $0x88] sm:$0xff]  ;;  %5897 = vmatpush3.msra.mxu1 %v8193_v11  ;;  %v8244_v11 = vld [vmem:[#allocation11 + $0x160] sm:$0xff] }
  0x7b   :  { %413 = vmatprep.subr.mxu0 %v8172_v14  ;;  %12426 = vst [vmem:[#allocation53_spill] sm:$0xff] %v8199_v13  ;;  %5898 = vmatprep.subr.mxu1 %v11916_v0  ;;  %v8219_v14 = vld [vmem:[#allocation10 + $0x28] sm:$0xff]  ;;  %12437 = vst [vmem:[#allocation64_spill] sm:$0xff] %v8244_v11 }
  0x7c   :  { %414 = vmatpush1.msra.mxu0 %v8178_v44  ;;  %v8204_v44 = vld [vmem:[#allocation10 + $0x70] sm:$0xff]  ;;  %5899 = vmatpush3.msra.mxu1 %v8199_v13  ;;  %12430 = vst [vmem:[#allocation57_spill] sm:$0xff] %v8219_v14 }
  0x7d   :  { %415 = vmatprep.subr.mxu0 %v8182_v8  ;;  %12427 = vst [vmem:[#allocation54_spill] sm:$0xff] %v8204_v44  ;;  %5900 = vmatprep.subr.mxu1 %v11916_v0  ;;  %v8215_v8 = vld [vmem:[#allocation10 + $0x40] sm:$0xff]  ;;  %v8223_v13 = vld [vmem:[#allocation10 + $0x10] sm:$0xff] }
  0x7e   :  { %416 = vmatpush1.msra.mxu0 %v8188_v10  ;;  %v8211_v10 = vld [vmem:[#allocation10 + $0x58] sm:$0xff]  ;;  %5901 = vmatpush3.msra.mxu1 %v8204_v44  ;;  %12429 = vst [vmem:[#allocation56_spill] sm:$0xff] %v8215_v8  ;;  %12431 = vst [vmem:[#allocation58_spill] sm:$0xff] %v8223_v13 }
  0x7f   :  { %450 = vmatmul.mubr.f32.vlgmr.msra.gmra.mxu0 %v11916_v0  ;;  %12428 = vst [vmem:[#allocation55_spill] sm:$0xff] %v8211_v10  ;;  %5902 = vmatprep.subr.mxu1 %v11916_v0  ;;  %v8236_v44 = vld [vmem:[#allocation11 + $0x178] sm:$0xff] }
  0x80   :  { %675 = vmatprep.mubr.f32.mxu0 %v11916_v0  ;;  %5903 = vmatpush3.msra.mxu1 %v8211_v10  ;;  %v8232_v10 = vld [vmem:[#allocation11 + $0x170] sm:$0xff]  ;;  %12434 = vst [vmem:[#allocation61_spill] sm:$0xff] %v8236_v44 }
  0x81   :  { %5904 = vmatprep.subr.mxu1 %v11916_v0  ;;  %12432 = vst [vmem:[#allocation59_spill] sm:$0xff] %v8232_v10  ;;  %611 = vmatprep.subr.mxu0 %v8232_v10  ;;  %v8254_v10 = vld [vmem:[#allocation11 + $0x138] sm:$0xff] }
  0x82   :  { %5905 = vmatpush3.msra.mxu1 %v8215_v8  ;;  %v8234_v8 = vld [vmem:[#allocation11 + $0x168] sm:$0xff]  ;;  %12440 = vst [vmem:[#allocation67_spill] sm:$0xff] %v8254_v10 }
  0x83   :  { %5906 = vmatprep.subr.mxu1 %v11916_v0  ;;  %12433 = vst [vmem:[#allocation60_spill] sm:$0xff] %v8234_v8  ;;  %612 = vmatpush1.msra.mxu0 %v8234_v8  ;;  %v8323_v8 = vld [vmem:[#allocation11 + $0xa0] sm:$0xff] }
  0x84   :  { %5907 = vmatpush3.msra.mxu1 %v8219_v14  ;;  %v8240_v14 = vld [vmem:[#allocation11 + $0x158] sm:$0xff]  ;;  %12461 = vst [vmem:[#allocation88_spill] sm:$0xff] %v8323_v8 }
  0x85   :  { %5908 = vmatprep.subr.mxu1 %v11916_v0  ;;  %12435 = vst [vmem:[#allocation62_spill] sm:$0xff] %v8240_v14  ;;  %613 = vmatprep.subr.mxu0 %v8240_v14  ;;  %v8265_v14 = vld [vmem:[#allocation11 + $0x120] sm:$0xff] }
  0x86   :  { %5909 = vmatpush3.msra.mxu1 %v8223_v13  ;;  %v8242_v13 = vld [vmem:[#allocation11 + $0x150] sm:$0xff]  ;;  %12442 = vst [vmem:[#allocation69_spill] sm:$0xff] %v8265_v14 }
  0x87   :  { %5911 = vmatmul.mubr.f32.vlgmr.msra.gmra.mxu1 %v11916_v0  ;;  %5913 = vmatprep.subr.mxu1 %v11916_v0  ;;  %12436 = vst [vmem:[#allocation63_spill] sm:$0xff] %v8242_v13 }
  0x88   :  { %5945 = vmatprep.mubr.msk.f32.mxu1 %vm7863_vm0, %v11916_v0  ;;  %5914 = vmatpush3.msra.mxu1 %v8236_v44  ;;  %v8261_v44 = vld [vmem:[#allocation11 + $0x128] sm:$0xff] }
  0x89   :  { %5915 = vmatprep.subr.mxu1 %v11916_v0  ;;  %614 = vmatpush1.msra.mxu0 %v8242_v13  ;;  %12441 = vst [vmem:[#allocation68_spill] sm:$0xff] %v8261_v44  ;;  %v8271_v13 = vld [vmem:[#allocation11 + $0x110] sm:$0xff] }
  0x8a   :  { %5916 = vmatpush3.msra.mxu1 %v8244_v11  ;;  %615 = vmatprep.subr.mxu0 %v8248_v2  ;;  %v8267_v11 = vld [vmem:[#allocation11 + $0x130] sm:$0xff]  ;;  %12444 = vst [vmem:[#allocation71_spill] sm:$0xff] %v8271_v13  ;;  %v8313_v2 = vld [vmem:[#allocation11 + $0xa8] sm:$0xff] }
  0x8b   :  { %5917 = vmatprep.subr.mxu1 %v11916_v0  ;;  %616 = vmatpush1.msra.mxu0 %v8254_v10  ;;  %12443 = vst [vmem:[#allocation70_spill] sm:$0xff] %v8267_v11  ;;  %v8277_v10 = vld [vmem:[#allocation11 + $0x118] sm:$0xff]  ;;  %12457 = vst [vmem:[#allocation84_spill] sm:$0xff] %v8313_v2 }
  0x8c   :  { %5918 = vmatpush3.msra.mxu1 %v8250_v4  ;;  %617 = vmatprep.subr.mxu0 %v8261_v44  ;;  %v8275_v4 = vld [vmem:[#allocation11 + $0x108] sm:$0xff]  ;;  %12446 = vst [vmem:[#allocation73_spill] sm:$0xff] %v8277_v10  ;;  %v8281_v44 = vld [vmem:[#allocation11 + $0xf8] sm:$0xff] }
  0x8d   :  { %5919 = vmatprep.subr.mxu1 %v11916_v0  ;;  %618 = vmatpush1.msra.mxu0 %v8265_v14  ;;  %12445 = vst [vmem:[#allocation72_spill] sm:$0xff] %v8275_v4  ;;  %12447 = vst [vmem:[#allocation74_spill] sm:$0xff] %v8281_v44  ;;  %v8287_v14 = vld [vmem:[#allocation11 + $0x100] sm:$0xff] }
  0x8e   :  { %5920 = vmatpush3.msra.mxu1 %v8267_v11  ;;  %619 = vmatprep.subr.mxu0 %v8271_v13  ;;  %v8285_v11 = vld [vmem:[#allocation11 + $0xf0] sm:$0xff]  ;;  %12449 = vst [vmem:[#allocation76_spill] sm:$0xff] %v8287_v14  ;;  %v8291_v13 = vld [vmem:[#allocation11 + $0xe0] sm:$0xff] }
  0x8f   :  { %5921 = vmatprep.subr.mxu1 %v11916_v0  ;;  %620 = vmatpush1.msra.mxu0 %v8275_v4  ;;  %12448 = vst [vmem:[#allocation75_spill] sm:$0xff] %v8285_v11  ;;  %12450 = vst [vmem:[#allocation77_spill] sm:$0xff] %v8291_v13  ;;  %v8297_v4 = vld [vmem:[#allocation11 + $0xe8] sm:$0xff] }
  0x90   :  { %5922 = vmatpush3.msra.mxu1 %v8277_v10  ;;  %621 = vmatprep.subr.mxu0 %v8281_v44  ;;  %v8295_v10 = vld [vmem:[#allocation11 + $0xd8] sm:$0xff]  ;;  %12452 = vst [vmem:[#allocation79_spill] sm:$0xff] %v8297_v4  ;;  %v8301_v44 = vld [vmem:[#allocation11 + $0xc8] sm:$0xff] }
  0x91   :  { %5923 = vmatprep.subr.mxu1 %v11916_v0  ;;  %622 = vmatpush1.msra.mxu0 %v8285_v11  ;;  %12451 = vst [vmem:[#allocation78_spill] sm:$0xff] %v8295_v10  ;;  %12453 = vst [vmem:[#allocation80_spill] sm:$0xff] %v8301_v44  ;;  %v8307_v11 = vld [vmem:[#allocation11 + $0xd0] sm:$0xff] }
  0x92   :  { %5924 = vmatpush3.msra.mxu1 %v8287_v14  ;;  %623 = vmatprep.subr.mxu0 %v8291_v13  ;;  %v8305_v14 = vld [vmem:[#allocation11 + $0xc0] sm:$0xff]  ;;  %12455 = vst [vmem:[#allocation82_spill] sm:$0xff] %v8307_v11  ;;  %v8311_v13 = vld [vmem:[#allocation11 + $0xb0] sm:$0xff] }
  0x93   :  { %5925 = vmatprep.subr.mxu1 %v11916_v0  ;;  %624 = vmatpush1.msra.mxu0 %v8295_v10  ;;  %12454 = vst [vmem:[#allocation81_spill] sm:$0xff] %v8305_v14  ;;  %12456 = vst [vmem:[#allocation83_spill] sm:$0xff] %v8311_v13  ;;  %v8315_v10 = vld [vmem:[#allocation11 + $0xb8] sm:$0xff] }
  0x94   :  { %5926 = vmatpush3.msra.mxu1 %v8297_v4  ;;  %625 = vmatprep.subr.mxu0 %v8301_v44  ;;  %12458 = vst [vmem:[#allocation85_spill] sm:$0xff] %v8315_v10  ;;  %v8319_v44 = vld [vmem:[#allocation11 + $0x98] sm:$0xff]  ;;  %v8321_v4 = vld [vmem:[#allocation11 + $0x90] sm:$0xff] }
  0x95   :  { %5927 = vmatprep.subr.mxu1 %v11916_v0  ;;  %626 = vmatpush1.msra.mxu0 %v8305_v14  ;;  %12459 = vst [vmem:[#allocation86_spill] sm:$0xff] %v8319_v44  ;;  %12460 = vst [vmem:[#allocation87_spill] sm:$0xff] %v8321_v4  ;;  %v8331_v14 = vld [vmem:[#allocation11 + $0x78] sm:$0xff] }
  0x96   :  { %5928 = vmatpush3.msra.mxu1 %v8307_v11  ;;  %627 = vmatprep.subr.mxu0 %v8311_v13  ;;  %v8327_v11 = vld [vmem:[#allocation11 + $0x80] sm:$0xff]  ;;  %12463 = vst [vmem:[#allocation90_spill] sm:$0xff] %v8331_v14  ;;  %v8333_v13 = vld [vmem:[#allocation11 + $0x88] sm:$0xff] }
  0x97   :  { %5929 = vmatprep.subr.mxu1 %v11916_v0  ;;  %628 = vmatpush1.msra.mxu0 %v8313_v2  ;;  %12462 = vst [vmem:[#allocation89_spill] sm:$0xff] %v8327_v11  ;;  %12464 = vst [vmem:[#allocation91_spill] sm:$0xff] %v8333_v13  ;;  %v8343_v2 = vld [vmem:[#allocation11 + $0x70] sm:$0xff] }
  0x98   :  { %5930 = vmatpush3.msra.mxu1 %v8315_v10  ;;  %629 = vmatprep.subr.mxu0 %v8319_v44  ;;  %v8341_v10 = vld [vmem:[#allocation11 + $0x60] sm:$0xff]  ;;  %12467 = vst [vmem:[#allocation94_spill] sm:$0xff] %v8343_v2  ;;  %v8347_v44 = vld [vmem:[#allocation11 + $0x50] sm:$0xff] }
  0x99   :  { %5931 = vmatprep.subr.mxu1 %v11916_v0  ;;  %630 = vmatpush1.msra.mxu0 %v8321_v4  ;;  %12466 = vst [vmem:[#allocation93_spill] sm:$0xff] %v8341_v10  ;;  %12468 = vst [vmem:[#allocation95_spill] sm:$0xff] %v8347_v44  ;;  %v8353_v4 = vld [vmem:[#allocation11 + $0x58] sm:$0xff] }
  0x9a   :  { %5932 = vmatpush3.msra.mxu1 %v8323_v8  ;;  %631 = vmatprep.subr.mxu0 %v8327_v11  ;;  %v8351_v8 = vld [vmem:[#allocation11 + $0x48] sm:$0xff]  ;;  %12470 = vst [vmem:[#allocation97_spill] sm:$0xff] %v8353_v4  ;;  %v8357_v11 = vld [vmem:[#allocation11 + $0x38] sm:$0xff] }
  0x9b   :  { %5933 = vmatprep.subr.mxu1 %v11916_v0  ;;  %632 = vmatpush1.msra.mxu0 %v8331_v14  ;;  %12469 = vst [vmem:[#allocation96_spill] sm:$0xff] %v8351_v8  ;;  %12471 = vst [vmem:[#allocation98_spill] sm:$0xff] %v8357_v11  ;;  %v8363_v14 = vld [vmem:[#allocation11 + $0x40] sm:$0xff] }
  0x9c   :  { %5934 = vmatpush3.msra.mxu1 %v8333_v13  ;;  %633 = vmatprep.subr.mxu0 %v8337_v5  ;;  %v8361_v13 = vld [vmem:[#allocation11 + $0x30] sm:$0xff]  ;;  %12473 = vst [vmem:[#allocation100_spill] sm:$0xff] %v8363_v14  ;;  %v8367_v5 = vld [vmem:[#allocation11 + $0x20] sm:$0xff] }
  0x9d   :  { %5935 = vmatprep.subr.mxu1 %v11916_v0  ;;  %634 = vmatpush1.msra.mxu0 %v8341_v10  ;;  %12472 = vst [vmem:[#allocation99_spill] sm:$0xff] %v8361_v13  ;;  %12474 = vst [vmem:[#allocation101_spill] sm:$0xff] %v8367_v5  ;;  %v8373_v10 = vld [vmem:[#allocation11 + $0x28] sm:$0xff] }
  0x9e   :  { %5936 = vmatpush3.msra.mxu1 %v8343_v2  ;;  %635 = vmatprep.subr.mxu0 %v8347_v44  ;;  %v8371_v2 = vld [vmem:[#allocation11 + $0x18] sm:$0xff]  ;;  %12476 = vst [vmem:[#allocation103_spill] sm:$0xff] %v8373_v10  ;;  %v8377_v44 = vld [vmem:[#allocation11 + $0x8] sm:$0xff] }
  0x9f   :  { %5937 = vmatprep.subr.mxu1 %v11916_v0  ;;  %636 = vmatpush1.msra.mxu0 %v8351_v8  ;;  %12475 = vst [vmem:[#allocation102_spill] sm:$0xff] %v8371_v2  ;;  %12477 = vst [vmem:[#allocation104_spill] sm:$0xff] %v8377_v44  ;;  %v8383_v8 = vld [vmem:[#allocation11 + $0x10] sm:$0xff] }
  0xa0   :  { %5938 = vmatpush3.msra.mxu1 %v8353_v4  ;;  %637 = vmatprep.subr.mxu0 %v8357_v11  ;;  %v8381_v4 = vld [vmem:[#allocation11] sm:$0xff]  ;;  %12479 = vst [vmem:[#allocation106_spill] sm:$0xff] %v8383_v8  ;;  %v8387_v11 = vld [vmem:[#allocation13 + $0x170] sm:$0xff] }
  0xa1   :  { %5939 = vmatprep.subr.mxu1 %v11916_v0  ;;  %638 = vmatpush1.msra.mxu0 %v8361_v13  ;;  %12478 = vst [vmem:[#allocation105_spill] sm:$0xff] %v8381_v4  ;;  %12480 = vst [vmem:[#allocation107_spill] sm:$0xff] %v8387_v11  ;;  %v165_v13 = vlaneseq }
  0xa2   :  { %5940 = vmatpush3.msra.mxu1 %v8363_v14  ;;  %639 = vmatprep.subr.mxu0 %v8367_v5 }
  0xa3   :  { %5941 = vmatprep.subr.mxu1 %v11916_v0  ;;  %640 = vmatpush1.msra.mxu0 %v8371_v2  ;;  %v166_v2 = vshrl.u32 %v165_v13, 7 }
  0xa4   :  { %5942 = vmatpush3.msra.mxu1 %v8373_v10  ;;  %641 = vmatprep.subr.mxu0 %v8377_v44  ;;  %v108_v44 = vld [vmem:[%s11832_s3] sm:$0x7] }
  0xa5   :  { %5943 = vmatprep.subr.mxu1 %v11916_v0  ;;  %642 = vmatpush1.msra.mxu0 %v8381_v4  ;;  %v8395_v63 = vsub.s32 0, %v166_v2  ;;  %v109_v4 = vld [vmem:[%s11833_s4] sm:$0x7] }
  0xa6   :  { %5944 = vmatpush3.msra.mxu1 %v8383_v8  ;;  %816 = vmatprep.subr.mxu0 %v8387_v11  ;;  %v8409_v11 = vsub.s32 1, %v166_v2 }
  0xa7   :  { %5948 = vmatprep.subr.mxu1 %v11916_v0  ;;  %12481 = vst [vmem:[#allocation108_spill] sm:$0xff] %v8395_v63  ;;  %v8404_v8 = vrot.slane %v108_v44, %v8395_v63  ;;  %v8407_v0 = vrot.slane %v109_v4, %v8395_v63 }
  0xa8   :  { %12484 = vst [vmem:[#allocation111_spill] sm:$0xff] %v8409_v11  ;;  %v8414_v61 = vrot.slane %v109_v4, %v8409_v11  ;;  %v8417_v16 = vrot.slane %v108_v44, %v8409_v11 }
  0xa9   :  { %12482 = vst [vmem:[#allocation109_spill] sm:$0xff] %v8404_v8  ;;  %12483 = vst [vmem:[#allocation110_spill] sm:$0xff] %v8407_v0 }
 0x11f   :  { %v246_v10 = vpop.f32.mrf.mxu0 }
 0x120   :  { %v247_v62 = vadd.f32 %v246_v10, %v8404_v8  ;;  %v8421_v8 = vsub.s32 2, %v166_v2 }
 0x122   :  { %v8424_v11 = vrot.slane %v109_v4, %v8421_v8 }
 0x125   :  { %v317_v5 = vpop.f32.mrf.mxu1 }
 0x127   :  { %v5877_v14 = vpop.f32.mrf.mxu1 }
 0x128   :  { %v248_v14 = vpop.f32.mrf.mxu0 }
 0x129   :  { %v249_v12 = vadd.f32 %v248_v14, %v8417_v16 }
 0x13f   :  { %v451_v13 = vpop.f32.mrf.mxu0 }
 0x140   :  { %v452_v7 = vadd.f32 %v451_v13, %v8407_v0 }
 0x141   :  { %v453_v59 = vpop.f32.mrf.mxu0 }
 0x142   :  { %v526_v58 = vadd.f32 %v452_v7, %v247_v62  ;;  %v454_v63 = vadd.f32 %v453_v59, %v8414_v61 }
 0x144   :  { %v5267_v56 = vmul.f32 -1.442695, %v526_v58  ;;  %v533_v55 = vadd.f32 %v454_v63, %v249_v12  ;;  %v8427_v58 = vrot.slane %v108_v44, %v8421_v8  ;;  %v8435_v44 = vld [vmem:[#allocation13 + $0x178] sm:$0xff] }
 0x146   :  { %6975 = vpow2.f32 %v5267_v56  ;;  %v5268_v53 = vmul.f32 -1.442695, %v533_v55  ;;  %v318_v55 = vadd.f32 %v317_v5, %v8427_v58  ;;  %v8441_v5 = vld [vmem:[#allocation13 + $0x150] sm:$0xff] }
 0x147   :  { %v522_v9 = vpop.f32.mrf.mxu1 }
 0x148   :  { %6977 = vpow2.f32 %v5268_v53  ;;  %v523_v56 = vadd.f32 %v522_v9, %v8424_v11  ;;  %v8443_v9 = vld [vmem:[#allocation13 + $0x160] sm:$0xff] }
 0x149   :  { %v5912_v10 = vpop.f32.mrf.mxu1 }
 0x153   :  { %v6976_v13 = vpop.eup %6975 }
 0x154   :  { %v530_v0 = vadd.f32 1.0, %v6976_v13  ;;  %v8433_v13 = vld [vmem:[#allocation13 + $0x168] sm:$0xff] }
 0x155   :  { %v6978_v62 = vpop.eup %6977 }
 0x156   :  { %6979 = vrcp.f32 %v530_v0  ;;  %v537_v59 = vadd.f32 1.0, %v6978_v62  ;;  %v8437_v62 = vld [vmem:[#allocation13 + $0x158] sm:$0xff] }
 0x158   :  { %6981 = vrcp.f32 %v537_v59  ;;  %v8447_v59 = vld [vmem:[#allocation13 + $0x140] sm:$0xff] }
 0x163   :  { %v6980_v63 = vpop.eup %6979 }
 0x164   :  { %v540_v53 = vmul.f32 %v6980_v63, %v523_v56  ;;  %v12485_v56 = vmov 0.0   ;;  %v8451_v63 = vld [vmem:[#allocation13 + $0x138] sm:$0xff] }
 0x165   :  { %v6982_v0 = vpop.eup %6981  ;;  %12486 = vst [vmem:[#allocation112_spill] sm:$0xff] %v8451_v63 }
 0x166   :  { %v541_v7 = vadd.f32 %v540_v53, %v318_v55  ;;  %v543_v2 = vsub.f32 1.0, %v6982_v0  ;;  %v545_v4 = vmul.f32 0.0, %v6982_v0  ;;  %v8453_v55 = vld [vmem:[#allocation13 + $0x148] sm:$0xff]  ;;  %v8463_v0 = vld [vmem:[#allocation13 + $0x130] sm:$0xff] }
 0x167   :  { %12487 = vst [vmem:[#allocation113_spill] sm:$0xff] %v8453_v55  ;;  %v8457_v53 = vld [vmem:[#allocation13 + $0x128] sm:$0xff]  ;;  %12490 = vst [vmem:[#allocation116_spill] sm:$0xff] %v8463_v0 }
 0x168   :  { %6983 = vtanh.f32 %v541_v7  ;;  %12488 = vst [vmem:[#allocation114_spill] sm:$0xff] %v8457_v53  ;;  %v8461_v7 = vld [vmem:[#allocation13 + $0x120] sm:$0xff] }
 0x169   :  { %12489 = vst [vmem:[#allocation115_spill] sm:$0xff] %v8461_v7 }
 0x175   :  { %v6984_v12 = vpop.eup %6983 }
 0x176   :  { %v544_v14 = vmul.f32 %v6984_v12, %v543_v2  ;;  %v8467_v2 = vld [vmem:[#allocation13 + $0x110] sm:$0xff]  ;;  %v8471_v12 = vld [vmem:[#allocation13 + $0x108] sm:$0xff] }
 0x177   :  { %12491 = vst [vmem:[#allocation117_spill] sm:$0xff] %v8467_v2  ;;  %12492 = vst [vmem:[#allocation118_spill] sm:$0xff] %v8471_v12 }
 0x178   :  { %v8431_v10 = vadd.f32 %v545_v4, %v544_v14  ;;  %v8473_v14 = vld [vmem:[#allocation13 + $0x118] sm:$0xff] }
 0x179   :  { %12493 = vst [vmem:[#allocation119_spill] sm:$0xff] %v8473_v14  ;;  %v8477_v4 = vld [vmem:[#allocation13 + $0xf8] sm:$0xff] }
 0x17a   :  { %676 = vmatmul.mubr.f32.vlgmr.msra.gmra.mxu0 %v8431_v10  ;;  %5946 = vmatmul.mubr.f32.vlgmr.msra.gmra.mxu1 %v8431_v10  ;;  %12494 = vst [vmem:[#allocation120_spill] sm:$0xff] %v8477_v4 }
 0x17b   :  { %817 = vmatpush1.msra.mxu0 %v8433_v13  ;;  %5949 = vmatpush3.msra.mxu1 %v8435_v44 }
 0x17c   :  { %818 = vmatprep.subr.mxu0 %v8437_v62  ;;  %5950 = vmatprep.subr.mxu1 %v12485_v56 }
 0x17d   :  { %819 = vmatpush1.msra.mxu0 %v8441_v5  ;;  %5951 = vmatpush3.msra.mxu1 %v8443_v9 }
 0x17e   :  { %820 = vmatprep.subr.mxu0 %v8447_v59  ;;  %5952 = vmatprep.subr.mxu1 %v12485_v56 }
 0x17f   :  { %821 = vmatpush1.msra.mxu0 %v8451_v63  ;;  %5953 = vmatpush3.msra.mxu1 %v8453_v55  ;;  %v8481_v55 = vld [vmem:[#allocation13 + $0xf0] sm:$0xff]  ;;  %v8483_v63 = vld [vmem:[#allocation13 + $0x100] sm:$0xff] }
 0x180   :  { %822 = vmatprep.subr.mxu0 %v8457_v53  ;;  %5954 = vmatprep.subr.mxu1 %v12485_v56  ;;  %12495 = vst [vmem:[#allocation121_spill] sm:$0xff] %v8481_v55  ;;  %12496 = vst [vmem:[#allocation122_spill] sm:$0xff] %v8483_v63  ;;  %v8487_v53 = vld [vmem:[#allocation13 + $0xe0] sm:$0xff] }
 0x181   :  { %823 = vmatpush1.msra.mxu0 %v8461_v7  ;;  %5955 = vmatpush3.msra.mxu1 %v8463_v0  ;;  %12497 = vst [vmem:[#allocation123_spill] sm:$0xff] %v8487_v53  ;;  %v8491_v0 = vld [vmem:[#allocation13 + $0xd8] sm:$0xff]  ;;  %v8493_v7 = vld [vmem:[#allocation13 + $0xe8] sm:$0xff] }
 0x182   :  { %824 = vmatprep.subr.mxu0 %v8467_v2  ;;  %5956 = vmatprep.subr.mxu1 %v12485_v56  ;;  %12498 = vst [vmem:[#allocation124_spill] sm:$0xff] %v8491_v0  ;;  %12499 = vst [vmem:[#allocation125_spill] sm:$0xff] %v8493_v7  ;;  %v8497_v2 = vld [vmem:[#allocation13 + $0xc8] sm:$0xff] }
 0x183   :  { %825 = vmatpush1.msra.mxu0 %v8471_v12  ;;  %5957 = vmatpush3.msra.mxu1 %v8473_v14  ;;  %12500 = vst [vmem:[#allocation126_spill] sm:$0xff] %v8497_v2  ;;  %v8501_v14 = vld [vmem:[#allocation13 + $0xc0] sm:$0xff]  ;;  %v8503_v12 = vld [vmem:[#allocation13 + $0xd0] sm:$0xff] }
 0x184   :  { %826 = vmatprep.subr.mxu0 %v8477_v4  ;;  %5958 = vmatprep.subr.mxu1 %v12485_v56  ;;  %12501 = vst [vmem:[#allocation127_spill] sm:$0xff] %v8501_v14  ;;  %12502 = vst [vmem:[#allocation128_spill] sm:$0xff] %v8503_v12  ;;  %v8507_v4 = vld [vmem:[#allocation13 + $0xb0] sm:$0xff] }
 0x185   :  { %827 = vmatpush1.msra.mxu0 %v8481_v55  ;;  %5959 = vmatpush3.msra.mxu1 %v8483_v63  ;;  %12503 = vst [vmem:[#allocation129_spill] sm:$0xff] %v8507_v4  ;;  %v8511_v63 = vld [vmem:[#allocation13 + $0xa8] sm:$0xff]  ;;  %v8513_v55 = vld [vmem:[#allocation13 + $0xb8] sm:$0xff] }
 0x186   :  { %828 = vmatprep.subr.mxu0 %v8487_v53  ;;  %5960 = vmatprep.subr.mxu1 %v12485_v56  ;;  %12504 = vst [vmem:[#allocation130_spill] sm:$0xff] %v8511_v63  ;;  %12505 = vst [vmem:[#allocation131_spill] sm:$0xff] %v8513_v55  ;;  %v8517_v53 = vld [vmem:[#allocation13 + $0x98] sm:$0xff] }
 0x187   :  { %829 = vmatpush1.msra.mxu0 %v8491_v0  ;;  %5961 = vmatpush3.msra.mxu1 %v8493_v7  ;;  %12506 = vst [vmem:[#allocation132_spill] sm:$0xff] %v8517_v53  ;;  %v8521_v7 = vld [vmem:[#allocation13 + $0x90] sm:$0xff]  ;;  %v8523_v0 = vld [vmem:[#allocation13 + $0xa0] sm:$0xff] }
 0x188   :  { %830 = vmatprep.subr.mxu0 %v8497_v2  ;;  %5962 = vmatprep.subr.mxu1 %v12485_v56  ;;  %12507 = vst [vmem:[#allocation133_spill] sm:$0xff] %v8521_v7  ;;  %12508 = vst [vmem:[#allocation134_spill] sm:$0xff] %v8523_v0  ;;  %v8527_v2 = vld [vmem:[#allocation13 + $0x80] sm:$0xff] }
 0x189   :  { %831 = vmatpush1.msra.mxu0 %v8501_v14  ;;  %5963 = vmatpush3.msra.mxu1 %v8503_v12  ;;  %12509 = vst [vmem:[#allocation135_spill] sm:$0xff] %v8527_v2  ;;  %v8531_v12 = vld [vmem:[#allocation13 + $0x78] sm:$0xff]  ;;  %v8533_v14 = vld [vmem:[#allocation13 + $0x88] sm:$0xff] }
 0x18a   :  { %832 = vmatprep.subr.mxu0 %v8507_v4  ;;  %5964 = vmatprep.subr.mxu1 %v12485_v56  ;;  %12510 = vst [vmem:[#allocation136_spill] sm:$0xff] %v8531_v12  ;;  %12511 = vst [vmem:[#allocation137_spill] sm:$0xff] %v8533_v14  ;;  %v8537_v4 = vld [vmem:[#allocation13 + $0x68] sm:$0xff] }
 0x18b   :  { %833 = vmatpush1.msra.mxu0 %v8511_v63  ;;  %5965 = vmatpush3.msra.mxu1 %v8513_v55  ;;  %12512 = vst [vmem:[#allocation138_spill] sm:$0xff] %v8537_v4  ;;  %v8541_v55 = vld [vmem:[#allocation13 + $0x60] sm:$0xff]  ;;  %v8543_v63 = vld [vmem:[#allocation13 + $0x70] sm:$0xff] }
 0x18c   :  { %834 = vmatprep.subr.mxu0 %v8517_v53  ;;  %5966 = vmatprep.subr.mxu1 %v12485_v56  ;;  %12513 = vst [vmem:[#allocation139_spill] sm:$0xff] %v8541_v55  ;;  %12514 = vst [vmem:[#allocation140_spill] sm:$0xff] %v8543_v63  ;;  %v8547_v53 = vld [vmem:[#allocation13 + $0x50] sm:$0xff] }
 0x18d   :  { %835 = vmatpush1.msra.mxu0 %v8521_v7  ;;  %5967 = vmatpush3.msra.mxu1 %v8523_v0  ;;  %12515 = vst [vmem:[#allocation141_spill] sm:$0xff] %v8547_v53  ;;  %v8551_v0 = vld [vmem:[#allocation13 + $0x48] sm:$0xff]  ;;  %v8553_v7 = vld [vmem:[#allocation13 + $0x58] sm:$0xff] }
 0x18e   :  { %836 = vmatprep.subr.mxu0 %v8527_v2  ;;  %5968 = vmatprep.subr.mxu1 %v12485_v56  ;;  %12516 = vst [vmem:[#allocation142_spill] sm:$0xff] %v8553_v7  ;;  %v8557_v2 = vld [vmem:[#allocation13 + $0x38] sm:$0xff] }
 0x18f   :  { %837 = vmatpush1.msra.mxu0 %v8531_v12  ;;  %5969 = vmatpush3.msra.mxu1 %v8533_v14  ;;  %12517 = vst [vmem:[#allocation143_spill] sm:$0xff] %v8557_v2  ;;  %v8561_v14 = vld [vmem:[#allocation13 + $0x30] sm:$0xff]  ;;  %v8563_v12 = vld [vmem:[#allocation13 + $0x40] sm:$0xff] }
 0x190   :  { %838 = vmatprep.subr.mxu0 %v8537_v4  ;;  %5970 = vmatprep.subr.mxu1 %v12485_v56  ;;  %v8567_v4 = vld [vmem:[#allocation13 + $0x20] sm:$0xff] }
 0x191   :  { %839 = vmatpush1.msra.mxu0 %v8541_v55  ;;  %5971 = vmatpush3.msra.mxu1 %v8543_v63  ;;  %v8571_v63 = vld [vmem:[#allocation13 + $0x18] sm:$0xff]  ;;  %v8573_v55 = vld [vmem:[#allocation13 + $0x28] sm:$0xff] }
 0x192   :  { %840 = vmatprep.subr.mxu0 %v8547_v53  ;;  %5972 = vmatprep.subr.mxu1 %v12485_v56  ;;  %v8577_v53 = vld [vmem:[#allocation13 + $0x8] sm:$0xff] }
 0x193   :  { %841 = vmatpush1.msra.mxu0 %v8551_v0  ;;  %5973 = vmatpush3.msra.mxu1 %v8553_v7  ;;  %12518 = vst [vmem:[#allocation144_spill] sm:$0xff] %v8577_v53  ;;  %v8581_v7 = vld [vmem:[#allocation13] sm:$0xff] }
 0x194   :  { %842 = vmatprep.subr.mxu0 %v8557_v2  ;;  %5974 = vmatprep.subr.mxu1 %v12485_v56  ;;  %12519 = vst [vmem:[#allocation145_spill] sm:$0xff] %v8581_v7  ;;  %v8585_v2 = vld [vmem:[#allocation13 + $0x10] sm:$0xff] }
 0x195   :  { %843 = vmatpush1.msra.mxu0 %v8561_v14  ;;  %5975 = vmatpush3.msra.mxu1 %v8563_v12  ;;  %12520 = vst [vmem:[#allocation146_spill] sm:$0xff] %v8585_v2 }
 0x196   :  { %844 = vmatprep.subr.mxu0 %v8567_v4  ;;  %5976 = vmatprep.subr.mxu1 %v12485_v56 }
 0x197   :  { %845 = vmatpush1.msra.mxu0 %v8571_v63  ;;  %5977 = vmatpush3.msra.mxu1 %v8573_v55 }
 0x198   :  { %846 = vmatprep.subr.mxu0 %v8577_v53  ;;  %5978 = vmatprep.subr.mxu1 %v12485_v56  ;;  %v8598_v53 = vld [vmem:[#allocation8 + $0x168] sm:$0xff] }
 0x199   :  { %847 = vmatpush1.msra.mxu0 %v8581_v7  ;;  %880 = vmatprep.mubr.f32.mxu0 %v12485_v56  ;;  %12521 = vst [vmem:[#allocation147_spill] sm:$0xff] %v8598_v53  ;;  %v8602_v7 = vld [vmem:[#allocation8 + $0x158] sm:$0xff] }
 0x19a   :  { %5979 = vmatpush3.msra.mxu1 %v8585_v2  ;;  %881 = vmatmul.mubr.f32.vlgmr.msra.gmra.mxu0 %v12485_v56  ;;  %v8606_v2 = vld [vmem:[#allocation8 + $0x150] sm:$0xff] }
 0x19b   :  { %5980 = vmatprep.mubr.msk.f32.mxu1 %vm7863_vm0, %v12485_v56  ;;  %981 = vmatprep.subr.mxu0 %v7946_v1  ;;  %12522 = vst [vmem:[#allocation148_spill] sm:$0xff] %v8606_v2  ;;  %v8610_v1 = vld [vmem:[#allocation8 + $0x140] sm:$0xff] }
 0x19c   :  { %5983 = vmatprep.subr.mxu1 %v12485_v56  ;;  %5981 = vmatmul.mubr.f32.vlgmr.msra.gmra.mxu1 %v12485_v56 }
 0x19d   :  { %982 = vmatpush1.msra.mxu0 %v8598_v53  ;;  %5984 = vmatpush3.msra.mxu1 %v7949_v15  ;;  %v8614_v53 = vld [vmem:[#allocation8 + $0x138] sm:$0xff]  ;;  %v8618_v15 = vld [vmem:[#allocation8 + $0x128] sm:$0xff] }
 0x19e   :  { %983 = vmatprep.subr.mxu0 %v8602_v7  ;;  %5985 = vmatprep.subr.mxu1 %v12485_v56  ;;  %12523 = vst [vmem:[#allocation149_spill] sm:$0xff] %v8614_v53 }
 0x19f   :  { %984 = vmatpush1.msra.mxu0 %v8606_v2  ;;  %5986 = vmatpush3.msra.mxu1 %v7952_v17  ;;  %v8622_v2 = vld [vmem:[#allocation8 + $0x120] sm:$0xff]  ;;  %v8626_v17 = vld [vmem:[#allocation8 + $0x110] sm:$0xff] }
 0x1a0   :  { %985 = vmatprep.subr.mxu0 %v8610_v1  ;;  %5987 = vmatprep.subr.mxu1 %v12485_v56  ;;  %12524 = vst [vmem:[#allocation150_spill] sm:$0xff] %v8622_v2 }
 0x1a1   :  { %986 = vmatpush1.msra.mxu0 %v8614_v53  ;;  %5988 = vmatpush3.msra.mxu1 %v7957_v19  ;;  %v8630_v53 = vld [vmem:[#allocation8 + $0x108] sm:$0xff]  ;;  %v8634_v19 = vld [vmem:[#allocation8 + $0xf8] sm:$0xff] }
 0x1a2   :  { %987 = vmatprep.subr.mxu0 %v8618_v15  ;;  %5989 = vmatprep.subr.mxu1 %v12485_v56  ;;  %12525 = vst [vmem:[#allocation151_spill] sm:$0xff] %v8630_v53 }
 0x1a3   :  { %988 = vmatpush1.msra.mxu0 %v8622_v2  ;;  %5990 = vmatpush3.msra.mxu1 %v7965_v22  ;;  %v8638_v2 = vld [vmem:[#allocation8 + $0xf0] sm:$0xff]  ;;  %v8642_v22 = vld [vmem:[#allocation8 + $0xe0] sm:$0xff] }
 0x1a4   :  { %989 = vmatprep.subr.mxu0 %v8626_v17  ;;  %5991 = vmatprep.subr.mxu1 %v12485_v56 }
 0x1a5   :  { %990 = vmatpush1.msra.mxu0 %v8630_v53  ;;  %5992 = vmatpush3.msra.mxu1 %v7975_v25  ;;  %v8646_v53 = vld [vmem:[#allocation8 + $0xd8] sm:$0xff]  ;;  %v8650_v25 = vld [vmem:[#allocation8 + $0xc8] sm:$0xff] }
 0x1a6   :  { %991 = vmatprep.subr.mxu0 %v8634_v19  ;;  %5993 = vmatprep.subr.mxu1 %v12485_v56 }
 0x1a7   :  { %992 = vmatpush1.msra.mxu0 %v8638_v2  ;;  %5994 = vmatpush3.msra.mxu1 %v7985_v28  ;;  %v12532_v28 = vld [vmem:[#allocation38_spill] sm:$0xff] }
 0x1a8   :  { %993 = vmatprep.subr.mxu0 %v8642_v22  ;;  %5995 = vmatprep.subr.mxu1 %v12485_v56 }
 0x1a9   :  { %994 = vmatpush1.msra.mxu0 %v8646_v53  ;;  %5996 = vmatpush3.msra.mxu1 %v7995_v31  ;;  %v12535_v31 = vld [vmem:[#allocation41_spill] sm:$0xff] }
 0x1aa   :  { %995 = vmatprep.subr.mxu0 %v8650_v25  ;;  %5997 = vmatprep.subr.mxu1 %v12485_v56 }
 0x1ab   :  { %996 = vmatpush1.msra.mxu0 %v7954_v18  ;;  %5998 = vmatpush3.msra.mxu1 %v8005_v34  ;;  %v980_v18 = vld [vmem:[#allocation5 + $0x8] sm:$0xff]  ;;  %v12538_v34 = vld [vmem:[#allocation44_spill] sm:$0xff] }
 0x1ac   :  { %997 = vmatprep.subr.mxu0 %v7959_v20  ;;  %5999 = vmatprep.subr.mxu1 %v12485_v56  ;;  %v12526_v20 = vld [vmem:[#allocation32_spill] sm:$0xff] }
 0x1ad   :  { %998 = vmatpush1.msra.mxu0 %v7962_v21  ;;  %6000 = vmatpush3.msra.mxu1 %v8015_v37  ;;  %v12527_v21 = vld [vmem:[#allocation19_spill] sm:$0xff] }
 0x1ae   :  { %999 = vmatprep.subr.mxu0 %v7968_v23  ;;  %6001 = vmatprep.subr.mxu1 %v12485_v56  ;;  %v12528_v23 = vld [vmem:[#allocation20_spill] sm:$0xff]  ;;  %v12541_v37 = vld [vmem:[#allocation47_spill] sm:$0xff] }
 0x1af   :  { %1000 = vmatpush1.msra.mxu0 %v7972_v24  ;;  %6002 = vmatpush3.msra.mxu1 %v8025_v40  ;;  %v12529_v24 = vld [vmem:[#allocation35_spill] sm:$0xff]  ;;  %v12544_v40 = vld [vmem:[#allocation50_spill] sm:$0xff] }
 0x1b0   :  { %1001 = vmatprep.subr.mxu0 %v7978_v26  ;;  %6003 = vmatprep.subr.mxu1 %v12485_v56  ;;  %v12530_v26 = vld [vmem:[#allocation21_spill] sm:$0xff] }
 0x1b1   :  { %1002 = vmatpush1.msra.mxu0 %v7982_v27  ;;  %6004 = vmatpush3.msra.mxu1 %v8035_v43  ;;  %v12531_v27 = vld [vmem:[#allocation22_spill] sm:$0xff]  ;;  %v12547_v43 = vld [vmem:[#allocation52_spill] sm:$0xff] }
 0x1b2   :  { %1003 = vmatprep.subr.mxu0 %v7988_v29  ;;  %6005 = vmatprep.subr.mxu1 %v12485_v56  ;;  %v12533_v29 = vld [vmem:[#allocation23_spill] sm:$0xff] }
 0x1b3   :  { %1004 = vmatpush1.msra.mxu0 %v7992_v30  ;;  %6006 = vmatpush3.msra.mxu1 %v8049_v48  ;;  %v12534_v30 = vld [vmem:[#allocation24_spill] sm:$0xff]  ;;  %v12551_v48 = vld [vmem:[#allocation37_spill] sm:$0xff] }
 0x1b4   :  { %1005 = vmatprep.subr.mxu0 %v7998_v32  ;;  %6007 = vmatprep.subr.mxu1 %v12485_v56  ;;  %v12536_v32 = vld [vmem:[#allocation25_spill] sm:$0xff] }
 0x1b5   :  { %1006 = vmatpush1.msra.mxu0 %v8002_v33  ;;  %6008 = vmatpush3.msra.mxu1 %v8058_v51  ;;  %v12537_v33 = vld [vmem:[#allocation26_spill] sm:$0xff]  ;;  %v12554_v51 = vld [vmem:[#allocation40_spill] sm:$0xff] }
 0x1b6   :  { %1007 = vmatprep.subr.mxu0 %v8008_v35  ;;  %6009 = vmatprep.subr.mxu1 %v12485_v56  ;;  %v12539_v35 = vld [vmem:[#allocation27_spill] sm:$0xff] }
 0x1b7   :  { %1008 = vmatpush1.msra.mxu0 %v8012_v36  ;;  %6010 = vmatpush3.msra.mxu1 %v8068_v54  ;;  %v12540_v36 = vld [vmem:[#allocation28_spill] sm:$0xff]  ;;  %v12556_v54 = vld [vmem:[#allocation55_spill] sm:$0xff] }
 0x1b8   :  { %1009 = vmatprep.subr.mxu0 %v8018_v38  ;;  %6011 = vmatprep.subr.mxu1 %v12485_v56  ;;  %v12542_v38 = vld [vmem:[#allocation29_spill] sm:$0xff] }
 0x1b9   :  { %1010 = vmatpush1.msra.mxu0 %v8022_v39  ;;  %6012 = vmatpush3.msra.mxu1 %v8078_v57  ;;  %v12543_v39 = vld [vmem:[#allocation30_spill] sm:$0xff]  ;;  %v12557_v57 = vld [vmem:[#allocation43_spill] sm:$0xff] }
 0x1ba   :  { %1011 = vmatprep.subr.mxu0 %v8028_v41  ;;  %6013 = vmatprep.subr.mxu1 %v12485_v56  ;;  %v12545_v41 = vld [vmem:[#allocation31_spill] sm:$0xff] }
 0x1bb   :  { %1012 = vmatpush1.msra.mxu0 %v8032_v42  ;;  %1045 = vmatprep.mubr.f32.mxu0 %v12485_v56  ;;  %v12546_v42 = vld [vmem:[#allocation33_spill] sm:$0xff] }
 0x1bc   :  { %6014 = vmatpush3.msra.mxu1 %v8088_v60  ;;  %1046 = vmatmul.mubr.f32.vlgmr.msra.gmra.mxu0 %v980_v18  ;;  %v12558_v60 = vld [vmem:[#allocation45_spill] sm:$0xff] }
 0x1bd   :  { %6015 = vmatprep.mubr.msk.f32.mxu1 %vm7863_vm0, %v12485_v56  ;;  %1122 = vmatprep.subr.mxu0 %v8038_v45  ;;  %v12548_v45 = vld [vmem:[#allocation34_spill] sm:$0xff] }
 0x1be   :  { %6018 = vmatprep.subr.mxu1 %v12485_v56  ;;  %6016 = vmatmul.mubr.f32.vlgmr.msra.gmra.mxu1 %v980_v18  ;;  %v12561_v18 = vld [vmem:[#allocation48_spill] sm:$0xff] }
 0x1bf   :  { %1123 = vmatpush1.msra.mxu0 %v8042_v46  ;;  %6019 = vmatpush3.msra.mxu1 %v8106_v3  ;;  %v12549_v46 = vld [vmem:[#allocation36_spill] sm:$0xff] }
 0x1c0   :  { %1124 = vmatprep.subr.mxu0 %v8046_v47  ;;  %6020 = vmatprep.subr.mxu1 %v12485_v56  ;;  %v12550_v47 = vld [vmem:[#allocation53_spill] sm:$0xff]  ;;  %v12559_v3 = vld [vmem:[#allocation56_spill] sm:$0xff] }
 0x1c1   :  { %1125 = vmatpush1.msra.mxu0 %v8052_v49  ;;  %6021 = vmatpush3.msra.mxu1 %v8115_v6  ;;  %v12552_v49 = vld [vmem:[#allocation39_spill] sm:$0xff]  ;;  %v12560_v6 = vld [vmem:[#allocation46_spill] sm:$0xff] }
 0x1c2   :  { %1126 = vmatprep.subr.mxu0 %v8055_v50  ;;  %6022 = vmatprep.subr.mxu1 %v12485_v56  ;;  %v12553_v50 = vld [vmem:[#allocation54_spill] sm:$0xff] }
 0x1c3   :  { %1127 = vmatpush1.msra.mxu0 %v8061_v52  ;;  %6023 = vmatpush3.msra.mxu1 %v12526_v20  ;;  %v12555_v52 = vld [vmem:[#allocation42_spill] sm:$0xff]  ;;  %v12562_v20 = vld [vmem:[#allocation57_spill] sm:$0xff] }
 0x1c4   :  { %1128 = vmatprep.subr.mxu0 %v12527_v21  ;;  %6024 = vmatprep.subr.mxu1 %v12485_v56  ;;  %v12563_v21 = vld [vmem:[#allocation49_spill] sm:$0xff] }
 0x1c5   :  { %1129 = vmatpush1.msra.mxu0 %v12528_v23  ;;  %6025 = vmatpush3.msra.mxu1 %v12529_v24  ;;  %v12564_v23 = vld [vmem:[#allocation51_spill] sm:$0xff]  ;;  %v12565_v24 = vld [vmem:[#allocation58_spill] sm:$0xff] }
 0x1c6   :  { %1130 = vmatprep.subr.mxu0 %v12530_v26  ;;  %6026 = vmatprep.subr.mxu1 %v12485_v56  ;;  %v12566_v26 = vld [vmem:[#allocation59_spill] sm:$0xff] }
 0x1c7   :  { %1131 = vmatpush1.msra.mxu0 %v12531_v27  ;;  %6027 = vmatpush3.msra.mxu1 %v12532_v28  ;;  %v12567_v27 = vld [vmem:[#allocation60_spill] sm:$0xff]  ;;  %v12568_v28 = vld [vmem:[#allocation61_spill] sm:$0xff] }
 0x1c8   :  { %1132 = vmatprep.subr.mxu0 %v12533_v29  ;;  %6028 = vmatprep.subr.mxu1 %v12485_v56  ;;  %v12569_v29 = vld [vmem:[#allocation62_spill] sm:$0xff] }
 0x1c9   :  { %1133 = vmatpush1.msra.mxu0 %v12534_v30  ;;  %6029 = vmatpush3.msra.mxu1 %v12535_v31  ;;  %v12570_v30 = vld [vmem:[#allocation63_spill] sm:$0xff]  ;;  %v12571_v31 = vld [vmem:[#allocation64_spill] sm:$0xff] }
 0x1ca   :  { %1134 = vmatprep.subr.mxu0 %v12536_v32  ;;  %6030 = vmatprep.subr.mxu1 %v12485_v56  ;;  %v12572_v32 = vld [vmem:[#allocation65_spill] sm:$0xff] }
 0x1cb   :  { %1135 = vmatpush1.msra.mxu0 %v12537_v33  ;;  %6031 = vmatpush3.msra.mxu1 %v12538_v34  ;;  %v12573_v33 = vld [vmem:[#allocation67_spill] sm:$0xff]  ;;  %v12574_v34 = vld [vmem:[#allocation66_spill] sm:$0xff] }
 0x1cc   :  { %1136 = vmatprep.subr.mxu0 %v12539_v35  ;;  %6032 = vmatprep.subr.mxu1 %v12485_v56  ;;  %v12575_v35 = vld [vmem:[#allocation68_spill] sm:$0xff] }
 0x1cd   :  { %1137 = vmatpush1.msra.mxu0 %v12540_v36  ;;  %6033 = vmatpush3.msra.mxu1 %v12541_v37  ;;  %v12576_v36 = vld [vmem:[#allocation69_spill] sm:$0xff]  ;;  %v12577_v37 = vld [vmem:[#allocation70_spill] sm:$0xff] }
 0x1ce   :  { %1138 = vmatprep.subr.mxu0 %v12542_v38  ;;  %6034 = vmatprep.subr.mxu1 %v12485_v56  ;;  %v12578_v38 = vld [vmem:[#allocation71_spill] sm:$0xff] }
 0x1cf   :  { %1139 = vmatpush1.msra.mxu0 %v12543_v39  ;;  %6035 = vmatpush3.msra.mxu1 %v12544_v40  ;;  %v12579_v39 = vld [vmem:[#allocation72_spill] sm:$0xff]  ;;  %v12580_v40 = vld [vmem:[#allocation73_spill] sm:$0xff] }
 0x1d0   :  { %1140 = vmatprep.subr.mxu0 %v12545_v41  ;;  %6036 = vmatprep.subr.mxu1 %v12485_v56  ;;  %v12581_v41 = vld [vmem:[#allocation74_spill] sm:$0xff] }
 0x1d1   :  { %1141 = vmatpush1.msra.mxu0 %v12546_v42  ;;  %6037 = vmatpush3.msra.mxu1 %v12547_v43  ;;  %v12582_v42 = vld [vmem:[#allocation75_spill] sm:$0xff]  ;;  %v12583_v43 = vld [vmem:[#allocation76_spill] sm:$0xff] }
 0x1d2   :  { %1142 = vmatprep.subr.mxu0 %v12548_v45  ;;  %6038 = vmatprep.subr.mxu1 %v12485_v56  ;;  %v12584_v45 = vld [vmem:[#allocation77_spill] sm:$0xff] }
 0x1d3   :  { %1143 = vmatpush1.msra.mxu0 %v12549_v46  ;;  %6039 = vmatpush3.msra.mxu1 %v12550_v47  ;;  %v12585_v46 = vld [vmem:[#allocation78_spill] sm:$0xff]  ;;  %v12586_v47 = vld [vmem:[#allocation79_spill] sm:$0xff] }
 0x1d4   :  { %1144 = vmatprep.subr.mxu0 %v12551_v48  ;;  %6040 = vmatprep.subr.mxu1 %v12485_v56  ;;  %v12587_v48 = vld [vmem:[#allocation80_spill] sm:$0xff] }
 0x1d5   :  { %1145 = vmatpush1.msra.mxu0 %v12552_v49  ;;  %6041 = vmatpush3.msra.mxu1 %v12553_v50  ;;  %v12588_v49 = vld [vmem:[#allocation81_spill] sm:$0xff]  ;;  %v12589_v50 = vld [vmem:[#allocation82_spill] sm:$0xff] }
 0x1d6   :  { %1146 = vmatprep.subr.mxu0 %v12554_v51  ;;  %6042 = vmatprep.subr.mxu1 %v12485_v56  ;;  %v12590_v51 = vld [vmem:[#allocation83_spill] sm:$0xff] }
 0x1d7   :  { %1147 = vmatpush1.msra.mxu0 %v12555_v52  ;;  %6043 = vmatpush3.msra.mxu1 %v12556_v54  ;;  %v12591_v52 = vld [vmem:[#allocation84_spill] sm:$0xff]  ;;  %v12592_v54 = vld [vmem:[#allocation85_spill] sm:$0xff] }
 0x1d8   :  { %1148 = vmatprep.subr.mxu0 %v12557_v57  ;;  %6044 = vmatprep.subr.mxu1 %v12485_v56  ;;  %v12593_v57 = vld [vmem:[#allocation86_spill] sm:$0xff] }
 0x1d9   :  { %1149 = vmatpush1.msra.mxu0 %v12558_v60  ;;  %6045 = vmatpush3.msra.mxu1 %v12559_v3  ;;  %v12594_v60 = vld [vmem:[#allocation87_spill] sm:$0xff]  ;;  %v12595_v3 = vld [vmem:[#allocation88_spill] sm:$0xff] }
 0x1da   :  { %1150 = vmatprep.subr.mxu0 %v12560_v6  ;;  %6046 = vmatprep.subr.mxu1 %v12485_v56  ;;  %v12596_v6 = vld [vmem:[#allocation89_spill] sm:$0xff] }
 0x1db   :  { %1151 = vmatpush1.msra.mxu0 %v12561_v18  ;;  %6047 = vmatpush3.msra.mxu1 %v12562_v20  ;;  %v12597_v18 = vld [vmem:[#allocation90_spill] sm:$0xff]  ;;  %v12598_v20 = vld [vmem:[#allocation91_spill] sm:$0xff] }
 0x1dc   :  { %1152 = vmatprep.subr.mxu0 %v12563_v21  ;;  %6048 = vmatprep.subr.mxu1 %v12485_v56  ;;  %v12599_v21 = vld [vmem:[#allocation92_spill] sm:$0xff] }
 0x1dd   :  { %1153 = vmatpush1.msra.mxu0 %v12564_v23  ;;  %1186 = vmatprep.mubr.f32.mxu0 %v12485_v56  ;;  %v12600_v23 = vld [vmem:[#allocation93_spill] sm:$0xff] }
 0x1de   :  { %6049 = vmatpush3.msra.mxu1 %v12565_v24  ;;  %6050 = vmatprep.mubr.msk.f32.mxu1 %vm7863_vm0, %v12485_v56  ;;  %v12601_v24 = vld [vmem:[#allocation94_spill] sm:$0xff] }
 0x1df   :  { %1187 = vmatmul.mubr.f32.vlgmr.msra.gmra.mxu0 %v8431_v10  ;;  %6051 = vmatmul.mubr.f32.vlgmr.msra.gmra.mxu1 %v8431_v10 }
 0x1e0   :  { %1284 = vmatprep.subr.mxu0 %v12566_v26  ;;  %6053 = vmatprep.subr.mxu1 %v12485_v56  ;;  %v12602_v26 = vld [vmem:[#allocation95_spill] sm:$0xff] }
 0x1e1   :  { %1285 = vmatpush1.msra.mxu0 %v12567_v27  ;;  %6054 = vmatpush3.msra.mxu1 %v12568_v28  ;;  %v12603_v27 = vld [vmem:[#allocation96_spill] sm:$0xff]  ;;  %v12604_v28 = vld [vmem:[#allocation97_spill] sm:$0xff] }
 0x1e2   :  { %1286 = vmatprep.subr.mxu0 %v12569_v29  ;;  %6055 = vmatprep.subr.mxu1 %v12485_v56  ;;  %v12605_v29 = vld [vmem:[#allocation98_spill] sm:$0xff] }
 0x1e3   :  { %1287 = vmatpush1.msra.mxu0 %v12570_v30  ;;  %6056 = vmatpush3.msra.mxu1 %v12571_v31  ;;  %v12606_v30 = vld [vmem:[#allocation99_spill] sm:$0xff]  ;;  %v12607_v31 = vld [vmem:[#allocation100_spill] sm:$0xff] }
 0x1e4   :  { %1288 = vmatprep.subr.mxu0 %v12572_v32  ;;  %6057 = vmatprep.subr.mxu1 %v12485_v56  ;;  %v12608_v32 = vld [vmem:[#allocation101_spill] sm:$0xff] }
 0x1e5   :  { %1289 = vmatpush1.msra.mxu0 %v12573_v33  ;;  %6058 = vmatpush3.msra.mxu1 %v12574_v34  ;;  %v12609_v33 = vld [vmem:[#allocation102_spill] sm:$0xff]  ;;  %v12610_v34 = vld [vmem:[#allocation103_spill] sm:$0xff] }
 0x1e6   :  { %1290 = vmatprep.subr.mxu0 %v12575_v35  ;;  %6059 = vmatprep.subr.mxu1 %v12485_v56  ;;  %v12611_v35 = vld [vmem:[#allocation104_spill] sm:$0xff] }
 0x1e7   :  { %1291 = vmatpush1.msra.mxu0 %v12576_v36  ;;  %6060 = vmatpush3.msra.mxu1 %v12577_v37  ;;  %v12612_v36 = vld [vmem:[#allocation105_spill] sm:$0xff]  ;;  %v12613_v37 = vld [vmem:[#allocation106_spill] sm:$0xff] }
 0x1e8   :  { %1292 = vmatprep.subr.mxu0 %v12578_v38  ;;  %6061 = vmatprep.subr.mxu1 %v12485_v56  ;;  %v12614_v38 = vld [vmem:[#allocation107_spill] sm:$0xff] }
 0x1e9   :  { %1293 = vmatpush1.msra.mxu0 %v12579_v39  ;;  %6062 = vmatpush3.msra.mxu1 %v12580_v40 }
 0x1ea   :  { %1294 = vmatprep.subr.mxu0 %v12581_v41  ;;  %6063 = vmatprep.subr.mxu1 %v12485_v56  ;;  %v110_v41 = vld [vmem:[%s11836_s7] sm:$0x7]  ;;  %s7864_s7 = smov [#allocation14]  }
 0x1eb   :  { %1295 = vmatpush1.msra.mxu0 %v12582_v42  ;;  %6064 = vmatpush3.msra.mxu1 %v12583_v43  ;;  %v111_v43 = vld [vmem:[%s11837_s8] sm:$0x7]  ;;  %s5256_s8 = sshll.u32 %s7864_s7, 4  ;;  %s5257_s8 = int_to_ptr.vmem [resolvable:$true] %s5256_s8 }
 0x1ec   :  { %1296 = vmatprep.subr.mxu0 %v12584_v45  ;;  %6065 = vmatprep.subr.mxu1 %v12485_v56  ;;  %v12615_v45 = vld [vmem:[#allocation108_spill] sm:$0xff]  ;;  %s7825_s18 = scalar_lea.vmem %s5257_s8, 128  ;;  %p7830_p12 = scmp.lt.s32.totalorder %s5257_s8, %s5257_s8 }
 0x1ed   :  { %1297 = vmatpush1.msra.mxu0 %v12585_v46  ;;  %6066 = vmatpush3.msra.mxu1 %v12586_v47  ;;  %v8836_v46 = vrot.slane %v110_v41, %v12615_v45  ;;  %v8839_v47 = vrot.slane %v111_v43, %v12615_v45  ;;  %p7826_p11 = scmp.ne.s32.totalorder %s5257_s8, %s7825_s18  ;;  %p7831_p13 = scmp.lt.s32.totalorder %s7825_s18, %s7825_s18 }
 0x1ee   :  { %1298 = vmatprep.subr.mxu0 %v12587_v48  ;;  %6067 = vmatprep.subr.mxu1 %v12485_v56 }
 0x1ef   :  { %1299 = vmatpush1.msra.mxu0 %v12588_v49  ;;  %6068 = vmatpush3.msra.mxu1 %v12589_v50  ;;  %12616 = vst [vmem:[#allocation32_spill] sm:$0xff] %v8836_v46  ;;  %p7832_p0 = por %p7831_p13, %p7830_p12 }
 0x1f0   :  { %1300 = vmatprep.subr.mxu0 %v12590_v51  ;;  %6069 = vmatprep.subr.mxu1 %v12485_v56 }
 0x1f1   :  { %1301 = vmatpush1.msra.mxu0 %v12591_v52  ;;  %6070 = vmatpush3.msra.mxu1 %v12592_v54  ;;  %p7833_p1 = pnand %p7832_p0, %p7826_p11 }
 0x1f2   :  { %1302 = vmatprep.subr.mxu0 %v12593_v57  ;;  %6071 = vmatprep.subr.mxu1 %v12485_v56 }
 0x1f3   :  { %1303 = vmatpush1.msra.mxu0 %v12594_v60  ;;  %6072 = vmatpush3.msra.mxu1 %v12595_v3 }
 0x1f4   :  { %1304 = vmatprep.subr.mxu0 %v12596_v6  ;;  %6073 = vmatprep.subr.mxu1 %v12485_v56 }
 0x1f5   :  { %1305 = vmatpush1.msra.mxu0 %v12597_v18  ;;  %6074 = vmatpush3.msra.mxu1 %v12598_v20  ;;  %v8844_v18 = vrot.slane %v111_v43, %v8421_v8  ;;  %v8847_v20 = vrot.slane %v110_v41, %v8421_v8 }
 0x1f6   :  { %1306 = vmatprep.subr.mxu0 %v12599_v21  ;;  %6075 = vmatprep.subr.mxu1 %v12485_v56 }
 0x1f7   :  { %1307 = vmatpush1.msra.mxu0 %v12600_v23  ;;  %6076 = vmatpush3.msra.mxu1 %v12601_v24  ;;  %12617 = vst [vmem:[#allocation19_spill] sm:$0xff] %v8844_v18  ;;  %12618 = vst [vmem:[#allocation20_spill] sm:$0xff] %v8847_v20 }
 0x1f8   :  { %1308 = vmatprep.subr.mxu0 %v12602_v26  ;;  %6077 = vmatprep.subr.mxu1 %v12485_v56 }
 0x1f9   :  { %1309 = vmatpush1.msra.mxu0 %v12603_v27  ;;  %6078 = vmatpush3.msra.mxu1 %v12604_v28 }
 0x1fa   :  { %1310 = vmatprep.subr.mxu0 %v12605_v29  ;;  %6079 = vmatprep.subr.mxu1 %v12485_v56 }
 0x1fb   :  { %1311 = vmatpush1.msra.mxu0 %v12606_v30  ;;  %6080 = vmatpush3.msra.mxu1 %v12607_v31 }
 0x1fc   :  { %1312 = vmatprep.subr.mxu0 %v12608_v32  ;;  %6081 = vmatprep.subr.mxu1 %v12485_v56 }
 0x1fd   :  { %1313 = vmatpush1.msra.mxu0 %v12609_v33  ;;  %6082 = vmatpush3.msra.mxu1 %v12610_v34 }
 0x1fe   :  { %1314 = vmatprep.subr.mxu0 %v12611_v35  ;;  %6083 = vmatprep.subr.mxu1 %v12485_v56  ;;  %v12619_v35 = vld [vmem:[#allocation109_spill] sm:$0xff] }
 0x1ff   :  { %1315 = vmatpush1.msra.mxu0 %v12612_v36  ;;  %6084 = vmatpush3.msra.mxu1 %v12613_v37  ;;  %v12620_v37 = vld [vmem:[#allocation110_spill] sm:$0xff] }
 0x200   :  { %1348 = vmatprep.mubr.f32.mxu0 %v12485_v56  ;;  %6085 = vmatprep.mubr.msk.f32.mxu1 %vm7863_vm0, %v12485_v56 }
 0x201   :  { %1425 = vmatprep.subr.mxu0 %v12614_v38  ;;  %6088 = vmatprep.subr.mxu1 %v12485_v56 }
 0x23a   :  { %v748_v39 = vpop.f32.mrf.mxu1  ;;  %v677_v42 = vpop.f32.mrf.mxu0 }
 0x23b   :  { %v678_v50 = vadd.f32 %v677_v42, %v8836_v46  ;;  %v749_v26 = vadd.f32 %v748_v39, %v8847_v20 }
 0x23c   :  { %v5947_v40 = vpop.f32.mrf.mxu1  ;;  %v679_v48 = vpop.f32.mrf.mxu0 }
 0x25a   :  { %v882_v49 = vpop.f32.mrf.mxu0 }
 0x25b   :  { %v883_v51 = vadd.f32 %v882_v49, %v8839_v47 }
 0x25c   :  { %v953_v52 = vpop.f32.mrf.mxu1  ;;  %v884_v30 = vpop.f32.mrf.mxu0 }
 0x25d   :  { %v957_v54 = vadd.f32 %v883_v51, %v678_v50  ;;  %v954_v21 = vadd.f32 %v953_v52, %v8844_v18 }
 0x25e   :  { %v5982_v57 = vpop.f32.mrf.mxu1 }
 0x25f   :  { %v5269_v60 = vmul.f32 -1.442695, %v957_v54 }
 0x261   :  { %6985 = vpow2.f32 %v5269_v60  ;;  %v12621_v60 = vld [vmem:[#allocation111_spill] sm:$0xff] }
 0x26e   :  { %v6986_v3 = vpop.eup %6985 }
 0x26f   :  { %v961_v6 = vadd.f32 1.0, %v6986_v3  ;;  %v8858_v3 = vrot.slane %v111_v43, %v12621_v60 }
 0x271   :  { %6987 = vrcp.f32 %v961_v6 }
 0x27c   :  { %v1047_v31 = vpop.f32.mrf.mxu0 }
 0x27d   :  { %v1048_v36 = vadd.f32 %v1047_v31, %v12619_v35 }
 0x27e   :  { %v6988_v23 = vpop.eup %6987  ;;  %v1118_v24 = vpop.f32.mrf.mxu1 }
 0x27f   :  { %v971_v27 = vmul.f32 %v6988_v23, %v954_v21  ;;  %v1049_v32 = vpop.f32.mrf.mxu0  ;;  %v8861_v21 = vrot.slane %v110_v41, %v12621_v60  ;;  %v12638_v60 = vld [vmem:[#allocation128_spill] sm:$0xff] }
 0x280   :  { %v6017_v28 = vpop.f32.mrf.mxu1  ;;  %v1050_v39 = vadd.f32 %v1049_v32, %v8417_v16 }
 0x281   :  { %v8851_v29 = vadd.f32 %v971_v27, %v749_v26  ;;  %v885_v27 = vadd.f32 %v884_v30, %v8858_v3  ;;  %v1119_v28 = vadd.f32 %v1118_v24, %v8427_v58  ;;  %v680_v32 = vadd.f32 %v679_v48, %v8861_v21  ;;  %v12622_v24 = vld [vmem:[#allocation112_spill] sm:$0xff]  ;;  %v12623_v30 = vld [vmem:[#allocation113_spill] sm:$0xff] }
 0x29f   :  { %v1188_v33 = vpop.f32.mrf.mxu0  ;;  %v1259_v34 = vpop.f32.mrf.mxu1 }
 0x2a0   :  { %v1189_v8 = vadd.f32 %v1188_v33, %v12620_v37  ;;  %v1260_v23 = vadd.f32 %v1259_v34, %v8424_v11 }
 0x2a1   :  { %v1190_v38 = vpop.f32.mrf.mxu0  ;;  %v6052_v40 = vpop.f32.mrf.mxu1 }
 0x2a2   :  { %v1263_v42 = vadd.f32 %v1189_v8, %v1048_v36  ;;  %v1191_v49 = vadd.f32 %v1190_v38, %v8414_v61  ;;  %v964_v36 = vadd.f32 %v885_v27, %v680_v32  ;;  %v12643_v27 = vld [vmem:[#allocation133_spill] sm:$0xff]  ;;  %v12646_v32 = vld [vmem:[#allocation136_spill] sm:$0xff] }
 0x2a4   :  { %v5271_v45 = vmul.f32 -1.442695, %v1263_v42  ;;  %v1270_v50 = vadd.f32 %v1191_v49, %v1050_v39  ;;  %v5270_v43 = vmul.f32 -1.442695, %v964_v36  ;;  %v12631_v49 = vld [vmem:[#allocation121_spill] sm:$0xff]  ;;  %v12632_v39 = vld [vmem:[#allocation122_spill] sm:$0xff] }
 0x2a6   :  { %6989 = vpow2.f32 %v5271_v45  ;;  %v5272_v51 = vmul.f32 -1.442695, %v1270_v50  ;;  %v12630_v45 = vld [vmem:[#allocation120_spill] sm:$0xff]  ;;  %v12633_v50 = vld [vmem:[#allocation123_spill] sm:$0xff] }
 0x2a8   :  { %6991 = vpow2.f32 %v5272_v51  ;;  %v12634_v51 = vld [vmem:[#allocation124_spill] sm:$0xff] }
 0x2b3   :  { %v6990_v52 = vpop.eup %6989 }
 0x2b4   :  { %v1267_v54 = vadd.f32 1.0, %v6990_v52  ;;  %v12635_v52 = vld [vmem:[#allocation125_spill] sm:$0xff] }
 0x2b5   :  { %v6992_v57 = vpop.eup %6991 }
 0x2b6   :  { %6993 = vrcp.f32 %v1267_v54  ;;  %v1274_v6 = vadd.f32 1.0, %v6992_v57  ;;  %v12636_v54 = vld [vmem:[#allocation126_spill] sm:$0xff]  ;;  %v12637_v57 = vld [vmem:[#allocation127_spill] sm:$0xff] }
 0x2b8   :  { %6995 = vrcp.f32 %v1274_v6  ;;  %v12640_v6 = vld [vmem:[#allocation130_spill] sm:$0xff] }
 0x2c3   :  { %v6994_v26 = vpop.eup %6993 }
 0x2c4   :  { %v1277_v31 = vmul.f32 %v6994_v26, %v1260_v23  ;;  %v12641_v23 = vld [vmem:[#allocation131_spill] sm:$0xff]  ;;  %v12642_v26 = vld [vmem:[#allocation132_spill] sm:$0xff] }
 0x2c5   :  { %v6996_v8 = vpop.eup %6995 }
 0x2c6   :  { %v1278_v33 = vadd.f32 %v1277_v31, %v1119_v28  ;;  %v1280_v38 = vsub.f32 1.0, %v6996_v8  ;;  %v1282_v34 = vmul.f32 %v6996_v8, %v8431_v10  ;;  %v12644_v28 = vld [vmem:[#allocation134_spill] sm:$0xff]  ;;  %v12645_v31 = vld [vmem:[#allocation135_spill] sm:$0xff] }
 0x2c7   :  { %v12649_v8 = vld [vmem:[#allocation139_spill] sm:$0xff] }
 0x2c8   :  { %6997 = vtanh.f32 %v1278_v33  ;;  %v12647_v33 = vld [vmem:[#allocation137_spill] sm:$0xff] }
 0x2c9   :  { %6999 = vpow2.f32 %v5270_v43  ;;  %v12648_v43 = vld [vmem:[#allocation138_spill] sm:$0xff] }
 0x2d5   :  { %v6998_v41 = vpop.eup %6997 }
 0x2d6   :  { %v1281_v40 = vmul.f32 %v6998_v41, %v1280_v38  ;;  %v7000_v48 = vpop.eup %6999  ;;  %v12650_v38 = vld [vmem:[#allocation140_spill] sm:$0xff] }
 0x2d7   :  { %v968_v10 = vadd.f32 1.0, %v7000_v48 }
 0x2d8   :  { %v8868_v42 = vadd.f32 %v1282_v34, %v1281_v40  ;;  %v12651_v40 = vld [vmem:[#allocation141_spill] sm:$0xff]  ;;  %v12652_v34 = vld [vmem:[#allocation142_spill] sm:$0xff] }
 0x2d9   :  { %7001 = vrcp.f32 %v968_v10  ;;  %v12653_v10 = vld [vmem:[#allocation143_spill] sm:$0xff] }
 0x2da   :  { %1349 = vmatmul.mubr.f32.vlgmr.msra.gmra.mxu0 %v8868_v42  ;;  %6086 = vmatmul.mubr.f32.vlgmr.msra.gmra.mxu1 %v8868_v42  ;;  %7003 = vtanh.f32 %v8851_v29  ;;  %v12639_v29 = vld [vmem:[#allocation129_spill] sm:$0xff] }
 0x2db   :  { %1426 = vmatpush1.msra.mxu0 %v8433_v13  ;;  %6089 = vmatpush3.msra.mxu1 %v8435_v44  ;;  %v12624_v13 = vld [vmem:[#allocation114_spill] sm:$0xff]  ;;  %v12625_v44 = vld [vmem:[#allocation115_spill] sm:$0xff] }
 0x2dc   :  { %1427 = vmatprep.subr.mxu0 %v8437_v62  ;;  %6090 = vmatprep.subr.mxu1 %v12485_v56  ;;  %v12626_v62 = vld [vmem:[#allocation116_spill] sm:$0xff] }
 0x2dd   :  { %1428 = vmatpush1.msra.mxu0 %v8441_v5  ;;  %6091 = vmatpush3.msra.mxu1 %v8443_v9  ;;  %v12627_v5 = vld [vmem:[#allocation117_spill] sm:$0xff]  ;;  %v12628_v9 = vld [vmem:[#allocation118_spill] sm:$0xff] }
 0x2de   :  { %1429 = vmatprep.subr.mxu0 %v8447_v59  ;;  %6092 = vmatprep.subr.mxu1 %v12485_v56  ;;  %v12629_v59 = vld [vmem:[#allocation119_spill] sm:$0xff] }
 0x2df   :  { %1430 = vmatpush1.msra.mxu0 %v12622_v24  ;;  %6093 = vmatpush3.msra.mxu1 %v12623_v30  ;;  %v12654_v30 = vld [vmem:[#allocation144_spill] sm:$0xff] }
 0x2e0   :  { %1431 = vmatprep.subr.mxu0 %v12624_v13  ;;  %6094 = vmatprep.subr.mxu1 %v12485_v56  ;;  %v12655_v13 = vld [vmem:[#allocation145_spill] sm:$0xff] }
 0x2e1   :  { %1432 = vmatpush1.msra.mxu0 %v12625_v44  ;;  %6095 = vmatpush3.msra.mxu1 %v12626_v62  ;;  %v12659_v44 = vld [vmem:[#allocation148_spill] sm:$0xff]  ;;  %v8953_v62 = vld [vmem:[#allocation8 + $0x160] sm:$0xff] }
 0x2e2   :  { %1433 = vmatprep.subr.mxu0 %v12627_v5  ;;  %6096 = vmatprep.subr.mxu1 %v12485_v56  ;;  %v12660_v5 = vld [vmem:[#allocation149_spill] sm:$0xff] }
 0x2e3   :  { %1434 = vmatpush1.msra.mxu0 %v12628_v9  ;;  %6097 = vmatpush3.msra.mxu1 %v12629_v59  ;;  %v8959_v9 = vld [vmem:[#allocation8 + $0x148] sm:$0xff]  ;;  %v8965_v59 = vld [vmem:[#allocation8 + $0x130] sm:$0xff] }
 0x2e4   :  { %1435 = vmatprep.subr.mxu0 %v12630_v45  ;;  %6098 = vmatprep.subr.mxu1 %v12485_v56  ;;  %v8971_v45 = vld [vmem:[#allocation8 + $0x118] sm:$0xff] }
 0x2e5   :  { %1436 = vmatpush1.msra.mxu0 %v12631_v49  ;;  %6099 = vmatpush3.msra.mxu1 %v12632_v39  ;;  %v9004_v49 = vld [vmem:[#allocation8 + $0x98] sm:$0xff]  ;;  %v9008_v39 = vld [vmem:[#allocation8 + $0x90] sm:$0xff] }
 0x2e6   :  { %1437 = vmatprep.subr.mxu0 %v12633_v50  ;;  %6100 = vmatprep.subr.mxu1 %v12485_v56  ;;  %v7002_v36 = vpop.eup %7001  ;;  %v9011_v50 = vld [vmem:[#allocation8 + $0xa0] sm:$0xff] }
 0x2e7   :  { %1438 = vmatpush1.msra.mxu0 %v12634_v51  ;;  %6101 = vmatpush3.msra.mxu1 %v12635_v52  ;;  %v7004_v41 = vpop.eup %7003  ;;  %v974_v48 = vsub.f32 1.0, %v7002_v36  ;;  %v9014_v51 = vld [vmem:[#allocation8 + $0x80] sm:$0xff]  ;;  %v9018_v52 = vld [vmem:[#allocation8 + $0x78] sm:$0xff] }
 0x2e8   :  { %1439 = vmatprep.subr.mxu0 %v12636_v54  ;;  %6102 = vmatprep.subr.mxu1 %v12485_v56  ;;  %v9021_v54 = vld [vmem:[#allocation8 + $0x88] sm:$0xff] }
 0x2e9   :  { %1440 = vmatpush1.msra.mxu0 %v12637_v57  ;;  %6103 = vmatpush3.msra.mxu1 %v12638_v60  ;;  %v975_v24 = vmul.f32 %v7004_v41, %v974_v48  ;;  %v9024_v57 = vld [vmem:[#allocation8 + $0x68] sm:$0xff]  ;;  %v9028_v60 = vld [vmem:[#allocation8 + $0x60] sm:$0xff]  ;;  %v9072_v41 = vld [vmem:[#allocation8 + $0x10] sm:$0xff] }
 0x2ea   :  { %1441 = vmatprep.subr.mxu0 %v12639_v29  ;;  %6104 = vmatprep.subr.mxu1 %v12485_v56  ;;  %v9031_v29 = vld [vmem:[#allocation8 + $0x70] sm:$0xff]  ;;  %12666 = vst [vmem:[#allocation23_spill] sm:$0xff] %v9072_v41  ;;  %v9084_v48 = vld [vmem:[#allocation10 + $0x178] sm:$0xff] }
 0x2eb   :  { %1442 = vmatpush1.msra.mxu0 %v12640_v6  ;;  %6105 = vmatpush3.msra.mxu1 %v12641_v23  ;;  %v9034_v6 = vld [vmem:[#allocation8 + $0x50] sm:$0xff]  ;;  %v9038_v23 = vld [vmem:[#allocation8 + $0x48] sm:$0xff]  ;;  %12669 = vst [vmem:[#allocation25_spill] sm:$0xff] %v9084_v48 }
 0x2ec   :  { %1443 = vmatprep.subr.mxu0 %v12642_v26  ;;  %6106 = vmatprep.subr.mxu1 %v12485_v56  ;;  %v9041_v26 = vld [vmem:[#allocation8 + $0x58] sm:$0xff] }
 0x2ed   :  { %1444 = vmatpush1.msra.mxu0 %v12643_v27  ;;  %6107 = vmatpush3.msra.mxu1 %v12644_v28  ;;  %v9044_v27 = vld [vmem:[#allocation8 + $0x38] sm:$0xff]  ;;  %v9048_v28 = vld [vmem:[#allocation8 + $0x30] sm:$0xff] }
 0x2ee   :  { %1445 = vmatprep.subr.mxu0 %v12645_v31  ;;  %6108 = vmatprep.subr.mxu1 %v12485_v56  ;;  %v9051_v31 = vld [vmem:[#allocation8 + $0x40] sm:$0xff] }
 0x2ef   :  { %1446 = vmatpush1.msra.mxu0 %v12646_v32  ;;  %6109 = vmatpush3.msra.mxu1 %v12647_v33  ;;  %v9054_v32 = vld [vmem:[#allocation8 + $0x20] sm:$0xff]  ;;  %v9058_v33 = vld [vmem:[#allocation8 + $0x18] sm:$0xff] }
 0x2f0   :  { %1447 = vmatprep.subr.mxu0 %v12648_v43  ;;  %6110 = vmatprep.subr.mxu1 %v12485_v56  ;;  %v1589_v43 = vld [vmem:[#allocation5 + $0x10] sm:$0xff] }
 0x2f1   :  { %1448 = vmatpush1.msra.mxu0 %v12649_v8  ;;  %6111 = vmatpush3.msra.mxu1 %v12650_v38  ;;  %v9064_v8 = vld [vmem:[#allocation8 + $0x8] sm:$0xff]  ;;  %v9068_v38 = vld [vmem:[#allocation8] sm:$0xff] }
 0x2f2   :  { %1449 = vmatprep.subr.mxu0 %v12651_v40  ;;  %6112 = vmatprep.subr.mxu1 %v12485_v56  ;;  %12664 = vst [vmem:[#allocation22_spill] sm:$0xff] %v9064_v8  ;;  %12665 = vst [vmem:[#allocation38_spill] sm:$0xff] %v9068_v38  ;;  %v9077_v40 = vld [vmem:[#allocation10 + $0x170] sm:$0xff] }
 0x2f3   :  { %1450 = vmatpush1.msra.mxu0 %v8551_v0  ;;  %6113 = vmatpush3.msra.mxu1 %v12652_v34  ;;  %v976_v0 = vmul.f32 0.0, %v7002_v36  ;;  %v9061_v36 = vld [vmem:[#allocation8 + $0x28] sm:$0xff]  ;;  %12667 = vst [vmem:[#allocation24_spill] sm:$0xff] %v9077_v40 }
 0x2f4   :  { %1451 = vmatprep.subr.mxu0 %v12653_v10  ;;  %6114 = vmatprep.subr.mxu1 %v12485_v56  ;;  %12663 = vst [vmem:[#allocation21_spill] sm:$0xff] %v9061_v36  ;;  %v9081_v34 = vld [vmem:[#allocation10 + $0x168] sm:$0xff]  ;;  %v9087_v10 = vld [vmem:[#allocation10 + $0x158] sm:$0xff] }
 0x2f5   :  { %1452 = vmatpush1.msra.mxu0 %v8561_v14  ;;  %6115 = vmatpush3.msra.mxu1 %v8563_v12  ;;  %v8935_v14 = vadd.f32 %v976_v0, %v975_v24  ;;  %v12657_v12 = vld [vmem:[#allocation146_spill] sm:$0xff]  ;;  %12668 = vst [vmem:[#allocation41_spill] sm:$0xff] %v9081_v34  ;;  %12670 = vst [vmem:[#allocation26_spill] sm:$0xff] %v9087_v10  ;;  %v9091_v24 = vld [vmem:[#allocation10 + $0x150] sm:$0xff] }
 0x2f6   :  { %1453 = vmatprep.subr.mxu0 %v8567_v4  ;;  %6116 = vmatprep.subr.mxu1 %v12485_v56  ;;  %v8947_v4 = vld [vmem:[#allocation8 + $0x178] sm:$0xff]  ;;  %12671 = vst [vmem:[#allocation44_spill] sm:$0xff] %v9091_v24  ;;  %v9094_v0 = vld [vmem:[#allocation10 + $0x160] sm:$0xff] }
 0x2f7   :  { %1454 = vmatpush1.msra.mxu0 %v8571_v63  ;;  %6117 = vmatpush3.msra.mxu1 %v8573_v55  ;;  %12656 = vst [vmem:[#allocation35_spill] sm:$0xff] %v8935_v14  ;;  %v8942_v63 = vld [vmem:[#allocation8 + $0x170] sm:$0xff]  ;;  %v12658_v55 = vld [vmem:[#allocation147_spill] sm:$0xff]  ;;  %12672 = vst [vmem:[#allocation27_spill] sm:$0xff] %v9094_v0 }
 0x2f8   :  { %1455 = vmatprep.subr.mxu0 %v12654_v30  ;;  %6118 = vmatprep.subr.mxu1 %v12485_v56  ;;  %v9097_v30 = vld [vmem:[#allocation10 + $0x140] sm:$0xff] }
 0x2f9   :  { %1456 = vmatpush1.msra.mxu0 %v12655_v13  ;;  %1489 = vmatprep.mubr.f32.mxu0 %v12485_v56  ;;  %12673 = vst [vmem:[#allocation28_spill] sm:$0xff] %v9097_v30  ;;  %v9101_v13 = vld [vmem:[#allocation10 + $0x138] sm:$0xff] }
 0x2fa   :  { %6119 = vmatpush3.msra.mxu1 %v12657_v12  ;;  %6120 = vmatprep.mubr.msk.f32.mxu1 %vm7863_vm0, %v12485_v56  ;;  %12674 = vst [vmem:[#allocation47_spill] sm:$0xff] %v9101_v13  ;;  %v9104_v12 = vld [vmem:[#allocation10 + $0x148] sm:$0xff] }
 0x2fb   :  { %1490 = vmatmul.mubr.f32.vlgmr.msra.gmra.mxu0 %v8935_v14  ;;  %6121 = vmatmul.mubr.f32.vlgmr.msra.gmra.mxu1 %v8935_v14  ;;  %12675 = vst [vmem:[#allocation29_spill] sm:$0xff] %v9104_v12 }
 0x2fc   :  { %1590 = vmatprep.subr.mxu0 %v8942_v63  ;;  %6123 = vmatprep.subr.mxu1 %v12485_v56 }
 0x2fd   :  { %1591 = vmatpush1.msra.mxu0 %v12658_v55  ;;  %6124 = vmatpush3.msra.mxu1 %v8947_v4  ;;  %v9107_v55 = vld [vmem:[#allocation10 + $0x128] sm:$0xff] }
 0x2fe   :  { %1592 = vmatprep.subr.mxu0 %v8602_v7  ;;  %6125 = vmatprep.subr.mxu1 %v12485_v56  ;;  %v12661_v7 = vld [vmem:[#allocation150_spill] sm:$0xff]  ;;  %12676 = vst [vmem:[#allocation30_spill] sm:$0xff] %v9107_v55 }
 0x2ff   :  { %1593 = vmatpush1.msra.mxu0 %v12659_v44  ;;  %6126 = vmatpush3.msra.mxu1 %v8953_v62  ;;  %v9111_v44 = vld [vmem:[#allocation10 + $0x120] sm:$0xff] }
 0x300   :  { %1594 = vmatprep.subr.mxu0 %v8610_v1  ;;  %6127 = vmatprep.subr.mxu1 %v12485_v56  ;;  %v12662_v1 = vld [vmem:[#allocation151_spill] sm:$0xff]  ;;  %12677 = vst [vmem:[#allocation50_spill] sm:$0xff] %v9111_v44 }
 0x301   :  { %1595 = vmatpush1.msra.mxu0 %v12660_v5  ;;  %6128 = vmatpush3.msra.mxu1 %v8959_v9  ;;  %v9114_v5 = vld [vmem:[#allocation10 + $0x130] sm:$0xff] }
 0x302   :  { %1596 = vmatprep.subr.mxu0 %v8618_v15  ;;  %6129 = vmatprep.subr.mxu1 %v12485_v56  ;;  %v8977_v15 = vld [vmem:[#allocation8 + $0x100] sm:$0xff]  ;;  %12678 = vst [vmem:[#allocation31_spill] sm:$0xff] %v9114_v5 }
 0x303   :  { %1597 = vmatpush1.msra.mxu0 %v12661_v7  ;;  %6130 = vmatpush3.msra.mxu1 %v8965_v59  ;;  %v9117_v7 = vld [vmem:[#allocation10 + $0x110] sm:$0xff] }
 0x304   :  { %1598 = vmatprep.subr.mxu0 %v8626_v17  ;;  %6131 = vmatprep.subr.mxu1 %v12485_v56  ;;  %v8983_v17 = vld [vmem:[#allocation8 + $0xe8] sm:$0xff]  ;;  %12679 = vst [vmem:[#allocation33_spill] sm:$0xff] %v9117_v7 }
 0x305   :  { %1599 = vmatpush1.msra.mxu0 %v12662_v1  ;;  %6132 = vmatpush3.msra.mxu1 %v8971_v45  ;;  %v9121_v1 = vld [vmem:[#allocation10 + $0x108] sm:$0xff] }
 0x306   :  { %1600 = vmatprep.subr.mxu0 %v8634_v19  ;;  %6133 = vmatprep.subr.mxu1 %v12485_v56  ;;  %v8988_v19 = vld [vmem:[#allocation8 + $0xc0] sm:$0xff]  ;;  %12680 = vst [vmem:[#allocation52_spill] sm:$0xff] %v9121_v1 }
 0x307   :  { %1601 = vmatpush1.msra.mxu0 %v8638_v2  ;;  %6134 = vmatpush3.msra.mxu1 %v8977_v15  ;;  %v8991_v2 = vld [vmem:[#allocation8 + $0xd0] sm:$0xff] }
 0x308   :  { %1602 = vmatprep.subr.mxu0 %v8642_v22  ;;  %6135 = vmatprep.subr.mxu1 %v12485_v56  ;;  %v8994_v22 = vld [vmem:[#allocation8 + $0xb0] sm:$0xff] }
 0x309   :  { %1603 = vmatpush1.msra.mxu0 %v8646_v53  ;;  %6136 = vmatpush3.msra.mxu1 %v8983_v17  ;;  %v8998_v53 = vld [vmem:[#allocation8 + $0xa8] sm:$0xff] }
 0x30a   :  { %1604 = vmatprep.subr.mxu0 %v8650_v25  ;;  %6137 = vmatprep.subr.mxu1 %v12485_v56  ;;  %v9001_v25 = vld [vmem:[#allocation8 + $0xb8] sm:$0xff] }
 0x30b   :  { %1605 = vmatpush1.msra.mxu0 %v8988_v19  ;;  %6138 = vmatpush3.msra.mxu1 %v8991_v2 }
 0x30c   :  { %1606 = vmatprep.subr.mxu0 %v8994_v22  ;;  %6139 = vmatprep.subr.mxu1 %v12485_v56 }
 0x30d   :  { %1607 = vmatpush1.msra.mxu0 %v8998_v53  ;;  %6140 = vmatpush3.msra.mxu1 %v9001_v25 }
 0x30e   :  { %1608 = vmatprep.subr.mxu0 %v9004_v49  ;;  %6141 = vmatprep.subr.mxu1 %v12485_v56 }
 0x30f   :  { %1609 = vmatpush1.msra.mxu0 %v9008_v39  ;;  %6142 = vmatpush3.msra.mxu1 %v9011_v50 }
 0x310   :  { %1610 = vmatprep.subr.mxu0 %v9014_v51  ;;  %6143 = vmatprep.subr.mxu1 %v12485_v56 }
 0x311   :  { %1611 = vmatpush1.msra.mxu0 %v9018_v52  ;;  %6144 = vmatpush3.msra.mxu1 %v9021_v54 }
 0x312   :  { %1612 = vmatprep.subr.mxu0 %v9024_v57  ;;  %6145 = vmatprep.subr.mxu1 %v12485_v56 }
 0x313   :  { %1613 = vmatpush1.msra.mxu0 %v9028_v60  ;;  %6146 = vmatpush3.msra.mxu1 %v9031_v29 }
 0x314   :  { %1614 = vmatprep.subr.mxu0 %v9034_v6  ;;  %6147 = vmatprep.subr.mxu1 %v12485_v56 }
 0x315   :  { %1615 = vmatpush1.msra.mxu0 %v9038_v23  ;;  %6148 = vmatpush3.msra.mxu1 %v9041_v26 }
 0x316   :  { %1616 = vmatprep.subr.mxu0 %v9044_v27  ;;  %6149 = vmatprep.subr.mxu1 %v12485_v56 }
 0x317   :  { %1617 = vmatpush1.msra.mxu0 %v9048_v28  ;;  %6150 = vmatpush3.msra.mxu1 %v9051_v31 }
 0x318   :  { %1618 = vmatprep.subr.mxu0 %v9054_v32  ;;  %6151 = vmatprep.subr.mxu1 %v12485_v56 }
 0x319   :  { %1619 = vmatpush1.msra.mxu0 %v9058_v33  ;;  %6152 = vmatpush3.msra.mxu1 %v9061_v36 }
 0x31a   :  { %1620 = vmatprep.subr.mxu0 %v9064_v8  ;;  %6153 = vmatprep.subr.mxu1 %v12485_v56 }
 0x31b   :  { %1621 = vmatpush1.msra.mxu0 %v9068_v38  ;;  %1654 = vmatprep.mubr.f32.mxu0 %v12485_v56 }
 0x31c   :  { %6154 = vmatpush3.msra.mxu1 %v9072_v41  ;;  %1655 = vmatmul.mubr.f32.vlgmr.msra.gmra.mxu0 %v1589_v43 }
 0x31d   :  { %6155 = vmatprep.mubr.msk.f32.mxu1 %vm7863_vm0, %v12485_v56  ;;  %1731 = vmatprep.subr.mxu0 %v9077_v40 }
 0x31e   :  { %6158 = vmatprep.subr.mxu1 %v12485_v56  ;;  %6156 = vmatmul.mubr.f32.vlgmr.msra.gmra.mxu1 %v1589_v43  ;;  %v9124_v43 = vld [vmem:[#allocation10 + $0x118] sm:$0xff] }
 0x31f   :  { %1732 = vmatpush1.msra.mxu0 %v9081_v34  ;;  %6159 = vmatpush3.msra.mxu1 %v9084_v48  ;;  %12681 = vst [vmem:[#allocation34_spill] sm:$0xff] %v9124_v43 }
 0x320   :  { %1733 = vmatprep.subr.mxu0 %v9087_v10  ;;  %6160 = vmatprep.subr.mxu1 %v12485_v56 }
 0x321   :  { %1734 = vmatpush1.msra.mxu0 %v9091_v24  ;;  %6161 = vmatpush3.msra.mxu1 %v9094_v0 }
 0x322   :  { %1735 = vmatprep.subr.mxu0 %v9097_v30  ;;  %6162 = vmatprep.subr.mxu1 %v12485_v56 }
 0x323   :  { %1736 = vmatpush1.msra.mxu0 %v9101_v13  ;;  %6163 = vmatpush3.msra.mxu1 %v9104_v12 }
 0x324   :  { %1737 = vmatprep.subr.mxu0 %v9107_v55  ;;  %6164 = vmatprep.subr.mxu1 %v12485_v56  ;;  %v9127_v55 = vld [vmem:[#allocation10 + $0xf8] sm:$0xff] }
 0x325   :  { %1738 = vmatpush1.msra.mxu0 %v9111_v44  ;;  %6165 = vmatpush3.msra.mxu1 %v9114_v5  ;;  %12682 = vst [vmem:[#allocation36_spill] sm:$0xff] %v9127_v55  ;;  %v9131_v5 = vld [vmem:[#allocation10 + $0xf0] sm:$0xff]  ;;  %v9137_v44 = vld [vmem:[#allocation10 + $0xe0] sm:$0xff] }
 0x326   :  { %1739 = vmatprep.subr.mxu0 %v9117_v7  ;;  %6166 = vmatprep.subr.mxu1 %v12485_v56  ;;  %12683 = vst [vmem:[#allocation53_spill] sm:$0xff] %v9131_v5  ;;  %v9134_v7 = vld [vmem:[#allocation10 + $0x100] sm:$0xff]  ;;  %12685 = vst [vmem:[#allocation39_spill] sm:$0xff] %v9137_v44 }
 0x327   :  { %1740 = vmatpush1.msra.mxu0 %v9121_v1  ;;  %6167 = vmatpush3.msra.mxu1 %v9124_v43  ;;  %12684 = vst [vmem:[#allocation37_spill] sm:$0xff] %v9134_v7  ;;  %v9141_v43 = vld [vmem:[#allocation10 + $0xd8] sm:$0xff]  ;;  %v9147_v1 = vld [vmem:[#allocation10 + $0xc8] sm:$0xff] }
 0x328   :  { %1741 = vmatprep.subr.mxu0 %v9127_v55  ;;  %6168 = vmatprep.subr.mxu1 %v12485_v56  ;;  %12686 = vst [vmem:[#allocation54_spill] sm:$0xff] %v9141_v43  ;;  %v9144_v55 = vld [vmem:[#allocation10 + $0xe8] sm:$0xff]  ;;  %12688 = vst [vmem:[#allocation42_spill] sm:$0xff] %v9147_v1 }
 0x329   :  { %1742 = vmatpush1.msra.mxu0 %v9131_v5  ;;  %6169 = vmatpush3.msra.mxu1 %v9134_v7  ;;  %12687 = vst [vmem:[#allocation40_spill] sm:$0xff] %v9144_v55  ;;  %v9151_v7 = vld [vmem:[#allocation10 + $0xc0] sm:$0xff]  ;;  %v9157_v5 = vld [vmem:[#allocation10 + $0xb0] sm:$0xff] }
 0x32a   :  { %1743 = vmatprep.subr.mxu0 %v9137_v44  ;;  %6170 = vmatprep.subr.mxu1 %v12485_v56  ;;  %12689 = vst [vmem:[#allocation55_spill] sm:$0xff] %v9151_v7  ;;  %v9154_v44 = vld [vmem:[#allocation10 + $0xd0] sm:$0xff]  ;;  %12691 = vst [vmem:[#allocation45_spill] sm:$0xff] %v9157_v5 }
 0x32b   :  { %1744 = vmatpush1.msra.mxu0 %v9141_v43  ;;  %6171 = vmatpush3.msra.mxu1 %v9144_v55  ;;  %12690 = vst [vmem:[#allocation43_spill] sm:$0xff] %v9154_v44  ;;  %v9161_v55 = vld [vmem:[#allocation10 + $0xa8] sm:$0xff]  ;;  %v9167_v43 = vld [vmem:[#allocation10 + $0x98] sm:$0xff] }
 0x32c   :  { %1745 = vmatprep.subr.mxu0 %v9147_v1  ;;  %6172 = vmatprep.subr.mxu1 %v12485_v56  ;;  %12692 = vst [vmem:[#allocation56_spill] sm:$0xff] %v9161_v55  ;;  %v9164_v1 = vld [vmem:[#allocation10 + $0xb8] sm:$0xff]  ;;  %12694 = vst [vmem:[#allocation48_spill] sm:$0xff] %v9167_v43 }
 0x32d   :  { %1746 = vmatpush1.msra.mxu0 %v9151_v7  ;;  %6173 = vmatpush3.msra.mxu1 %v9154_v44  ;;  %12693 = vst [vmem:[#allocation46_spill] sm:$0xff] %v9164_v1  ;;  %v9171_v44 = vld [vmem:[#allocation10 + $0x90] sm:$0xff]  ;;  %v9177_v7 = vld [vmem:[#allocation10 + $0x80] sm:$0xff] }
 0x32e   :  { %1747 = vmatprep.subr.mxu0 %v9157_v5  ;;  %6174 = vmatprep.subr.mxu1 %v12485_v56  ;;  %12695 = vst [vmem:[#allocation57_spill] sm:$0xff] %v9171_v44  ;;  %v9174_v5 = vld [vmem:[#allocation10 + $0xa0] sm:$0xff]  ;;  %12697 = vst [vmem:[#allocation51_spill] sm:$0xff] %v9177_v7 }
 0x32f   :  { %1748 = vmatpush1.msra.mxu0 %v9161_v55  ;;  %6175 = vmatpush3.msra.mxu1 %v9164_v1  ;;  %12696 = vst [vmem:[#allocation49_spill] sm:$0xff] %v9174_v5  ;;  %v9181_v1 = vld [vmem:[#allocation10 + $0x78] sm:$0xff]  ;;  %v9187_v55 = vld [vmem:[#allocation10 + $0x68] sm:$0xff] }
 0x330   :  { %1749 = vmatprep.subr.mxu0 %v9167_v43  ;;  %6176 = vmatprep.subr.mxu1 %v12485_v56  ;;  %12698 = vst [vmem:[#allocation58_spill] sm:$0xff] %v9181_v1  ;;  %v9184_v43 = vld [vmem:[#allocation10 + $0x88] sm:$0xff]  ;;  %12700 = vst [vmem:[#allocation60_spill] sm:$0xff] %v9187_v55 }
 0x331   :  { %1750 = vmatpush1.msra.mxu0 %v9171_v44  ;;  %6177 = vmatpush3.msra.mxu1 %v9174_v5  ;;  %12699 = vst [vmem:[#allocation59_spill] sm:$0xff] %v9184_v43  ;;  %v9191_v5 = vld [vmem:[#allocation10 + $0x60] sm:$0xff]  ;;  %v9197_v44 = vld [vmem:[#allocation10 + $0x50] sm:$0xff] }
 0x332   :  { %1751 = vmatprep.subr.mxu0 %v9177_v7  ;;  %6178 = vmatprep.subr.mxu1 %v12485_v56  ;;  %12701 = vst [vmem:[#allocation61_spill] sm:$0xff] %v9191_v5  ;;  %v9194_v7 = vld [vmem:[#allocation10 + $0x70] sm:$0xff]  ;;  %12703 = vst [vmem:[#allocation63_spill] sm:$0xff] %v9197_v44 }
 0x333   :  { %1752 = vmatpush1.msra.mxu0 %v9181_v1  ;;  %6179 = vmatpush3.msra.mxu1 %v9184_v43  ;;  %12702 = vst [vmem:[#allocation62_spill] sm:$0xff] %v9194_v7  ;;  %v9201_v43 = vld [vmem:[#allocation10 + $0x48] sm:$0xff]  ;;  %v9207_v1 = vld [vmem:[#allocation10 + $0x38] sm:$0xff] }
 0x334   :  { %1753 = vmatprep.subr.mxu0 %v9187_v55  ;;  %6180 = vmatprep.subr.mxu1 %v12485_v56  ;;  %12704 = vst [vmem:[#allocation64_spill] sm:$0xff] %v9201_v43  ;;  %v9204_v55 = vld [vmem:[#allocation10 + $0x58] sm:$0xff]  ;;  %12706 = vst [vmem:[#allocation67_spill] sm:$0xff] %v9207_v1 }
 0x335   :  { %1754 = vmatpush1.msra.mxu0 %v9191_v5  ;;  %6181 = vmatpush3.msra.mxu1 %v9194_v7  ;;  %12705 = vst [vmem:[#allocation65_spill] sm:$0xff] %v9204_v55  ;;  %v9211_v7 = vld [vmem:[#allocation10 + $0x30] sm:$0xff]  ;;  %v9217_v5 = vld [vmem:[#allocation10 + $0x20] sm:$0xff] }
 0x336   :  { %1755 = vmatprep.subr.mxu0 %v9197_v44  ;;  %6182 = vmatprep.subr.mxu1 %v12485_v56  ;;  %12707 = vst [vmem:[#allocation66_spill] sm:$0xff] %v9211_v7  ;;  %v9214_v44 = vld [vmem:[#allocation10 + $0x40] sm:$0xff]  ;;  %12709 = vst [vmem:[#allocation69_spill] sm:$0xff] %v9217_v5 }
 0x337   :  { %1756 = vmatpush1.msra.mxu0 %v9201_v43  ;;  %6183 = vmatpush3.msra.mxu1 %v9204_v55  ;;  %12708 = vst [vmem:[#allocation68_spill] sm:$0xff] %v9214_v44  ;;  %v9221_v55 = vld [vmem:[#allocation10 + $0x18] sm:$0xff]  ;;  %v9227_v43 = vld [vmem:[#allocation10 + $0x8] sm:$0xff] }
 0x338   :  { %1757 = vmatprep.subr.mxu0 %v9207_v1  ;;  %6184 = vmatprep.subr.mxu1 %v12485_v56  ;;  %12710 = vst [vmem:[#allocation70_spill] sm:$0xff] %v9221_v55  ;;  %v9224_v1 = vld [vmem:[#allocation10 + $0x28] sm:$0xff]  ;;  %12712 = vst [vmem:[#allocation72_spill] sm:$0xff] %v9227_v43 }
 0x339   :  { %1758 = vmatpush1.msra.mxu0 %v9211_v7  ;;  %6185 = vmatpush3.msra.mxu1 %v9214_v44  ;;  %12711 = vst [vmem:[#allocation71_spill] sm:$0xff] %v9224_v1  ;;  %v9231_v44 = vld [vmem:[#allocation10] sm:$0xff] }
 0x33a   :  { %1759 = vmatprep.subr.mxu0 %v9217_v5  ;;  %6186 = vmatprep.subr.mxu1 %v12485_v56  ;;  %12713 = vst [vmem:[#allocation73_spill] sm:$0xff] %v9231_v44  ;;  %v9235_v5 = vld [vmem:[#allocation10 + $0x10] sm:$0xff]  ;;  %v9262_v7 = vld [vmem:[#allocation11 + $0x140] sm:$0xff] }
 0x33b   :  { %1760 = vmatpush1.msra.mxu0 %v9221_v55  ;;  %6187 = vmatpush3.msra.mxu1 %v9224_v1  ;;  %12714 = vst [vmem:[#allocation74_spill] sm:$0xff] %v9235_v5  ;;  %v9249_v1 = vld [vmem:[#allocation11 + $0x178] sm:$0xff]  ;;  %v9256_v55 = vld [vmem:[#allocation11 + $0x150] sm:$0xff]  ;;  %12721 = vst [vmem:[#allocation81_spill] sm:$0xff] %v9262_v7 }
 0x33c   :  { %1761 = vmatprep.subr.mxu0 %v9227_v43  ;;  %6188 = vmatprep.subr.mxu1 %v12485_v56  ;;  %v9242_v43 = vld [vmem:[#allocation11 + $0x170] sm:$0xff]  ;;  %12717 = vst [vmem:[#allocation77_spill] sm:$0xff] %v9249_v1  ;;  %12719 = vst [vmem:[#allocation79_spill] sm:$0xff] %v9256_v55 }
 0x33d   :  { %1762 = vmatpush1.msra.mxu0 %v9231_v44  ;;  %1795 = vmatprep.mubr.f32.mxu0 %v12485_v56  ;;  %12715 = vst [vmem:[#allocation75_spill] sm:$0xff] %v9242_v43  ;;  %v9246_v44 = vld [vmem:[#allocation11 + $0x168] sm:$0xff] }
 0x33e   :  { %6189 = vmatpush3.msra.mxu1 %v9235_v5  ;;  %6190 = vmatprep.mubr.msk.f32.mxu1 %vm7863_vm0, %v12485_v56  ;;  %12716 = vst [vmem:[#allocation76_spill] sm:$0xff] %v9246_v44  ;;  %v9252_v5 = vld [vmem:[#allocation11 + $0x158] sm:$0xff] }
 0x33f   :  { %1796 = vmatmul.mubr.f32.vlgmr.msra.gmra.mxu0 %v8868_v42  ;;  %6191 = vmatmul.mubr.f32.vlgmr.msra.gmra.mxu1 %v8868_v42  ;;  %12718 = vst [vmem:[#allocation78_spill] sm:$0xff] %v9252_v5 }
 0x340   :  { %1893 = vmatprep.subr.mxu0 %v9242_v43  ;;  %6193 = vmatprep.subr.mxu1 %v12485_v56  ;;  %v9259_v43 = vld [vmem:[#allocation11 + $0x160] sm:$0xff] }
 0x341   :  { %1894 = vmatpush1.msra.mxu0 %v9246_v44  ;;  %6194 = vmatpush3.msra.mxu1 %v9249_v1  ;;  %12720 = vst [vmem:[#allocation80_spill] sm:$0xff] %v9259_v43  ;;  %v9266_v1 = vld [vmem:[#allocation11 + $0x138] sm:$0xff]  ;;  %v9272_v44 = vld [vmem:[#allocation11 + $0x128] sm:$0xff] }
 0x342   :  { %1895 = vmatprep.subr.mxu0 %v9252_v5  ;;  %6195 = vmatprep.subr.mxu1 %v12485_v56  ;;  %12722 = vst [vmem:[#allocation82_spill] sm:$0xff] %v9266_v1  ;;  %v9269_v5 = vld [vmem:[#allocation11 + $0x148] sm:$0xff]  ;;  %12724 = vst [vmem:[#allocation84_spill] sm:$0xff] %v9272_v44 }
 0x343   :  { %1896 = vmatpush1.msra.mxu0 %v9256_v55  ;;  %6196 = vmatpush3.msra.mxu1 %v9259_v43  ;;  %12723 = vst [vmem:[#allocation83_spill] sm:$0xff] %v9269_v5  ;;  %v9276_v43 = vld [vmem:[#allocation11 + $0x120] sm:$0xff]  ;;  %v9282_v55 = vld [vmem:[#allocation11 + $0x110] sm:$0xff] }
 0x344   :  { %1897 = vmatprep.subr.mxu0 %v9262_v7  ;;  %6197 = vmatprep.subr.mxu1 %v12485_v56  ;;  %12725 = vst [vmem:[#allocation85_spill] sm:$0xff] %v9276_v43  ;;  %v9279_v7 = vld [vmem:[#allocation11 + $0x130] sm:$0xff]  ;;  %12727 = vst [vmem:[#allocation87_spill] sm:$0xff] %v9282_v55 }
 0x345   :  { %1898 = vmatpush1.msra.mxu0 %v9266_v1  ;;  %6198 = vmatpush3.msra.mxu1 %v9269_v5  ;;  %12726 = vst [vmem:[#allocation86_spill] sm:$0xff] %v9279_v7  ;;  %v9286_v5 = vld [vmem:[#allocation11 + $0x108] sm:$0xff]  ;;  %v9292_v1 = vld [vmem:[#allocation11 + $0xf8] sm:$0xff] }
 0x346   :  { %1899 = vmatprep.subr.mxu0 %v9272_v44  ;;  %6199 = vmatprep.subr.mxu1 %v12485_v56  ;;  %12728 = vst [vmem:[#allocation88_spill] sm:$0xff] %v9286_v5  ;;  %v9289_v44 = vld [vmem:[#allocation11 + $0x118] sm:$0xff]  ;;  %12730 = vst [vmem:[#allocation90_spill] sm:$0xff] %v9292_v1 }
 0x347   :  { %1900 = vmatpush1.msra.mxu0 %v9276_v43  ;;  %6200 = vmatpush3.msra.mxu1 %v9279_v7  ;;  %12729 = vst [vmem:[#allocation89_spill] sm:$0xff] %v9289_v44  ;;  %v9296_v7 = vld [vmem:[#allocation11 + $0xf0] sm:$0xff]  ;;  %v9302_v43 = vld [vmem:[#allocation11 + $0xe0] sm:$0xff] }
 0x348   :  { %1901 = vmatprep.subr.mxu0 %v9282_v55  ;;  %6201 = vmatprep.subr.mxu1 %v12485_v56  ;;  %12731 = vst [vmem:[#allocation91_spill] sm:$0xff] %v9296_v7  ;;  %v9299_v55 = vld [vmem:[#allocation11 + $0x100] sm:$0xff]  ;;  %12733 = vst [vmem:[#allocation93_spill] sm:$0xff] %v9302_v43 }
 0x349   :  { %1902 = vmatpush1.msra.mxu0 %v9286_v5  ;;  %6202 = vmatpush3.msra.mxu1 %v9289_v44  ;;  %12732 = vst [vmem:[#allocation92_spill] sm:$0xff] %v9299_v55  ;;  %v9306_v44 = vld [vmem:[#allocation11 + $0xd8] sm:$0xff]  ;;  %v9312_v5 = vld [vmem:[#allocation11 + $0xc8] sm:$0xff] }
 0x34a   :  { %1903 = vmatprep.subr.mxu0 %v9292_v1  ;;  %6203 = vmatprep.subr.mxu1 %v12485_v56  ;;  %12734 = vst [vmem:[#allocation94_spill] sm:$0xff] %v9306_v44  ;;  %v9309_v1 = vld [vmem:[#allocation11 + $0xe8] sm:$0xff]  ;;  %12736 = vst [vmem:[#allocation96_spill] sm:$0xff] %v9312_v5 }
 0x34b   :  { %1904 = vmatpush1.msra.mxu0 %v9296_v7  ;;  %6204 = vmatpush3.msra.mxu1 %v9299_v55  ;;  %12735 = vst [vmem:[#allocation95_spill] sm:$0xff] %v9309_v1  ;;  %v9316_v55 = vld [vmem:[#allocation11 + $0xc0] sm:$0xff]  ;;  %v9322_v7 = vld [vmem:[#allocation11 + $0xb0] sm:$0xff] }
 0x34c   :  { %1905 = vmatprep.subr.mxu0 %v9302_v43  ;;  %6205 = vmatprep.subr.mxu1 %v12485_v56  ;;  %12737 = vst [vmem:[#allocation97_spill] sm:$0xff] %v9316_v55  ;;  %v9319_v43 = vld [vmem:[#allocation11 + $0xd0] sm:$0xff]  ;;  %12739 = vst [vmem:[#allocation99_spill] sm:$0xff] %v9322_v7 }
 0x34d   :  { %1906 = vmatpush1.msra.mxu0 %v9306_v44  ;;  %6206 = vmatpush3.msra.mxu1 %v9309_v1  ;;  %12738 = vst [vmem:[#allocation98_spill] sm:$0xff] %v9319_v43  ;;  %v9326_v1 = vld [vmem:[#allocation11 + $0xa8] sm:$0xff]  ;;  %v9332_v44 = vld [vmem:[#allocation11 + $0x98] sm:$0xff] }
 0x34e   :  { %1907 = vmatprep.subr.mxu0 %v9312_v5  ;;  %6207 = vmatprep.subr.mxu1 %v12485_v56  ;;  %12740 = vst [vmem:[#allocation100_spill] sm:$0xff] %v9326_v1  ;;  %v9329_v5 = vld [vmem:[#allocation11 + $0xb8] sm:$0xff]  ;;  %12742 = vst [vmem:[#allocation102_spill] sm:$0xff] %v9332_v44 }
 0x34f   :  { %1908 = vmatpush1.msra.mxu0 %v9316_v55  ;;  %6208 = vmatpush3.msra.mxu1 %v9319_v43  ;;  %12741 = vst [vmem:[#allocation101_spill] sm:$0xff] %v9329_v5  ;;  %v9336_v43 = vld [vmem:[#allocation11 + $0x90] sm:$0xff]  ;;  %v9342_v55 = vld [vmem:[#allocation11 + $0x80] sm:$0xff] }
 0x350   :  { %1909 = vmatprep.subr.mxu0 %v9322_v7  ;;  %6209 = vmatprep.subr.mxu1 %v12485_v56  ;;  %12743 = vst [vmem:[#allocation103_spill] sm:$0xff] %v9336_v43  ;;  %v9339_v7 = vld [vmem:[#allocation11 + $0xa0] sm:$0xff]  ;;  %12745 = vst [vmem:[#allocation105_spill] sm:$0xff] %v9342_v55 }
 0x351   :  { %1910 = vmatpush1.msra.mxu0 %v9326_v1  ;;  %6210 = vmatpush3.msra.mxu1 %v9329_v5  ;;  %12744 = vst [vmem:[#allocation104_spill] sm:$0xff] %v9339_v7  ;;  %v9346_v5 = vld [vmem:[#allocation11 + $0x78] sm:$0xff]  ;;  %v9352_v1 = vld [vmem:[#allocation11 + $0x68] sm:$0xff] }
 0x352   :  { %1911 = vmatprep.subr.mxu0 %v9332_v44  ;;  %6211 = vmatprep.subr.mxu1 %v12485_v56  ;;  %12746 = vst [vmem:[#allocation106_spill] sm:$0xff] %v9346_v5  ;;  %v9349_v44 = vld [vmem:[#allocation11 + $0x88] sm:$0xff]  ;;  %12748 = vst [vmem:[#allocation108_spill] sm:$0xff] %v9352_v1 }
 0x353   :  { %1912 = vmatpush1.msra.mxu0 %v9336_v43  ;;  %6212 = vmatpush3.msra.mxu1 %v9339_v7  ;;  %12747 = vst [vmem:[#allocation107_spill] sm:$0xff] %v9349_v44  ;;  %v9356_v7 = vld [vmem:[#allocation11 + $0x60] sm:$0xff]  ;;  %v9362_v43 = vld [vmem:[#allocation11 + $0x50] sm:$0xff] }
 0x354   :  { %1913 = vmatprep.subr.mxu0 %v9342_v55  ;;  %6213 = vmatprep.subr.mxu1 %v12485_v56  ;;  %12749 = vst [vmem:[#allocation109_spill] sm:$0xff] %v9356_v7  ;;  %v9359_v55 = vld [vmem:[#allocation11 + $0x70] sm:$0xff]  ;;  %12751 = vst [vmem:[#allocation111_spill] sm:$0xff] %v9362_v43 }
 0x355   :  { %1914 = vmatpush1.msra.mxu0 %v9346_v5  ;;  %6214 = vmatpush3.msra.mxu1 %v9349_v44  ;;  %12750 = vst [vmem:[#allocation110_spill] sm:$0xff] %v9359_v55  ;;  %v9366_v44 = vld [vmem:[#allocation11 + $0x48] sm:$0xff]  ;;  %v9372_v5 = vld [vmem:[#allocation11 + $0x38] sm:$0xff] }
 0x356   :  { %1915 = vmatprep.subr.mxu0 %v9352_v1  ;;  %6215 = vmatprep.subr.mxu1 %v12485_v56  ;;  %12752 = vst [vmem:[#allocation112_spill] sm:$0xff] %v9366_v44  ;;  %v9369_v1 = vld [vmem:[#allocation11 + $0x58] sm:$0xff]  ;;  %12754 = vst [vmem:[#allocation114_spill] sm:$0xff] %v9372_v5 }
 0x357   :  { %1916 = vmatpush1.msra.mxu0 %v9356_v7  ;;  %6216 = vmatpush3.msra.mxu1 %v9359_v55  ;;  %12753 = vst [vmem:[#allocation113_spill] sm:$0xff] %v9369_v1  ;;  %v9376_v55 = vld [vmem:[#allocation11 + $0x30] sm:$0xff]  ;;  %v9382_v7 = vld [vmem:[#allocation11 + $0x20] sm:$0xff] }
 0x358   :  { %1917 = vmatprep.subr.mxu0 %v9362_v43  ;;  %6217 = vmatprep.subr.mxu1 %v12485_v56  ;;  %12755 = vst [vmem:[#allocation115_spill] sm:$0xff] %v9376_v55  ;;  %v9379_v43 = vld [vmem:[#allocation11 + $0x40] sm:$0xff]  ;;  %12757 = vst [vmem:[#allocation117_spill] sm:$0xff] %v9382_v7 }
 0x359   :  { %1918 = vmatpush1.msra.mxu0 %v9366_v44  ;;  %6218 = vmatpush3.msra.mxu1 %v9369_v1  ;;  %12756 = vst [vmem:[#allocation116_spill] sm:$0xff] %v9379_v43  ;;  %v9386_v1 = vld [vmem:[#allocation11 + $0x18] sm:$0xff]  ;;  %v9392_v44 = vld [vmem:[#allocation11 + $0x8] sm:$0xff] }
 0x35a   :  { %1919 = vmatprep.subr.mxu0 %v9372_v5  ;;  %6219 = vmatprep.subr.mxu1 %v12485_v56  ;;  %12758 = vst [vmem:[#allocation118_spill] sm:$0xff] %v9386_v1  ;;  %v9389_v5 = vld [vmem:[#allocation11 + $0x28] sm:$0xff]  ;;  %12760 = vst [vmem:[#allocation120_spill] sm:$0xff] %v9392_v44 }
 0x35b   :  { %1920 = vmatpush1.msra.mxu0 %v9376_v55  ;;  %6220 = vmatpush3.msra.mxu1 %v9379_v43  ;;  %12759 = vst [vmem:[#allocation119_spill] sm:$0xff] %v9389_v5  ;;  %v9396_v43 = vld [vmem:[#allocation11] sm:$0xff] }
 0x35c   :  { %1921 = vmatprep.subr.mxu0 %v9382_v7  ;;  %6221 = vmatprep.subr.mxu1 %v12485_v56  ;;  %12761 = vst [vmem:[#allocation121_spill] sm:$0xff] %v9396_v43  ;;  %v9399_v7 = vld [vmem:[#allocation11 + $0x10] sm:$0xff] }
 0x35d   :  { %1922 = vmatpush1.msra.mxu0 %v9386_v1  ;;  %6222 = vmatpush3.msra.mxu1 %v9389_v5  ;;  %12762 = vst [vmem:[#allocation122_spill] sm:$0xff] %v9399_v7  ;;  %v9405_v5 = vld [vmem:[#allocation13 + $0x170] sm:$0xff] }
 0x35e   :  { %1923 = vmatprep.subr.mxu0 %v9392_v44  ;;  %6223 = vmatprep.subr.mxu1 %v12485_v56  ;;  %12763 = vst [vmem:[#allocation123_spill] sm:$0xff] %v9405_v5 }
 0x35f   :  { %1924 = vmatpush1.msra.mxu0 %v9396_v43  ;;  %6224 = vmatpush3.msra.mxu1 %v9399_v7 }
 0x360   :  { %1957 = vmatprep.mubr.f32.mxu0 %v12485_v56  ;;  %6225 = vmatprep.mubr.msk.f32.mxu1 %vm7863_vm0, %v12485_v56 }
 0x361   :  { %2034 = vmatprep.subr.mxu0 %v9405_v5  ;;  %6228 = vmatprep.subr.mxu1 %v12485_v56 }
 0x39a   :  { %v1421_v44 = vpop.f32.mrf.mxu1  ;;  %v1350_v55 = vpop.f32.mrf.mxu0 }
 0x39b   :  { %v1351_v30 = vadd.f32 %v1350_v55, %v8836_v46 }
 0x39c   :  { %v6087_v1 = vpop.f32.mrf.mxu1  ;;  %v1352_v12 = vpop.f32.mrf.mxu0 }
 0x39d   :  { %v1422_v1 = vadd.f32 %v1421_v44, %v8847_v20 }
 0x3bb   :  { %v1491_v43 = vpop.f32.mrf.mxu0  ;;  %v1562_v13 = vpop.f32.mrf.mxu1 }
 0x3bc   :  { %v1492_v7 = vadd.f32 %v1491_v43, %v8839_v47  ;;  %v1563_v5 = vadd.f32 %v1562_v13, %v8844_v18 }
 0x3bd   :  { %v6122_v0 = vpop.f32.mrf.mxu1  ;;  %v1493_v55 = vpop.f32.mrf.mxu0 }
 0x3be   :  { %v1566_v24 = vadd.f32 %v1492_v7, %v1351_v30 }
 0x3c0   :  { %v5273_v10 = vmul.f32 -1.442695, %v1566_v24 }
 0x3c2   :  { %7005 = vpow2.f32 %v5273_v10 }
 0x3cf   :  { %v7006_v48 = vpop.eup %7005 }
 0x3d0   :  { %v1570_v34 = vadd.f32 1.0, %v7006_v48 }
 0x3d2   :  { %7007 = vrcp.f32 %v1570_v34 }
 0x3dc   :  { %v1656_v46 = vpop.f32.mrf.mxu0 }
 0x3dd   :  { %v1657_v10 = vadd.f32 %v1656_v46, %v12619_v35 }
 0x3de   :  { %v1727_v40 = vpop.f32.mrf.mxu1  ;;  %v1658_v43 = vpop.f32.mrf.mxu0 }
 0x3df   :  { %v7008_v41 = vpop.eup %7007 }
 0x3e0   :  { %v1580_v38 = vmul.f32 %v7008_v41, %v1563_v5  ;;  %v6157_v8 = vpop.f32.mrf.mxu1  ;;  %v1659_v41 = vadd.f32 %v1658_v43, %v8417_v16  ;;  %v1353_v43 = vadd.f32 %v1352_v12, %v8861_v21 }
 0x3e2   :  { %v9413_v36 = vadd.f32 %v1580_v38, %v1422_v1 }
 0x3ff   :  { %v1797_v0 = vpop.f32.mrf.mxu0  ;;  %v1868_v30 = vpop.f32.mrf.mxu1 }
 0x400   :  { %v1798_v48 = vadd.f32 %v1797_v0, %v12620_v37  ;;  %v1869_v46 = vadd.f32 %v1868_v30, %v8424_v11 }
 0x401   :  { %v1799_v34 = vpop.f32.mrf.mxu0  ;;  %v6192_v24 = vpop.f32.mrf.mxu1 }
 0x402   :  { %v1872_v13 = vadd.f32 %v1798_v48, %v1657_v10  ;;  %v1800_v18 = vadd.f32 %v1799_v34, %v8414_v61  ;;  %v1494_v24 = vadd.f32 %v1493_v55, %v8858_v3  ;;  %v1728_v10 = vadd.f32 %v1727_v40, %v8427_v58  ;;  %v9431_v40 = vld [vmem:[#allocation13 + $0x178] sm:$0xff] }
 0x403   :  { %v9434_v55 = vld [vmem:[#allocation13 + $0x158] sm:$0xff] }
 0x404   :  { %v5275_v7 = vmul.f32 -1.442695, %v1872_v13  ;;  %v1879_v8 = vadd.f32 %v1800_v18, %v1659_v41  ;;  %v1573_v18 = vadd.f32 %v1494_v24, %v1353_v43  ;;  %v9451_v24 = vld [vmem:[#allocation13 + $0x148] sm:$0xff]  ;;  %v9461_v43 = vld [vmem:[#allocation13 + $0x130] sm:$0xff] }
 0x406   :  { %7009 = vpow2.f32 %v5275_v7  ;;  %v5276_v38 = vmul.f32 -1.442695, %v1879_v8  ;;  %v5274_v13 = vmul.f32 -1.442695, %v1573_v18  ;;  %v9468_v18 = vld [vmem:[#allocation13 + $0x108] sm:$0xff] }
 0x407   :  { %12764 = vst [vmem:[#allocation124_spill] sm:$0xff] %v9468_v18 }
 0x408   :  { %7011 = vpow2.f32 %v5276_v38 }
 0x413   :  { %v7010_v44 = vpop.eup %7009 }
 0x414   :  { %v1876_v5 = vadd.f32 1.0, %v7010_v44 }
 0x415   :  { %v7012_v1 = vpop.eup %7011 }
 0x416   :  { %7013 = vrcp.f32 %v1876_v5  ;;  %v1883_v20 = vadd.f32 1.0, %v7012_v1  ;;  %v9441_v5 = vld [vmem:[#allocation13 + $0x160] sm:$0xff] }
 0x417   :  { %v9444_v1 = vld [vmem:[#allocation13 + $0x140] sm:$0xff] }
 0x418   :  { %7015 = vrcp.f32 %v1883_v20  ;;  %v9428_v20 = vld [vmem:[#allocation13 + $0x168] sm:$0xff] }
 0x423   :  { %v7014_v0 = vpop.eup %7013 }
 0x424   :  { %v1886_v48 = vmul.f32 %v7014_v0, %v1869_v46  ;;  %v9448_v0 = vld [vmem:[#allocation13 + $0x138] sm:$0xff] }
 0x425   :  { %v7016_v7 = vpop.eup %7015 }
 0x426   :  { %v1887_v34 = vadd.f32 %v1886_v48, %v1728_v10  ;;  %v1889_v41 = vsub.f32 1.0, %v7016_v7  ;;  %v1891_v30 = vmul.f32 %v7016_v7, %v8868_v42  ;;  %v9438_v42 = vld [vmem:[#allocation13 + $0x150] sm:$0xff]  ;;  %v9454_v10 = vld [vmem:[#allocation13 + $0x128] sm:$0xff]  ;;  %v9458_v48 = vld [vmem:[#allocation13 + $0x120] sm:$0xff] }
 0x427   :  { %v9474_v7 = vld [vmem:[#allocation13 + $0xf8] sm:$0xff] }
 0x428   :  { %7017 = vtanh.f32 %v1887_v34  ;;  %v9464_v34 = vld [vmem:[#allocation13 + $0x110] sm:$0xff]  ;;  %12766 = vst [vmem:[#allocation126_spill] sm:$0xff] %v9474_v7 }
 0x429   :  { %7019 = vpow2.f32 %v5274_v13  ;;  %v9471_v13 = vld [vmem:[#allocation13 + $0x118] sm:$0xff] }
 0x42a   :  { %12765 = vst [vmem:[#allocation125_spill] sm:$0xff] %v9471_v13 }
 0x435   :  { %v7018_v8 = vpop.eup %7017 }
 0x436   :  { %v1890_v38 = vmul.f32 %v7018_v8, %v1889_v41  ;;  %v7020_v12 = vpop.eup %7019  ;;  %v9479_v41 = vld [vmem:[#allocation13 + $0xf0] sm:$0xff]  ;;  %v9482_v8 = vld [vmem:[#allocation13 + $0x100] sm:$0xff] }
 0x437   :  { %v1577_v46 = vadd.f32 1.0, %v7020_v12  ;;  %12767 = vst [vmem:[#allocation127_spill] sm:$0xff] %v9479_v41  ;;  %12768 = vst [vmem:[#allocation128_spill] sm:$0xff] %v9482_v8  ;;  %v9492_v12 = vld [vmem:[#allocation13 + $0xe8] sm:$0xff] }
 0x438   :  { %v9424_v44 = vadd.f32 %v1891_v30, %v1890_v38  ;;  %v9485_v38 = vld [vmem:[#allocation13 + $0xe0] sm:$0xff]  ;;  %v9489_v30 = vld [vmem:[#allocation13 + $0xd8] sm:$0xff]  ;;  %12771 = vst [vmem:[#allocation131_spill] sm:$0xff] %v9492_v12 }
 0x439   :  { %7021 = vrcp.f32 %v1577_v46  ;;  %12769 = vst [vmem:[#allocation129_spill] sm:$0xff] %v9485_v38  ;;  %12770 = vst [vmem:[#allocation130_spill] sm:$0xff] %v9489_v30  ;;  %v9499_v46 = vld [vmem:[#allocation13 + $0xc0] sm:$0xff] }
 0x43a   :  { %1958 = vmatmul.mubr.f32.vlgmr.msra.gmra.mxu0 %v9424_v44  ;;  %6226 = vmatmul.mubr.f32.vlgmr.msra.gmra.mxu1 %v9424_v44  ;;  %7023 = vtanh.f32 %v9413_v36  ;;  %v9495_v36 = vld [vmem:[#allocation13 + $0xc8] sm:$0xff]  ;;  %12773 = vst [vmem:[#allocation133_spill] sm:$0xff] %v9499_v46 }
 0x43b   :  { %2035 = vmatpush1.msra.mxu0 %v9428_v20  ;;  %6229 = vmatpush3.msra.mxu1 %v9431_v40  ;;  %12772 = vst [vmem:[#allocation132_spill] sm:$0xff] %v9495_v36 }
 0x43c   :  { %2036 = vmatprep.subr.mxu0 %v9434_v55  ;;  %6230 = vmatprep.subr.mxu1 %v12485_v56 }
 0x43d   :  { %2037 = vmatpush1.msra.mxu0 %v9438_v42  ;;  %6231 = vmatpush3.msra.mxu1 %v9441_v5 }
 0x43e   :  { %2038 = vmatprep.subr.mxu0 %v9444_v1  ;;  %6232 = vmatprep.subr.mxu1 %v12485_v56 }
 0x43f   :  { %2039 = vmatpush1.msra.mxu0 %v9448_v0  ;;  %6233 = vmatpush3.msra.mxu1 %v9451_v24 }
 0x440   :  { %2040 = vmatprep.subr.mxu0 %v9454_v10  ;;  %6234 = vmatprep.subr.mxu1 %v12485_v56 }
 0x441   :  { %2041 = vmatpush1.msra.mxu0 %v9458_v48  ;;  %6235 = vmatpush3.msra.mxu1 %v9461_v43 }
 0x442   :  { %2042 = vmatprep.subr.mxu0 %v9464_v34  ;;  %6236 = vmatprep.subr.mxu1 %v12485_v56 }
 0x443   :  { %2043 = vmatpush1.msra.mxu0 %v9468_v18  ;;  %6237 = vmatpush3.msra.mxu1 %v9471_v13  ;;  %v9565_v13 = vld [vmem:[#allocation13 + $0x20] sm:$0xff]  ;;  %v9576_v18 = vld [vmem:[#allocation13 + $0x8] sm:$0xff] }
 0x444   :  { %2044 = vmatprep.subr.mxu0 %v9474_v7  ;;  %6238 = vmatprep.subr.mxu1 %v12485_v56  ;;  %v9555_v7 = vld [vmem:[#allocation13 + $0x38] sm:$0xff] }
 0x445   :  { %2045 = vmatpush1.msra.mxu0 %v9479_v41  ;;  %6239 = vmatpush3.msra.mxu1 %v9482_v8  ;;  %v9505_v8 = vld [vmem:[#allocation13 + $0xb0] sm:$0xff]  ;;  %12790 = vst [vmem:[#allocation150_spill] sm:$0xff] %v9555_v7 }
 0x446   :  { %2046 = vmatprep.subr.mxu0 %v9485_v38  ;;  %6240 = vmatprep.subr.mxu1 %v12485_v56  ;;  %v9502_v38 = vld [vmem:[#allocation13 + $0xd0] sm:$0xff]  ;;  %12775 = vst [vmem:[#allocation135_spill] sm:$0xff] %v9505_v8 }
 0x447   :  { %2047 = vmatpush1.msra.mxu0 %v9489_v30  ;;  %6241 = vmatpush3.msra.mxu1 %v9492_v12  ;;  %12774 = vst [vmem:[#allocation134_spill] sm:$0xff] %v9502_v38  ;;  %v9509_v12 = vld [vmem:[#allocation13 + $0xa8] sm:$0xff]  ;;  %v9515_v30 = vld [vmem:[#allocation13 + $0x98] sm:$0xff]  ;;  %v9545_v41 = vld [vmem:[#allocation13 + $0x50] sm:$0xff] }
 0x448   :  { %2048 = vmatprep.subr.mxu0 %v9495_v36  ;;  %6242 = vmatprep.subr.mxu1 %v12485_v56  ;;  %12776 = vst [vmem:[#allocation136_spill] sm:$0xff] %v9509_v12  ;;  %v9512_v36 = vld [vmem:[#allocation13 + $0xb8] sm:$0xff]  ;;  %12778 = vst [vmem:[#allocation138_spill] sm:$0xff] %v9515_v30 }
 0x449   :  { %2049 = vmatpush1.msra.mxu0 %v9499_v46  ;;  %6243 = vmatpush3.msra.mxu1 %v9502_v38  ;;  %12777 = vst [vmem:[#allocation137_spill] sm:$0xff] %v9512_v36  ;;  %v9519_v38 = vld [vmem:[#allocation13 + $0x90] sm:$0xff]  ;;  %v9525_v46 = vld [vmem:[#allocation13 + $0x80] sm:$0xff]  ;;  %12787 = vst [vmem:[#allocation147_spill] sm:$0xff] %v9545_v41 }
 0x44a   :  { %2050 = vmatprep.subr.mxu0 %v9505_v8  ;;  %6244 = vmatprep.subr.mxu1 %v12485_v56  ;;  %12779 = vst [vmem:[#allocation139_spill] sm:$0xff] %v9519_v38  ;;  %v9522_v8 = vld [vmem:[#allocation13 + $0xa0] sm:$0xff]  ;;  %12781 = vst [vmem:[#allocation141_spill] sm:$0xff] %v9525_v46 }
 0x44b   :  { %2051 = vmatpush1.msra.mxu0 %v9509_v12  ;;  %6245 = vmatpush3.msra.mxu1 %v9512_v36  ;;  %12780 = vst [vmem:[#allocation140_spill] sm:$0xff] %v9522_v8  ;;  %v9529_v36 = vld [vmem:[#allocation13 + $0x78] sm:$0xff]  ;;  %v7022_v12 = vpop.eup %7021 }
 0x44c   :  { %2052 = vmatprep.subr.mxu0 %v9515_v30  ;;  %6246 = vmatprep.subr.mxu1 %v12485_v56  ;;  %12782 = vst [vmem:[#allocation142_spill] sm:$0xff] %v9529_v36  ;;  %v9532_v30 = vld [vmem:[#allocation13 + $0x88] sm:$0xff] }
 0x44d   :  { %2053 = vmatpush1.msra.mxu0 %v9519_v38  ;;  %6247 = vmatpush3.msra.mxu1 %v9522_v8  ;;  %12783 = vst [vmem:[#allocation143_spill] sm:$0xff] %v9532_v30  ;;  %v9535_v38 = vld [vmem:[#allocation13 + $0x68] sm:$0xff]  ;;  %v9539_v8 = vld [vmem:[#allocation13 + $0x60] sm:$0xff] }
 0x44e   :  { %2054 = vmatprep.subr.mxu0 %v9525_v46  ;;  %6248 = vmatprep.subr.mxu1 %v12485_v56  ;;  %12784 = vst [vmem:[#allocation144_spill] sm:$0xff] %v9535_v38  ;;  %12785 = vst [vmem:[#allocation145_spill] sm:$0xff] %v9539_v8  ;;  %v9542_v46 = vld [vmem:[#allocation13 + $0x70] sm:$0xff] }
 0x44f   :  { %2055 = vmatpush1.msra.mxu0 %v9529_v36  ;;  %6249 = vmatpush3.msra.mxu1 %v9532_v30  ;;  %12786 = vst [vmem:[#allocation146_spill] sm:$0xff] %v9542_v46  ;;  %v7024_v36 = vpop.eup %7023  ;;  %v9549_v30 = vld [vmem:[#allocation13 + $0x48] sm:$0xff] }
 0x450   :  { %2056 = vmatprep.subr.mxu0 %v9535_v38  ;;  %6250 = vmatprep.subr.mxu1 %v12485_v56  ;;  %12788 = vst [vmem:[#allocation148_spill] sm:$0xff] %v9549_v30  ;;  %v9552_v38 = vld [vmem:[#allocation13 + $0x58] sm:$0xff] }
 0x451   :  { %2057 = vmatpush1.msra.mxu0 %v9539_v8  ;;  %6251 = vmatpush3.msra.mxu1 %v9542_v46  ;;  %12789 = vst [vmem:[#allocation149_spill] sm:$0xff] %v9552_v38  ;;  %v1583_v8 = vsub.f32 1.0, %v7022_v12  ;;  %v9559_v46 = vld [vmem:[#allocation13 + $0x30] sm:$0xff] }
 0x452   :  { %2058 = vmatprep.subr.mxu0 %v9545_v41  ;;  %6252 = vmatprep.subr.mxu1 %v12485_v56  ;;  %12791 = vst [vmem:[#allocation151_spill] sm:$0xff] %v9559_v46  ;;  %v9562_v41 = vld [vmem:[#allocation13 + $0x40] sm:$0xff] }
 0x453   :  { %2059 = vmatpush1.msra.mxu0 %v9549_v30  ;;  %6253 = vmatpush3.msra.mxu1 %v9552_v38  ;;  %v1584_v30 = vmul.f32 %v7024_v36, %v1583_v8  ;;  %v9569_v38 = vld [vmem:[#allocation13 + $0x18] sm:$0xff]  ;;  %v9580_v8 = vld [vmem:[#allocation13] sm:$0xff] }
 0x454   :  { %2060 = vmatprep.subr.mxu0 %v9555_v7  ;;  %6254 = vmatprep.subr.mxu1 %v12485_v56  ;;  %12792 = vst [vmem:[#allocation152_spill] sm:$0xff] %v9569_v38  ;;  %v9572_v7 = vld [vmem:[#allocation13 + $0x28] sm:$0xff] }
 0x455   :  { %2061 = vmatpush1.msra.mxu0 %v9559_v46  ;;  %6255 = vmatpush3.msra.mxu1 %v9562_v41  ;;  %v1585_v46 = vmul.f32 %v7022_v12, %v8935_v14  ;;  %v9595_v12 = vld [vmem:[#allocation8 + $0x168] sm:$0xff]  ;;  %v9611_v14 = vld [vmem:[#allocation8 + $0x138] sm:$0xff] }
 0x456   :  { %2062 = vmatprep.subr.mxu0 %v9565_v13  ;;  %6256 = vmatprep.subr.mxu1 %v12485_v56  ;;  %12795 = vst [vmem:[#allocation155_spill] sm:$0xff] %v9611_v14 }
 0x457   :  { %2063 = vmatpush1.msra.mxu0 %v9569_v38  ;;  %6257 = vmatpush3.msra.mxu1 %v9572_v7  ;;  %v9584_v36 = vadd.f32 %v1585_v46, %v1584_v30  ;;  %v9586_v38 = vld [vmem:[#allocation13 + $0x10] sm:$0xff]  ;;  %v9599_v30 = vld [vmem:[#allocation8 + $0x158] sm:$0xff] }
 0x458   :  { %2064 = vmatprep.subr.mxu0 %v9576_v18  ;;  %6258 = vmatprep.subr.mxu1 %v12485_v56  ;;  %v9603_v46 = vld [vmem:[#allocation8 + $0x150] sm:$0xff] }
 0x459   :  { %2065 = vmatpush1.msra.mxu0 %v9580_v8  ;;  %2098 = vmatprep.mubr.f32.mxu0 %v12485_v56  ;;  %12793 = vst [vmem:[#allocation153_spill] sm:$0xff] %v9584_v36  ;;  %12794 = vst [vmem:[#allocation154_spill] sm:$0xff] %v9603_v46 }
 0x45a   :  { %6259 = vmatpush3.msra.mxu1 %v9586_v38  ;;  %6260 = vmatprep.mubr.msk.f32.mxu1 %vm7863_vm0, %v12485_v56 }
 0x45b   :  { %2099 = vmatmul.mubr.f32.vlgmr.msra.gmra.mxu0 %v9584_v36  ;;  %6261 = vmatmul.mubr.f32.vlgmr.msra.gmra.mxu1 %v9584_v36 }
 0x45c   :  { %2199 = vmatprep.subr.mxu0 %v8942_v63  ;;  %6263 = vmatprep.subr.mxu1 %v12485_v56  ;;  %v9607_v63 = vld [vmem:[#allocation8 + $0x140] sm:$0xff] }
 0x45d   :  { %2200 = vmatpush1.msra.mxu0 %v9595_v12  ;;  %6264 = vmatpush3.msra.mxu1 %v8947_v4  ;;  %v9615_v4 = vld [vmem:[#allocation8 + $0x128] sm:$0xff] }
 0x45e   :  { %2201 = vmatprep.subr.mxu0 %v9599_v30  ;;  %6265 = vmatprep.subr.mxu1 %v12485_v56 }
 0x45f   :  { %2202 = vmatpush1.msra.mxu0 %v9603_v46  ;;  %6266 = vmatpush3.msra.mxu1 %v8953_v62  ;;  %v9619_v46 = vld [vmem:[#allocation8 + $0x120] sm:$0xff]  ;;  %v9623_v62 = vld [vmem:[#allocation8 + $0x110] sm:$0xff] }
 0x460   :  { %2203 = vmatprep.subr.mxu0 %v9607_v63  ;;  %6267 = vmatprep.subr.mxu1 %v12485_v56  ;;  %12796 = vst [vmem:[#allocation156_spill] sm:$0xff] %v9619_v46 }
 0x461   :  { %2204 = vmatpush1.msra.mxu0 %v9611_v14  ;;  %6268 = vmatpush3.msra.mxu1 %v8959_v9  ;;  %v9627_v14 = vld [vmem:[#allocation8 + $0x108] sm:$0xff]  ;;  %v9631_v9 = vld [vmem:[#allocation8 + $0xf8] sm:$0xff] }
 0x462   :  { %2205 = vmatprep.subr.mxu0 %v9615_v4  ;;  %6269 = vmatprep.subr.mxu1 %v12485_v56  ;;  %12797 = vst [vmem:[#allocation157_spill] sm:$0xff] %v9627_v14 }
 0x463   :  { %2206 = vmatpush1.msra.mxu0 %v9619_v46  ;;  %6270 = vmatpush3.msra.mxu1 %v8965_v59  ;;  %v9635_v46 = vld [vmem:[#allocation8 + $0xf0] sm:$0xff]  ;;  %v9639_v59 = vld [vmem:[#allocation8 + $0xe0] sm:$0xff] }
 0x464   :  { %2207 = vmatprep.subr.mxu0 %v9623_v62  ;;  %6271 = vmatprep.subr.mxu1 %v12485_v56 }
 0x465   :  { %2208 = vmatpush1.msra.mxu0 %v9627_v14  ;;  %6272 = vmatpush3.msra.mxu1 %v8971_v45  ;;  %v9643_v14 = vld [vmem:[#allocation8 + $0xd8] sm:$0xff]  ;;  %v9647_v45 = vld [vmem:[#allocation8 + $0xc8] sm:$0xff] }
 0x466   :  { %2209 = vmatprep.subr.mxu0 %v9631_v9  ;;  %6273 = vmatprep.subr.mxu1 %v12485_v56 }
 0x467   :  { %2210 = vmatpush1.msra.mxu0 %v9635_v46  ;;  %6274 = vmatpush3.msra.mxu1 %v8977_v15  ;;  %v12798_v15 = vld [vmem:[#allocation21_spill] sm:$0xff] }
 0x468   :  { %2211 = vmatprep.subr.mxu0 %v9639_v59  ;;  %6275 = vmatprep.subr.mxu1 %v12485_v56 }
 0x469   :  { %2212 = vmatpush1.msra.mxu0 %v9643_v14  ;;  %6276 = vmatpush3.msra.mxu1 %v8983_v17  ;;  %v2198_v17 = vld [vmem:[#allocation5 + $0x18] sm:$0xff] }
 0x46a   :  { %2213 = vmatprep.subr.mxu0 %v9647_v45  ;;  %6277 = vmatprep.subr.mxu1 %v12485_v56 }
 0x46b   :  { %2214 = vmatpush1.msra.mxu0 %v8988_v19  ;;  %6278 = vmatpush3.msra.mxu1 %v8991_v2  ;;  %v12799_v19 = vld [vmem:[#allocation22_spill] sm:$0xff] }
 0x46c   :  { %2215 = vmatprep.subr.mxu0 %v8994_v22  ;;  %6279 = vmatprep.subr.mxu1 %v12485_v56  ;;  %v12800_v2 = vld [vmem:[#allocation38_spill] sm:$0xff]  ;;  %v12801_v22 = vld [vmem:[#allocation23_spill] sm:$0xff] }
 0x46d   :  { %2216 = vmatpush1.msra.mxu0 %v8998_v53  ;;  %6280 = vmatpush3.msra.mxu1 %v9001_v25  ;;  %v12802_v53 = vld [vmem:[#allocation24_spill] sm:$0xff]  ;;  %v12803_v25 = vld [vmem:[#allocation41_spill] sm:$0xff] }
 0x46e   :  { %2217 = vmatprep.subr.mxu0 %v9004_v49  ;;  %6281 = vmatprep.subr.mxu1 %v12485_v56  ;;  %v12804_v49 = vld [vmem:[#allocation25_spill] sm:$0xff] }
 0x46f   :  { %2218 = vmatpush1.msra.mxu0 %v9008_v39  ;;  %6282 = vmatpush3.msra.mxu1 %v9011_v50  ;;  %v12805_v39 = vld [vmem:[#allocation26_spill] sm:$0xff]  ;;  %v12806_v50 = vld [vmem:[#allocation44_spill] sm:$0xff] }
 0x470   :  { %2219 = vmatprep.subr.mxu0 %v9014_v51  ;;  %6283 = vmatprep.subr.mxu1 %v12485_v56  ;;  %v12807_v51 = vld [vmem:[#allocation27_spill] sm:$0xff] }
 0x471   :  { %2220 = vmatpush1.msra.mxu0 %v9018_v52  ;;  %6284 = vmatpush3.msra.mxu1 %v9021_v54  ;;  %v12808_v52 = vld [vmem:[#allocation28_spill] sm:$0xff]  ;;  %v12809_v54 = vld [vmem:[#allocation47_spill] sm:$0xff] }
 0x472   :  { %2221 = vmatprep.subr.mxu0 %v9024_v57  ;;  %6285 = vmatprep.subr.mxu1 %v12485_v56  ;;  %v12810_v57 = vld [vmem:[#allocation29_spill] sm:$0xff] }
 0x473   :  { %2222 = vmatpush1.msra.mxu0 %v9028_v60  ;;  %6286 = vmatpush3.msra.mxu1 %v9031_v29  ;;  %v12811_v60 = vld [vmem:[#allocation30_spill] sm:$0xff] }
 0x474   :  { %2223 = vmatprep.subr.mxu0 %v9034_v6  ;;  %6287 = vmatprep.subr.mxu1 %v12485_v56  ;;  %v12812_v29 = vld [vmem:[#allocation50_spill] sm:$0xff]  ;;  %v12813_v6 = vld [vmem:[#allocation31_spill] sm:$0xff] }
 0x475   :  { %2224 = vmatpush1.msra.mxu0 %v9038_v23  ;;  %6288 = vmatpush3.msra.mxu1 %v9041_v26  ;;  %v12814_v23 = vld [vmem:[#allocation33_spill] sm:$0xff]  ;;  %v12815_v26 = vld [vmem:[#allocation52_spill] sm:$0xff] }
 0x476   :  { %2225 = vmatprep.subr.mxu0 %v9044_v27  ;;  %6289 = vmatprep.subr.mxu1 %v12485_v56  ;;  %v12816_v27 = vld [vmem:[#allocation34_spill] sm:$0xff] }
 0x477   :  { %2226 = vmatpush1.msra.mxu0 %v9048_v28  ;;  %6290 = vmatpush3.msra.mxu1 %v9051_v31  ;;  %v12817_v28 = vld [vmem:[#allocation36_spill] sm:$0xff]  ;;  %v12818_v31 = vld [vmem:[#allocation53_spill] sm:$0xff] }
 0x478   :  { %2227 = vmatprep.subr.mxu0 %v9054_v32  ;;  %6291 = vmatprep.subr.mxu1 %v12485_v56  ;;  %v12819_v32 = vld [vmem:[#allocation37_spill] sm:$0xff] }
 0x479   :  { %2228 = vmatpush1.msra.mxu0 %v9058_v33  ;;  %6292 = vmatpush3.msra.mxu1 %v12798_v15  ;;  %v12820_v33 = vld [vmem:[#allocation39_spill] sm:$0xff]  ;;  %v12821_v15 = vld [vmem:[#allocation54_spill] sm:$0xff] }
 0x47a   :  { %2229 = vmatprep.subr.mxu0 %v12799_v19  ;;  %6293 = vmatprep.subr.mxu1 %v12485_v56  ;;  %v12823_v19 = vld [vmem:[#allocation42_spill] sm:$0xff] }
 0x47b   :  { %2230 = vmatpush1.msra.mxu0 %v12800_v2  ;;  %2263 = vmatprep.mubr.f32.mxu0 %v12485_v56  ;;  %v12824_v2 = vld [vmem:[#allocation55_spill] sm:$0xff] }
 0x47c   :  { %6294 = vmatpush3.msra.mxu1 %v12801_v22  ;;  %2264 = vmatmul.mubr.f32.vlgmr.msra.gmra.mxu0 %v2198_v17  ;;  %v12825_v22 = vld [vmem:[#allocation43_spill] sm:$0xff] }
 0x47d   :  { %6295 = vmatprep.mubr.msk.f32.mxu1 %vm7863_vm0, %v12485_v56  ;;  %2340 = vmatprep.subr.mxu0 %v12802_v53  ;;  %v12826_v53 = vld [vmem:[#allocation45_spill] sm:$0xff] }
 0x47e   :  { %6298 = vmatprep.subr.mxu1 %v12485_v56  ;;  %6296 = vmatmul.mubr.f32.vlgmr.msra.gmra.mxu1 %v2198_v17  ;;  %v12822_v17 = vld [vmem:[#allocation40_spill] sm:$0xff] }
 0x47f   :  { %2341 = vmatpush1.msra.mxu0 %v12803_v25  ;;  %6299 = vmatpush3.msra.mxu1 %v12804_v49  ;;  %v12827_v25 = vld [vmem:[#allocation56_spill] sm:$0xff]  ;;  %v12828_v49 = vld [vmem:[#allocation46_spill] sm:$0xff] }
 0x480   :  { %2342 = vmatprep.subr.mxu0 %v12805_v39  ;;  %6300 = vmatprep.subr.mxu1 %v12485_v56  ;;  %v12829_v39 = vld [vmem:[#allocation48_spill] sm:$0xff] }
 0x481   :  { %2343 = vmatpush1.msra.mxu0 %v12806_v50  ;;  %6301 = vmatpush3.msra.mxu1 %v12807_v51  ;;  %v12830_v50 = vld [vmem:[#allocation57_spill] sm:$0xff] }
 0x482   :  { %2344 = vmatprep.subr.mxu0 %v12808_v52  ;;  %6302 = vmatprep.subr.mxu1 %v12485_v56  ;;  %v12831_v51 = vld [vmem:[#allocation49_spill] sm:$0xff]  ;;  %v12832_v52 = vld [vmem:[#allocation51_spill] sm:$0xff] }
 0x483   :  { %2345 = vmatpush1.msra.mxu0 %v12809_v54  ;;  %6303 = vmatpush3.msra.mxu1 %v12810_v57  ;;  %v12833_v54 = vld [vmem:[#allocation58_spill] sm:$0xff]  ;;  %v12834_v57 = vld [vmem:[#allocation59_spill] sm:$0xff] }
 0x484   :  { %2346 = vmatprep.subr.mxu0 %v12811_v60  ;;  %6304 = vmatprep.subr.mxu1 %v12485_v56  ;;  %v12835_v60 = vld [vmem:[#allocation60_spill] sm:$0xff] }
 0x485   :  { %2347 = vmatpush1.msra.mxu0 %v12812_v29  ;;  %6305 = vmatpush3.msra.mxu1 %v12813_v6  ;;  %v12836_v29 = vld [vmem:[#allocation61_spill] sm:$0xff]  ;;  %v12837_v6 = vld [vmem:[#allocation62_spill] sm:$0xff] }
 0x486   :  { %2348 = vmatprep.subr.mxu0 %v12814_v23  ;;  %6306 = vmatprep.subr.mxu1 %v12485_v56  ;;  %v12838_v23 = vld [vmem:[#allocation63_spill] sm:$0xff] }
 0x487   :  { %2349 = vmatpush1.msra.mxu0 %v12815_v26  ;;  %6307 = vmatpush3.msra.mxu1 %v12816_v27  ;;  %v12839_v26 = vld [vmem:[#allocation64_spill] sm:$0xff]  ;;  %v12840_v27 = vld [vmem:[#allocation65_spill] sm:$0xff] }
 0x488   :  { %2350 = vmatprep.subr.mxu0 %v12817_v28  ;;  %6308 = vmatprep.subr.mxu1 %v12485_v56  ;;  %v12841_v28 = vld [vmem:[#allocation67_spill] sm:$0xff] }
 0x489   :  { %2351 = vmatpush1.msra.mxu0 %v12818_v31  ;;  %6309 = vmatpush3.msra.mxu1 %v12819_v32  ;;  %v12842_v31 = vld [vmem:[#allocation66_spill] sm:$0xff]  ;;  %v12843_v32 = vld [vmem:[#allocation68_spill] sm:$0xff] }
 0x48a   :  { %2352 = vmatprep.subr.mxu0 %v12820_v33  ;;  %6310 = vmatprep.subr.mxu1 %v12485_v56  ;;  %v12844_v33 = vld [vmem:[#allocation69_spill] sm:$0xff] }
 0x48b   :  { %2353 = vmatpush1.msra.mxu0 %v12821_v15  ;;  %6311 = vmatpush3.msra.mxu1 %v12822_v17  ;;  %v12845_v15 = vld [vmem:[#allocation70_spill] sm:$0xff]  ;;  %v12846_v17 = vld [vmem:[#allocation71_spill] sm:$0xff] }
 0x48c   :  { %2354 = vmatprep.subr.mxu0 %v12823_v19  ;;  %6312 = vmatprep.subr.mxu1 %v12485_v56  ;;  %v12847_v19 = vld [vmem:[#allocation72_spill] sm:$0xff] }
 0x48d   :  { %2355 = vmatpush1.msra.mxu0 %v12824_v2  ;;  %6313 = vmatpush3.msra.mxu1 %v12825_v22  ;;  %v12848_v2 = vld [vmem:[#allocation73_spill] sm:$0xff]  ;;  %v12849_v22 = vld [vmem:[#allocation74_spill] sm:$0xff] }
 0x48e   :  { %2356 = vmatprep.subr.mxu0 %v12826_v53  ;;  %6314 = vmatprep.subr.mxu1 %v12485_v56  ;;  %v12850_v53 = vld [vmem:[#allocation75_spill] sm:$0xff] }
 0x48f   :  { %2357 = vmatpush1.msra.mxu0 %v12827_v25  ;;  %6315 = vmatpush3.msra.mxu1 %v12828_v49  ;;  %v12851_v25 = vld [vmem:[#allocation76_spill] sm:$0xff]  ;;  %v12852_v49 = vld [vmem:[#allocation77_spill] sm:$0xff] }
 0x490   :  { %2358 = vmatprep.subr.mxu0 %v12829_v39  ;;  %6316 = vmatprep.subr.mxu1 %v12485_v56  ;;  %v12853_v39 = vld [vmem:[#allocation78_spill] sm:$0xff] }
 0x491   :  { %2359 = vmatpush1.msra.mxu0 %v12830_v50  ;;  %6317 = vmatpush3.msra.mxu1 %v12831_v51  ;;  %v12854_v50 = vld [vmem:[#allocation79_spill] sm:$0xff]  ;;  %v12855_v51 = vld [vmem:[#allocation80_spill] sm:$0xff] }
 0x492   :  { %2360 = vmatprep.subr.mxu0 %v12832_v52  ;;  %6318 = vmatprep.subr.mxu1 %v12485_v56  ;;  %v12856_v52 = vld [vmem:[#allocation81_spill] sm:$0xff] }
 0x493   :  { %2361 = vmatpush1.msra.mxu0 %v12833_v54  ;;  %6319 = vmatpush3.msra.mxu1 %v12834_v57  ;;  %v12857_v54 = vld [vmem:[#allocation82_spill] sm:$0xff]  ;;  %v12858_v57 = vld [vmem:[#allocation83_spill] sm:$0xff] }
 0x494   :  { %2362 = vmatprep.subr.mxu0 %v12835_v60  ;;  %6320 = vmatprep.subr.mxu1 %v12485_v56  ;;  %v12859_v60 = vld [vmem:[#allocation84_spill] sm:$0xff] }
 0x495   :  { %2363 = vmatpush1.msra.mxu0 %v12836_v29  ;;  %6321 = vmatpush3.msra.mxu1 %v12837_v6  ;;  %v12860_v29 = vld [vmem:[#allocation85_spill] sm:$0xff]  ;;  %v12861_v6 = vld [vmem:[#allocation86_spill] sm:$0xff] }
 0x496   :  { %2364 = vmatprep.subr.mxu0 %v12838_v23  ;;  %6322 = vmatprep.subr.mxu1 %v12485_v56  ;;  %v12862_v23 = vld [vmem:[#allocation87_spill] sm:$0xff] }
 0x497   :  { %2365 = vmatpush1.msra.mxu0 %v12839_v26  ;;  %6323 = vmatpush3.msra.mxu1 %v12840_v27  ;;  %v12863_v26 = vld [vmem:[#allocation88_spill] sm:$0xff]  ;;  %v12864_v27 = vld [vmem:[#allocation89_spill] sm:$0xff] }
 0x498   :  { %2366 = vmatprep.subr.mxu0 %v12841_v28  ;;  %6324 = vmatprep.subr.mxu1 %v12485_v56  ;;  %v12865_v28 = vld [vmem:[#allocation90_spill] sm:$0xff] }
 0x499   :  { %2367 = vmatpush1.msra.mxu0 %v12842_v31  ;;  %6325 = vmatpush3.msra.mxu1 %v12843_v32  ;;  %v12866_v31 = vld [vmem:[#allocation91_spill] sm:$0xff]  ;;  %v12867_v32 = vld [vmem:[#allocation92_spill] sm:$0xff] }
 0x49a   :  { %2368 = vmatprep.subr.mxu0 %v12844_v33  ;;  %6326 = vmatprep.subr.mxu1 %v12485_v56  ;;  %v12868_v33 = vld [vmem:[#allocation93_spill] sm:$0xff] }
 0x49b   :  { %2369 = vmatpush1.msra.mxu0 %v12845_v15  ;;  %6327 = vmatpush3.msra.mxu1 %v12846_v17  ;;  %v12869_v15 = vld [vmem:[#allocation94_spill] sm:$0xff]  ;;  %v12870_v17 = vld [vmem:[#allocation95_spill] sm:$0xff] }
 0x49c   :  { %2370 = vmatprep.subr.mxu0 %v12847_v19  ;;  %6328 = vmatprep.subr.mxu1 %v12485_v56  ;;  %v12871_v19 = vld [vmem:[#allocation96_spill] sm:$0xff] }
 0x49d   :  { %2371 = vmatpush1.msra.mxu0 %v12848_v2  ;;  %2404 = vmatprep.mubr.f32.mxu0 %v12485_v56  ;;  %v12872_v2 = vld [vmem:[#allocation97_spill] sm:$0xff] }
 0x49e   :  { %6329 = vmatpush3.msra.mxu1 %v12849_v22  ;;  %6330 = vmatprep.mubr.msk.f32.mxu1 %vm7863_vm0, %v12485_v56  ;;  %v12873_v22 = vld [vmem:[#allocation98_spill] sm:$0xff] }
 0x49f   :  { %2405 = vmatmul.mubr.f32.vlgmr.msra.gmra.mxu0 %v9424_v44  ;;  %6331 = vmatmul.mubr.f32.vlgmr.msra.gmra.mxu1 %v9424_v44 }
 0x4a0   :  { %2502 = vmatprep.subr.mxu0 %v12850_v53  ;;  %6333 = vmatprep.subr.mxu1 %v12485_v56  ;;  %v12874_v53 = vld [vmem:[#allocation99_spill] sm:$0xff] }
 0x4a1   :  { %2503 = vmatpush1.msra.mxu0 %v12851_v25  ;;  %6334 = vmatpush3.msra.mxu1 %v12852_v49  ;;  %v12875_v25 = vld [vmem:[#allocation100_spill] sm:$0xff]  ;;  %v12876_v49 = vld [vmem:[#allocation101_spill] sm:$0xff] }
 0x4a2   :  { %2504 = vmatprep.subr.mxu0 %v12853_v39  ;;  %6335 = vmatprep.subr.mxu1 %v12485_v56  ;;  %v12877_v39 = vld [vmem:[#allocation102_spill] sm:$0xff] }
 0x4a3   :  { %2505 = vmatpush1.msra.mxu0 %v12854_v50  ;;  %6336 = vmatpush3.msra.mxu1 %v12855_v51  ;;  %v12878_v50 = vld [vmem:[#allocation103_spill] sm:$0xff]  ;;  %v12879_v51 = vld [vmem:[#allocation104_spill] sm:$0xff] }
 0x4a4   :  { %2506 = vmatprep.subr.mxu0 %v12856_v52  ;;  %6337 = vmatprep.subr.mxu1 %v12485_v56  ;;  %v12880_v52 = vld [vmem:[#allocation105_spill] sm:$0xff] }
 0x4a5   :  { %2507 = vmatpush1.msra.mxu0 %v12857_v54  ;;  %6338 = vmatpush3.msra.mxu1 %v12858_v57  ;;  %v12881_v54 = vld [vmem:[#allocation106_spill] sm:$0xff]  ;;  %v12882_v57 = vld [vmem:[#allocation107_spill] sm:$0xff] }
 0x4a6   :  { %2508 = vmatprep.subr.mxu0 %v12859_v60  ;;  %6339 = vmatprep.subr.mxu1 %v12485_v56  ;;  %v12883_v60 = vld [vmem:[#allocation108_spill] sm:$0xff] }
 0x4a7   :  { %2509 = vmatpush1.msra.mxu0 %v12860_v29  ;;  %6340 = vmatpush3.msra.mxu1 %v12861_v6  ;;  %v12884_v29 = vld [vmem:[#allocation109_spill] sm:$0xff]  ;;  %v12885_v6 = vld [vmem:[#allocation110_spill] sm:$0xff] }
 0x4a8   :  { %2510 = vmatprep.subr.mxu0 %v12862_v23  ;;  %6341 = vmatprep.subr.mxu1 %v12485_v56  ;;  %v12886_v23 = vld [vmem:[#allocation111_spill] sm:$0xff] }
 0x4a9   :  { %2511 = vmatpush1.msra.mxu0 %v12863_v26  ;;  %6342 = vmatpush3.msra.mxu1 %v12864_v27  ;;  %v12887_v26 = vld [vmem:[#allocation112_spill] sm:$0xff]  ;;  %v12888_v27 = vld [vmem:[#allocation113_spill] sm:$0xff] }
 0x4aa   :  { %2512 = vmatprep.subr.mxu0 %v12865_v28  ;;  %6343 = vmatprep.subr.mxu1 %v12485_v56  ;;  %v12889_v28 = vld [vmem:[#allocation114_spill] sm:$0xff] }
 0x4ab   :  { %2513 = vmatpush1.msra.mxu0 %v12866_v31  ;;  %6344 = vmatpush3.msra.mxu1 %v12867_v32  ;;  %v12890_v31 = vld [vmem:[#allocation115_spill] sm:$0xff]  ;;  %v12891_v32 = vld [vmem:[#allocation116_spill] sm:$0xff] }
 0x4ac   :  { %2514 = vmatprep.subr.mxu0 %v12868_v33  ;;  %6345 = vmatprep.subr.mxu1 %v12485_v56  ;;  %v12892_v33 = vld [vmem:[#allocation117_spill] sm:$0xff] }
 0x4ad   :  { %2515 = vmatpush1.msra.mxu0 %v12869_v15  ;;  %6346 = vmatpush3.msra.mxu1 %v12870_v17  ;;  %v12893_v15 = vld [vmem:[#allocation118_spill] sm:$0xff]  ;;  %v12894_v17 = vld [vmem:[#allocation119_spill] sm:$0xff] }
 0x4ae   :  { %2516 = vmatprep.subr.mxu0 %v12871_v19  ;;  %6347 = vmatprep.subr.mxu1 %v12485_v56  ;;  %v12895_v19 = vld [vmem:[#allocation120_spill] sm:$0xff] }
 0x4af   :  { %2517 = vmatpush1.msra.mxu0 %v12872_v2  ;;  %6348 = vmatpush3.msra.mxu1 %v12873_v22  ;;  %v12896_v2 = vld [vmem:[#allocation121_spill] sm:$0xff]  ;;  %v12897_v22 = vld [vmem:[#allocation122_spill] sm:$0xff] }
 0x4b0   :  { %2518 = vmatprep.subr.mxu0 %v12874_v53  ;;  %6349 = vmatprep.subr.mxu1 %v12485_v56  ;;  %v12898_v53 = vld [vmem:[#allocation123_spill] sm:$0xff] }
 0x4b1   :  { %2519 = vmatpush1.msra.mxu0 %v12875_v25  ;;  %6350 = vmatpush3.msra.mxu1 %v12876_v49 }
 0x4b2   :  { %2520 = vmatprep.subr.mxu0 %v12877_v39  ;;  %6351 = vmatprep.subr.mxu1 %v12485_v56 }
 0x4b3   :  { %2521 = vmatpush1.msra.mxu0 %v12878_v50  ;;  %6352 = vmatpush3.msra.mxu1 %v12879_v51 }
 0x4b4   :  { %2522 = vmatprep.subr.mxu0 %v12880_v52  ;;  %6353 = vmatprep.subr.mxu1 %v12485_v56 }
 0x4b5   :  { %2523 = vmatpush1.msra.mxu0 %v12881_v54  ;;  %6354 = vmatpush3.msra.mxu1 %v12882_v57  ;;  %v12899_v54 = vld [vmem:[#allocation32_spill] sm:$0xff] }
 0x4b6   :  { %2524 = vmatprep.subr.mxu0 %v12883_v60  ;;  %6355 = vmatprep.subr.mxu1 %v12485_v56 }
 0x4b7   :  { %2525 = vmatpush1.msra.mxu0 %v12884_v29  ;;  %6356 = vmatpush3.msra.mxu1 %v12885_v6 }
 0x4b8   :  { %2526 = vmatprep.subr.mxu0 %v12886_v23  ;;  %6357 = vmatprep.subr.mxu1 %v12485_v56 }
 0x4b9   :  { %2527 = vmatpush1.msra.mxu0 %v12887_v26  ;;  %6358 = vmatpush3.msra.mxu1 %v12888_v27 }
 0x4ba   :  { %2528 = vmatprep.subr.mxu0 %v12889_v28  ;;  %6359 = vmatprep.subr.mxu1 %v12485_v56  ;;  %v12900_v28 = vld [vmem:[#allocation19_spill] sm:$0xff] }
 0x4bb   :  { %2529 = vmatpush1.msra.mxu0 %v12890_v31  ;;  %6360 = vmatpush3.msra.mxu1 %v12891_v32 }
 0x4bc   :  { %2530 = vmatprep.subr.mxu0 %v12892_v33  ;;  %6361 = vmatprep.subr.mxu1 %v12485_v56 }
 0x4bd   :  { %2531 = vmatpush1.msra.mxu0 %v12893_v15  ;;  %6362 = vmatpush3.msra.mxu1 %v12894_v17  ;;  %v12901_v15 = vld [vmem:[#allocation20_spill] sm:$0xff] }
 0x4be   :  { %2532 = vmatprep.subr.mxu0 %v12895_v19  ;;  %6363 = vmatprep.subr.mxu1 %v12485_v56 }
 0x4bf   :  { %2533 = vmatpush1.msra.mxu0 %v12896_v2  ;;  %6364 = vmatpush3.msra.mxu1 %v12897_v22 }
 0x4c0   :  { %2566 = vmatprep.mubr.f32.mxu0 %v12485_v56  ;;  %6365 = vmatprep.mubr.msk.f32.mxu1 %vm7863_vm0, %v12485_v56 }
 0x4c1   :  { %2643 = vmatprep.subr.mxu0 %v12898_v53  ;;  %6368 = vmatprep.subr.mxu1 %v12485_v56 }
 0x4fa   :  { %v2030_v25 = vpop.f32.mrf.mxu1  ;;  %v1959_v39 = vpop.f32.mrf.mxu0 }
 0x4fb   :  { %v1960_v57 = vadd.f32 %v1959_v39, %v12899_v54  ;;  %v2031_v17 = vadd.f32 %v2030_v25, %v12901_v15 }
 0x4fc   :  { %v6227_v49 = vpop.f32.mrf.mxu1  ;;  %v1961_v50 = vpop.f32.mrf.mxu0 }
 0x51b   :  { %v2100_v51 = vpop.f32.mrf.mxu0  ;;  %v2171_v52 = vpop.f32.mrf.mxu1 }
 0x51c   :  { %v2101_v60 = vadd.f32 %v2100_v51, %v8839_v47  ;;  %v2172_v31 = vadd.f32 %v2171_v52, %v12900_v28 }
 0x51d   :  { %v6262_v29 = vpop.f32.mrf.mxu1  ;;  %v2102_v53 = vpop.f32.mrf.mxu0 }
 0x51e   :  { %v2175_v6 = vadd.f32 %v2101_v60, %v1960_v57 }
 0x520   :  { %v5277_v23 = vmul.f32 -1.442695, %v2175_v6 }
 0x522   :  { %7025 = vpow2.f32 %v5277_v23 }
 0x52f   :  { %v7026_v26 = vpop.eup %7025 }
 0x530   :  { %v2179_v27 = vadd.f32 1.0, %v7026_v26 }
 0x532   :  { %7027 = vrcp.f32 %v2179_v27 }
 0x53c   :  { %v2265_v49 = vpop.f32.mrf.mxu0 }
 0x53d   :  { %v2266_v60 = vadd.f32 %v2265_v49, %v12619_v35 }
 0x53e   :  { %v2336_v32 = vpop.f32.mrf.mxu1  ;;  %v2267_v39 = vpop.f32.mrf.mxu0 }
 0x53f   :  { %v7028_v33 = vpop.eup %7027  ;;  %v2268_v25 = vadd.f32 %v2267_v39, %v8417_v16  ;;  %v1962_v39 = vadd.f32 %v1961_v50, %v8861_v21 }
 0x540   :  { %v2189_v19 = vmul.f32 %v7028_v33, %v2172_v31  ;;  %v6297_v2 = vpop.f32.mrf.mxu1 }
 0x542   :  { %v9830_v22 = vadd.f32 %v2189_v19, %v2031_v17 }
 0x55f   :  { %v2406_v51 = vpop.f32.mrf.mxu0  ;;  %v2477_v57 = vpop.f32.mrf.mxu1 }
 0x560   :  { %v2407_v29 = vadd.f32 %v2406_v51, %v12620_v37  ;;  %v2478_v49 = vadd.f32 %v2477_v57, %v8424_v11 }
 0x561   :  { %v2408_v6 = vpop.f32.mrf.mxu0  ;;  %v6332_v23 = vpop.f32.mrf.mxu1 }
 0x562   :  { %v2481_v52 = vadd.f32 %v2407_v29, %v2266_v60  ;;  %v2409_v27 = vadd.f32 %v2408_v6, %v8414_v61  ;;  %v2103_v23 = vadd.f32 %v2102_v53, %v8858_v3  ;;  %v2337_v60 = vadd.f32 %v2336_v32, %v8427_v58  ;;  %v12914_v32 = vld [vmem:[#allocation136_spill] sm:$0xff]  ;;  %v12917_v53 = vld [vmem:[#allocation139_spill] sm:$0xff] }
 0x564   :  { %v5279_v26 = vmul.f32 -1.442695, %v2481_v52  ;;  %v2488_v31 = vadd.f32 %v2409_v27, %v2268_v25  ;;  %v2182_v52 = vadd.f32 %v2103_v23, %v1962_v39  ;;  %v12924_v39 = vld [vmem:[#allocation146_spill] sm:$0xff] }
 0x566   :  { %7029 = vpow2.f32 %v5279_v26  ;;  %v5280_v33 = vmul.f32 -1.442695, %v2488_v31  ;;  %v5278_v26 = vmul.f32 -1.442695, %v2182_v52  ;;  %v12925_v52 = vld [vmem:[#allocation147_spill] sm:$0xff] }
 0x568   :  { %7031 = vpow2.f32 %v5280_v33 }
 0x573   :  { %v7030_v17 = vpop.eup %7029 }
 0x574   :  { %v2485_v19 = vadd.f32 1.0, %v7030_v17 }
 0x575   :  { %v7032_v2 = vpop.eup %7031 }
 0x576   :  { %7033 = vrcp.f32 %v2485_v19  ;;  %v2492_v15 = vadd.f32 1.0, %v7032_v2  ;;  %v12918_v19 = vld [vmem:[#allocation140_spill] sm:$0xff]  ;;  %v12919_v2 = vld [vmem:[#allocation141_spill] sm:$0xff] }
 0x578   :  { %7035 = vrcp.f32 %v2492_v15  ;;  %v12915_v15 = vld [vmem:[#allocation137_spill] sm:$0xff] }
 0x583   :  { %v7034_v51 = vpop.eup %7033 }
 0x584   :  { %v2495_v29 = vmul.f32 %v7034_v51, %v2478_v49  ;;  %v12920_v49 = vld [vmem:[#allocation142_spill] sm:$0xff]  ;;  %v12921_v51 = vld [vmem:[#allocation143_spill] sm:$0xff] }
 0x585   :  { %v7036_v27 = vpop.eup %7035 }
 0x586   :  { %v2496_v6 = vadd.f32 %v2495_v29, %v2337_v60  ;;  %v2498_v25 = vsub.f32 1.0, %v7036_v27  ;;  %v2500_v57 = vmul.f32 %v7036_v27, %v9424_v44  ;;  %v12922_v60 = vld [vmem:[#allocation144_spill] sm:$0xff]  ;;  %v12923_v29 = vld [vmem:[#allocation145_spill] sm:$0xff] }
 0x587   :  { %v12927_v27 = vld [vmem:[#allocation149_spill] sm:$0xff] }
 0x588   :  { %7037 = vtanh.f32 %v2496_v6 }
 0x589   :  { %7039 = vpow2.f32 %v5278_v26  ;;  %v12926_v26 = vld [vmem:[#allocation148_spill] sm:$0xff] }
 0x595   :  { %v7038_v31 = vpop.eup %7037 }
 0x596   :  { %v2499_v33 = vmul.f32 %v7038_v31, %v2498_v25  ;;  %v7040_v50 = vpop.eup %7039  ;;  %v12928_v31 = vld [vmem:[#allocation150_spill] sm:$0xff] }
 0x597   :  { %v2186_v44 = vadd.f32 1.0, %v7040_v50  ;;  %v12930_v50 = vld [vmem:[#allocation152_spill] sm:$0xff] }
 0x598   :  { %v9841_v17 = vadd.f32 %v2500_v57, %v2499_v33  ;;  %v12929_v33 = vld [vmem:[#allocation151_spill] sm:$0xff] }
 0x599   :  { %7041 = vrcp.f32 %v2186_v44 }
 0x59a   :  { %2567 = vmatmul.mubr.f32.vlgmr.msra.gmra.mxu0 %v9841_v17  ;;  %6366 = vmatmul.mubr.f32.vlgmr.msra.gmra.mxu1 %v9841_v17  ;;  %7043 = vtanh.f32 %v9830_v22  ;;  %v12916_v22 = vld [vmem:[#allocation138_spill] sm:$0xff] }
 0x59b   :  { %2644 = vmatpush1.msra.mxu0 %v9428_v20  ;;  %6369 = vmatpush3.msra.mxu1 %v9431_v40  ;;  %v12902_v20 = vld [vmem:[#allocation124_spill] sm:$0xff]  ;;  %v12903_v40 = vld [vmem:[#allocation125_spill] sm:$0xff] }
 0x59c   :  { %2645 = vmatprep.subr.mxu0 %v9434_v55  ;;  %6370 = vmatprep.subr.mxu1 %v12485_v56  ;;  %v12904_v55 = vld [vmem:[#allocation126_spill] sm:$0xff] }
 0x59d   :  { %2646 = vmatpush1.msra.mxu0 %v9438_v42  ;;  %6371 = vmatpush3.msra.mxu1 %v9441_v5  ;;  %v12905_v42 = vld [vmem:[#allocation127_spill] sm:$0xff]  ;;  %v12906_v5 = vld [vmem:[#allocation128_spill] sm:$0xff] }
 0x59e   :  { %2647 = vmatprep.subr.mxu0 %v9444_v1  ;;  %6372 = vmatprep.subr.mxu1 %v12485_v56  ;;  %v12907_v1 = vld [vmem:[#allocation129_spill] sm:$0xff] }
 0x59f   :  { %2648 = vmatpush1.msra.mxu0 %v9448_v0  ;;  %6373 = vmatpush3.msra.mxu1 %v9451_v24  ;;  %v12908_v0 = vld [vmem:[#allocation130_spill] sm:$0xff]  ;;  %v12909_v24 = vld [vmem:[#allocation131_spill] sm:$0xff] }
 0x5a0   :  { %2649 = vmatprep.subr.mxu0 %v9454_v10  ;;  %6374 = vmatprep.subr.mxu1 %v12485_v56  ;;  %v12910_v10 = vld [vmem:[#allocation132_spill] sm:$0xff] }
 0x5a1   :  { %2650 = vmatpush1.msra.mxu0 %v9458_v48  ;;  %6375 = vmatpush3.msra.mxu1 %v9461_v43  ;;  %v12911_v48 = vld [vmem:[#allocation133_spill] sm:$0xff]  ;;  %v12912_v43 = vld [vmem:[#allocation134_spill] sm:$0xff] }
 0x5a2   :  { %2651 = vmatprep.subr.mxu0 %v9464_v34  ;;  %6376 = vmatprep.subr.mxu1 %v12485_v56  ;;  %v12913_v34 = vld [vmem:[#allocation135_spill] sm:$0xff] }
 0x5a3   :  { %2652 = vmatpush1.msra.mxu0 %v12902_v20  ;;  %6377 = vmatpush3.msra.mxu1 %v12903_v40  ;;  %v9939_v20 = vld [vmem:[#allocation8 + $0x130] sm:$0xff]  ;;  %v9945_v40 = vld [vmem:[#allocation8 + $0x118] sm:$0xff] }
 0x5a4   :  { %2653 = vmatprep.subr.mxu0 %v12904_v55  ;;  %6378 = vmatprep.subr.mxu1 %v12485_v56  ;;  %v9978_v55 = vld [vmem:[#allocation8 + $0x98] sm:$0xff] }
 0x5a5   :  { %2654 = vmatpush1.msra.mxu0 %v12905_v42  ;;  %6379 = vmatpush3.msra.mxu1 %v12906_v5  ;;  %v9982_v42 = vld [vmem:[#allocation8 + $0x90] sm:$0xff]  ;;  %v9985_v5 = vld [vmem:[#allocation8 + $0xa0] sm:$0xff] }
 0x5a6   :  { %2655 = vmatprep.subr.mxu0 %v12907_v1  ;;  %6380 = vmatprep.subr.mxu1 %v12485_v56  ;;  %v7042_v23 = vpop.eup %7041  ;;  %v9988_v1 = vld [vmem:[#allocation8 + $0x80] sm:$0xff] }
 0x5a7   :  { %2656 = vmatpush1.msra.mxu0 %v12908_v0  ;;  %6381 = vmatpush3.msra.mxu1 %v12909_v24  ;;  %v7044_v6 = vpop.eup %7043  ;;  %v2192_v25 = vsub.f32 1.0, %v7042_v23  ;;  %v2194_v44 = vmul.f32 %v7042_v23, %v9584_v36  ;;  %v9992_v0 = vld [vmem:[#allocation8 + $0x78] sm:$0xff]  ;;  %v9995_v24 = vld [vmem:[#allocation8 + $0x88] sm:$0xff]  ;;  %v2807_v23 = vld [vmem:[#allocation5 + $0x20] sm:$0xff] }
 0x5a8   :  { %2657 = vmatprep.subr.mxu0 %v12910_v10  ;;  %6382 = vmatprep.subr.mxu1 %v12485_v56  ;;  %v9998_v10 = vld [vmem:[#allocation8 + $0x68] sm:$0xff]  ;;  %v10101_v36 = vld [vmem:[#allocation10 + $0xf8] sm:$0xff] }
 0x5a9   :  { %2658 = vmatpush1.msra.mxu0 %v12911_v48  ;;  %6383 = vmatpush3.msra.mxu1 %v12912_v43  ;;  %v2193_v57 = vmul.f32 %v7044_v6, %v2192_v25  ;;  %v10002_v48 = vld [vmem:[#allocation8 + $0x60] sm:$0xff]  ;;  %v10005_v43 = vld [vmem:[#allocation8 + $0x70] sm:$0xff]  ;;  %12955 = vst [vmem:[#allocation53_spill] sm:$0xff] %v10101_v36 }
 0x5aa   :  { %2659 = vmatprep.subr.mxu0 %v12913_v34  ;;  %6384 = vmatprep.subr.mxu1 %v12485_v56  ;;  %v10008_v34 = vld [vmem:[#allocation8 + $0x50] sm:$0xff] }
 0x5ab   :  { %2660 = vmatpush1.msra.mxu0 %v12914_v32  ;;  %6385 = vmatpush3.msra.mxu1 %v12915_v15  ;;  %v10012_v32 = vld [vmem:[#allocation8 + $0x48] sm:$0xff]  ;;  %v10015_v15 = vld [vmem:[#allocation8 + $0x58] sm:$0xff]  ;;  %v10051_v6 = vld [vmem:[#allocation10 + $0x170] sm:$0xff] }
 0x5ac   :  { %2661 = vmatprep.subr.mxu0 %v12916_v22  ;;  %6386 = vmatprep.subr.mxu1 %v12485_v56  ;;  %v10018_v22 = vld [vmem:[#allocation8 + $0x38] sm:$0xff]  ;;  %12940 = vst [vmem:[#allocation41_spill] sm:$0xff] %v10051_v6  ;;  %v10065_v25 = vld [vmem:[#allocation10 + $0x150] sm:$0xff] }
 0x5ad   :  { %2662 = vmatpush1.msra.mxu0 %v12917_v53  ;;  %6387 = vmatpush3.msra.mxu1 %v12918_v19  ;;  %v10022_v53 = vld [vmem:[#allocation8 + $0x30] sm:$0xff]  ;;  %v10025_v19 = vld [vmem:[#allocation8 + $0x40] sm:$0xff]  ;;  %12944 = vst [vmem:[#allocation27_spill] sm:$0xff] %v10065_v25 }
 0x5ae   :  { %2663 = vmatprep.subr.mxu0 %v12919_v2  ;;  %6388 = vmatprep.subr.mxu1 %v12485_v56  ;;  %v10028_v2 = vld [vmem:[#allocation8 + $0x20] sm:$0xff] }
 0x5af   :  { %2664 = vmatpush1.msra.mxu0 %v12920_v49  ;;  %6389 = vmatpush3.msra.mxu1 %v12921_v51  ;;  %v10032_v49 = vld [vmem:[#allocation8 + $0x18] sm:$0xff]  ;;  %v10035_v51 = vld [vmem:[#allocation8 + $0x28] sm:$0xff] }
 0x5b0   :  { %2665 = vmatprep.subr.mxu0 %v12922_v60  ;;  %6390 = vmatprep.subr.mxu1 %v12485_v56  ;;  %12936 = vst [vmem:[#allocation22_spill] sm:$0xff] %v10035_v51  ;;  %v10038_v60 = vld [vmem:[#allocation8 + $0x8] sm:$0xff] }
 0x5b1   :  { %2666 = vmatpush1.msra.mxu0 %v12923_v29  ;;  %6391 = vmatpush3.msra.mxu1 %v12924_v39  ;;  %12937 = vst [vmem:[#allocation38_spill] sm:$0xff] %v10038_v60  ;;  %v10042_v29 = vld [vmem:[#allocation8] sm:$0xff]  ;;  %v10046_v39 = vld [vmem:[#allocation8 + $0x10] sm:$0xff] }
 0x5b2   :  { %2667 = vmatprep.subr.mxu0 %v12925_v52  ;;  %6392 = vmatprep.subr.mxu1 %v12485_v56  ;;  %12938 = vst [vmem:[#allocation23_spill] sm:$0xff] %v10042_v29  ;;  %12939 = vst [vmem:[#allocation24_spill] sm:$0xff] %v10046_v39  ;;  %v10055_v52 = vld [vmem:[#allocation10 + $0x168] sm:$0xff] }
 0x5b3   :  { %2668 = vmatpush1.msra.mxu0 %v12926_v26  ;;  %6393 = vmatpush3.msra.mxu1 %v12927_v27  ;;  %12941 = vst [vmem:[#allocation25_spill] sm:$0xff] %v10055_v52  ;;  %v10058_v26 = vld [vmem:[#allocation10 + $0x178] sm:$0xff] }
 0x5b4   :  { %2669 = vmatprep.subr.mxu0 %v12928_v31  ;;  %6394 = vmatprep.subr.mxu1 %v12485_v56  ;;  %12942 = vst [vmem:[#allocation26_spill] sm:$0xff] %v10058_v26  ;;  %v10061_v27 = vld [vmem:[#allocation10 + $0x158] sm:$0xff]  ;;  %v10068_v31 = vld [vmem:[#allocation10 + $0x160] sm:$0xff] }
 0x5b5   :  { %2670 = vmatpush1.msra.mxu0 %v12929_v33  ;;  %6395 = vmatpush3.msra.mxu1 %v9562_v41  ;;  %v9909_v41 = vadd.f32 %v2194_v44, %v2193_v57  ;;  %12943 = vst [vmem:[#allocation44_spill] sm:$0xff] %v10061_v27  ;;  %12945 = vst [vmem:[#allocation28_spill] sm:$0xff] %v10068_v31  ;;  %v10071_v33 = vld [vmem:[#allocation10 + $0x140] sm:$0xff]  ;;  %v10075_v57 = vld [vmem:[#allocation10 + $0x138] sm:$0xff] }
 0x5b6   :  { %2671 = vmatprep.subr.mxu0 %v9565_v13  ;;  %6396 = vmatprep.subr.mxu1 %v12485_v56  ;;  %v9916_v13 = vld [vmem:[#allocation8 + $0x170] sm:$0xff]  ;;  %12946 = vst [vmem:[#allocation47_spill] sm:$0xff] %v10071_v33  ;;  %12947 = vst [vmem:[#allocation29_spill] sm:$0xff] %v10075_v57  ;;  %v10081_v44 = vld [vmem:[#allocation10 + $0x128] sm:$0xff] }
 0x5b7   :  { %2672 = vmatpush1.msra.mxu0 %v12930_v50  ;;  %6397 = vmatpush3.msra.mxu1 %v9572_v7  ;;  %12931 = vst [vmem:[#allocation21_spill] sm:$0xff] %v9909_v41  ;;  %v12932_v7 = vld [vmem:[#allocation154_spill] sm:$0xff]  ;;  %v10078_v50 = vld [vmem:[#allocation10 + $0x148] sm:$0xff]  ;;  %12949 = vst [vmem:[#allocation50_spill] sm:$0xff] %v10081_v44 }
 0x5b8   :  { %2673 = vmatprep.subr.mxu0 %v9576_v18  ;;  %6398 = vmatprep.subr.mxu1 %v12485_v56  ;;  %v9921_v18 = vld [vmem:[#allocation8 + $0x178] sm:$0xff]  ;;  %12948 = vst [vmem:[#allocation30_spill] sm:$0xff] %v10078_v50 }
 0x5b9   :  { %2674 = vmatpush1.msra.mxu0 %v9580_v8  ;;  %2707 = vmatprep.mubr.f32.mxu0 %v12485_v56  ;;  %v12933_v8 = vld [vmem:[#allocation155_spill] sm:$0xff] }
 0x5ba   :  { %6399 = vmatpush3.msra.mxu1 %v9586_v38  ;;  %6400 = vmatprep.mubr.msk.f32.mxu1 %vm7863_vm0, %v12485_v56  ;;  %v9927_v38 = vld [vmem:[#allocation8 + $0x160] sm:$0xff] }
 0x5bb   :  { %2708 = vmatmul.mubr.f32.vlgmr.msra.gmra.mxu0 %v9909_v41  ;;  %6401 = vmatmul.mubr.f32.vlgmr.msra.gmra.mxu1 %v9909_v41 }
 0x5bc   :  { %2808 = vmatprep.subr.mxu0 %v9916_v13  ;;  %6403 = vmatprep.subr.mxu1 %v12485_v56 }
 0x5bd   :  { %2809 = vmatpush1.msra.mxu0 %v9595_v12  ;;  %6404 = vmatpush3.msra.mxu1 %v9921_v18  ;;  %v9933_v12 = vld [vmem:[#allocation8 + $0x148] sm:$0xff] }
 0x5be   :  { %2810 = vmatprep.subr.mxu0 %v9599_v30  ;;  %6405 = vmatprep.subr.mxu1 %v12485_v56  ;;  %v12934_v30 = vld [vmem:[#allocation156_spill] sm:$0xff] }
 0x5bf   :  { %2811 = vmatpush1.msra.mxu0 %v12932_v7  ;;  %6406 = vmatpush3.msra.mxu1 %v9927_v38  ;;  %v10085_v7 = vld [vmem:[#allocation10 + $0x120] sm:$0xff] }
 0x5c0   :  { %2812 = vmatprep.subr.mxu0 %v9607_v63  ;;  %6407 = vmatprep.subr.mxu1 %v12485_v56  ;;  %v12935_v63 = vld [vmem:[#allocation157_spill] sm:$0xff]  ;;  %12950 = vst [vmem:[#allocation31_spill] sm:$0xff] %v10085_v7 }
 0x5c1   :  { %2813 = vmatpush1.msra.mxu0 %v12933_v8  ;;  %6408 = vmatpush3.msra.mxu1 %v9933_v12  ;;  %v10088_v8 = vld [vmem:[#allocation10 + $0x130] sm:$0xff] }
 0x5c2   :  { %2814 = vmatprep.subr.mxu0 %v9615_v4  ;;  %6409 = vmatprep.subr.mxu1 %v12485_v56  ;;  %v9951_v4 = vld [vmem:[#allocation8 + $0x100] sm:$0xff]  ;;  %12951 = vst [vmem:[#allocation33_spill] sm:$0xff] %v10088_v8 }
 0x5c3   :  { %2815 = vmatpush1.msra.mxu0 %v12934_v30  ;;  %6410 = vmatpush3.msra.mxu1 %v9939_v20  ;;  %v10091_v30 = vld [vmem:[#allocation10 + $0x110] sm:$0xff] }
 0x5c4   :  { %2816 = vmatprep.subr.mxu0 %v9623_v62  ;;  %6411 = vmatprep.subr.mxu1 %v12485_v56  ;;  %v9957_v62 = vld [vmem:[#allocation8 + $0xe8] sm:$0xff]  ;;  %12952 = vst [vmem:[#allocation52_spill] sm:$0xff] %v10091_v30 }
 0x5c5   :  { %2817 = vmatpush1.msra.mxu0 %v12935_v63  ;;  %6412 = vmatpush3.msra.mxu1 %v9945_v40  ;;  %v10095_v63 = vld [vmem:[#allocation10 + $0x108] sm:$0xff] }
 0x5c6   :  { %2818 = vmatprep.subr.mxu0 %v9631_v9  ;;  %6413 = vmatprep.subr.mxu1 %v12485_v56  ;;  %v9962_v9 = vld [vmem:[#allocation8 + $0xc0] sm:$0xff]  ;;  %12953 = vst [vmem:[#allocation34_spill] sm:$0xff] %v10095_v63 }
 0x5c7   :  { %2819 = vmatpush1.msra.mxu0 %v9635_v46  ;;  %6414 = vmatpush3.msra.mxu1 %v9951_v4  ;;  %v9965_v46 = vld [vmem:[#allocation8 + $0xd0] sm:$0xff] }
 0x5c8   :  { %2820 = vmatprep.subr.mxu0 %v9639_v59  ;;  %6415 = vmatprep.subr.mxu1 %v12485_v56  ;;  %v9968_v59 = vld [vmem:[#allocation8 + $0xb0] sm:$0xff] }
 0x5c9   :  { %2821 = vmatpush1.msra.mxu0 %v9643_v14  ;;  %6416 = vmatpush3.msra.mxu1 %v9957_v62  ;;  %v9972_v14 = vld [vmem:[#allocation8 + $0xa8] sm:$0xff] }
 0x5ca   :  { %2822 = vmatprep.subr.mxu0 %v9647_v45  ;;  %6417 = vmatprep.subr.mxu1 %v12485_v56  ;;  %v9975_v45 = vld [vmem:[#allocation8 + $0xb8] sm:$0xff] }
 0x5cb   :  { %2823 = vmatpush1.msra.mxu0 %v9962_v9  ;;  %6418 = vmatpush3.msra.mxu1 %v9965_v46 }
 0x5cc   :  { %2824 = vmatprep.subr.mxu0 %v9968_v59  ;;  %6419 = vmatprep.subr.mxu1 %v12485_v56 }
 0x5cd   :  { %2825 = vmatpush1.msra.mxu0 %v9972_v14  ;;  %6420 = vmatpush3.msra.mxu1 %v9975_v45 }
 0x5ce   :  { %2826 = vmatprep.subr.mxu0 %v9978_v55  ;;  %6421 = vmatprep.subr.mxu1 %v12485_v56 }
 0x5cf   :  { %2827 = vmatpush1.msra.mxu0 %v9982_v42  ;;  %6422 = vmatpush3.msra.mxu1 %v9985_v5 }
 0x5d0   :  { %2828 = vmatprep.subr.mxu0 %v9988_v1  ;;  %6423 = vmatprep.subr.mxu1 %v12485_v56 }
 0x5d1   :  { %2829 = vmatpush1.msra.mxu0 %v9992_v0  ;;  %6424 = vmatpush3.msra.mxu1 %v9995_v24 }
 0x5d2   :  { %2830 = vmatprep.subr.mxu0 %v9998_v10  ;;  %6425 = vmatprep.subr.mxu1 %v12485_v56 }
 0x5d3   :  { %2831 = vmatpush1.msra.mxu0 %v10002_v48  ;;  %6426 = vmatpush3.msra.mxu1 %v10005_v43 }
 0x5d4   :  { %2832 = vmatprep.subr.mxu0 %v10008_v34  ;;  %6427 = vmatprep.subr.mxu1 %v12485_v56 }
 0x5d5   :  { %2833 = vmatpush1.msra.mxu0 %v10012_v32  ;;  %6428 = vmatpush3.msra.mxu1 %v10015_v15 }
 0x5d6   :  { %2834 = vmatprep.subr.mxu0 %v10018_v22  ;;  %6429 = vmatprep.subr.mxu1 %v12485_v56 }
 0x5d7   :  { %2835 = vmatpush1.msra.mxu0 %v10022_v53  ;;  %6430 = vmatpush3.msra.mxu1 %v10025_v19 }
 0x5d8   :  { %2836 = vmatprep.subr.mxu0 %v10028_v2  ;;  %6431 = vmatprep.subr.mxu1 %v12485_v56 }
 0x5d9   :  { %2837 = vmatpush1.msra.mxu0 %v10032_v49  ;;  %6432 = vmatpush3.msra.mxu1 %v10035_v51 }
 0x5da   :  { %2838 = vmatprep.subr.mxu0 %v10038_v60  ;;  %6433 = vmatprep.subr.mxu1 %v12485_v56 }
 0x5db   :  { %2839 = vmatpush1.msra.mxu0 %v10042_v29  ;;  %2872 = vmatprep.mubr.f32.mxu0 %v12485_v56 }
 0x5dc   :  { %6434 = vmatpush3.msra.mxu1 %v10046_v39  ;;  %2873 = vmatmul.mubr.f32.vlgmr.msra.gmra.mxu0 %v2807_v23 }
 0x5dd   :  { %6435 = vmatprep.mubr.msk.f32.mxu1 %vm7863_vm0, %v12485_v56  ;;  %2949 = vmatprep.subr.mxu0 %v10051_v6 }
 0x5de   :  { %6438 = vmatprep.subr.mxu1 %v12485_v56  ;;  %6436 = vmatmul.mubr.f32.vlgmr.msra.gmra.mxu1 %v2807_v23  ;;  %v10098_v23 = vld [vmem:[#allocation10 + $0x118] sm:$0xff] }
 0x5df   :  { %2950 = vmatpush1.msra.mxu0 %v10055_v52  ;;  %6439 = vmatpush3.msra.mxu1 %v10058_v26  ;;  %12954 = vst [vmem:[#allocation36_spill] sm:$0xff] %v10098_v23 }
 0x5e0   :  { %2951 = vmatprep.subr.mxu0 %v10061_v27  ;;  %6440 = vmatprep.subr.mxu1 %v12485_v56 }
 0x5e1   :  { %2952 = vmatpush1.msra.mxu0 %v10065_v25  ;;  %6441 = vmatpush3.msra.mxu1 %v10068_v31 }
 0x5e2   :  { %2953 = vmatprep.subr.mxu0 %v10071_v33  ;;  %6442 = vmatprep.subr.mxu1 %v12485_v56 }
 0x5e3   :  { %2954 = vmatpush1.msra.mxu0 %v10075_v57  ;;  %6443 = vmatpush3.msra.mxu1 %v10078_v50 }
 0x5e4   :  { %2955 = vmatprep.subr.mxu0 %v10081_v44  ;;  %6444 = vmatprep.subr.mxu1 %v12485_v56 }
 0x5e5   :  { %2956 = vmatpush1.msra.mxu0 %v10085_v7  ;;  %6445 = vmatpush3.msra.mxu1 %v10088_v8  ;;  %v10105_v8 = vld [vmem:[#allocation10 + $0xf0] sm:$0xff]  ;;  %v10111_v7 = vld [vmem:[#allocation10 + $0xe0] sm:$0xff] }
 0x5e6   :  { %2957 = vmatprep.subr.mxu0 %v10091_v30  ;;  %6446 = vmatprep.subr.mxu1 %v12485_v56  ;;  %12956 = vst [vmem:[#allocation37_spill] sm:$0xff] %v10105_v8  ;;  %v10108_v30 = vld [vmem:[#allocation10 + $0x100] sm:$0xff]  ;;  %12958 = vst [vmem:[#allocation54_spill] sm:$0xff] %v10111_v7 }
 0x5e7   :  { %2958 = vmatpush1.msra.mxu0 %v10095_v63  ;;  %6447 = vmatpush3.msra.mxu1 %v10098_v23  ;;  %12957 = vst [vmem:[#allocation39_spill] sm:$0xff] %v10108_v30  ;;  %v10115_v23 = vld [vmem:[#allocation10 + $0xd8] sm:$0xff]  ;;  %v10121_v63 = vld [vmem:[#allocation10 + $0xc8] sm:$0xff] }
 0x5e8   :  { %2959 = vmatprep.subr.mxu0 %v10101_v36  ;;  %6448 = vmatprep.subr.mxu1 %v12485_v56  ;;  %12959 = vst [vmem:[#allocation40_spill] sm:$0xff] %v10115_v23  ;;  %v10118_v36 = vld [vmem:[#allocation10 + $0xe8] sm:$0xff]  ;;  %12961 = vst [vmem:[#allocation55_spill] sm:$0xff] %v10121_v63 }
 0x5e9   :  { %2960 = vmatpush1.msra.mxu0 %v10105_v8  ;;  %6449 = vmatpush3.msra.mxu1 %v10108_v30  ;;  %12960 = vst [vmem:[#allocation42_spill] sm:$0xff] %v10118_v36  ;;  %v10125_v30 = vld [vmem:[#allocation10 + $0xc0] sm:$0xff]  ;;  %v10131_v8 = vld [vmem:[#allocation10 + $0xb0] sm:$0xff] }
 0x5ea   :  { %2961 = vmatprep.subr.mxu0 %v10111_v7  ;;  %6450 = vmatprep.subr.mxu1 %v12485_v56  ;;  %12962 = vst [vmem:[#allocation43_spill] sm:$0xff] %v10125_v30  ;;  %v10128_v7 = vld [vmem:[#allocation10 + $0xd0] sm:$0xff]  ;;  %12964 = vst [vmem:[#allocation56_spill] sm:$0xff] %v10131_v8 }
 0x5eb   :  { %2962 = vmatpush1.msra.mxu0 %v10115_v23  ;;  %6451 = vmatpush3.msra.mxu1 %v10118_v36  ;;  %12963 = vst [vmem:[#allocation45_spill] sm:$0xff] %v10128_v7  ;;  %v10135_v36 = vld [vmem:[#allocation10 + $0xa8] sm:$0xff]  ;;  %v10141_v23 = vld [vmem:[#allocation10 + $0x98] sm:$0xff] }
 0x5ec   :  { %2963 = vmatprep.subr.mxu0 %v10121_v63  ;;  %6452 = vmatprep.subr.mxu1 %v12485_v56  ;;  %12965 = vst [vmem:[#allocation46_spill] sm:$0xff] %v10135_v36  ;;  %v10138_v63 = vld [vmem:[#allocation10 + $0xb8] sm:$0xff]  ;;  %12967 = vst [vmem:[#allocation57_spill] sm:$0xff] %v10141_v23 }
 0x5ed   :  { %2964 = vmatpush1.msra.mxu0 %v10125_v30  ;;  %6453 = vmatpush3.msra.mxu1 %v10128_v7  ;;  %12966 = vst [vmem:[#allocation48_spill] sm:$0xff] %v10138_v63  ;;  %v10145_v7 = vld [vmem:[#allocation10 + $0x90] sm:$0xff]  ;;  %v10151_v30 = vld [vmem:[#allocation10 + $0x80] sm:$0xff] }
 0x5ee   :  { %2965 = vmatprep.subr.mxu0 %v10131_v8  ;;  %6454 = vmatprep.subr.mxu1 %v12485_v56  ;;  %12968 = vst [vmem:[#allocation49_spill] sm:$0xff] %v10145_v7  ;;  %v10148_v8 = vld [vmem:[#allocation10 + $0xa0] sm:$0xff]  ;;  %12970 = vst [vmem:[#allocation58_spill] sm:$0xff] %v10151_v30 }
 0x5ef   :  { %2966 = vmatpush1.msra.mxu0 %v10135_v36  ;;  %6455 = vmatpush3.msra.mxu1 %v10138_v63  ;;  %12969 = vst [vmem:[#allocation51_spill] sm:$0xff] %v10148_v8  ;;  %v10155_v63 = vld [vmem:[#allocation10 + $0x78] sm:$0xff]  ;;  %v10161_v36 = vld [vmem:[#allocation10 + $0x68] sm:$0xff] }
 0x5f0   :  { %2967 = vmatprep.subr.mxu0 %v10141_v23  ;;  %6456 = vmatprep.subr.mxu1 %v12485_v56  ;;  %12971 = vst [vmem:[#allocation59_spill] sm:$0xff] %v10155_v63  ;;  %v10158_v23 = vld [vmem:[#allocation10 + $0x88] sm:$0xff]  ;;  %12973 = vst [vmem:[#allocation61_spill] sm:$0xff] %v10161_v36 }
 0x5f1   :  { %2968 = vmatpush1.msra.mxu0 %v10145_v7  ;;  %6457 = vmatpush3.msra.mxu1 %v10148_v8  ;;  %12972 = vst [vmem:[#allocation60_spill] sm:$0xff] %v10158_v23  ;;  %v10165_v8 = vld [vmem:[#allocation10 + $0x60] sm:$0xff]  ;;  %v10171_v7 = vld [vmem:[#allocation10 + $0x50] sm:$0xff] }
 0x5f2   :  { %2969 = vmatprep.subr.mxu0 %v10151_v30  ;;  %6458 = vmatprep.subr.mxu1 %v12485_v56  ;;  %12974 = vst [vmem:[#allocation62_spill] sm:$0xff] %v10165_v8  ;;  %v10168_v30 = vld [vmem:[#allocation10 + $0x70] sm:$0xff]  ;;  %12976 = vst [vmem:[#allocation64_spill] sm:$0xff] %v10171_v7 }
 0x5f3   :  { %2970 = vmatpush1.msra.mxu0 %v10155_v63  ;;  %6459 = vmatpush3.msra.mxu1 %v10158_v23  ;;  %12975 = vst [vmem:[#allocation63_spill] sm:$0xff] %v10168_v30  ;;  %v10175_v23 = vld [vmem:[#allocation10 + $0x48] sm:$0xff]  ;;  %v10181_v63 = vld [vmem:[#allocation10 + $0x38] sm:$0xff] }
 0x5f4   :  { %2971 = vmatprep.subr.mxu0 %v10161_v36  ;;  %6460 = vmatprep.subr.mxu1 %v12485_v56  ;;  %12977 = vst [vmem:[#allocation65_spill] sm:$0xff] %v10175_v23  ;;  %v10178_v36 = vld [vmem:[#allocation10 + $0x58] sm:$0xff]  ;;  %12979 = vst [vmem:[#allocation66_spill] sm:$0xff] %v10181_v63 }
 0x5f5   :  { %2972 = vmatpush1.msra.mxu0 %v10165_v8  ;;  %6461 = vmatpush3.msra.mxu1 %v10168_v30  ;;  %12978 = vst [vmem:[#allocation67_spill] sm:$0xff] %v10178_v36  ;;  %v10185_v30 = vld [vmem:[#allocation10 + $0x30] sm:$0xff]  ;;  %v10191_v8 = vld [vmem:[#allocation10 + $0x20] sm:$0xff] }
 0x5f6   :  { %2973 = vmatprep.subr.mxu0 %v10171_v7  ;;  %6462 = vmatprep.subr.mxu1 %v12485_v56  ;;  %12980 = vst [vmem:[#allocation68_spill] sm:$0xff] %v10185_v30  ;;  %v10188_v7 = vld [vmem:[#allocation10 + $0x40] sm:$0xff]  ;;  %12982 = vst [vmem:[#allocation70_spill] sm:$0xff] %v10191_v8 }
 0x5f7   :  { %2974 = vmatpush1.msra.mxu0 %v10175_v23  ;;  %6463 = vmatpush3.msra.mxu1 %v10178_v36  ;;  %12981 = vst [vmem:[#allocation69_spill] sm:$0xff] %v10188_v7  ;;  %v10195_v36 = vld [vmem:[#allocation10 + $0x18] sm:$0xff]  ;;  %v10201_v23 = vld [vmem:[#allocation10 + $0x8] sm:$0xff] }
 0x5f8   :  { %2975 = vmatprep.subr.mxu0 %v10181_v63  ;;  %6464 = vmatprep.subr.mxu1 %v12485_v56  ;;  %12983 = vst [vmem:[#allocation71_spill] sm:$0xff] %v10195_v36  ;;  %v10198_v63 = vld [vmem:[#allocation10 + $0x28] sm:$0xff]  ;;  %12985 = vst [vmem:[#allocation73_spill] sm:$0xff] %v10201_v23 }
 0x5f9   :  { %2976 = vmatpush1.msra.mxu0 %v10185_v30  ;;  %6465 = vmatpush3.msra.mxu1 %v10188_v7  ;;  %12984 = vst [vmem:[#allocation72_spill] sm:$0xff] %v10198_v63  ;;  %v10205_v7 = vld [vmem:[#allocation10] sm:$0xff] }
 0x5fa   :  { %2977 = vmatprep.subr.mxu0 %v10191_v8  ;;  %6466 = vmatprep.subr.mxu1 %v12485_v56  ;;  %12986 = vst [vmem:[#allocation74_spill] sm:$0xff] %v10205_v7  ;;  %v10209_v8 = vld [vmem:[#allocation10 + $0x10] sm:$0xff]  ;;  %v10236_v30 = vld [vmem:[#allocation11 + $0x140] sm:$0xff] }
 0x5fb   :  { %2978 = vmatpush1.msra.mxu0 %v10195_v36  ;;  %6467 = vmatpush3.msra.mxu1 %v10198_v63  ;;  %12987 = vst [vmem:[#allocation75_spill] sm:$0xff] %v10209_v8  ;;  %v10223_v63 = vld [vmem:[#allocation11 + $0x178] sm:$0xff]  ;;  %v10230_v36 = vld [vmem:[#allocation11 + $0x150] sm:$0xff]  ;;  %12994 = vst [vmem:[#allocation82_spill] sm:$0xff] %v10236_v30 }
 0x5fc   :  { %2979 = vmatprep.subr.mxu0 %v10201_v23  ;;  %6468 = vmatprep.subr.mxu1 %v12485_v56  ;;  %v10216_v23 = vld [vmem:[#allocation11 + $0x170] sm:$0xff]  ;;  %12990 = vst [vmem:[#allocation78_spill] sm:$0xff] %v10223_v63  ;;  %12992 = vst [vmem:[#allocation80_spill] sm:$0xff] %v10230_v36 }
 0x5fd   :  { %2980 = vmatpush1.msra.mxu0 %v10205_v7  ;;  %3013 = vmatprep.mubr.f32.mxu0 %v12485_v56  ;;  %12988 = vst [vmem:[#allocation76_spill] sm:$0xff] %v10216_v23  ;;  %v10220_v7 = vld [vmem:[#allocation11 + $0x168] sm:$0xff] }
 0x5fe   :  { %6469 = vmatpush3.msra.mxu1 %v10209_v8  ;;  %6470 = vmatprep.mubr.msk.f32.mxu1 %vm7863_vm0, %v12485_v56  ;;  %12989 = vst [vmem:[#allocation77_spill] sm:$0xff] %v10220_v7  ;;  %v10226_v8 = vld [vmem:[#allocation11 + $0x158] sm:$0xff] }
 0x5ff   :  { %3014 = vmatmul.mubr.f32.vlgmr.msra.gmra.mxu0 %v9841_v17  ;;  %6471 = vmatmul.mubr.f32.vlgmr.msra.gmra.mxu1 %v9841_v17  ;;  %12991 = vst [vmem:[#allocation79_spill] sm:$0xff] %v10226_v8 }
 0x600   :  { %3111 = vmatprep.subr.mxu0 %v10216_v23  ;;  %6473 = vmatprep.subr.mxu1 %v12485_v56  ;;  %v10233_v23 = vld [vmem:[#allocation11 + $0x160] sm:$0xff] }
 0x601   :  { %3112 = vmatpush1.msra.mxu0 %v10220_v7  ;;  %6474 = vmatpush3.msra.mxu1 %v10223_v63  ;;  %12993 = vst [vmem:[#allocation81_spill] sm:$0xff] %v10233_v23  ;;  %v10240_v63 = vld [vmem:[#allocation11 + $0x138] sm:$0xff]  ;;  %v10246_v7 = vld [vmem:[#allocation11 + $0x128] sm:$0xff] }
 0x602   :  { %3113 = vmatprep.subr.mxu0 %v10226_v8  ;;  %6475 = vmatprep.subr.mxu1 %v12485_v56  ;;  %12995 = vst [vmem:[#allocation83_spill] sm:$0xff] %v10240_v63  ;;  %v10243_v8 = vld [vmem:[#allocation11 + $0x148] sm:$0xff]  ;;  %12997 = vst [vmem:[#allocation85_spill] sm:$0xff] %v10246_v7 }
 0x603   :  { %3114 = vmatpush1.msra.mxu0 %v10230_v36  ;;  %6476 = vmatpush3.msra.mxu1 %v10233_v23  ;;  %12996 = vst [vmem:[#allocation84_spill] sm:$0xff] %v10243_v8  ;;  %v10250_v23 = vld [vmem:[#allocation11 + $0x120] sm:$0xff]  ;;  %v10256_v36 = vld [vmem:[#allocation11 + $0x110] sm:$0xff] }
 0x604   :  { %3115 = vmatprep.subr.mxu0 %v10236_v30  ;;  %6477 = vmatprep.subr.mxu1 %v12485_v56  ;;  %12998 = vst [vmem:[#allocation86_spill] sm:$0xff] %v10250_v23  ;;  %v10253_v30 = vld [vmem:[#allocation11 + $0x130] sm:$0xff]  ;;  %13000 = vst [vmem:[#allocation88_spill] sm:$0xff] %v10256_v36 }
 0x605   :  { %3116 = vmatpush1.msra.mxu0 %v10240_v63  ;;  %6478 = vmatpush3.msra.mxu1 %v10243_v8  ;;  %12999 = vst [vmem:[#allocation87_spill] sm:$0xff] %v10253_v30  ;;  %v10260_v8 = vld [vmem:[#allocation11 + $0x108] sm:$0xff]  ;;  %v10266_v63 = vld [vmem:[#allocation11 + $0xf8] sm:$0xff] }
 0x606   :  { %3117 = vmatprep.subr.mxu0 %v10246_v7  ;;  %6479 = vmatprep.subr.mxu1 %v12485_v56  ;;  %13001 = vst [vmem:[#allocation89_spill] sm:$0xff] %v10260_v8  ;;  %v10263_v7 = vld [vmem:[#allocation11 + $0x118] sm:$0xff]  ;;  %13003 = vst [vmem:[#allocation91_spill] sm:$0xff] %v10266_v63 }
 0x607   :  { %3118 = vmatpush1.msra.mxu0 %v10250_v23  ;;  %6480 = vmatpush3.msra.mxu1 %v10253_v30  ;;  %13002 = vst [vmem:[#allocation90_spill] sm:$0xff] %v10263_v7  ;;  %v10270_v30 = vld [vmem:[#allocation11 + $0xf0] sm:$0xff]  ;;  %v10276_v23 = vld [vmem:[#allocation11 + $0xe0] sm:$0xff] }
 0x608   :  { %3119 = vmatprep.subr.mxu0 %v10256_v36  ;;  %6481 = vmatprep.subr.mxu1 %v12485_v56  ;;  %13004 = vst [vmem:[#allocation92_spill] sm:$0xff] %v10270_v30  ;;  %v10273_v36 = vld [vmem:[#allocation11 + $0x100] sm:$0xff]  ;;  %13006 = vst [vmem:[#allocation94_spill] sm:$0xff] %v10276_v23 }
 0x609   :  { %3120 = vmatpush1.msra.mxu0 %v10260_v8  ;;  %6482 = vmatpush3.msra.mxu1 %v10263_v7  ;;  %13005 = vst [vmem:[#allocation93_spill] sm:$0xff] %v10273_v36  ;;  %v10280_v7 = vld [vmem:[#allocation11 + $0xd8] sm:$0xff]  ;;  %v10286_v8 = vld [vmem:[#allocation11 + $0xc8] sm:$0xff] }
 0x60a   :  { %3121 = vmatprep.subr.mxu0 %v10266_v63  ;;  %6483 = vmatprep.subr.mxu1 %v12485_v56  ;;  %13007 = vst [vmem:[#allocation95_spill] sm:$0xff] %v10280_v7  ;;  %v10283_v63 = vld [vmem:[#allocation11 + $0xe8] sm:$0xff]  ;;  %13009 = vst [vmem:[#allocation97_spill] sm:$0xff] %v10286_v8 }
 0x60b   :  { %3122 = vmatpush1.msra.mxu0 %v10270_v30  ;;  %6484 = vmatpush3.msra.mxu1 %v10273_v36  ;;  %13008 = vst [vmem:[#allocation96_spill] sm:$0xff] %v10283_v63  ;;  %v10290_v36 = vld [vmem:[#allocation11 + $0xc0] sm:$0xff]  ;;  %v10296_v30 = vld [vmem:[#allocation11 + $0xb0] sm:$0xff] }
 0x60c   :  { %3123 = vmatprep.subr.mxu0 %v10276_v23  ;;  %6485 = vmatprep.subr.mxu1 %v12485_v56  ;;  %13010 = vst [vmem:[#allocation98_spill] sm:$0xff] %v10290_v36  ;;  %v10293_v23 = vld [vmem:[#allocation11 + $0xd0] sm:$0xff]  ;;  %13012 = vst [vmem:[#allocation100_spill] sm:$0xff] %v10296_v30 }
 0x60d   :  { %3124 = vmatpush1.msra.mxu0 %v10280_v7  ;;  %6486 = vmatpush3.msra.mxu1 %v10283_v63  ;;  %13011 = vst [vmem:[#allocation99_spill] sm:$0xff] %v10293_v23  ;;  %v10300_v63 = vld [vmem:[#allocation11 + $0xa8] sm:$0xff]  ;;  %v10306_v7 = vld [vmem:[#allocation11 + $0x98] sm:$0xff] }
 0x60e   :  { %3125 = vmatprep.subr.mxu0 %v10286_v8  ;;  %6487 = vmatprep.subr.mxu1 %v12485_v56  ;;  %13013 = vst [vmem:[#allocation101_spill] sm:$0xff] %v10300_v63  ;;  %v10303_v8 = vld [vmem:[#allocation11 + $0xb8] sm:$0xff]  ;;  %13015 = vst [vmem:[#allocation103_spill] sm:$0xff] %v10306_v7 }
 0x60f   :  { %3126 = vmatpush1.msra.mxu0 %v10290_v36  ;;  %6488 = vmatpush3.msra.mxu1 %v10293_v23  ;;  %13014 = vst [vmem:[#allocation102_spill] sm:$0xff] %v10303_v8  ;;  %v10310_v23 = vld [vmem:[#allocation11 + $0x90] sm:$0xff]  ;;  %v10316_v36 = vld [vmem:[#allocation11 + $0x80] sm:$0xff] }
 0x610   :  { %3127 = vmatprep.subr.mxu0 %v10296_v30  ;;  %6489 = vmatprep.subr.mxu1 %v12485_v56  ;;  %13016 = vst [vmem:[#allocation104_spill] sm:$0xff] %v10310_v23  ;;  %v10313_v30 = vld [vmem:[#allocation11 + $0xa0] sm:$0xff]  ;;  %13018 = vst [vmem:[#allocation106_spill] sm:$0xff] %v10316_v36 }
 0x611   :  { %3128 = vmatpush1.msra.mxu0 %v10300_v63  ;;  %6490 = vmatpush3.msra.mxu1 %v10303_v8  ;;  %13017 = vst [vmem:[#allocation105_spill] sm:$0xff] %v10313_v30  ;;  %v10320_v8 = vld [vmem:[#allocation11 + $0x78] sm:$0xff]  ;;  %v10326_v63 = vld [vmem:[#allocation11 + $0x68] sm:$0xff] }
 0x612   :  { %3129 = vmatprep.subr.mxu0 %v10306_v7  ;;  %6491 = vmatprep.subr.mxu1 %v12485_v56  ;;  %13019 = vst [vmem:[#allocation107_spill] sm:$0xff] %v10320_v8  ;;  %v10323_v7 = vld [vmem:[#allocation11 + $0x88] sm:$0xff]  ;;  %13021 = vst [vmem:[#allocation109_spill] sm:$0xff] %v10326_v63 }
 0x613   :  { %3130 = vmatpush1.msra.mxu0 %v10310_v23  ;;  %6492 = vmatpush3.msra.mxu1 %v10313_v30  ;;  %13020 = vst [vmem:[#allocation108_spill] sm:$0xff] %v10323_v7  ;;  %v10330_v30 = vld [vmem:[#allocation11 + $0x60] sm:$0xff]  ;;  %v10336_v23 = vld [vmem:[#allocation11 + $0x50] sm:$0xff] }
 0x614   :  { %3131 = vmatprep.subr.mxu0 %v10316_v36  ;;  %6493 = vmatprep.subr.mxu1 %v12485_v56  ;;  %13022 = vst [vmem:[#allocation110_spill] sm:$0xff] %v10330_v30  ;;  %v10333_v36 = vld [vmem:[#allocation11 + $0x70] sm:$0xff]  ;;  %13024 = vst [vmem:[#allocation112_spill] sm:$0xff] %v10336_v23 }
 0x615   :  { %3132 = vmatpush1.msra.mxu0 %v10320_v8  ;;  %6494 = vmatpush3.msra.mxu1 %v10323_v7  ;;  %13023 = vst [vmem:[#allocation111_spill] sm:$0xff] %v10333_v36  ;;  %v10340_v7 = vld [vmem:[#allocation11 + $0x48] sm:$0xff]  ;;  %v10346_v8 = vld [vmem:[#allocation11 + $0x38] sm:$0xff] }
 0x616   :  { %3133 = vmatprep.subr.mxu0 %v10326_v63  ;;  %6495 = vmatprep.subr.mxu1 %v12485_v56  ;;  %13025 = vst [vmem:[#allocation113_spill] sm:$0xff] %v10340_v7  ;;  %v10343_v63 = vld [vmem:[#allocation11 + $0x58] sm:$0xff]  ;;  %13027 = vst [vmem:[#allocation115_spill] sm:$0xff] %v10346_v8 }
 0x617   :  { %3134 = vmatpush1.msra.mxu0 %v10330_v30  ;;  %6496 = vmatpush3.msra.mxu1 %v10333_v36  ;;  %13026 = vst [vmem:[#allocation114_spill] sm:$0xff] %v10343_v63  ;;  %v10350_v36 = vld [vmem:[#allocation11 + $0x30] sm:$0xff]  ;;  %v10356_v30 = vld [vmem:[#allocation11 + $0x20] sm:$0xff] }
 0x618   :  { %3135 = vmatprep.subr.mxu0 %v10336_v23  ;;  %6497 = vmatprep.subr.mxu1 %v12485_v56  ;;  %13028 = vst [vmem:[#allocation116_spill] sm:$0xff] %v10350_v36  ;;  %v10353_v23 = vld [vmem:[#allocation11 + $0x40] sm:$0xff]  ;;  %13030 = vst [vmem:[#allocation118_spill] sm:$0xff] %v10356_v30 }
 0x619   :  { %3136 = vmatpush1.msra.mxu0 %v10340_v7  ;;  %6498 = vmatpush3.msra.mxu1 %v10343_v63  ;;  %13029 = vst [vmem:[#allocation117_spill] sm:$0xff] %v10353_v23  ;;  %v10360_v63 = vld [vmem:[#allocation11 + $0x18] sm:$0xff]  ;;  %v10366_v7 = vld [vmem:[#allocation11 + $0x8] sm:$0xff] }
 0x61a   :  { %3137 = vmatprep.subr.mxu0 %v10346_v8  ;;  %6499 = vmatprep.subr.mxu1 %v12485_v56  ;;  %13031 = vst [vmem:[#allocation119_spill] sm:$0xff] %v10360_v63  ;;  %v10363_v8 = vld [vmem:[#allocation11 + $0x28] sm:$0xff]  ;;  %13033 = vst [vmem:[#allocation121_spill] sm:$0xff] %v10366_v7 }
 0x61b   :  { %3138 = vmatpush1.msra.mxu0 %v10350_v36  ;;  %6500 = vmatpush3.msra.mxu1 %v10353_v23  ;;  %13032 = vst [vmem:[#allocation120_spill] sm:$0xff] %v10363_v8  ;;  %v10370_v23 = vld [vmem:[#allocation11] sm:$0xff] }
 0x61c   :  { %3139 = vmatprep.subr.mxu0 %v10356_v30  ;;  %6501 = vmatprep.subr.mxu1 %v12485_v56  ;;  %13034 = vst [vmem:[#allocation122_spill] sm:$0xff] %v10370_v23  ;;  %v10373_v30 = vld [vmem:[#allocation11 + $0x10] sm:$0xff] }
 0x61d   :  { %3140 = vmatpush1.msra.mxu0 %v10360_v63  ;;  %6502 = vmatpush3.msra.mxu1 %v10363_v8  ;;  %13035 = vst [vmem:[#allocation123_spill] sm:$0xff] %v10373_v30  ;;  %v10379_v8 = vld [vmem:[#allocation13 + $0x170] sm:$0xff] }
 0x61e   :  { %3141 = vmatprep.subr.mxu0 %v10366_v7  ;;  %6503 = vmatprep.subr.mxu1 %v12485_v56  ;;  %13036 = vst [vmem:[#allocation124_spill] sm:$0xff] %v10379_v8 }
 0x61f   :  { %3142 = vmatpush1.msra.mxu0 %v10370_v23  ;;  %6504 = vmatpush3.msra.mxu1 %v10373_v30 }
 0x620   :  { %3175 = vmatprep.mubr.f32.mxu0 %v12485_v56  ;;  %6505 = vmatprep.mubr.msk.f32.mxu1 %vm7863_vm0, %v12485_v56 }
 0x621   :  { %3252 = vmatprep.subr.mxu0 %v10379_v8  ;;  %6508 = vmatprep.subr.mxu1 %v12485_v56 }
 0x65a   :  { %v2639_v7 = vpop.f32.mrf.mxu1  ;;  %v2568_v36 = vpop.f32.mrf.mxu0 }
 0x65b   :  { %v2569_v57 = vadd.f32 %v2568_v36, %v12899_v54 }
 0x65c   :  { %v6367_v63 = vpop.f32.mrf.mxu1  ;;  %v2570_v44 = vpop.f32.mrf.mxu0 }
 0x65d   :  { %v13037_v63 = vld [vmem:[#allocation20_spill] sm:$0xff] }
 0x65e   :  { %v2640_v39 = vadd.f32 %v2639_v7, %v13037_v63 }
 0x67b   :  { %v2709_v23 = vpop.f32.mrf.mxu0  ;;  %v2780_v50 = vpop.f32.mrf.mxu1 }
 0x67c   :  { %v2710_v30 = vadd.f32 %v2709_v23, %v8839_v47  ;;  %v2781_v8 = vadd.f32 %v2780_v50, %v12900_v28 }
 0x67d   :  { %v6402_v33 = vpop.f32.mrf.mxu1  ;;  %v2711_v36 = vpop.f32.mrf.mxu0 }
 0x67e   :  { %v2784_v31 = vadd.f32 %v2710_v30, %v2569_v57 }
 0x680   :  { %v5281_v25 = vmul.f32 -1.442695, %v2784_v31 }
 0x682   :  { %7045 = vpow2.f32 %v5281_v25 }
 0x68f   :  { %v7046_v27 = vpop.eup %7045 }
 0x690   :  { %v2788_v26 = vadd.f32 1.0, %v7046_v27 }
 0x692   :  { %7047 = vrcp.f32 %v2788_v26 }
 0x69c   :  { %v2874_v54 = vpop.f32.mrf.mxu0 }
 0x69d   :  { %v2875_v25 = vadd.f32 %v2874_v54, %v12619_v35 }
 0x69e   :  { %v2945_v52 = vpop.f32.mrf.mxu1  ;;  %v2876_v23 = vpop.f32.mrf.mxu0 }
 0x69f   :  { %v7048_v6 = vpop.eup %7047 }
 0x6a0   :  { %v2798_v29 = vmul.f32 %v7048_v6, %v2781_v8  ;;  %v6437_v60 = vpop.f32.mrf.mxu1  ;;  %v2877_v6 = vadd.f32 %v2876_v23, %v8417_v16  ;;  %v2571_v23 = vadd.f32 %v2570_v44, %v8861_v21  ;;  %v10405_v44 = vld [vmem:[#allocation13 + $0x178] sm:$0xff] }
 0x6a2   :  { %v10387_v51 = vadd.f32 %v2798_v29, %v2640_v39 }
 0x6bf   :  { %v3015_v33 = vpop.f32.mrf.mxu0  ;;  %v3086_v57 = vpop.f32.mrf.mxu1 }
 0x6c0   :  { %v3016_v27 = vadd.f32 %v3015_v33, %v12620_v37  ;;  %v3087_v54 = vadd.f32 %v3086_v57, %v8424_v11 }
 0x6c1   :  { %v3017_v26 = vpop.f32.mrf.mxu0  ;;  %v6472_v31 = vpop.f32.mrf.mxu1 }
 0x6c2   :  { %v3090_v50 = vadd.f32 %v3016_v27, %v2875_v25  ;;  %v3018_v28 = vadd.f32 %v3017_v26, %v8414_v61  ;;  %v2712_v31 = vadd.f32 %v2711_v36, %v8858_v3  ;;  %v2946_v25 = vadd.f32 %v2945_v52, %v8427_v58  ;;  %v10402_v52 = vld [vmem:[#allocation13 + $0x168] sm:$0xff]  ;;  %v10408_v36 = vld [vmem:[#allocation13 + $0x158] sm:$0xff] }
 0x6c4   :  { %v5283_v30 = vmul.f32 -1.442695, %v3090_v50  ;;  %v3097_v60 = vadd.f32 %v3018_v28, %v2877_v6  ;;  %v2791_v28 = vadd.f32 %v2712_v31, %v2571_v23  ;;  %v10425_v31 = vld [vmem:[#allocation13 + $0x148] sm:$0xff]  ;;  %v10435_v23 = vld [vmem:[#allocation13 + $0x130] sm:$0xff] }
 0x6c6   :  { %7049 = vpow2.f32 %v5283_v30  ;;  %v5284_v29 = vmul.f32 -1.442695, %v3097_v60  ;;  %v5282_v50 = vmul.f32 -1.442695, %v2791_v28  ;;  %v10442_v28 = vld [vmem:[#allocation13 + $0x108] sm:$0xff] }
 0x6c7   :  { %13038 = vst [vmem:[#allocation125_spill] sm:$0xff] %v10442_v28 }
 0x6c8   :  { %7051 = vpow2.f32 %v5284_v29 }
 0x6d3   :  { %v7050_v39 = vpop.eup %7049 }
 0x6d4   :  { %v3094_v7 = vadd.f32 1.0, %v7050_v39 }
 0x6d5   :  { %v7052_v8 = vpop.eup %7051 }
 0x6d6   :  { %7053 = vrcp.f32 %v3094_v7  ;;  %v3101_v63 = vadd.f32 1.0, %v7052_v8  ;;  %v10415_v7 = vld [vmem:[#allocation13 + $0x160] sm:$0xff] }
 0x6d7   :  { %v10418_v8 = vld [vmem:[#allocation13 + $0x140] sm:$0xff] }
 0x6d8   :  { %7055 = vrcp.f32 %v3101_v63 }
 0x6e3   :  { %v7054_v33 = vpop.eup %7053 }
 0x6e4   :  { %v3104_v27 = vmul.f32 %v7054_v33, %v3087_v54  ;;  %v10422_v33 = vld [vmem:[#allocation13 + $0x138] sm:$0xff] }
 0x6e5   :  { %v7056_v30 = vpop.eup %7055 }
 0x6e6   :  { %v3105_v26 = vadd.f32 %v3104_v27, %v2946_v25  ;;  %v3107_v6 = vsub.f32 1.0, %v7056_v30  ;;  %v3109_v57 = vmul.f32 %v7056_v30, %v9841_v17  ;;  %v10412_v17 = vld [vmem:[#allocation13 + $0x150] sm:$0xff]  ;;  %v10428_v25 = vld [vmem:[#allocation13 + $0x128] sm:$0xff]  ;;  %v10432_v27 = vld [vmem:[#allocation13 + $0x120] sm:$0xff] }
 0x6e7   :  { %v10448_v30 = vld [vmem:[#allocation13 + $0xf8] sm:$0xff] }
 0x6e8   :  { %7057 = vtanh.f32 %v3105_v26  ;;  %v10438_v26 = vld [vmem:[#allocation13 + $0x110] sm:$0xff]  ;;  %13040 = vst [vmem:[#allocation127_spill] sm:$0xff] %v10448_v30 }
 0x6e9   :  { %7059 = vpow2.f32 %v5282_v50  ;;  %v10445_v50 = vld [vmem:[#allocation13 + $0x118] sm:$0xff] }
 0x6ea   :  { %13039 = vst [vmem:[#allocation126_spill] sm:$0xff] %v10445_v50 }
 0x6f5   :  { %v7058_v60 = vpop.eup %7057 }
 0x6f6   :  { %v3108_v29 = vmul.f32 %v7058_v60, %v3107_v6  ;;  %v7060_v63 = vpop.eup %7059  ;;  %v10453_v6 = vld [vmem:[#allocation13 + $0xf0] sm:$0xff]  ;;  %v10456_v60 = vld [vmem:[#allocation13 + $0x100] sm:$0xff] }
 0x6f7   :  { %v2795_v54 = vadd.f32 1.0, %v7060_v63  ;;  %13041 = vst [vmem:[#allocation128_spill] sm:$0xff] %v10453_v6  ;;  %13042 = vst [vmem:[#allocation129_spill] sm:$0xff] %v10456_v60  ;;  %v10466_v63 = vld [vmem:[#allocation13 + $0xe8] sm:$0xff] }
 0x6f8   :  { %v10398_v39 = vadd.f32 %v3109_v57, %v3108_v29  ;;  %v10459_v29 = vld [vmem:[#allocation13 + $0xe0] sm:$0xff]  ;;  %v10463_v57 = vld [vmem:[#allocation13 + $0xd8] sm:$0xff]  ;;  %13045 = vst [vmem:[#allocation132_spill] sm:$0xff] %v10466_v63 }
 0x6f9   :  { %7061 = vrcp.f32 %v2795_v54  ;;  %13043 = vst [vmem:[#allocation130_spill] sm:$0xff] %v10459_v29  ;;  %13044 = vst [vmem:[#allocation131_spill] sm:$0xff] %v10463_v57  ;;  %v10473_v54 = vld [vmem:[#allocation13 + $0xc0] sm:$0xff] }
 0x6fa   :  { %3176 = vmatmul.mubr.f32.vlgmr.msra.gmra.mxu0 %v10398_v39  ;;  %6506 = vmatmul.mubr.f32.vlgmr.msra.gmra.mxu1 %v10398_v39  ;;  %7063 = vtanh.f32 %v10387_v51  ;;  %v10469_v51 = vld [vmem:[#allocation13 + $0xc8] sm:$0xff]  ;;  %13047 = vst [vmem:[#allocation134_spill] sm:$0xff] %v10473_v54 }
 0x6fb   :  { %3253 = vmatpush1.msra.mxu0 %v10402_v52  ;;  %6509 = vmatpush3.msra.mxu1 %v10405_v44  ;;  %13046 = vst [vmem:[#allocation133_spill] sm:$0xff] %v10469_v51 }
 0x6fc   :  { %3254 = vmatprep.subr.mxu0 %v10408_v36  ;;  %6510 = vmatprep.subr.mxu1 %v12485_v56 }
 0x6fd   :  { %3255 = vmatpush1.msra.mxu0 %v10412_v17  ;;  %6511 = vmatpush3.msra.mxu1 %v10415_v7 }
 0x6fe   :  { %3256 = vmatprep.subr.mxu0 %v10418_v8  ;;  %6512 = vmatprep.subr.mxu1 %v12485_v56 }
 0x6ff   :  { %3257 = vmatpush1.msra.mxu0 %v10422_v33  ;;  %6513 = vmatpush3.msra.mxu1 %v10425_v31 }
 0x700   :  { %3258 = vmatprep.subr.mxu0 %v10428_v25  ;;  %6514 = vmatprep.subr.mxu1 %v12485_v56 }
 0x701   :  { %3259 = vmatpush1.msra.mxu0 %v10432_v27  ;;  %6515 = vmatpush3.msra.mxu1 %v10435_v23 }
 0x702   :  { %3260 = vmatprep.subr.mxu0 %v10438_v26  ;;  %6516 = vmatprep.subr.mxu1 %v12485_v56 }
 0x703   :  { %3261 = vmatpush1.msra.mxu0 %v10442_v28  ;;  %6517 = vmatpush3.msra.mxu1 %v10445_v50  ;;  %v10539_v50 = vld [vmem:[#allocation13 + $0x20] sm:$0xff]  ;;  %v10550_v28 = vld [vmem:[#allocation13 + $0x8] sm:$0xff] }
 0x704   :  { %3262 = vmatprep.subr.mxu0 %v10448_v30  ;;  %6518 = vmatprep.subr.mxu1 %v12485_v56  ;;  %v10529_v30 = vld [vmem:[#allocation13 + $0x38] sm:$0xff] }
 0x705   :  { %3263 = vmatpush1.msra.mxu0 %v10453_v6  ;;  %6519 = vmatpush3.msra.mxu1 %v10456_v60  ;;  %v10479_v60 = vld [vmem:[#allocation13 + $0xb0] sm:$0xff]  ;;  %13064 = vst [vmem:[#allocation151_spill] sm:$0xff] %v10529_v30 }
 0x706   :  { %3264 = vmatprep.subr.mxu0 %v10459_v29  ;;  %6520 = vmatprep.subr.mxu1 %v12485_v56  ;;  %v10476_v29 = vld [vmem:[#allocation13 + $0xd0] sm:$0xff]  ;;  %13049 = vst [vmem:[#allocation136_spill] sm:$0xff] %v10479_v60 }
 0x707   :  { %3265 = vmatpush1.msra.mxu0 %v10463_v57  ;;  %6521 = vmatpush3.msra.mxu1 %v10466_v63  ;;  %13048 = vst [vmem:[#allocation135_spill] sm:$0xff] %v10476_v29  ;;  %v10483_v63 = vld [vmem:[#allocation13 + $0xa8] sm:$0xff]  ;;  %v10489_v57 = vld [vmem:[#allocation13 + $0x98] sm:$0xff]  ;;  %v10519_v6 = vld [vmem:[#allocation13 + $0x50] sm:$0xff] }
 0x708   :  { %3266 = vmatprep.subr.mxu0 %v10469_v51  ;;  %6522 = vmatprep.subr.mxu1 %v12485_v56  ;;  %13050 = vst [vmem:[#allocation137_spill] sm:$0xff] %v10483_v63  ;;  %v10486_v51 = vld [vmem:[#allocation13 + $0xb8] sm:$0xff]  ;;  %13052 = vst [vmem:[#allocation139_spill] sm:$0xff] %v10489_v57 }
 0x709   :  { %3267 = vmatpush1.msra.mxu0 %v10473_v54  ;;  %6523 = vmatpush3.msra.mxu1 %v10476_v29  ;;  %13051 = vst [vmem:[#allocation138_spill] sm:$0xff] %v10486_v51  ;;  %v10493_v29 = vld [vmem:[#allocation13 + $0x90] sm:$0xff]  ;;  %v10499_v54 = vld [vmem:[#allocation13 + $0x80] sm:$0xff]  ;;  %13061 = vst [vmem:[#allocation148_spill] sm:$0xff] %v10519_v6 }
 0x70a   :  { %3268 = vmatprep.subr.mxu0 %v10479_v60  ;;  %6524 = vmatprep.subr.mxu1 %v12485_v56  ;;  %13053 = vst [vmem:[#allocation140_spill] sm:$0xff] %v10493_v29  ;;  %v10496_v60 = vld [vmem:[#allocation13 + $0xa0] sm:$0xff]  ;;  %13055 = vst [vmem:[#allocation142_spill] sm:$0xff] %v10499_v54 }
 0x70b   :  { %3269 = vmatpush1.msra.mxu0 %v10483_v63  ;;  %6525 = vmatpush3.msra.mxu1 %v10486_v51  ;;  %13054 = vst [vmem:[#allocation141_spill] sm:$0xff] %v10496_v60  ;;  %v10503_v51 = vld [vmem:[#allocation13 + $0x78] sm:$0xff]  ;;  %v7062_v63 = vpop.eup %7061 }
 0x70c   :  { %3270 = vmatprep.subr.mxu0 %v10489_v57  ;;  %6526 = vmatprep.subr.mxu1 %v12485_v56  ;;  %13056 = vst [vmem:[#allocation143_spill] sm:$0xff] %v10503_v51  ;;  %v10506_v57 = vld [vmem:[#allocation13 + $0x88] sm:$0xff] }
 0x70d   :  { %3271 = vmatpush1.msra.mxu0 %v10493_v29  ;;  %6527 = vmatpush3.msra.mxu1 %v10496_v60  ;;  %13057 = vst [vmem:[#allocation144_spill] sm:$0xff] %v10506_v57  ;;  %v10509_v29 = vld [vmem:[#allocation13 + $0x68] sm:$0xff]  ;;  %v10513_v60 = vld [vmem:[#allocation13 + $0x60] sm:$0xff] }
 0x70e   :  { %3272 = vmatprep.subr.mxu0 %v10499_v54  ;;  %6528 = vmatprep.subr.mxu1 %v12485_v56  ;;  %13058 = vst [vmem:[#allocation145_spill] sm:$0xff] %v10509_v29  ;;  %13059 = vst [vmem:[#allocation146_spill] sm:$0xff] %v10513_v60  ;;  %v10516_v54 = vld [vmem:[#allocation13 + $0x70] sm:$0xff] }
 0x70f   :  { %3273 = vmatpush1.msra.mxu0 %v10503_v51  ;;  %6529 = vmatpush3.msra.mxu1 %v10506_v57  ;;  %13060 = vst [vmem:[#allocation147_spill] sm:$0xff] %v10516_v54  ;;  %v7064_v51 = vpop.eup %7063  ;;  %v10523_v57 = vld [vmem:[#allocation13 + $0x48] sm:$0xff] }
 0x710   :  { %3274 = vmatprep.subr.mxu0 %v10509_v29  ;;  %6530 = vmatprep.subr.mxu1 %v12485_v56  ;;  %13062 = vst [vmem:[#allocation149_spill] sm:$0xff] %v10523_v57  ;;  %v10526_v29 = vld [vmem:[#allocation13 + $0x58] sm:$0xff] }
 0x711   :  { %3275 = vmatpush1.msra.mxu0 %v10513_v60  ;;  %6531 = vmatpush3.msra.mxu1 %v10516_v54  ;;  %13063 = vst [vmem:[#allocation150_spill] sm:$0xff] %v10526_v29  ;;  %v2801_v60 = vsub.f32 1.0, %v7062_v63  ;;  %v10533_v54 = vld [vmem:[#allocation13 + $0x30] sm:$0xff] }
 0x712   :  { %3276 = vmatprep.subr.mxu0 %v10519_v6  ;;  %6532 = vmatprep.subr.mxu1 %v12485_v56  ;;  %13065 = vst [vmem:[#allocation152_spill] sm:$0xff] %v10533_v54  ;;  %v10536_v6 = vld [vmem:[#allocation13 + $0x40] sm:$0xff] }
 0x713   :  { %3277 = vmatpush1.msra.mxu0 %v10523_v57  ;;  %6533 = vmatpush3.msra.mxu1 %v10526_v29  ;;  %v2802_v57 = vmul.f32 %v7064_v51, %v2801_v60  ;;  %v10543_v29 = vld [vmem:[#allocation13 + $0x18] sm:$0xff]  ;;  %v10554_v60 = vld [vmem:[#allocation13] sm:$0xff] }
 0x714   :  { %3278 = vmatprep.subr.mxu0 %v10529_v30  ;;  %6534 = vmatprep.subr.mxu1 %v12485_v56  ;;  %13066 = vst [vmem:[#allocation154_spill] sm:$0xff] %v10543_v29  ;;  %v10546_v30 = vld [vmem:[#allocation13 + $0x28] sm:$0xff] }
 0x715   :  { %3279 = vmatpush1.msra.mxu0 %v10533_v54  ;;  %6535 = vmatpush3.msra.mxu1 %v10536_v6  ;;  %v2803_v54 = vmul.f32 %v7062_v63, %v9909_v41  ;;  %v10569_v63 = vld [vmem:[#allocation8 + $0x168] sm:$0xff]  ;;  %v10585_v41 = vld [vmem:[#allocation8 + $0x138] sm:$0xff] }
 0x716   :  { %3280 = vmatprep.subr.mxu0 %v10539_v50  ;;  %6536 = vmatprep.subr.mxu1 %v12485_v56  ;;  %13069 = vst [vmem:[#allocation157_spill] sm:$0xff] %v10585_v41 }
 0x717   :  { %3281 = vmatpush1.msra.mxu0 %v10543_v29  ;;  %6537 = vmatpush3.msra.mxu1 %v10546_v30  ;;  %v10558_v51 = vadd.f32 %v2803_v54, %v2802_v57  ;;  %v10560_v29 = vld [vmem:[#allocation13 + $0x10] sm:$0xff]  ;;  %v10573_v57 = vld [vmem:[#allocation8 + $0x158] sm:$0xff] }
 0x718   :  { %3282 = vmatprep.subr.mxu0 %v10550_v28  ;;  %6538 = vmatprep.subr.mxu1 %v12485_v56  ;;  %v10577_v54 = vld [vmem:[#allocation8 + $0x150] sm:$0xff] }
 0x719   :  { %3283 = vmatpush1.msra.mxu0 %v10554_v60  ;;  %3316 = vmatprep.mubr.f32.mxu0 %v12485_v56  ;;  %13067 = vst [vmem:[#allocation155_spill] sm:$0xff] %v10558_v51  ;;  %13068 = vst [vmem:[#allocation156_spill] sm:$0xff] %v10577_v54 }
 0x71a   :  { %6539 = vmatpush3.msra.mxu1 %v10560_v29  ;;  %6540 = vmatprep.mubr.msk.f32.mxu1 %vm7863_vm0, %v12485_v56 }
 0x71b   :  { %3317 = vmatmul.mubr.f32.vlgmr.msra.gmra.mxu0 %v10558_v51  ;;  %6541 = vmatmul.mubr.f32.vlgmr.msra.gmra.mxu1 %v10558_v51 }
 0x71c   :  { %3417 = vmatprep.subr.mxu0 %v9916_v13  ;;  %6543 = vmatprep.subr.mxu1 %v12485_v56  ;;  %v10581_v13 = vld [vmem:[#allocation8 + $0x140] sm:$0xff] }
 0x71d   :  { %3418 = vmatpush1.msra.mxu0 %v10569_v63  ;;  %6544 = vmatpush3.msra.mxu1 %v9921_v18  ;;  %v10589_v18 = vld [vmem:[#allocation8 + $0x128] sm:$0xff] }
 0x71e   :  { %3419 = vmatprep.subr.mxu0 %v10573_v57  ;;  %6545 = vmatprep.subr.mxu1 %v12485_v56 }
 0x71f   :  { %3420 = vmatpush1.msra.mxu0 %v10577_v54  ;;  %6546 = vmatpush3.msra.mxu1 %v9927_v38  ;;  %v10593_v54 = vld [vmem:[#allocation8 + $0x120] sm:$0xff]  ;;  %v10597_v38 = vld [vmem:[#allocation8 + $0x110] sm:$0xff] }
 0x720   :  { %3421 = vmatprep.subr.mxu0 %v10581_v13  ;;  %6547 = vmatprep.subr.mxu1 %v12485_v56  ;;  %13070 = vst [vmem:[#allocation158_spill] sm:$0xff] %v10593_v54 }
 0x721   :  { %3422 = vmatpush1.msra.mxu0 %v10585_v41  ;;  %6548 = vmatpush3.msra.mxu1 %v9933_v12  ;;  %v10601_v41 = vld [vmem:[#allocation8 + $0x108] sm:$0xff]  ;;  %v10605_v12 = vld [vmem:[#allocation8 + $0xf8] sm:$0xff] }
 0x722   :  { %3423 = vmatprep.subr.mxu0 %v10589_v18  ;;  %6549 = vmatprep.subr.mxu1 %v12485_v56  ;;  %13071 = vst [vmem:[#allocation159_spill] sm:$0xff] %v10601_v41 }
 0x723   :  { %3424 = vmatpush1.msra.mxu0 %v10593_v54  ;;  %6550 = vmatpush3.msra.mxu1 %v9939_v20  ;;  %v10609_v54 = vld [vmem:[#allocation8 + $0xf0] sm:$0xff]  ;;  %v10613_v20 = vld [vmem:[#allocation8 + $0xe0] sm:$0xff] }
 0x724   :  { %3425 = vmatprep.subr.mxu0 %v10597_v38  ;;  %6551 = vmatprep.subr.mxu1 %v12485_v56 }
 0x725   :  { %3426 = vmatpush1.msra.mxu0 %v10601_v41  ;;  %6552 = vmatpush3.msra.mxu1 %v9945_v40  ;;  %v10617_v41 = vld [vmem:[#allocation8 + $0xd8] sm:$0xff]  ;;  %v10621_v40 = vld [vmem:[#allocation8 + $0xc8] sm:$0xff] }
 0x726   :  { %3427 = vmatprep.subr.mxu0 %v10605_v12  ;;  %6553 = vmatprep.subr.mxu1 %v12485_v56 }
 0x727   :  { %3428 = vmatpush1.msra.mxu0 %v10609_v54  ;;  %6554 = vmatpush3.msra.mxu1 %v9951_v4  ;;  %v13072_v4 = vld [vmem:[#allocation22_spill] sm:$0xff] }
 0x728   :  { %3429 = vmatprep.subr.mxu0 %v10613_v20  ;;  %6555 = vmatprep.subr.mxu1 %v12485_v56 }
 0x729   :  { %3430 = vmatpush1.msra.mxu0 %v10617_v41  ;;  %6556 = vmatpush3.msra.mxu1 %v9957_v62  ;;  %v3416_v62 = vld [vmem:[#allocation5 + $0x28] sm:$0xff] }
 0x72a   :  { %3431 = vmatprep.subr.mxu0 %v10621_v40  ;;  %6557 = vmatprep.subr.mxu1 %v12485_v56 }
 0x72b   :  { %3432 = vmatpush1.msra.mxu0 %v9962_v9  ;;  %6558 = vmatpush3.msra.mxu1 %v9965_v46  ;;  %v13073_v9 = vld [vmem:[#allocation38_spill] sm:$0xff]  ;;  %v13074_v46 = vld [vmem:[#allocation23_spill] sm:$0xff] }
 0x72c   :  { %3433 = vmatprep.subr.mxu0 %v9968_v59  ;;  %6559 = vmatprep.subr.mxu1 %v12485_v56  ;;  %v13075_v59 = vld [vmem:[#allocation24_spill] sm:$0xff] }
 0x72d   :  { %3434 = vmatpush1.msra.mxu0 %v9972_v14  ;;  %6560 = vmatpush3.msra.mxu1 %v9975_v45  ;;  %v13076_v14 = vld [vmem:[#allocation41_spill] sm:$0xff] }
 0x72e   :  { %3435 = vmatprep.subr.mxu0 %v9978_v55  ;;  %6561 = vmatprep.subr.mxu1 %v12485_v56  ;;  %v13077_v45 = vld [vmem:[#allocation25_spill] sm:$0xff]  ;;  %v13078_v55 = vld [vmem:[#allocation26_spill] sm:$0xff] }
 0x72f   :  { %3436 = vmatpush1.msra.mxu0 %v9982_v42  ;;  %6562 = vmatpush3.msra.mxu1 %v9985_v5  ;;  %v13079_v42 = vld [vmem:[#allocation44_spill] sm:$0xff]  ;;  %v13080_v5 = vld [vmem:[#allocation27_spill] sm:$0xff] }
 0x730   :  { %3437 = vmatprep.subr.mxu0 %v9988_v1  ;;  %6563 = vmatprep.subr.mxu1 %v12485_v56  ;;  %v13081_v1 = vld [vmem:[#allocation28_spill] sm:$0xff] }
 0x731   :  { %3438 = vmatpush1.msra.mxu0 %v9992_v0  ;;  %6564 = vmatpush3.msra.mxu1 %v9995_v24  ;;  %v13082_v0 = vld [vmem:[#allocation47_spill] sm:$0xff]  ;;  %v13083_v24 = vld [vmem:[#allocation29_spill] sm:$0xff] }
 0x732   :  { %3439 = vmatprep.subr.mxu0 %v9998_v10  ;;  %6565 = vmatprep.subr.mxu1 %v12485_v56  ;;  %v13084_v10 = vld [vmem:[#allocation30_spill] sm:$0xff] }
 0x733   :  { %3440 = vmatpush1.msra.mxu0 %v10002_v48  ;;  %6566 = vmatpush3.msra.mxu1 %v10005_v43  ;;  %v13085_v48 = vld [vmem:[#allocation50_spill] sm:$0xff]  ;;  %v13086_v43 = vld [vmem:[#allocation31_spill] sm:$0xff] }
 0x734   :  { %3441 = vmatprep.subr.mxu0 %v10008_v34  ;;  %6567 = vmatprep.subr.mxu1 %v12485_v56  ;;  %v13087_v34 = vld [vmem:[#allocation33_spill] sm:$0xff] }
 0x735   :  { %3442 = vmatpush1.msra.mxu0 %v10012_v32  ;;  %6568 = vmatpush3.msra.mxu1 %v10015_v15  ;;  %v13088_v32 = vld [vmem:[#allocation52_spill] sm:$0xff]  ;;  %v13089_v15 = vld [vmem:[#allocation34_spill] sm:$0xff] }
 0x736   :  { %3443 = vmatprep.subr.mxu0 %v10018_v22  ;;  %6569 = vmatprep.subr.mxu1 %v12485_v56  ;;  %v13090_v22 = vld [vmem:[#allocation36_spill] sm:$0xff] }
 0x737   :  { %3444 = vmatpush1.msra.mxu0 %v10022_v53  ;;  %6570 = vmatpush3.msra.mxu1 %v10025_v19  ;;  %v13091_v53 = vld [vmem:[#allocation53_spill] sm:$0xff] }
 0x738   :  { %3445 = vmatprep.subr.mxu0 %v10028_v2  ;;  %6571 = vmatprep.subr.mxu1 %v12485_v56  ;;  %v13092_v19 = vld [vmem:[#allocation37_spill] sm:$0xff]  ;;  %v13093_v2 = vld [vmem:[#allocation39_spill] sm:$0xff] }
 0x739   :  { %3446 = vmatpush1.msra.mxu0 %v10032_v49  ;;  %6572 = vmatpush3.msra.mxu1 %v13072_v4  ;;  %v13094_v49 = vld [vmem:[#allocation54_spill] sm:$0xff]  ;;  %v13095_v4 = vld [vmem:[#allocation40_spill] sm:$0xff] }
 0x73a   :  { %3447 = vmatprep.subr.mxu0 %v13073_v9  ;;  %6573 = vmatprep.subr.mxu1 %v12485_v56  ;;  %v13097_v9 = vld [vmem:[#allocation55_spill] sm:$0xff] }
 0x73b   :  { %3448 = vmatpush1.msra.mxu0 %v13074_v46  ;;  %3481 = vmatprep.mubr.f32.mxu0 %v12485_v56  ;;  %v13098_v46 = vld [vmem:[#allocation43_spill] sm:$0xff] }
 0x73c   :  { %6574 = vmatpush3.msra.mxu1 %v13075_v59  ;;  %3482 = vmatmul.mubr.f32.vlgmr.msra.gmra.mxu0 %v3416_v62  ;;  %v13099_v59 = vld [vmem:[#allocation45_spill] sm:$0xff] }
 0x73d   :  { %6575 = vmatprep.mubr.msk.f32.mxu1 %vm7863_vm0, %v12485_v56  ;;  %3558 = vmatprep.subr.mxu0 %v13076_v14  ;;  %v13100_v14 = vld [vmem:[#allocation56_spill] sm:$0xff] }
 0x73e   :  { %6578 = vmatprep.subr.mxu1 %v12485_v56  ;;  %6576 = vmatmul.mubr.f32.vlgmr.msra.gmra.mxu1 %v3416_v62  ;;  %v13096_v62 = vld [vmem:[#allocation42_spill] sm:$0xff] }
 0x73f   :  { %3559 = vmatpush1.msra.mxu0 %v13077_v45  ;;  %6579 = vmatpush3.msra.mxu1 %v13078_v55  ;;  %v13101_v45 = vld [vmem:[#allocation46_spill] sm:$0xff]  ;;  %v13102_v55 = vld [vmem:[#allocation48_spill] sm:$0xff] }
 0x740   :  { %3560 = vmatprep.subr.mxu0 %v13079_v42  ;;  %6580 = vmatprep.subr.mxu1 %v12485_v56  ;;  %v13103_v42 = vld [vmem:[#allocation57_spill] sm:$0xff] }
 0x741   :  { %3561 = vmatpush1.msra.mxu0 %v13080_v5  ;;  %6581 = vmatpush3.msra.mxu1 %v13081_v1  ;;  %v13104_v5 = vld [vmem:[#allocation49_spill] sm:$0xff]  ;;  %v13105_v1 = vld [vmem:[#allocation51_spill] sm:$0xff] }
 0x742   :  { %3562 = vmatprep.subr.mxu0 %v13082_v0  ;;  %6582 = vmatprep.subr.mxu1 %v12485_v56  ;;  %v13106_v0 = vld [vmem:[#allocation58_spill] sm:$0xff] }
 0x743   :  { %3563 = vmatpush1.msra.mxu0 %v13083_v24  ;;  %6583 = vmatpush3.msra.mxu1 %v13084_v10  ;;  %v13107_v24 = vld [vmem:[#allocation59_spill] sm:$0xff]  ;;  %v13108_v10 = vld [vmem:[#allocation60_spill] sm:$0xff] }
 0x744   :  { %3564 = vmatprep.subr.mxu0 %v13085_v48  ;;  %6584 = vmatprep.subr.mxu1 %v12485_v56  ;;  %v13109_v48 = vld [vmem:[#allocation61_spill] sm:$0xff] }
 0x745   :  { %3565 = vmatpush1.msra.mxu0 %v13086_v43  ;;  %6585 = vmatpush3.msra.mxu1 %v13087_v34  ;;  %v13110_v43 = vld [vmem:[#allocation62_spill] sm:$0xff]  ;;  %v13111_v34 = vld [vmem:[#allocation63_spill] sm:$0xff] }
 0x746   :  { %3566 = vmatprep.subr.mxu0 %v13088_v32  ;;  %6586 = vmatprep.subr.mxu1 %v12485_v56  ;;  %v13112_v32 = vld [vmem:[#allocation64_spill] sm:$0xff] }
 0x747   :  { %3567 = vmatpush1.msra.mxu0 %v13089_v15  ;;  %6587 = vmatpush3.msra.mxu1 %v13090_v22  ;;  %v13113_v15 = vld [vmem:[#allocation65_spill] sm:$0xff]  ;;  %v13114_v22 = vld [vmem:[#allocation67_spill] sm:$0xff] }
 0x748   :  { %3568 = vmatprep.subr.mxu0 %v13091_v53  ;;  %6588 = vmatprep.subr.mxu1 %v12485_v56  ;;  %v13115_v53 = vld [vmem:[#allocation66_spill] sm:$0xff] }
 0x749   :  { %3569 = vmatpush1.msra.mxu0 %v13092_v19  ;;  %6589 = vmatpush3.msra.mxu1 %v13093_v2  ;;  %v13116_v19 = vld [vmem:[#allocation68_spill] sm:$0xff]  ;;  %v13117_v2 = vld [vmem:[#allocation69_spill] sm:$0xff] }
 0x74a   :  { %3570 = vmatprep.subr.mxu0 %v13094_v49  ;;  %6590 = vmatprep.subr.mxu1 %v12485_v56  ;;  %v13118_v49 = vld [vmem:[#allocation70_spill] sm:$0xff] }
 0x74b   :  { %3571 = vmatpush1.msra.mxu0 %v13095_v4  ;;  %6591 = vmatpush3.msra.mxu1 %v13096_v62  ;;  %v13119_v4 = vld [vmem:[#allocation71_spill] sm:$0xff]  ;;  %v13120_v62 = vld [vmem:[#allocation72_spill] sm:$0xff] }
 0x74c   :  { %3572 = vmatprep.subr.mxu0 %v13097_v9  ;;  %6592 = vmatprep.subr.mxu1 %v12485_v56  ;;  %v13121_v9 = vld [vmem:[#allocation73_spill] sm:$0xff] }
 0x74d   :  { %3573 = vmatpush1.msra.mxu0 %v13098_v46  ;;  %6593 = vmatpush3.msra.mxu1 %v13099_v59  ;;  %v13122_v46 = vld [vmem:[#allocation74_spill] sm:$0xff]  ;;  %v13123_v59 = vld [vmem:[#allocation75_spill] sm:$0xff] }
 0x74e   :  { %3574 = vmatprep.subr.mxu0 %v13100_v14  ;;  %6594 = vmatprep.subr.mxu1 %v12485_v56  ;;  %v13124_v14 = vld [vmem:[#allocation76_spill] sm:$0xff] }
 0x74f   :  { %3575 = vmatpush1.msra.mxu0 %v13101_v45  ;;  %6595 = vmatpush3.msra.mxu1 %v13102_v55  ;;  %v13125_v45 = vld [vmem:[#allocation77_spill] sm:$0xff]  ;;  %v13126_v55 = vld [vmem:[#allocation78_spill] sm:$0xff] }
 0x750   :  { %3576 = vmatprep.subr.mxu0 %v13103_v42  ;;  %6596 = vmatprep.subr.mxu1 %v12485_v56  ;;  %v13127_v42 = vld [vmem:[#allocation79_spill] sm:$0xff] }
 0x751   :  { %3577 = vmatpush1.msra.mxu0 %v13104_v5  ;;  %6597 = vmatpush3.msra.mxu1 %v13105_v1  ;;  %v13128_v5 = vld [vmem:[#allocation80_spill] sm:$0xff]  ;;  %v13129_v1 = vld [vmem:[#allocation81_spill] sm:$0xff] }
 0x752   :  { %3578 = vmatprep.subr.mxu0 %v13106_v0  ;;  %6598 = vmatprep.subr.mxu1 %v12485_v56  ;;  %v13130_v0 = vld [vmem:[#allocation82_spill] sm:$0xff] }
 0x753   :  { %3579 = vmatpush1.msra.mxu0 %v13107_v24  ;;  %6599 = vmatpush3.msra.mxu1 %v13108_v10  ;;  %v13131_v24 = vld [vmem:[#allocation83_spill] sm:$0xff]  ;;  %v13132_v10 = vld [vmem:[#allocation84_spill] sm:$0xff] }
 0x754   :  { %3580 = vmatprep.subr.mxu0 %v13109_v48  ;;  %6600 = vmatprep.subr.mxu1 %v12485_v56  ;;  %v13133_v48 = vld [vmem:[#allocation85_spill] sm:$0xff] }
 0x755   :  { %3581 = vmatpush1.msra.mxu0 %v13110_v43  ;;  %6601 = vmatpush3.msra.mxu1 %v13111_v34  ;;  %v13134_v43 = vld [vmem:[#allocation86_spill] sm:$0xff]  ;;  %v13135_v34 = vld [vmem:[#allocation87_spill] sm:$0xff] }
 0x756   :  { %3582 = vmatprep.subr.mxu0 %v13112_v32  ;;  %6602 = vmatprep.subr.mxu1 %v12485_v56  ;;  %v13136_v32 = vld [vmem:[#allocation88_spill] sm:$0xff] }
 0x757   :  { %3583 = vmatpush1.msra.mxu0 %v13113_v15  ;;  %6603 = vmatpush3.msra.mxu1 %v13114_v22  ;;  %v13137_v15 = vld [vmem:[#allocation89_spill] sm:$0xff]  ;;  %v13138_v22 = vld [vmem:[#allocation90_spill] sm:$0xff] }
 0x758   :  { %3584 = vmatprep.subr.mxu0 %v13115_v53  ;;  %6604 = vmatprep.subr.mxu1 %v12485_v56  ;;  %v13139_v53 = vld [vmem:[#allocation91_spill] sm:$0xff] }
 0x759   :  { %3585 = vmatpush1.msra.mxu0 %v13116_v19  ;;  %6605 = vmatpush3.msra.mxu1 %v13117_v2  ;;  %v13140_v19 = vld [vmem:[#allocation92_spill] sm:$0xff]  ;;  %v13141_v2 = vld [vmem:[#allocation93_spill] sm:$0xff] }
 0x75a   :  { %3586 = vmatprep.subr.mxu0 %v13118_v49  ;;  %6606 = vmatprep.subr.mxu1 %v12485_v56  ;;  %v13142_v49 = vld [vmem:[#allocation94_spill] sm:$0xff] }
 0x75b   :  { %3587 = vmatpush1.msra.mxu0 %v13119_v4  ;;  %6607 = vmatpush3.msra.mxu1 %v13120_v62  ;;  %v13143_v4 = vld [vmem:[#allocation95_spill] sm:$0xff]  ;;  %v13144_v62 = vld [vmem:[#allocation96_spill] sm:$0xff] }
 0x75c   :  { %3588 = vmatprep.subr.mxu0 %v13121_v9  ;;  %6608 = vmatprep.subr.mxu1 %v12485_v56  ;;  %v13145_v9 = vld [vmem:[#allocation97_spill] sm:$0xff] }
 0x75d   :  { %3589 = vmatpush1.msra.mxu0 %v13122_v46  ;;  %3622 = vmatprep.mubr.f32.mxu0 %v12485_v56  ;;  %v13146_v46 = vld [vmem:[#allocation98_spill] sm:$0xff] }
 0x75e   :  { %6609 = vmatpush3.msra.mxu1 %v13123_v59  ;;  %6610 = vmatprep.mubr.msk.f32.mxu1 %vm7863_vm0, %v12485_v56  ;;  %v13147_v59 = vld [vmem:[#allocation99_spill] sm:$0xff] }
 0x75f   :  { %3623 = vmatmul.mubr.f32.vlgmr.msra.gmra.mxu0 %v10398_v39  ;;  %6611 = vmatmul.mubr.f32.vlgmr.msra.gmra.mxu1 %v10398_v39 }
 0x760   :  { %3720 = vmatprep.subr.mxu0 %v13124_v14  ;;  %6613 = vmatprep.subr.mxu1 %v12485_v56  ;;  %v13148_v14 = vld [vmem:[#allocation100_spill] sm:$0xff] }
 0x761   :  { %3721 = vmatpush1.msra.mxu0 %v13125_v45  ;;  %6614 = vmatpush3.msra.mxu1 %v13126_v55  ;;  %v13149_v45 = vld [vmem:[#allocation101_spill] sm:$0xff]  ;;  %v13150_v55 = vld [vmem:[#allocation102_spill] sm:$0xff] }
 0x762   :  { %3722 = vmatprep.subr.mxu0 %v13127_v42  ;;  %6615 = vmatprep.subr.mxu1 %v12485_v56  ;;  %v13151_v42 = vld [vmem:[#allocation103_spill] sm:$0xff] }
 0x763   :  { %3723 = vmatpush1.msra.mxu0 %v13128_v5  ;;  %6616 = vmatpush3.msra.mxu1 %v13129_v1  ;;  %v13152_v5 = vld [vmem:[#allocation104_spill] sm:$0xff]  ;;  %v13153_v1 = vld [vmem:[#allocation105_spill] sm:$0xff] }
 0x764   :  { %3724 = vmatprep.subr.mxu0 %v13130_v0  ;;  %6617 = vmatprep.subr.mxu1 %v12485_v56  ;;  %v13154_v0 = vld [vmem:[#allocation106_spill] sm:$0xff] }
 0x765   :  { %3725 = vmatpush1.msra.mxu0 %v13131_v24  ;;  %6618 = vmatpush3.msra.mxu1 %v13132_v10  ;;  %v13155_v24 = vld [vmem:[#allocation107_spill] sm:$0xff]  ;;  %v13156_v10 = vld [vmem:[#allocation108_spill] sm:$0xff] }
 0x766   :  { %3726 = vmatprep.subr.mxu0 %v13133_v48  ;;  %6619 = vmatprep.subr.mxu1 %v12485_v56  ;;  %v13157_v48 = vld [vmem:[#allocation109_spill] sm:$0xff] }
 0x767   :  { %3727 = vmatpush1.msra.mxu0 %v13134_v43  ;;  %6620 = vmatpush3.msra.mxu1 %v13135_v34  ;;  %v13158_v43 = vld [vmem:[#allocation110_spill] sm:$0xff]  ;;  %v13159_v34 = vld [vmem:[#allocation111_spill] sm:$0xff] }
 0x768   :  { %3728 = vmatprep.subr.mxu0 %v13136_v32  ;;  %6621 = vmatprep.subr.mxu1 %v12485_v56  ;;  %v13160_v32 = vld [vmem:[#allocation112_spill] sm:$0xff] }
 0x769   :  { %3729 = vmatpush1.msra.mxu0 %v13137_v15  ;;  %6622 = vmatpush3.msra.mxu1 %v13138_v22  ;;  %v13161_v15 = vld [vmem:[#allocation113_spill] sm:$0xff]  ;;  %v13162_v22 = vld [vmem:[#allocation114_spill] sm:$0xff] }
 0x76a   :  { %3730 = vmatprep.subr.mxu0 %v13139_v53  ;;  %6623 = vmatprep.subr.mxu1 %v12485_v56  ;;  %v13163_v53 = vld [vmem:[#allocation115_spill] sm:$0xff] }
 0x76b   :  { %3731 = vmatpush1.msra.mxu0 %v13140_v19  ;;  %6624 = vmatpush3.msra.mxu1 %v13141_v2  ;;  %v13164_v19 = vld [vmem:[#allocation116_spill] sm:$0xff]  ;;  %v13165_v2 = vld [vmem:[#allocation117_spill] sm:$0xff] }
 0x76c   :  { %3732 = vmatprep.subr.mxu0 %v13142_v49  ;;  %6625 = vmatprep.subr.mxu1 %v12485_v56  ;;  %v13166_v49 = vld [vmem:[#allocation118_spill] sm:$0xff] }
 0x76d   :  { %3733 = vmatpush1.msra.mxu0 %v13143_v4  ;;  %6626 = vmatpush3.msra.mxu1 %v13144_v62  ;;  %v13167_v4 = vld [vmem:[#allocation119_spill] sm:$0xff]  ;;  %v13168_v62 = vld [vmem:[#allocation120_spill] sm:$0xff] }
 0x76e   :  { %3734 = vmatprep.subr.mxu0 %v13145_v9  ;;  %6627 = vmatprep.subr.mxu1 %v12485_v56  ;;  %v13169_v9 = vld [vmem:[#allocation121_spill] sm:$0xff] }
 0x76f   :  { %3735 = vmatpush1.msra.mxu0 %v13146_v46  ;;  %6628 = vmatpush3.msra.mxu1 %v13147_v59  ;;  %v13170_v46 = vld [vmem:[#allocation122_spill] sm:$0xff]  ;;  %v13171_v59 = vld [vmem:[#allocation123_spill] sm:$0xff] }
 0x770   :  { %3736 = vmatprep.subr.mxu0 %v13148_v14  ;;  %6629 = vmatprep.subr.mxu1 %v12485_v56  ;;  %v13172_v14 = vld [vmem:[#allocation124_spill] sm:$0xff] }
 0x771   :  { %3737 = vmatpush1.msra.mxu0 %v13149_v45  ;;  %6630 = vmatpush3.msra.mxu1 %v13150_v55 }
 0x772   :  { %3738 = vmatprep.subr.mxu0 %v13151_v42  ;;  %6631 = vmatprep.subr.mxu1 %v12485_v56 }
 0x773   :  { %3739 = vmatpush1.msra.mxu0 %v13152_v5  ;;  %6632 = vmatpush3.msra.mxu1 %v13153_v1 }
 0x774   :  { %3740 = vmatprep.subr.mxu0 %v13154_v0  ;;  %6633 = vmatprep.subr.mxu1 %v12485_v56 }
 0x775   :  { %3741 = vmatpush1.msra.mxu0 %v13155_v24  ;;  %6634 = vmatpush3.msra.mxu1 %v13156_v10  ;;  %v13173_v24 = vld [vmem:[#allocation32_spill] sm:$0xff] }
 0x776   :  { %3742 = vmatprep.subr.mxu0 %v13157_v48  ;;  %6635 = vmatprep.subr.mxu1 %v12485_v56 }
 0x777   :  { %3743 = vmatpush1.msra.mxu0 %v13158_v43  ;;  %6636 = vmatpush3.msra.mxu1 %v13159_v34 }
 0x778   :  { %3744 = vmatprep.subr.mxu0 %v13160_v32  ;;  %6637 = vmatprep.subr.mxu1 %v12485_v56 }
 0x779   :  { %3745 = vmatpush1.msra.mxu0 %v13161_v15  ;;  %6638 = vmatpush3.msra.mxu1 %v13162_v22 }
 0x77a   :  { %3746 = vmatprep.subr.mxu0 %v13163_v53  ;;  %6639 = vmatprep.subr.mxu1 %v12485_v56  ;;  %v13174_v53 = vld [vmem:[#allocation19_spill] sm:$0xff] }
 0x77b   :  { %3747 = vmatpush1.msra.mxu0 %v13164_v19  ;;  %6640 = vmatpush3.msra.mxu1 %v13165_v2 }
 0x77c   :  { %3748 = vmatprep.subr.mxu0 %v13166_v49  ;;  %6641 = vmatprep.subr.mxu1 %v12485_v56 }
 0x77d   :  { %3749 = vmatpush1.msra.mxu0 %v13167_v4  ;;  %6642 = vmatpush3.msra.mxu1 %v13168_v62  ;;  %v13175_v4 = vld [vmem:[#allocation20_spill] sm:$0xff] }
 0x77e   :  { %3750 = vmatprep.subr.mxu0 %v13169_v9  ;;  %6643 = vmatprep.subr.mxu1 %v12485_v56 }
 0x77f   :  { %3751 = vmatpush1.msra.mxu0 %v13170_v46  ;;  %6644 = vmatpush3.msra.mxu1 %v13171_v59 }
 0x780   :  { %3784 = vmatprep.mubr.f32.mxu0 %v12485_v56  ;;  %6645 = vmatprep.mubr.msk.f32.mxu1 %vm7863_vm0, %v12485_v56 }
 0x781   :  { %3861 = vmatprep.subr.mxu0 %v13172_v14  ;;  %6648 = vmatprep.subr.mxu1 %v12485_v56 }
 0x7ba   :  { %v3248_v45 = vpop.f32.mrf.mxu1  ;;  %v3177_v42 = vpop.f32.mrf.mxu0 }
 0x7bb   :  { %v3178_v10 = vadd.f32 %v3177_v42, %v13173_v24  ;;  %v3249_v62 = vadd.f32 %v3248_v45, %v13175_v4 }
 0x7bc   :  { %v6507_v55 = vpop.f32.mrf.mxu1  ;;  %v3179_v5 = vpop.f32.mrf.mxu0 }
 0x7db   :  { %v3318_v1 = vpop.f32.mrf.mxu0  ;;  %v3389_v0 = vpop.f32.mrf.mxu1 }
 0x7dc   :  { %v3319_v48 = vadd.f32 %v3318_v1, %v8839_v47  ;;  %v3390_v19 = vadd.f32 %v3389_v0, %v13174_v53 }
 0x7dd   :  { %v6542_v43 = vpop.f32.mrf.mxu1  ;;  %v3320_v14 = vpop.f32.mrf.mxu0 }
 0x7de   :  { %v3393_v34 = vadd.f32 %v3319_v48, %v3178_v10 }
 0x7e0   :  { %v5285_v32 = vmul.f32 -1.442695, %v3393_v34 }
 0x7e2   :  { %7065 = vpow2.f32 %v5285_v32 }
 0x7ef   :  { %v7066_v15 = vpop.eup %7065 }
 0x7f0   :  { %v3397_v22 = vadd.f32 1.0, %v7066_v15 }
 0x7f2   :  { %7067 = vrcp.f32 %v3397_v22 }
 0x7fc   :  { %v3483_v55 = vpop.f32.mrf.mxu0 }
 0x7fd   :  { %v3484_v48 = vadd.f32 %v3483_v55, %v12619_v35 }
 0x7fe   :  { %v3554_v2 = vpop.f32.mrf.mxu1  ;;  %v3485_v42 = vpop.f32.mrf.mxu0 }
 0x7ff   :  { %v7068_v49 = vpop.eup %7067  ;;  %v3486_v45 = vadd.f32 %v3485_v42, %v8417_v16  ;;  %v3180_v42 = vadd.f32 %v3179_v5, %v8861_v21 }
 0x800   :  { %v3407_v9 = vmul.f32 %v7068_v49, %v3390_v19  ;;  %v6577_v46 = vpop.f32.mrf.mxu1 }
 0x802   :  { %v10804_v59 = vadd.f32 %v3407_v9, %v3249_v62 }
 0x81f   :  { %v3624_v1 = vpop.f32.mrf.mxu0  ;;  %v3695_v10 = vpop.f32.mrf.mxu1 }
 0x820   :  { %v3625_v43 = vadd.f32 %v3624_v1, %v12620_v37  ;;  %v3696_v55 = vadd.f32 %v3695_v10, %v8424_v11 }
 0x821   :  { %v3626_v34 = vpop.f32.mrf.mxu0  ;;  %v6612_v32 = vpop.f32.mrf.mxu1 }
 0x822   :  { %v3699_v0 = vadd.f32 %v3625_v43, %v3484_v48  ;;  %v3627_v22 = vadd.f32 %v3626_v34, %v8414_v61  ;;  %v3321_v32 = vadd.f32 %v3320_v14, %v8858_v3  ;;  %v3555_v48 = vadd.f32 %v3554_v2, %v8427_v58  ;;  %v13188_v2 = vld [vmem:[#allocation137_spill] sm:$0xff]  ;;  %v13191_v14 = vld [vmem:[#allocation140_spill] sm:$0xff] }
 0x824   :  { %v5287_v15 = vmul.f32 -1.442695, %v3699_v0  ;;  %v3706_v19 = vadd.f32 %v3627_v22, %v3486_v45  ;;  %v3400_v0 = vadd.f32 %v3321_v32, %v3180_v42  ;;  %v13198_v42 = vld [vmem:[#allocation147_spill] sm:$0xff] }
 0x826   :  { %7069 = vpow2.f32 %v5287_v15  ;;  %v5288_v49 = vmul.f32 -1.442695, %v3706_v19  ;;  %v5286_v15 = vmul.f32 -1.442695, %v3400_v0  ;;  %v13199_v0 = vld [vmem:[#allocation148_spill] sm:$0xff] }
 0x828   :  { %7071 = vpow2.f32 %v5288_v49 }
 0x833   :  { %v7070_v62 = vpop.eup %7069 }
 0x834   :  { %v3703_v9 = vadd.f32 1.0, %v7070_v62 }
 0x835   :  { %v7072_v46 = vpop.eup %7071 }
 0x836   :  { %7073 = vrcp.f32 %v3703_v9  ;;  %v3710_v4 = vadd.f32 1.0, %v7072_v46  ;;  %v13192_v9 = vld [vmem:[#allocation141_spill] sm:$0xff]  ;;  %v13193_v46 = vld [vmem:[#allocation142_spill] sm:$0xff] }
 0x838   :  { %7075 = vrcp.f32 %v3710_v4  ;;  %v13189_v4 = vld [vmem:[#allocation138_spill] sm:$0xff] }
 0x843   :  { %v7074_v1 = vpop.eup %7073 }
 0x844   :  { %v3713_v43 = vmul.f32 %v7074_v1, %v3696_v55  ;;  %v13194_v55 = vld [vmem:[#allocation143_spill] sm:$0xff]  ;;  %v13195_v1 = vld [vmem:[#allocation144_spill] sm:$0xff] }
 0x845   :  { %v7076_v22 = vpop.eup %7075 }
 0x846   :  { %v3714_v34 = vadd.f32 %v3713_v43, %v3555_v48  ;;  %v3716_v45 = vsub.f32 1.0, %v7076_v22  ;;  %v3718_v10 = vmul.f32 %v7076_v22, %v10398_v39  ;;  %v13196_v48 = vld [vmem:[#allocation145_spill] sm:$0xff]  ;;  %v13197_v43 = vld [vmem:[#allocation146_spill] sm:$0xff] }
 0x847   :  { %v13201_v22 = vld [vmem:[#allocation150_spill] sm:$0xff] }
 0x848   :  { %7077 = vtanh.f32 %v3714_v34 }
 0x849   :  { %7079 = vpow2.f32 %v5286_v15  ;;  %v13200_v15 = vld [vmem:[#allocation149_spill] sm:$0xff] }
 0x855   :  { %v7078_v19 = vpop.eup %7077 }
 0x856   :  { %v3717_v49 = vmul.f32 %v7078_v19, %v3716_v45  ;;  %v7080_v5 = vpop.eup %7079  ;;  %v13202_v19 = vld [vmem:[#allocation151_spill] sm:$0xff] }
 0x857   :  { %v3404_v39 = vadd.f32 1.0, %v7080_v5  ;;  %v13204_v5 = vld [vmem:[#allocation154_spill] sm:$0xff] }
 0x858   :  { %v10815_v62 = vadd.f32 %v3718_v10, %v3717_v49  ;;  %v13203_v49 = vld [vmem:[#allocation152_spill] sm:$0xff] }
 0x859   :  { %7081 = vrcp.f32 %v3404_v39 }
 0x85a   :  { %3785 = vmatmul.mubr.f32.vlgmr.msra.gmra.mxu0 %v10815_v62  ;;  %6646 = vmatmul.mubr.f32.vlgmr.msra.gmra.mxu1 %v10815_v62  ;;  %7083 = vtanh.f32 %v10804_v59  ;;  %v13190_v59 = vld [vmem:[#allocation139_spill] sm:$0xff] }
 0x85b   :  { %3862 = vmatpush1.msra.mxu0 %v10402_v52  ;;  %6649 = vmatpush3.msra.mxu1 %v10405_v44  ;;  %v13176_v52 = vld [vmem:[#allocation125_spill] sm:$0xff]  ;;  %v13177_v44 = vld [vmem:[#allocation126_spill] sm:$0xff] }
 0x85c   :  { %3863 = vmatprep.subr.mxu0 %v10408_v36  ;;  %6650 = vmatprep.subr.mxu1 %v12485_v56  ;;  %v13178_v36 = vld [vmem:[#allocation127_spill] sm:$0xff] }
 0x85d   :  { %3864 = vmatpush1.msra.mxu0 %v10412_v17  ;;  %6651 = vmatpush3.msra.mxu1 %v10415_v7  ;;  %v13179_v17 = vld [vmem:[#allocation128_spill] sm:$0xff]  ;;  %v13180_v7 = vld [vmem:[#allocation129_spill] sm:$0xff] }
 0x85e   :  { %3865 = vmatprep.subr.mxu0 %v10418_v8  ;;  %6652 = vmatprep.subr.mxu1 %v12485_v56  ;;  %v13181_v8 = vld [vmem:[#allocation130_spill] sm:$0xff] }
 0x85f   :  { %3866 = vmatpush1.msra.mxu0 %v10422_v33  ;;  %6653 = vmatpush3.msra.mxu1 %v10425_v31  ;;  %v13182_v33 = vld [vmem:[#allocation131_spill] sm:$0xff]  ;;  %v13183_v31 = vld [vmem:[#allocation132_spill] sm:$0xff] }
 0x860   :  { %3867 = vmatprep.subr.mxu0 %v10428_v25  ;;  %6654 = vmatprep.subr.mxu1 %v12485_v56  ;;  %v13184_v25 = vld [vmem:[#allocation133_spill] sm:$0xff] }
 0x861   :  { %3868 = vmatpush1.msra.mxu0 %v10432_v27  ;;  %6655 = vmatpush3.msra.mxu1 %v10435_v23  ;;  %v13185_v27 = vld [vmem:[#allocation134_spill] sm:$0xff]  ;;  %v13186_v23 = vld [vmem:[#allocation135_spill] sm:$0xff] }
 0x862   :  { %3869 = vmatprep.subr.mxu0 %v10438_v26  ;;  %6656 = vmatprep.subr.mxu1 %v12485_v56  ;;  %v13187_v26 = vld [vmem:[#allocation136_spill] sm:$0xff] }
 0x863   :  { %3870 = vmatpush1.msra.mxu0 %v13176_v52  ;;  %6657 = vmatpush3.msra.mxu1 %v13177_v44  ;;  %v10913_v52 = vld [vmem:[#allocation8 + $0x130] sm:$0xff]  ;;  %v10919_v44 = vld [vmem:[#allocation8 + $0x118] sm:$0xff] }
 0x864   :  { %3871 = vmatprep.subr.mxu0 %v13178_v36  ;;  %6658 = vmatprep.subr.mxu1 %v12485_v56  ;;  %v10952_v36 = vld [vmem:[#allocation8 + $0x98] sm:$0xff] }
 0x865   :  { %3872 = vmatpush1.msra.mxu0 %v13179_v17  ;;  %6659 = vmatpush3.msra.mxu1 %v13180_v7  ;;  %v10956_v17 = vld [vmem:[#allocation8 + $0x90] sm:$0xff]  ;;  %v10959_v7 = vld [vmem:[#allocation8 + $0xa0] sm:$0xff] }
 0x866   :  { %3873 = vmatprep.subr.mxu0 %v13181_v8  ;;  %6660 = vmatprep.subr.mxu1 %v12485_v56  ;;  %v7082_v32 = vpop.eup %7081  ;;  %v10962_v8 = vld [vmem:[#allocation8 + $0x80] sm:$0xff] }
 0x867   :  { %3874 = vmatpush1.msra.mxu0 %v13182_v33  ;;  %6661 = vmatpush3.msra.mxu1 %v13183_v31  ;;  %v7084_v34 = vpop.eup %7083  ;;  %v3410_v45 = vsub.f32 1.0, %v7082_v32  ;;  %v3412_v39 = vmul.f32 %v7082_v32, %v10558_v51  ;;  %v10966_v33 = vld [vmem:[#allocation8 + $0x78] sm:$0xff]  ;;  %v10969_v31 = vld [vmem:[#allocation8 + $0x88] sm:$0xff]  ;;  %v4025_v32 = vld [vmem:[#allocation5 + $0x30] sm:$0xff] }
 0x868   :  { %3875 = vmatprep.subr.mxu0 %v13184_v25  ;;  %6662 = vmatprep.subr.mxu1 %v12485_v56  ;;  %v10972_v25 = vld [vmem:[#allocation8 + $0x68] sm:$0xff]  ;;  %v11075_v51 = vld [vmem:[#allocation10 + $0xf8] sm:$0xff] }
 0x869   :  { %3876 = vmatpush1.msra.mxu0 %v13185_v27  ;;  %6663 = vmatpush3.msra.mxu1 %v13186_v23  ;;  %v3411_v10 = vmul.f32 %v7084_v34, %v3410_v45  ;;  %v10976_v27 = vld [vmem:[#allocation8 + $0x60] sm:$0xff]  ;;  %v10979_v23 = vld [vmem:[#allocation8 + $0x70] sm:$0xff]  ;;  %13229 = vst [vmem:[#allocation37_spill] sm:$0xff] %v11075_v51 }
 0x86a   :  { %3877 = vmatprep.subr.mxu0 %v13187_v26  ;;  %6664 = vmatprep.subr.mxu1 %v12485_v56  ;;  %v10982_v26 = vld [vmem:[#allocation8 + $0x50] sm:$0xff] }
 0x86b   :  { %3878 = vmatpush1.msra.mxu0 %v13188_v2  ;;  %6665 = vmatpush3.msra.mxu1 %v13189_v4  ;;  %v10986_v2 = vld [vmem:[#allocation8 + $0x48] sm:$0xff]  ;;  %v10989_v4 = vld [vmem:[#allocation8 + $0x58] sm:$0xff]  ;;  %v11025_v34 = vld [vmem:[#allocation10 + $0x170] sm:$0xff] }
 0x86c   :  { %3879 = vmatprep.subr.mxu0 %v13190_v59  ;;  %6666 = vmatprep.subr.mxu1 %v12485_v56  ;;  %v10992_v59 = vld [vmem:[#allocation8 + $0x38] sm:$0xff]  ;;  %13214 = vst [vmem:[#allocation25_spill] sm:$0xff] %v11025_v34  ;;  %v11039_v45 = vld [vmem:[#allocation10 + $0x150] sm:$0xff] }
 0x86d   :  { %3880 = vmatpush1.msra.mxu0 %v13191_v14  ;;  %6667 = vmatpush3.msra.mxu1 %v13192_v9  ;;  %v10996_v14 = vld [vmem:[#allocation8 + $0x30] sm:$0xff]  ;;  %v10999_v9 = vld [vmem:[#allocation8 + $0x40] sm:$0xff]  ;;  %13218 = vst [vmem:[#allocation28_spill] sm:$0xff] %v11039_v45 }
 0x86e   :  { %3881 = vmatprep.subr.mxu0 %v13193_v46  ;;  %6668 = vmatprep.subr.mxu1 %v12485_v56  ;;  %v11002_v46 = vld [vmem:[#allocation8 + $0x20] sm:$0xff] }
 0x86f   :  { %3882 = vmatpush1.msra.mxu0 %v13194_v55  ;;  %6669 = vmatpush3.msra.mxu1 %v13195_v1  ;;  %v11006_v55 = vld [vmem:[#allocation8 + $0x18] sm:$0xff]  ;;  %v11009_v1 = vld [vmem:[#allocation8 + $0x28] sm:$0xff] }
 0x870   :  { %3883 = vmatprep.subr.mxu0 %v13196_v48  ;;  %6670 = vmatprep.subr.mxu1 %v12485_v56  ;;  %13210 = vst [vmem:[#allocation38_spill] sm:$0xff] %v11009_v1  ;;  %v11012_v48 = vld [vmem:[#allocation8 + $0x8] sm:$0xff] }
 0x871   :  { %3884 = vmatpush1.msra.mxu0 %v13197_v43  ;;  %6671 = vmatpush3.msra.mxu1 %v13198_v42  ;;  %13211 = vst [vmem:[#allocation23_spill] sm:$0xff] %v11012_v48  ;;  %v11016_v43 = vld [vmem:[#allocation8] sm:$0xff]  ;;  %v11020_v42 = vld [vmem:[#allocation8 + $0x10] sm:$0xff] }
 0x872   :  { %3885 = vmatprep.subr.mxu0 %v13199_v0  ;;  %6672 = vmatprep.subr.mxu1 %v12485_v56  ;;  %13212 = vst [vmem:[#allocation24_spill] sm:$0xff] %v11016_v43  ;;  %13213 = vst [vmem:[#allocation41_spill] sm:$0xff] %v11020_v42  ;;  %v11029_v0 = vld [vmem:[#allocation10 + $0x168] sm:$0xff] }
 0x873   :  { %3886 = vmatpush1.msra.mxu0 %v13200_v15  ;;  %6673 = vmatpush3.msra.mxu1 %v13201_v22  ;;  %13215 = vst [vmem:[#allocation26_spill] sm:$0xff] %v11029_v0  ;;  %v11032_v15 = vld [vmem:[#allocation10 + $0x178] sm:$0xff] }
 0x874   :  { %3887 = vmatprep.subr.mxu0 %v13202_v19  ;;  %6674 = vmatprep.subr.mxu1 %v12485_v56  ;;  %13216 = vst [vmem:[#allocation44_spill] sm:$0xff] %v11032_v15  ;;  %v11035_v22 = vld [vmem:[#allocation10 + $0x158] sm:$0xff]  ;;  %v11042_v19 = vld [vmem:[#allocation10 + $0x160] sm:$0xff] }
 0x875   :  { %3888 = vmatpush1.msra.mxu0 %v13203_v49  ;;  %6675 = vmatpush3.msra.mxu1 %v10536_v6  ;;  %v10883_v6 = vadd.f32 %v3412_v39, %v3411_v10  ;;  %13217 = vst [vmem:[#allocation27_spill] sm:$0xff] %v11035_v22  ;;  %13219 = vst [vmem:[#allocation47_spill] sm:$0xff] %v11042_v19  ;;  %v11045_v49 = vld [vmem:[#allocation10 + $0x140] sm:$0xff]  ;;  %v11049_v10 = vld [vmem:[#allocation10 + $0x138] sm:$0xff] }
 0x876   :  { %3889 = vmatprep.subr.mxu0 %v10539_v50  ;;  %6676 = vmatprep.subr.mxu1 %v12485_v56  ;;  %v10890_v50 = vld [vmem:[#allocation8 + $0x170] sm:$0xff]  ;;  %13220 = vst [vmem:[#allocation29_spill] sm:$0xff] %v11045_v49  ;;  %13221 = vst [vmem:[#allocation30_spill] sm:$0xff] %v11049_v10  ;;  %v11055_v39 = vld [vmem:[#allocation10 + $0x128] sm:$0xff] }
 0x877   :  { %3890 = vmatpush1.msra.mxu0 %v13204_v5  ;;  %6677 = vmatpush3.msra.mxu1 %v10546_v30  ;;  %13205 = vst [vmem:[#allocation22_spill] sm:$0xff] %v10883_v6  ;;  %v13206_v30 = vld [vmem:[#allocation156_spill] sm:$0xff]  ;;  %v11052_v5 = vld [vmem:[#allocation10 + $0x148] sm:$0xff]  ;;  %13223 = vst [vmem:[#allocation31_spill] sm:$0xff] %v11055_v39 }
 0x878   :  { %3891 = vmatprep.subr.mxu0 %v10550_v28  ;;  %6678 = vmatprep.subr.mxu1 %v12485_v56  ;;  %v10895_v28 = vld [vmem:[#allocation8 + $0x178] sm:$0xff]  ;;  %13222 = vst [vmem:[#allocation50_spill] sm:$0xff] %v11052_v5 }
 0x879   :  { %3892 = vmatpush1.msra.mxu0 %v10554_v60  ;;  %3925 = vmatprep.mubr.f32.mxu0 %v12485_v56  ;;  %v13207_v60 = vld [vmem:[#allocation157_spill] sm:$0xff] }
 0x87a   :  { %6679 = vmatpush3.msra.mxu1 %v10560_v29  ;;  %6680 = vmatprep.mubr.msk.f32.mxu1 %vm7863_vm0, %v12485_v56  ;;  %v10901_v29 = vld [vmem:[#allocation8 + $0x160] sm:$0xff] }
 0x87b   :  { %3926 = vmatmul.mubr.f32.vlgmr.msra.gmra.mxu0 %v10883_v6  ;;  %6681 = vmatmul.mubr.f32.vlgmr.msra.gmra.mxu1 %v10883_v6 }
 0x87c   :  { %4026 = vmatprep.subr.mxu0 %v10890_v50  ;;  %6683 = vmatprep.subr.mxu1 %v12485_v56 }
 0x87d   :  { %4027 = vmatpush1.msra.mxu0 %v10569_v63  ;;  %6684 = vmatpush3.msra.mxu1 %v10895_v28  ;;  %v10907_v63 = vld [vmem:[#allocation8 + $0x148] sm:$0xff] }
 0x87e   :  { %4028 = vmatprep.subr.mxu0 %v10573_v57  ;;  %6685 = vmatprep.subr.mxu1 %v12485_v56  ;;  %v13208_v57 = vld [vmem:[#allocation158_spill] sm:$0xff] }
 0x87f   :  { %4029 = vmatpush1.msra.mxu0 %v13206_v30  ;;  %6686 = vmatpush3.msra.mxu1 %v10901_v29  ;;  %v11059_v30 = vld [vmem:[#allocation10 + $0x120] sm:$0xff] }
 0x880   :  { %4030 = vmatprep.subr.mxu0 %v10581_v13  ;;  %6687 = vmatprep.subr.mxu1 %v12485_v56  ;;  %v13209_v13 = vld [vmem:[#allocation159_spill] sm:$0xff]  ;;  %13224 = vst [vmem:[#allocation33_spill] sm:$0xff] %v11059_v30 }
 0x881   :  { %4031 = vmatpush1.msra.mxu0 %v13207_v60  ;;  %6688 = vmatpush3.msra.mxu1 %v10907_v63  ;;  %v11062_v60 = vld [vmem:[#allocation10 + $0x130] sm:$0xff] }
 0x882   :  { %4032 = vmatprep.subr.mxu0 %v10589_v18  ;;  %6689 = vmatprep.subr.mxu1 %v12485_v56  ;;  %v10925_v18 = vld [vmem:[#allocation8 + $0x100] sm:$0xff]  ;;  %13225 = vst [vmem:[#allocation52_spill] sm:$0xff] %v11062_v60 }
 0x883   :  { %4033 = vmatpush1.msra.mxu0 %v13208_v57  ;;  %6690 = vmatpush3.msra.mxu1 %v10913_v52  ;;  %v11065_v57 = vld [vmem:[#allocation10 + $0x110] sm:$0xff] }
 0x884   :  { %4034 = vmatprep.subr.mxu0 %v10597_v38  ;;  %6691 = vmatprep.subr.mxu1 %v12485_v56  ;;  %v10931_v38 = vld [vmem:[#allocation8 + $0xe8] sm:$0xff]  ;;  %13226 = vst [vmem:[#allocation34_spill] sm:$0xff] %v11065_v57 }
 0x885   :  { %4035 = vmatpush1.msra.mxu0 %v13209_v13  ;;  %6692 = vmatpush3.msra.mxu1 %v10919_v44  ;;  %v11069_v13 = vld [vmem:[#allocation10 + $0x108] sm:$0xff] }
 0x886   :  { %4036 = vmatprep.subr.mxu0 %v10605_v12  ;;  %6693 = vmatprep.subr.mxu1 %v12485_v56  ;;  %v10936_v12 = vld [vmem:[#allocation8 + $0xc0] sm:$0xff]  ;;  %13227 = vst [vmem:[#allocation36_spill] sm:$0xff] %v11069_v13 }
 0x887   :  { %4037 = vmatpush1.msra.mxu0 %v10609_v54  ;;  %6694 = vmatpush3.msra.mxu1 %v10925_v18  ;;  %v10939_v54 = vld [vmem:[#allocation8 + $0xd0] sm:$0xff] }
 0x888   :  { %4038 = vmatprep.subr.mxu0 %v10613_v20  ;;  %6695 = vmatprep.subr.mxu1 %v12485_v56  ;;  %v10942_v20 = vld [vmem:[#allocation8 + $0xb0] sm:$0xff] }
 0x889   :  { %4039 = vmatpush1.msra.mxu0 %v10617_v41  ;;  %6696 = vmatpush3.msra.mxu1 %v10931_v38  ;;  %v10946_v41 = vld [vmem:[#allocation8 + $0xa8] sm:$0xff] }
 0x88a   :  { %4040 = vmatprep.subr.mxu0 %v10621_v40  ;;  %6697 = vmatprep.subr.mxu1 %v12485_v56  ;;  %v10949_v40 = vld [vmem:[#allocation8 + $0xb8] sm:$0xff] }
 0x88b   :  { %4041 = vmatpush1.msra.mxu0 %v10936_v12  ;;  %6698 = vmatpush3.msra.mxu1 %v10939_v54 }
 0x88c   :  { %4042 = vmatprep.subr.mxu0 %v10942_v20  ;;  %6699 = vmatprep.subr.mxu1 %v12485_v56 }
 0x88d   :  { %4043 = vmatpush1.msra.mxu0 %v10946_v41  ;;  %6700 = vmatpush3.msra.mxu1 %v10949_v40 }
 0x88e   :  { %4044 = vmatprep.subr.mxu0 %v10952_v36  ;;  %6701 = vmatprep.subr.mxu1 %v12485_v56 }
 0x88f   :  { %4045 = vmatpush1.msra.mxu0 %v10956_v17  ;;  %6702 = vmatpush3.msra.mxu1 %v10959_v7 }
 0x890   :  { %4046 = vmatprep.subr.mxu0 %v10962_v8  ;;  %6703 = vmatprep.subr.mxu1 %v12485_v56 }
 0x891   :  { %4047 = vmatpush1.msra.mxu0 %v10966_v33  ;;  %6704 = vmatpush3.msra.mxu1 %v10969_v31 }
 0x892   :  { %4048 = vmatprep.subr.mxu0 %v10972_v25  ;;  %6705 = vmatprep.subr.mxu1 %v12485_v56 }
 0x893   :  { %4049 = vmatpush1.msra.mxu0 %v10976_v27  ;;  %6706 = vmatpush3.msra.mxu1 %v10979_v23 }
 0x894   :  { %4050 = vmatprep.subr.mxu0 %v10982_v26  ;;  %6707 = vmatprep.subr.mxu1 %v12485_v56 }
 0x895   :  { %4051 = vmatpush1.msra.mxu0 %v10986_v2  ;;  %6708 = vmatpush3.msra.mxu1 %v10989_v4 }
 0x896   :  { %4052 = vmatprep.subr.mxu0 %v10992_v59  ;;  %6709 = vmatprep.subr.mxu1 %v12485_v56 }
 0x897   :  { %4053 = vmatpush1.msra.mxu0 %v10996_v14  ;;  %6710 = vmatpush3.msra.mxu1 %v10999_v9 }
 0x898   :  { %4054 = vmatprep.subr.mxu0 %v11002_v46  ;;  %6711 = vmatprep.subr.mxu1 %v12485_v56 }
 0x899   :  { %4055 = vmatpush1.msra.mxu0 %v11006_v55  ;;  %6712 = vmatpush3.msra.mxu1 %v11009_v1 }
 0x89a   :  { %4056 = vmatprep.subr.mxu0 %v11012_v48  ;;  %6713 = vmatprep.subr.mxu1 %v12485_v56 }
 0x89b   :  { %4057 = vmatpush1.msra.mxu0 %v11016_v43  ;;  %4090 = vmatprep.mubr.f32.mxu0 %v12485_v56 }
 0x89c   :  { %6714 = vmatpush3.msra.mxu1 %v11020_v42  ;;  %4091 = vmatmul.mubr.f32.vlgmr.msra.gmra.mxu0 %v4025_v32 }
 0x89d   :  { %6715 = vmatprep.mubr.msk.f32.mxu1 %vm7863_vm0, %v12485_v56  ;;  %4167 = vmatprep.subr.mxu0 %v11025_v34 }
 0x89e   :  { %6718 = vmatprep.subr.mxu1 %v12485_v56  ;;  %6716 = vmatmul.mubr.f32.vlgmr.msra.gmra.mxu1 %v4025_v32  ;;  %v11072_v32 = vld [vmem:[#allocation10 + $0x118] sm:$0xff] }
 0x89f   :  { %4168 = vmatpush1.msra.mxu0 %v11029_v0  ;;  %6719 = vmatpush3.msra.mxu1 %v11032_v15  ;;  %13228 = vst [vmem:[#allocation53_spill] sm:$0xff] %v11072_v32 }
 0x8a0   :  { %4169 = vmatprep.subr.mxu0 %v11035_v22  ;;  %6720 = vmatprep.subr.mxu1 %v12485_v56 }
 0x8a1   :  { %4170 = vmatpush1.msra.mxu0 %v11039_v45  ;;  %6721 = vmatpush3.msra.mxu1 %v11042_v19 }
 0x8a2   :  { %4171 = vmatprep.subr.mxu0 %v11045_v49  ;;  %6722 = vmatprep.subr.mxu1 %v12485_v56 }
 0x8a3   :  { %4172 = vmatpush1.msra.mxu0 %v11049_v10  ;;  %6723 = vmatpush3.msra.mxu1 %v11052_v5 }
 0x8a4   :  { %4173 = vmatprep.subr.mxu0 %v11055_v39  ;;  %6724 = vmatprep.subr.mxu1 %v12485_v56 }
 0x8a5   :  { %4174 = vmatpush1.msra.mxu0 %v11059_v30  ;;  %6725 = vmatpush3.msra.mxu1 %v11062_v60  ;;  %v11079_v60 = vld [vmem:[#allocation10 + $0xf0] sm:$0xff]  ;;  %v11085_v30 = vld [vmem:[#allocation10 + $0xe0] sm:$0xff] }
 0x8a6   :  { %4175 = vmatprep.subr.mxu0 %v11065_v57  ;;  %6726 = vmatprep.subr.mxu1 %v12485_v56  ;;  %13230 = vst [vmem:[#allocation39_spill] sm:$0xff] %v11079_v60  ;;  %v11082_v57 = vld [vmem:[#allocation10 + $0x100] sm:$0xff]  ;;  %13232 = vst [vmem:[#allocation40_spill] sm:$0xff] %v11085_v30 }
 0x8a7   :  { %4176 = vmatpush1.msra.mxu0 %v11069_v13  ;;  %6727 = vmatpush3.msra.mxu1 %v11072_v32  ;;  %13231 = vst [vmem:[#allocation54_spill] sm:$0xff] %v11082_v57  ;;  %v11089_v32 = vld [vmem:[#allocation10 + $0xd8] sm:$0xff]  ;;  %v11095_v13 = vld [vmem:[#allocation10 + $0xc8] sm:$0xff] }
 0x8a8   :  { %4177 = vmatprep.subr.mxu0 %v11075_v51  ;;  %6728 = vmatprep.subr.mxu1 %v12485_v56  ;;  %13233 = vst [vmem:[#allocation42_spill] sm:$0xff] %v11089_v32  ;;  %v11092_v51 = vld [vmem:[#allocation10 + $0xe8] sm:$0xff]  ;;  %13235 = vst [vmem:[#allocation43_spill] sm:$0xff] %v11095_v13 }
 0x8a9   :  { %4178 = vmatpush1.msra.mxu0 %v11079_v60  ;;  %6729 = vmatpush3.msra.mxu1 %v11082_v57  ;;  %13234 = vst [vmem:[#allocation55_spill] sm:$0xff] %v11092_v51  ;;  %v11099_v57 = vld [vmem:[#allocation10 + $0xc0] sm:$0xff]  ;;  %v11105_v60 = vld [vmem:[#allocation10 + $0xb0] sm:$0xff] }
 0x8aa   :  { %4179 = vmatprep.subr.mxu0 %v11085_v30  ;;  %6730 = vmatprep.subr.mxu1 %v12485_v56  ;;  %13236 = vst [vmem:[#allocation45_spill] sm:$0xff] %v11099_v57  ;;  %v11102_v30 = vld [vmem:[#allocation10 + $0xd0] sm:$0xff]  ;;  %13238 = vst [vmem:[#allocation46_spill] sm:$0xff] %v11105_v60 }
 0x8ab   :  { %4180 = vmatpush1.msra.mxu0 %v11089_v32  ;;  %6731 = vmatpush3.msra.mxu1 %v11092_v51  ;;  %13237 = vst [vmem:[#allocation56_spill] sm:$0xff] %v11102_v30  ;;  %v11109_v51 = vld [vmem:[#allocation10 + $0xa8] sm:$0xff]  ;;  %v11115_v32 = vld [vmem:[#allocation10 + $0x98] sm:$0xff] }
 0x8ac   :  { %4181 = vmatprep.subr.mxu0 %v11095_v13  ;;  %6732 = vmatprep.subr.mxu1 %v12485_v56  ;;  %13239 = vst [vmem:[#allocation48_spill] sm:$0xff] %v11109_v51  ;;  %v11112_v13 = vld [vmem:[#allocation10 + $0xb8] sm:$0xff]  ;;  %13241 = vst [vmem:[#allocation49_spill] sm:$0xff] %v11115_v32 }
 0x8ad   :  { %4182 = vmatpush1.msra.mxu0 %v11099_v57  ;;  %6733 = vmatpush3.msra.mxu1 %v11102_v30  ;;  %13240 = vst [vmem:[#allocation57_spill] sm:$0xff] %v11112_v13  ;;  %v11119_v30 = vld [vmem:[#allocation10 + $0x90] sm:$0xff]  ;;  %v11125_v57 = vld [vmem:[#allocation10 + $0x80] sm:$0xff] }
 0x8ae   :  { %4183 = vmatprep.subr.mxu0 %v11105_v60  ;;  %6734 = vmatprep.subr.mxu1 %v12485_v56  ;;  %13242 = vst [vmem:[#allocation51_spill] sm:$0xff] %v11119_v30  ;;  %v11122_v60 = vld [vmem:[#allocation10 + $0xa0] sm:$0xff]  ;;  %13244 = vst [vmem:[#allocation59_spill] sm:$0xff] %v11125_v57 }
 0x8af   :  { %4184 = vmatpush1.msra.mxu0 %v11109_v51  ;;  %6735 = vmatpush3.msra.mxu1 %v11112_v13  ;;  %13243 = vst [vmem:[#allocation58_spill] sm:$0xff] %v11122_v60  ;;  %v11129_v13 = vld [vmem:[#allocation10 + $0x78] sm:$0xff]  ;;  %v11135_v51 = vld [vmem:[#allocation10 + $0x68] sm:$0xff] }
 0x8b0   :  { %4185 = vmatprep.subr.mxu0 %v11115_v32  ;;  %6736 = vmatprep.subr.mxu1 %v12485_v56  ;;  %13245 = vst [vmem:[#allocation60_spill] sm:$0xff] %v11129_v13  ;;  %v11132_v32 = vld [vmem:[#allocation10 + $0x88] sm:$0xff]  ;;  %13247 = vst [vmem:[#allocation62_spill] sm:$0xff] %v11135_v51 }
 0x8b1   :  { %4186 = vmatpush1.msra.mxu0 %v11119_v30  ;;  %6737 = vmatpush3.msra.mxu1 %v11122_v60  ;;  %13246 = vst [vmem:[#allocation61_spill] sm:$0xff] %v11132_v32  ;;  %v11139_v60 = vld [vmem:[#allocation10 + $0x60] sm:$0xff]  ;;  %v11145_v30 = vld [vmem:[#allocation10 + $0x50] sm:$0xff] }
 0x8b2   :  { %4187 = vmatprep.subr.mxu0 %v11125_v57  ;;  %6738 = vmatprep.subr.mxu1 %v12485_v56  ;;  %13248 = vst [vmem:[#allocation63_spill] sm:$0xff] %v11139_v60  ;;  %v11142_v57 = vld [vmem:[#allocation10 + $0x70] sm:$0xff]  ;;  %13250 = vst [vmem:[#allocation65_spill] sm:$0xff] %v11145_v30 }
 0x8b3   :  { %4188 = vmatpush1.msra.mxu0 %v11129_v13  ;;  %6739 = vmatpush3.msra.mxu1 %v11132_v32  ;;  %13249 = vst [vmem:[#allocation64_spill] sm:$0xff] %v11142_v57  ;;  %v11149_v32 = vld [vmem:[#allocation10 + $0x48] sm:$0xff]  ;;  %v11155_v13 = vld [vmem:[#allocation10 + $0x38] sm:$0xff] }
 0x8b4   :  { %4189 = vmatprep.subr.mxu0 %v11135_v51  ;;  %6740 = vmatprep.subr.mxu1 %v12485_v56  ;;  %13251 = vst [vmem:[#allocation67_spill] sm:$0xff] %v11149_v32  ;;  %v11152_v51 = vld [vmem:[#allocation10 + $0x58] sm:$0xff]  ;;  %13253 = vst [vmem:[#allocation68_spill] sm:$0xff] %v11155_v13 }
 0x8b5   :  { %4190 = vmatpush1.msra.mxu0 %v11139_v60  ;;  %6741 = vmatpush3.msra.mxu1 %v11142_v57  ;;  %13252 = vst [vmem:[#allocation66_spill] sm:$0xff] %v11152_v51  ;;  %v11159_v57 = vld [vmem:[#allocation10 + $0x30] sm:$0xff]  ;;  %v11165_v60 = vld [vmem:[#allocation10 + $0x20] sm:$0xff] }
 0x8b6   :  { %4191 = vmatprep.subr.mxu0 %v11145_v30  ;;  %6742 = vmatprep.subr.mxu1 %v12485_v56  ;;  %13254 = vst [vmem:[#allocation69_spill] sm:$0xff] %v11159_v57  ;;  %v11162_v30 = vld [vmem:[#allocation10 + $0x40] sm:$0xff]  ;;  %13256 = vst [vmem:[#allocation71_spill] sm:$0xff] %v11165_v60 }
 0x8b7   :  { %4192 = vmatpush1.msra.mxu0 %v11149_v32  ;;  %6743 = vmatpush3.msra.mxu1 %v11152_v51  ;;  %13255 = vst [vmem:[#allocation70_spill] sm:$0xff] %v11162_v30  ;;  %v11169_v51 = vld [vmem:[#allocation10 + $0x18] sm:$0xff]  ;;  %v11175_v32 = vld [vmem:[#allocation10 + $0x8] sm:$0xff] }
 0x8b8   :  { %4193 = vmatprep.subr.mxu0 %v11155_v13  ;;  %6744 = vmatprep.subr.mxu1 %v12485_v56  ;;  %13257 = vst [vmem:[#allocation72_spill] sm:$0xff] %v11169_v51  ;;  %v11172_v13 = vld [vmem:[#allocation10 + $0x28] sm:$0xff]  ;;  %13259 = vst [vmem:[#allocation74_spill] sm:$0xff] %v11175_v32 }
 0x8b9   :  { %4194 = vmatpush1.msra.mxu0 %v11159_v57  ;;  %6745 = vmatpush3.msra.mxu1 %v11162_v30  ;;  %13258 = vst [vmem:[#allocation73_spill] sm:$0xff] %v11172_v13  ;;  %v11179_v30 = vld [vmem:[#allocation10] sm:$0xff] }
 0x8ba   :  { %4195 = vmatprep.subr.mxu0 %v11165_v60  ;;  %6746 = vmatprep.subr.mxu1 %v12485_v56  ;;  %13260 = vst [vmem:[#allocation75_spill] sm:$0xff] %v11179_v30  ;;  %v11183_v60 = vld [vmem:[#allocation10 + $0x10] sm:$0xff]  ;;  %v11210_v57 = vld [vmem:[#allocation11 + $0x140] sm:$0xff] }
 0x8bb   :  { %4196 = vmatpush1.msra.mxu0 %v11169_v51  ;;  %6747 = vmatpush3.msra.mxu1 %v11172_v13  ;;  %13261 = vst [vmem:[#allocation76_spill] sm:$0xff] %v11183_v60  ;;  %v11197_v13 = vld [vmem:[#allocation11 + $0x178] sm:$0xff]  ;;  %v11204_v51 = vld [vmem:[#allocation11 + $0x150] sm:$0xff]  ;;  %13268 = vst [vmem:[#allocation83_spill] sm:$0xff] %v11210_v57 }
 0x8bc   :  { %4197 = vmatprep.subr.mxu0 %v11175_v32  ;;  %6748 = vmatprep.subr.mxu1 %v12485_v56  ;;  %v11190_v32 = vld [vmem:[#allocation11 + $0x170] sm:$0xff]  ;;  %13264 = vst [vmem:[#allocation79_spill] sm:$0xff] %v11197_v13  ;;  %13266 = vst [vmem:[#allocation81_spill] sm:$0xff] %v11204_v51 }
 0x8bd   :  { %4198 = vmatpush1.msra.mxu0 %v11179_v30  ;;  %4231 = vmatprep.mubr.f32.mxu0 %v12485_v56  ;;  %13262 = vst [vmem:[#allocation77_spill] sm:$0xff] %v11190_v32  ;;  %v11194_v30 = vld [vmem:[#allocation11 + $0x168] sm:$0xff] }
 0x8be   :  { %6749 = vmatpush3.msra.mxu1 %v11183_v60  ;;  %6750 = vmatprep.mubr.msk.f32.mxu1 %vm7863_vm0, %v12485_v56  ;;  %13263 = vst [vmem:[#allocation78_spill] sm:$0xff] %v11194_v30  ;;  %v11200_v60 = vld [vmem:[#allocation11 + $0x158] sm:$0xff] }
 0x8bf   :  { %4232 = vmatmul.mubr.f32.vlgmr.msra.gmra.mxu0 %v10815_v62  ;;  %6751 = vmatmul.mubr.f32.vlgmr.msra.gmra.mxu1 %v10815_v62  ;;  %13265 = vst [vmem:[#allocation80_spill] sm:$0xff] %v11200_v60 }
 0x8c0   :  { %4329 = vmatprep.subr.mxu0 %v11190_v32  ;;  %6753 = vmatprep.subr.mxu1 %v12485_v56  ;;  %v11207_v32 = vld [vmem:[#allocation11 + $0x160] sm:$0xff] }
 0x8c1   :  { %4330 = vmatpush1.msra.mxu0 %v11194_v30  ;;  %6754 = vmatpush3.msra.mxu1 %v11197_v13  ;;  %13267 = vst [vmem:[#allocation82_spill] sm:$0xff] %v11207_v32  ;;  %v11214_v13 = vld [vmem:[#allocation11 + $0x138] sm:$0xff]  ;;  %v11220_v30 = vld [vmem:[#allocation11 + $0x128] sm:$0xff] }
 0x8c2   :  { %4331 = vmatprep.subr.mxu0 %v11200_v60  ;;  %6755 = vmatprep.subr.mxu1 %v12485_v56  ;;  %13269 = vst [vmem:[#allocation84_spill] sm:$0xff] %v11214_v13  ;;  %v11217_v60 = vld [vmem:[#allocation11 + $0x148] sm:$0xff]  ;;  %13271 = vst [vmem:[#allocation86_spill] sm:$0xff] %v11220_v30 }
 0x8c3   :  { %4332 = vmatpush1.msra.mxu0 %v11204_v51  ;;  %6756 = vmatpush3.msra.mxu1 %v11207_v32  ;;  %13270 = vst [vmem:[#allocation85_spill] sm:$0xff] %v11217_v60  ;;  %v11224_v32 = vld [vmem:[#allocation11 + $0x120] sm:$0xff]  ;;  %v11230_v51 = vld [vmem:[#allocation11 + $0x110] sm:$0xff] }
 0x8c4   :  { %4333 = vmatprep.subr.mxu0 %v11210_v57  ;;  %6757 = vmatprep.subr.mxu1 %v12485_v56  ;;  %13272 = vst [vmem:[#allocation87_spill] sm:$0xff] %v11224_v32  ;;  %v11227_v57 = vld [vmem:[#allocation11 + $0x130] sm:$0xff]  ;;  %13274 = vst [vmem:[#allocation89_spill] sm:$0xff] %v11230_v51 }
 0x8c5   :  { %4334 = vmatpush1.msra.mxu0 %v11214_v13  ;;  %6758 = vmatpush3.msra.mxu1 %v11217_v60  ;;  %13273 = vst [vmem:[#allocation88_spill] sm:$0xff] %v11227_v57  ;;  %v11234_v60 = vld [vmem:[#allocation11 + $0x108] sm:$0xff]  ;;  %v11240_v13 = vld [vmem:[#allocation11 + $0xf8] sm:$0xff] }
 0x8c6   :  { %4335 = vmatprep.subr.mxu0 %v11220_v30  ;;  %6759 = vmatprep.subr.mxu1 %v12485_v56  ;;  %13275 = vst [vmem:[#allocation90_spill] sm:$0xff] %v11234_v60  ;;  %v11237_v30 = vld [vmem:[#allocation11 + $0x118] sm:$0xff]  ;;  %13277 = vst [vmem:[#allocation92_spill] sm:$0xff] %v11240_v13 }
 0x8c7   :  { %4336 = vmatpush1.msra.mxu0 %v11224_v32  ;;  %6760 = vmatpush3.msra.mxu1 %v11227_v57  ;;  %13276 = vst [vmem:[#allocation91_spill] sm:$0xff] %v11237_v30  ;;  %v11244_v57 = vld [vmem:[#allocation11 + $0xf0] sm:$0xff]  ;;  %v11250_v32 = vld [vmem:[#allocation11 + $0xe0] sm:$0xff] }
 0x8c8   :  { %4337 = vmatprep.subr.mxu0 %v11230_v51  ;;  %6761 = vmatprep.subr.mxu1 %v12485_v56  ;;  %13278 = vst [vmem:[#allocation93_spill] sm:$0xff] %v11244_v57  ;;  %v11247_v51 = vld [vmem:[#allocation11 + $0x100] sm:$0xff]  ;;  %13280 = vst [vmem:[#allocation95_spill] sm:$0xff] %v11250_v32 }
 0x8c9   :  { %4338 = vmatpush1.msra.mxu0 %v11234_v60  ;;  %6762 = vmatpush3.msra.mxu1 %v11237_v30  ;;  %13279 = vst [vmem:[#allocation94_spill] sm:$0xff] %v11247_v51  ;;  %v11254_v30 = vld [vmem:[#allocation11 + $0xd8] sm:$0xff]  ;;  %v11260_v60 = vld [vmem:[#allocation11 + $0xc8] sm:$0xff] }
 0x8ca   :  { %4339 = vmatprep.subr.mxu0 %v11240_v13  ;;  %6763 = vmatprep.subr.mxu1 %v12485_v56  ;;  %13281 = vst [vmem:[#allocation96_spill] sm:$0xff] %v11254_v30  ;;  %v11257_v13 = vld [vmem:[#allocation11 + $0xe8] sm:$0xff]  ;;  %13283 = vst [vmem:[#allocation98_spill] sm:$0xff] %v11260_v60 }
 0x8cb   :  { %4340 = vmatpush1.msra.mxu0 %v11244_v57  ;;  %6764 = vmatpush3.msra.mxu1 %v11247_v51  ;;  %13282 = vst [vmem:[#allocation97_spill] sm:$0xff] %v11257_v13  ;;  %v11264_v51 = vld [vmem:[#allocation11 + $0xc0] sm:$0xff]  ;;  %v11270_v57 = vld [vmem:[#allocation11 + $0xb0] sm:$0xff] }
 0x8cc   :  { %4341 = vmatprep.subr.mxu0 %v11250_v32  ;;  %6765 = vmatprep.subr.mxu1 %v12485_v56  ;;  %13284 = vst [vmem:[#allocation99_spill] sm:$0xff] %v11264_v51  ;;  %v11267_v32 = vld [vmem:[#allocation11 + $0xd0] sm:$0xff]  ;;  %13286 = vst [vmem:[#allocation101_spill] sm:$0xff] %v11270_v57 }
 0x8cd   :  { %4342 = vmatpush1.msra.mxu0 %v11254_v30  ;;  %6766 = vmatpush3.msra.mxu1 %v11257_v13  ;;  %13285 = vst [vmem:[#allocation100_spill] sm:$0xff] %v11267_v32  ;;  %v11274_v13 = vld [vmem:[#allocation11 + $0xa8] sm:$0xff]  ;;  %v11280_v30 = vld [vmem:[#allocation11 + $0x98] sm:$0xff] }
 0x8ce   :  { %4343 = vmatprep.subr.mxu0 %v11260_v60  ;;  %6767 = vmatprep.subr.mxu1 %v12485_v56  ;;  %13287 = vst [vmem:[#allocation102_spill] sm:$0xff] %v11274_v13  ;;  %v11277_v60 = vld [vmem:[#allocation11 + $0xb8] sm:$0xff]  ;;  %13289 = vst [vmem:[#allocation104_spill] sm:$0xff] %v11280_v30 }
 0x8cf   :  { %4344 = vmatpush1.msra.mxu0 %v11264_v51  ;;  %6768 = vmatpush3.msra.mxu1 %v11267_v32  ;;  %13288 = vst [vmem:[#allocation103_spill] sm:$0xff] %v11277_v60  ;;  %v11284_v32 = vld [vmem:[#allocation11 + $0x90] sm:$0xff]  ;;  %v11290_v51 = vld [vmem:[#allocation11 + $0x80] sm:$0xff] }
 0x8d0   :  { %4345 = vmatprep.subr.mxu0 %v11270_v57  ;;  %6769 = vmatprep.subr.mxu1 %v12485_v56  ;;  %13290 = vst [vmem:[#allocation105_spill] sm:$0xff] %v11284_v32  ;;  %v11287_v57 = vld [vmem:[#allocation11 + $0xa0] sm:$0xff]  ;;  %13292 = vst [vmem:[#allocation107_spill] sm:$0xff] %v11290_v51 }
 0x8d1   :  { %4346 = vmatpush1.msra.mxu0 %v11274_v13  ;;  %6770 = vmatpush3.msra.mxu1 %v11277_v60  ;;  %13291 = vst [vmem:[#allocation106_spill] sm:$0xff] %v11287_v57  ;;  %v11294_v60 = vld [vmem:[#allocation11 + $0x78] sm:$0xff]  ;;  %v11300_v13 = vld [vmem:[#allocation11 + $0x68] sm:$0xff] }
 0x8d2   :  { %4347 = vmatprep.subr.mxu0 %v11280_v30  ;;  %6771 = vmatprep.subr.mxu1 %v12485_v56  ;;  %13293 = vst [vmem:[#allocation108_spill] sm:$0xff] %v11294_v60  ;;  %v11297_v30 = vld [vmem:[#allocation11 + $0x88] sm:$0xff]  ;;  %13295 = vst [vmem:[#allocation110_spill] sm:$0xff] %v11300_v13 }
 0x8d3   :  { %4348 = vmatpush1.msra.mxu0 %v11284_v32  ;;  %6772 = vmatpush3.msra.mxu1 %v11287_v57  ;;  %13294 = vst [vmem:[#allocation109_spill] sm:$0xff] %v11297_v30  ;;  %v11304_v57 = vld [vmem:[#allocation11 + $0x60] sm:$0xff]  ;;  %v11310_v32 = vld [vmem:[#allocation11 + $0x50] sm:$0xff] }
 0x8d4   :  { %4349 = vmatprep.subr.mxu0 %v11290_v51  ;;  %6773 = vmatprep.subr.mxu1 %v12485_v56  ;;  %13296 = vst [vmem:[#allocation111_spill] sm:$0xff] %v11304_v57  ;;  %v11307_v51 = vld [vmem:[#allocation11 + $0x70] sm:$0xff]  ;;  %13298 = vst [vmem:[#allocation113_spill] sm:$0xff] %v11310_v32 }
 0x8d5   :  { %4350 = vmatpush1.msra.mxu0 %v11294_v60  ;;  %6774 = vmatpush3.msra.mxu1 %v11297_v30  ;;  %13297 = vst [vmem:[#allocation112_spill] sm:$0xff] %v11307_v51  ;;  %v11314_v30 = vld [vmem:[#allocation11 + $0x48] sm:$0xff]  ;;  %v11320_v60 = vld [vmem:[#allocation11 + $0x38] sm:$0xff] }
 0x8d6   :  { %4351 = vmatprep.subr.mxu0 %v11300_v13  ;;  %6775 = vmatprep.subr.mxu1 %v12485_v56  ;;  %13299 = vst [vmem:[#allocation114_spill] sm:$0xff] %v11314_v30  ;;  %v11317_v13 = vld [vmem:[#allocation11 + $0x58] sm:$0xff]  ;;  %13301 = vst [vmem:[#allocation116_spill] sm:$0xff] %v11320_v60 }
 0x8d7   :  { %4352 = vmatpush1.msra.mxu0 %v11304_v57  ;;  %6776 = vmatpush3.msra.mxu1 %v11307_v51  ;;  %13300 = vst [vmem:[#allocation115_spill] sm:$0xff] %v11317_v13  ;;  %v11324_v51 = vld [vmem:[#allocation11 + $0x30] sm:$0xff]  ;;  %v11330_v57 = vld [vmem:[#allocation11 + $0x20] sm:$0xff] }
 0x8d8   :  { %4353 = vmatprep.subr.mxu0 %v11310_v32  ;;  %6777 = vmatprep.subr.mxu1 %v12485_v56  ;;  %13302 = vst [vmem:[#allocation117_spill] sm:$0xff] %v11324_v51  ;;  %v11327_v32 = vld [vmem:[#allocation11 + $0x40] sm:$0xff]  ;;  %13304 = vst [vmem:[#allocation119_spill] sm:$0xff] %v11330_v57 }
 0x8d9   :  { %4354 = vmatpush1.msra.mxu0 %v11314_v30  ;;  %6778 = vmatpush3.msra.mxu1 %v11317_v13  ;;  %13303 = vst [vmem:[#allocation118_spill] sm:$0xff] %v11327_v32  ;;  %v11334_v13 = vld [vmem:[#allocation11 + $0x18] sm:$0xff]  ;;  %v11340_v30 = vld [vmem:[#allocation11 + $0x8] sm:$0xff] }
 0x8da   :  { %4355 = vmatprep.subr.mxu0 %v11320_v60  ;;  %6779 = vmatprep.subr.mxu1 %v12485_v56  ;;  %13305 = vst [vmem:[#allocation120_spill] sm:$0xff] %v11334_v13  ;;  %v11337_v60 = vld [vmem:[#allocation11 + $0x28] sm:$0xff]  ;;  %13307 = vst [vmem:[#allocation122_spill] sm:$0xff] %v11340_v30 }
 0x8db   :  { %4356 = vmatpush1.msra.mxu0 %v11324_v51  ;;  %6780 = vmatpush3.msra.mxu1 %v11327_v32  ;;  %13306 = vst [vmem:[#allocation121_spill] sm:$0xff] %v11337_v60  ;;  %v11344_v32 = vld [vmem:[#allocation11] sm:$0xff] }
 0x8dc   :  { %4357 = vmatprep.subr.mxu0 %v11330_v57  ;;  %6781 = vmatprep.subr.mxu1 %v12485_v56  ;;  %13308 = vst [vmem:[#allocation123_spill] sm:$0xff] %v11344_v32  ;;  %v11347_v57 = vld [vmem:[#allocation11 + $0x10] sm:$0xff] }
 0x8dd   :  { %4358 = vmatpush1.msra.mxu0 %v11334_v13  ;;  %6782 = vmatpush3.msra.mxu1 %v11337_v60  ;;  %13309 = vst [vmem:[#allocation124_spill] sm:$0xff] %v11347_v57  ;;  %v11353_v60 = vld [vmem:[#allocation13 + $0x170] sm:$0xff] }
 0x8de   :  { %4359 = vmatprep.subr.mxu0 %v11340_v30  ;;  %6783 = vmatprep.subr.mxu1 %v12485_v56  ;;  %13310 = vst [vmem:[#allocation125_spill] sm:$0xff] %v11353_v60 }
 0x8df   :  { %4360 = vmatpush1.msra.mxu0 %v11344_v32  ;;  %6784 = vmatpush3.msra.mxu1 %v11347_v57 }
 0x8e0   :  { %4393 = vmatprep.mubr.f32.mxu0 %v12485_v56  ;;  %6785 = vmatprep.mubr.msk.f32.mxu1 %vm7863_vm0, %v12485_v56 }
 0x8e1   :  { %4470 = vmatprep.subr.mxu0 %v11353_v60  ;;  %6788 = vmatprep.subr.mxu1 %v12485_v56 }
 0x91a   :  { %v3857_v30 = vpop.f32.mrf.mxu1  ;;  %v3786_v51 = vpop.f32.mrf.mxu0 }
 0x91b   :  { %v3787_v10 = vadd.f32 %v3786_v51, %v13173_v24 }
 0x91c   :  { %v6647_v13 = vpop.f32.mrf.mxu1  ;;  %v3788_v39 = vpop.f32.mrf.mxu0 }
 0x91d   :  { %v13311_v13 = vld [vmem:[#allocation20_spill] sm:$0xff] }
 0x91e   :  { %v3858_v42 = vadd.f32 %v3857_v30, %v13311_v13 }
 0x93b   :  { %v3927_v32 = vpop.f32.mrf.mxu0  ;;  %v3998_v5 = vpop.f32.mrf.mxu1 }
 0x93c   :  { %v3928_v57 = vadd.f32 %v3927_v32, %v8839_v47  ;;  %v3999_v60 = vadd.f32 %v3998_v5, %v13174_v53 }
 0x93d   :  { %v6682_v49 = vpop.f32.mrf.mxu1  ;;  %v3929_v51 = vpop.f32.mrf.mxu0 }
 0x93e   :  { %v4002_v19 = vadd.f32 %v3928_v57, %v3787_v10 }
 0x940   :  { %v5289_v45 = vmul.f32 -1.442695, %v4002_v19 }
 0x942   :  { %7085 = vpow2.f32 %v5289_v45 }
 0x94f   :  { %v7086_v22 = vpop.eup %7085 }
 0x950   :  { %v4006_v15 = vadd.f32 1.0, %v7086_v22 }
 0x952   :  { %7087 = vrcp.f32 %v4006_v15 }
 0x95c   :  { %v4092_v24 = vpop.f32.mrf.mxu0 }
 0x95d   :  { %v4093_v45 = vadd.f32 %v4092_v24, %v12619_v35 }
 0x95e   :  { %v4163_v0 = vpop.f32.mrf.mxu1  ;;  %v4094_v32 = vpop.f32.mrf.mxu0 }
 0x95f   :  { %v7088_v34 = vpop.eup %7087 }
 0x960   :  { %v4016_v43 = vmul.f32 %v7088_v34, %v3999_v60  ;;  %v6717_v48 = vpop.f32.mrf.mxu1  ;;  %v4095_v34 = vadd.f32 %v4094_v32, %v8417_v16  ;;  %v3789_v32 = vadd.f32 %v3788_v39, %v8861_v21  ;;  %v11379_v39 = vld [vmem:[#allocation13 + $0x178] sm:$0xff] }
 0x962   :  { %v11361_v1 = vadd.f32 %v4016_v43, %v3858_v42 }
 0x97f   :  { %v4233_v49 = vpop.f32.mrf.mxu0  ;;  %v4304_v10 = vpop.f32.mrf.mxu1 }
 0x980   :  { %v4234_v22 = vadd.f32 %v4233_v49, %v12620_v37  ;;  %v4305_v24 = vadd.f32 %v4304_v10, %v8424_v11 }
 0x981   :  { %v4235_v15 = vpop.f32.mrf.mxu0  ;;  %v6752_v19 = vpop.f32.mrf.mxu1 }
 0x982   :  { %v4308_v5 = vadd.f32 %v4234_v22, %v4093_v45  ;;  %v4236_v53 = vadd.f32 %v4235_v15, %v8414_v61  ;;  %v3930_v19 = vadd.f32 %v3929_v51, %v8858_v3  ;;  %v4164_v45 = vadd.f32 %v4163_v0, %v8427_v58  ;;  %v11376_v0 = vld [vmem:[#allocation13 + $0x168] sm:$0xff]  ;;  %v11382_v51 = vld [vmem:[#allocation13 + $0x158] sm:$0xff] }
 0x984   :  { %v5291_v57 = vmul.f32 -1.442695, %v4308_v5  ;;  %v4315_v48 = vadd.f32 %v4236_v53, %v4095_v34  ;;  %v4009_v53 = vadd.f32 %v3930_v19, %v3789_v32  ;;  %v11399_v19 = vld [vmem:[#allocation13 + $0x148] sm:$0xff]  ;;  %v11409_v32 = vld [vmem:[#allocation13 + $0x130] sm:$0xff] }
 0x986   :  { %7089 = vpow2.f32 %v5291_v57  ;;  %v5292_v43 = vmul.f32 -1.442695, %v4315_v48  ;;  %v5290_v5 = vmul.f32 -1.442695, %v4009_v53  ;;  %v11416_v53 = vld [vmem:[#allocation13 + $0x108] sm:$0xff] }
 0x987   :  { %13312 = vst [vmem:[#allocation126_spill] sm:$0xff] %v11416_v53 }
 0x988   :  { %7091 = vpow2.f32 %v5292_v43 }
 0x993   :  { %v7090_v42 = vpop.eup %7089 }
 0x994   :  { %v4312_v30 = vadd.f32 1.0, %v7090_v42 }
 0x995   :  { %v7092_v60 = vpop.eup %7091 }
 0x996   :  { %7093 = vrcp.f32 %v4312_v30  ;;  %v4319_v13 = vadd.f32 1.0, %v7092_v60  ;;  %v11389_v30 = vld [vmem:[#allocation13 + $0x160] sm:$0xff] }
 0x997   :  { %v11392_v60 = vld [vmem:[#allocation13 + $0x140] sm:$0xff] }
 0x998   :  { %7095 = vrcp.f32 %v4319_v13 }
 0x9a3   :  { %v7094_v49 = vpop.eup %7093 }
 0x9a4   :  { %v4322_v22 = vmul.f32 %v7094_v49, %v4305_v24  ;;  %v11396_v49 = vld [vmem:[#allocation13 + $0x138] sm:$0xff] }
 0x9a5   :  { %v7096_v57 = vpop.eup %7095 }
 0x9a6   :  { %v4323_v15 = vadd.f32 %v4322_v22, %v4164_v45  ;;  %v4325_v34 = vsub.f32 1.0, %v7096_v57  ;;  %v4327_v10 = vmul.f32 %v7096_v57, %v10815_v62  ;;  %v11386_v62 = vld [vmem:[#allocation13 + $0x150] sm:$0xff]  ;;  %v11402_v45 = vld [vmem:[#allocation13 + $0x128] sm:$0xff]  ;;  %v11406_v22 = vld [vmem:[#allocation13 + $0x120] sm:$0xff] }
 0x9a7   :  { %v11422_v57 = vld [vmem:[#allocation13 + $0xf8] sm:$0xff] }
 0x9a8   :  { %7097 = vtanh.f32 %v4323_v15  ;;  %v11412_v15 = vld [vmem:[#allocation13 + $0x110] sm:$0xff]  ;;  %13314 = vst [vmem:[#allocation128_spill] sm:$0xff] %v11422_v57 }
 0x9a9   :  { %7099 = vpow2.f32 %v5290_v5  ;;  %v11419_v5 = vld [vmem:[#allocation13 + $0x118] sm:$0xff] }
 0x9aa   :  { %13313 = vst [vmem:[#allocation127_spill] sm:$0xff] %v11419_v5 }
 0x9b5   :  { %v7098_v48 = vpop.eup %7097 }
 0x9b6   :  { %v4326_v43 = vmul.f32 %v7098_v48, %v4325_v34  ;;  %v7100_v13 = vpop.eup %7099  ;;  %v11427_v34 = vld [vmem:[#allocation13 + $0xf0] sm:$0xff]  ;;  %v11430_v48 = vld [vmem:[#allocation13 + $0x100] sm:$0xff] }
 0x9b7   :  { %v4013_v24 = vadd.f32 1.0, %v7100_v13  ;;  %13315 = vst [vmem:[#allocation129_spill] sm:$0xff] %v11427_v34  ;;  %13316 = vst [vmem:[#allocation130_spill] sm:$0xff] %v11430_v48  ;;  %v11440_v13 = vld [vmem:[#allocation13 + $0xe8] sm:$0xff] }
 0x9b8   :  { %v11372_v42 = vadd.f32 %v4327_v10, %v4326_v43  ;;  %v11433_v43 = vld [vmem:[#allocation13 + $0xe0] sm:$0xff]  ;;  %v11437_v10 = vld [vmem:[#allocation13 + $0xd8] sm:$0xff]  ;;  %13319 = vst [vmem:[#allocation133_spill] sm:$0xff] %v11440_v13 }
 0x9b9   :  { %7101 = vrcp.f32 %v4013_v24  ;;  %13317 = vst [vmem:[#allocation131_spill] sm:$0xff] %v11433_v43  ;;  %13318 = vst [vmem:[#allocation132_spill] sm:$0xff] %v11437_v10  ;;  %v11447_v24 = vld [vmem:[#allocation13 + $0xc0] sm:$0xff] }
 0x9ba   :  { %4394 = vmatmul.mubr.f32.vlgmr.msra.gmra.mxu0 %v11372_v42  ;;  %6786 = vmatmul.mubr.f32.vlgmr.msra.gmra.mxu1 %v11372_v42  ;;  %7103 = vtanh.f32 %v11361_v1  ;;  %v11443_v1 = vld [vmem:[#allocation13 + $0xc8] sm:$0xff]  ;;  %13321 = vst [vmem:[#allocation135_spill] sm:$0xff] %v11447_v24 }
 0x9bb   :  { %4471 = vmatpush1.msra.mxu0 %v11376_v0  ;;  %6789 = vmatpush3.msra.mxu1 %v11379_v39  ;;  %13320 = vst [vmem:[#allocation134_spill] sm:$0xff] %v11443_v1 }
 0x9bc   :  { %4472 = vmatprep.subr.mxu0 %v11382_v51  ;;  %6790 = vmatprep.subr.mxu1 %v12485_v56 }
 0x9bd   :  { %4473 = vmatpush1.msra.mxu0 %v11386_v62  ;;  %6791 = vmatpush3.msra.mxu1 %v11389_v30 }
 0x9be   :  { %4474 = vmatprep.subr.mxu0 %v11392_v60  ;;  %6792 = vmatprep.subr.mxu1 %v12485_v56 }
 0x9bf   :  { %4475 = vmatpush1.msra.mxu0 %v11396_v49  ;;  %6793 = vmatpush3.msra.mxu1 %v11399_v19 }
 0x9c0   :  { %4476 = vmatprep.subr.mxu0 %v11402_v45  ;;  %6794 = vmatprep.subr.mxu1 %v12485_v56 }
 0x9c1   :  { %4477 = vmatpush1.msra.mxu0 %v11406_v22  ;;  %6795 = vmatpush3.msra.mxu1 %v11409_v32 }
 0x9c2   :  { %4478 = vmatprep.subr.mxu0 %v11412_v15  ;;  %6796 = vmatprep.subr.mxu1 %v12485_v56 }
 0x9c3   :  { %4479 = vmatpush1.msra.mxu0 %v11416_v53  ;;  %6797 = vmatpush3.msra.mxu1 %v11419_v5  ;;  %v11513_v5 = vld [vmem:[#allocation13 + $0x20] sm:$0xff]  ;;  %v11524_v53 = vld [vmem:[#allocation13 + $0x8] sm:$0xff] }
 0x9c4   :  { %4480 = vmatprep.subr.mxu0 %v11422_v57  ;;  %6798 = vmatprep.subr.mxu1 %v12485_v56  ;;  %v11503_v57 = vld [vmem:[#allocation13 + $0x38] sm:$0xff] }
 0x9c5   :  { %4481 = vmatpush1.msra.mxu0 %v11427_v34  ;;  %6799 = vmatpush3.msra.mxu1 %v11430_v48  ;;  %v11453_v48 = vld [vmem:[#allocation13 + $0xb0] sm:$0xff]  ;;  %13338 = vst [vmem:[#allocation152_spill] sm:$0xff] %v11503_v57 }
 0x9c6   :  { %4482 = vmatprep.subr.mxu0 %v11433_v43  ;;  %6800 = vmatprep.subr.mxu1 %v12485_v56  ;;  %v11450_v43 = vld [vmem:[#allocation13 + $0xd0] sm:$0xff]  ;;  %13323 = vst [vmem:[#allocation137_spill] sm:$0xff] %v11453_v48 }
 0x9c7   :  { %4483 = vmatpush1.msra.mxu0 %v11437_v10  ;;  %6801 = vmatpush3.msra.mxu1 %v11440_v13  ;;  %13322 = vst [vmem:[#allocation136_spill] sm:$0xff] %v11450_v43  ;;  %v11457_v13 = vld [vmem:[#allocation13 + $0xa8] sm:$0xff]  ;;  %v11463_v10 = vld [vmem:[#allocation13 + $0x98] sm:$0xff]  ;;  %v11493_v34 = vld [vmem:[#allocation13 + $0x50] sm:$0xff] }
 0x9c8   :  { %4484 = vmatprep.subr.mxu0 %v11443_v1  ;;  %6802 = vmatprep.subr.mxu1 %v12485_v56  ;;  %13324 = vst [vmem:[#allocation138_spill] sm:$0xff] %v11457_v13  ;;  %v11460_v1 = vld [vmem:[#allocation13 + $0xb8] sm:$0xff]  ;;  %13326 = vst [vmem:[#allocation140_spill] sm:$0xff] %v11463_v10 }
 0x9c9   :  { %4485 = vmatpush1.msra.mxu0 %v11447_v24  ;;  %6803 = vmatpush3.msra.mxu1 %v11450_v43  ;;  %13325 = vst [vmem:[#allocation139_spill] sm:$0xff] %v11460_v1  ;;  %v11467_v43 = vld [vmem:[#allocation13 + $0x90] sm:$0xff]  ;;  %v11473_v24 = vld [vmem:[#allocation13 + $0x80] sm:$0xff]  ;;  %13335 = vst [vmem:[#allocation149_spill] sm:$0xff] %v11493_v34 }
 0x9ca   :  { %4486 = vmatprep.subr.mxu0 %v11453_v48  ;;  %6804 = vmatprep.subr.mxu1 %v12485_v56  ;;  %13327 = vst [vmem:[#allocation141_spill] sm:$0xff] %v11467_v43  ;;  %v11470_v48 = vld [vmem:[#allocation13 + $0xa0] sm:$0xff]  ;;  %13329 = vst [vmem:[#allocation143_spill] sm:$0xff] %v11473_v24 }
 0x9cb   :  { %4487 = vmatpush1.msra.mxu0 %v11457_v13  ;;  %6805 = vmatpush3.msra.mxu1 %v11460_v1  ;;  %13328 = vst [vmem:[#allocation142_spill] sm:$0xff] %v11470_v48  ;;  %v11477_v1 = vld [vmem:[#allocation13 + $0x78] sm:$0xff]  ;;  %v7102_v13 = vpop.eup %7101 }
 0x9cc   :  { %4488 = vmatprep.subr.mxu0 %v11463_v10  ;;  %6806 = vmatprep.subr.mxu1 %v12485_v56  ;;  %13330 = vst [vmem:[#allocation144_spill] sm:$0xff] %v11477_v1  ;;  %v11480_v10 = vld [vmem:[#allocation13 + $0x88] sm:$0xff] }
 0x9cd   :  { %4489 = vmatpush1.msra.mxu0 %v11467_v43  ;;  %6807 = vmatpush3.msra.mxu1 %v11470_v48  ;;  %13331 = vst [vmem:[#allocation145_spill] sm:$0xff] %v11480_v10  ;;  %v11483_v43 = vld [vmem:[#allocation13 + $0x68] sm:$0xff]  ;;  %v11487_v48 = vld [vmem:[#allocation13 + $0x60] sm:$0xff] }
 0x9ce   :  { %4490 = vmatprep.subr.mxu0 %v11473_v24  ;;  %6808 = vmatprep.subr.mxu1 %v12485_v56  ;;  %13332 = vst [vmem:[#allocation146_spill] sm:$0xff] %v11483_v43  ;;  %13333 = vst [vmem:[#allocation147_spill] sm:$0xff] %v11487_v48  ;;  %v11490_v24 = vld [vmem:[#allocation13 + $0x70] sm:$0xff] }
 0x9cf   :  { %4491 = vmatpush1.msra.mxu0 %v11477_v1  ;;  %6809 = vmatpush3.msra.mxu1 %v11480_v10  ;;  %13334 = vst [vmem:[#allocation148_spill] sm:$0xff] %v11490_v24  ;;  %v7104_v1 = vpop.eup %7103  ;;  %v11497_v10 = vld [vmem:[#allocation13 + $0x48] sm:$0xff] }
 0x9d0   :  { %4492 = vmatprep.subr.mxu0 %v11483_v43  ;;  %6810 = vmatprep.subr.mxu1 %v12485_v56  ;;  %13336 = vst [vmem:[#allocation150_spill] sm:$0xff] %v11497_v10  ;;  %v11500_v43 = vld [vmem:[#allocation13 + $0x58] sm:$0xff] }
 0x9d1   :  { %4493 = vmatpush1.msra.mxu0 %v11487_v48  ;;  %6811 = vmatpush3.msra.mxu1 %v11490_v24  ;;  %13337 = vst [vmem:[#allocation151_spill] sm:$0xff] %v11500_v43  ;;  %v4019_v48 = vsub.f32 1.0, %v7102_v13  ;;  %v11507_v24 = vld [vmem:[#allocation13 + $0x30] sm:$0xff] }
 0x9d2   :  { %4494 = vmatprep.subr.mxu0 %v11493_v34  ;;  %6812 = vmatprep.subr.mxu1 %v12485_v56  ;;  %13339 = vst [vmem:[#allocation154_spill] sm:$0xff] %v11507_v24  ;;  %v11510_v34 = vld [vmem:[#allocation13 + $0x40] sm:$0xff] }
 0x9d3   :  { %4495 = vmatpush1.msra.mxu0 %v11497_v10  ;;  %6813 = vmatpush3.msra.mxu1 %v11500_v43  ;;  %v4020_v10 = vmul.f32 %v7104_v1, %v4019_v48  ;;  %v11517_v43 = vld [vmem:[#allocation13 + $0x18] sm:$0xff]  ;;  %v11528_v48 = vld [vmem:[#allocation13] sm:$0xff] }
 0x9d4   :  { %4496 = vmatprep.subr.mxu0 %v11503_v57  ;;  %6814 = vmatprep.subr.mxu1 %v12485_v56  ;;  %13340 = vst [vmem:[#allocation156_spill] sm:$0xff] %v11517_v43  ;;  %v11520_v57 = vld [vmem:[#allocation13 + $0x28] sm:$0xff] }
 0x9d5   :  { %4497 = vmatpush1.msra.mxu0 %v11507_v24  ;;  %6815 = vmatpush3.msra.mxu1 %v11510_v34  ;;  %v4021_v24 = vmul.f32 %v7102_v13, %v10883_v6  ;;  %v7711_v13 = vld [vmem:[#allocation8 + $0x168] sm:$0xff]  ;;  %v7714_v6 = vld [vmem:[#allocation8 + $0x140] sm:$0xff] }
 0x9d6   :  { %4498 = vmatprep.subr.mxu0 %v11513_v5  ;;  %6816 = vmatprep.subr.mxu1 %v12485_v56 }
 0x9d7   :  { %4499 = vmatpush1.msra.mxu0 %v11517_v43  ;;  %6817 = vmatpush3.msra.mxu1 %v11520_v57  ;;  %v11532_v1 = vadd.f32 %v4021_v24, %v4020_v10  ;;  %v11534_v43 = vld [vmem:[#allocation13 + $0x10] sm:$0xff]  ;;  %v7712_v10 = vld [vmem:[#allocation8 + $0x158] sm:$0xff] }
 0x9d8   :  { %4500 = vmatprep.subr.mxu0 %v11524_v53  ;;  %6818 = vmatprep.subr.mxu1 %v12485_v56  ;;  %13341 = vst [vmem:[#allocation157_spill] sm:$0xff] %v11534_v43  ;;  %v7713_v24 = vld [vmem:[#allocation8 + $0x150] sm:$0xff] }
 0x9d9   :  { %4501 = vmatpush1.msra.mxu0 %v11528_v48  ;;  %4534 = vmatprep.mubr.f32.mxu0 %v12485_v56 }
 0x9da   :  { %6819 = vmatpush3.msra.mxu1 %v11534_v43  ;;  %6820 = vmatprep.mubr.msk.f32.mxu1 %vm7863_vm0, %v12485_v56  ;;  %v7715_v43 = vld [vmem:[#allocation8 + $0x138] sm:$0xff] }
 0x9db   :  { %4535 = vmatmul.mubr.f32.vlgmr.msra.gmra.mxu0 %v11532_v1  ;;  %6821 = vmatmul.mubr.f32.vlgmr.msra.gmra.mxu1 %v11532_v1 }
 0x9dc   :  { %4635 = vmatprep.subr.mxu0 %v10890_v50  ;;  %6823 = vmatprep.subr.mxu1 %v12485_v56  ;;  %v7716_v50 = vld [vmem:[#allocation8 + $0x128] sm:$0xff] }
 0x9dd   :  { %4636 = vmatpush1.msra.mxu0 %v7711_v13  ;;  %6824 = vmatpush3.msra.mxu1 %v10895_v28  ;;  %v7717_v28 = vld [vmem:[#allocation8 + $0x120] sm:$0xff]  ;;  %v7718_v13 = vld [vmem:[#allocation8 + $0x110] sm:$0xff] }
 0x9de   :  { %4637 = vmatprep.subr.mxu0 %v7712_v10  ;;  %6825 = vmatprep.subr.mxu1 %v12485_v56  ;;  %v7724_v10 = vld [vmem:[#allocation8 + $0xc8] sm:$0xff] }
 0x9df   :  { %4638 = vmatpush1.msra.mxu0 %v7713_v24  ;;  %6826 = vmatpush3.msra.mxu1 %v10901_v29  ;;  %v7719_v29 = vld [vmem:[#allocation8 + $0x108] sm:$0xff] }
 0x9e0   :  { %4639 = vmatprep.subr.mxu0 %v7714_v6  ;;  %6827 = vmatprep.subr.mxu1 %v12485_v56  ;;  %v7720_v6 = vld [vmem:[#allocation8 + $0xf8] sm:$0xff]  ;;  %v13366_v24 = vld [vmem:[#allocation55_spill] sm:$0xff] }
 0x9e1   :  { %4640 = vmatpush1.msra.mxu0 %v7715_v43  ;;  %6828 = vmatpush3.msra.mxu1 %v10907_v63  ;;  %v7721_v63 = vld [vmem:[#allocation8 + $0xf0] sm:$0xff]  ;;  %v7722_v43 = vld [vmem:[#allocation8 + $0xe0] sm:$0xff] }
 0x9e2   :  { %4641 = vmatprep.subr.mxu0 %v7716_v50  ;;  %6829 = vmatprep.subr.mxu1 %v12485_v56  ;;  %v13367_v50 = vld [vmem:[#allocation43_spill] sm:$0xff] }
 0x9e3   :  { %4642 = vmatpush1.msra.mxu0 %v7717_v28  ;;  %6830 = vmatpush3.msra.mxu1 %v10913_v52  ;;  %v7723_v52 = vld [vmem:[#allocation8 + $0xd8] sm:$0xff] }
 0x9e4   :  { %4643 = vmatprep.subr.mxu0 %v7718_v13  ;;  %6831 = vmatprep.subr.mxu1 %v12485_v56  ;;  %v13368_v28 = vld [vmem:[#allocation45_spill] sm:$0xff]  ;;  %v13369_v13 = vld [vmem:[#allocation56_spill] sm:$0xff] }
 0x9e5   :  { %4644 = vmatpush1.msra.mxu0 %v7719_v29  ;;  %6832 = vmatpush3.msra.mxu1 %v10919_v44  ;;  %v13342_v44 = vld [vmem:[#allocation38_spill] sm:$0xff] }
 0x9e6   :  { %4645 = vmatprep.subr.mxu0 %v7720_v6  ;;  %6833 = vmatprep.subr.mxu1 %v12485_v56  ;;  %v13370_v29 = vld [vmem:[#allocation46_spill] sm:$0xff]  ;;  %v13371_v6 = vld [vmem:[#allocation48_spill] sm:$0xff] }
 0x9e7   :  { %4646 = vmatpush1.msra.mxu0 %v7721_v63  ;;  %6834 = vmatpush3.msra.mxu1 %v10925_v18  ;;  %v4634_v18 = vld [vmem:[#allocation5 + $0x38] sm:$0xff] }
 0x9e8   :  { %4647 = vmatprep.subr.mxu0 %v7722_v43  ;;  %6835 = vmatprep.subr.mxu1 %v12485_v56  ;;  %v13372_v63 = vld [vmem:[#allocation57_spill] sm:$0xff] }
 0x9e9   :  { %4648 = vmatpush1.msra.mxu0 %v7723_v52  ;;  %6836 = vmatpush3.msra.mxu1 %v10931_v38  ;;  %v13343_v38 = vld [vmem:[#allocation23_spill] sm:$0xff]  ;;  %v13373_v43 = vld [vmem:[#allocation49_spill] sm:$0xff] }
 0x9ea   :  { %4649 = vmatprep.subr.mxu0 %v7724_v10  ;;  %6837 = vmatprep.subr.mxu1 %v12485_v56  ;;  %v13374_v52 = vld [vmem:[#allocation51_spill] sm:$0xff]  ;;  %v13375_v10 = vld [vmem:[#allocation58_spill] sm:$0xff] }
 0x9eb   :  { %4650 = vmatpush1.msra.mxu0 %v10936_v12  ;;  %6838 = vmatpush3.msra.mxu1 %v10939_v54  ;;  %v13344_v12 = vld [vmem:[#allocation24_spill] sm:$0xff]  ;;  %v13345_v54 = vld [vmem:[#allocation41_spill] sm:$0xff] }
 0x9ec   :  { %4651 = vmatprep.subr.mxu0 %v10942_v20  ;;  %6839 = vmatprep.subr.mxu1 %v12485_v56  ;;  %v13346_v20 = vld [vmem:[#allocation25_spill] sm:$0xff] }
 0x9ed   :  { %4652 = vmatpush1.msra.mxu0 %v10946_v41  ;;  %6840 = vmatpush3.msra.mxu1 %v10949_v40  ;;  %v13347_v41 = vld [vmem:[#allocation26_spill] sm:$0xff]  ;;  %v13348_v40 = vld [vmem:[#allocation44_spill] sm:$0xff] }
 0x9ee   :  { %4653 = vmatprep.subr.mxu0 %v10952_v36  ;;  %6841 = vmatprep.subr.mxu1 %v12485_v56  ;;  %v13349_v36 = vld [vmem:[#allocation27_spill] sm:$0xff] }
 0x9ef   :  { %4654 = vmatpush1.msra.mxu0 %v10956_v17  ;;  %6842 = vmatpush3.msra.mxu1 %v10959_v7  ;;  %v13350_v17 = vld [vmem:[#allocation28_spill] sm:$0xff]  ;;  %v13351_v7 = vld [vmem:[#allocation47_spill] sm:$0xff] }
 0x9f0   :  { %4655 = vmatprep.subr.mxu0 %v10962_v8  ;;  %6843 = vmatprep.subr.mxu1 %v12485_v56  ;;  %v13352_v8 = vld [vmem:[#allocation29_spill] sm:$0xff] }
 0x9f1   :  { %4656 = vmatpush1.msra.mxu0 %v10966_v33  ;;  %6844 = vmatpush3.msra.mxu1 %v10969_v31  ;;  %v13353_v33 = vld [vmem:[#allocation30_spill] sm:$0xff] }
 0x9f2   :  { %4657 = vmatprep.subr.mxu0 %v10972_v25  ;;  %6845 = vmatprep.subr.mxu1 %v12485_v56  ;;  %v13354_v31 = vld [vmem:[#allocation50_spill] sm:$0xff]  ;;  %v13355_v25 = vld [vmem:[#allocation31_spill] sm:$0xff] }
 0x9f3   :  { %4658 = vmatpush1.msra.mxu0 %v10976_v27  ;;  %6846 = vmatpush3.msra.mxu1 %v10979_v23  ;;  %v13356_v27 = vld [vmem:[#allocation33_spill] sm:$0xff]  ;;  %v13357_v23 = vld [vmem:[#allocation52_spill] sm:$0xff] }
 0x9f4   :  { %4659 = vmatprep.subr.mxu0 %v10982_v26  ;;  %6847 = vmatprep.subr.mxu1 %v12485_v56  ;;  %v13358_v26 = vld [vmem:[#allocation34_spill] sm:$0xff] }
 0x9f5   :  { %4660 = vmatpush1.msra.mxu0 %v10986_v2  ;;  %6848 = vmatpush3.msra.mxu1 %v10989_v4  ;;  %v13359_v2 = vld [vmem:[#allocation36_spill] sm:$0xff]  ;;  %v13360_v4 = vld [vmem:[#allocation53_spill] sm:$0xff] }
 0x9f6   :  { %4661 = vmatprep.subr.mxu0 %v10992_v59  ;;  %6849 = vmatprep.subr.mxu1 %v12485_v56  ;;  %v13361_v59 = vld [vmem:[#allocation37_spill] sm:$0xff] }
 0x9f7   :  { %4662 = vmatpush1.msra.mxu0 %v10996_v14  ;;  %6850 = vmatpush3.msra.mxu1 %v10999_v9  ;;  %v13362_v14 = vld [vmem:[#allocation39_spill] sm:$0xff]  ;;  %v13363_v9 = vld [vmem:[#allocation54_spill] sm:$0xff] }
 0x9f8   :  { %4663 = vmatprep.subr.mxu0 %v11002_v46  ;;  %6851 = vmatprep.subr.mxu1 %v12485_v56  ;;  %v13364_v46 = vld [vmem:[#allocation40_spill] sm:$0xff] }
 0x9f9   :  { %4664 = vmatpush1.msra.mxu0 %v11006_v55  ;;  %6852 = vmatpush3.msra.mxu1 %v13342_v44  ;;  %v13365_v55 = vld [vmem:[#allocation42_spill] sm:$0xff]  ;;  %v13376_v44 = vld [vmem:[#allocation59_spill] sm:$0xff] }
 0x9fa   :  { %4665 = vmatprep.subr.mxu0 %v13343_v38  ;;  %6853 = vmatprep.subr.mxu1 %v12485_v56  ;;  %v13378_v38 = vld [vmem:[#allocation61_spill] sm:$0xff] }
 0x9fb   :  { %4666 = vmatpush1.msra.mxu0 %v13344_v12  ;;  %4699 = vmatprep.mubr.f32.mxu0 %v12485_v56  ;;  %v13379_v12 = vld [vmem:[#allocation62_spill] sm:$0xff] }
 0x9fc   :  { %6854 = vmatpush3.msra.mxu1 %v13345_v54  ;;  %4700 = vmatmul.mubr.f32.vlgmr.msra.gmra.mxu0 %v4634_v18  ;;  %v13380_v54 = vld [vmem:[#allocation63_spill] sm:$0xff] }
 0x9fd   :  { %6855 = vmatprep.mubr.msk.f32.mxu1 %vm7863_vm0, %v12485_v56  ;;  %4776 = vmatprep.subr.mxu0 %v13346_v20  ;;  %v13381_v20 = vld [vmem:[#allocation64_spill] sm:$0xff] }
 0x9fe   :  { %6858 = vmatprep.subr.mxu1 %v12485_v56  ;;  %6856 = vmatmul.mubr.f32.vlgmr.msra.gmra.mxu1 %v4634_v18  ;;  %v13377_v18 = vld [vmem:[#allocation60_spill] sm:$0xff] }
 0x9ff   :  { %4777 = vmatpush1.msra.mxu0 %v13347_v41  ;;  %6859 = vmatpush3.msra.mxu1 %v13348_v40  ;;  %v13382_v41 = vld [vmem:[#allocation65_spill] sm:$0xff]  ;;  %v13383_v40 = vld [vmem:[#allocation67_spill] sm:$0xff] }
 0xa00   :  { %4778 = vmatprep.subr.mxu0 %v13349_v36  ;;  %6860 = vmatprep.subr.mxu1 %v12485_v56  ;;  %v13384_v36 = vld [vmem:[#allocation66_spill] sm:$0xff] }
 0xa01   :  { %4779 = vmatpush1.msra.mxu0 %v13350_v17  ;;  %6861 = vmatpush3.msra.mxu1 %v13351_v7  ;;  %v13385_v17 = vld [vmem:[#allocation68_spill] sm:$0xff]  ;;  %v13386_v7 = vld [vmem:[#allocation69_spill] sm:$0xff] }
 0xa02   :  { %4780 = vmatprep.subr.mxu0 %v13352_v8  ;;  %6862 = vmatprep.subr.mxu1 %v12485_v56  ;;  %v13387_v8 = vld [vmem:[#allocation70_spill] sm:$0xff] }
 0xa03   :  { %4781 = vmatpush1.msra.mxu0 %v13353_v33  ;;  %6863 = vmatpush3.msra.mxu1 %v13354_v31  ;;  %v13388_v33 = vld [vmem:[#allocation71_spill] sm:$0xff]  ;;  %v13389_v31 = vld [vmem:[#allocation72_spill] sm:$0xff] }
 0xa04   :  { %4782 = vmatprep.subr.mxu0 %v13355_v25  ;;  %6864 = vmatprep.subr.mxu1 %v12485_v56  ;;  %v13390_v25 = vld [vmem:[#allocation73_spill] sm:$0xff] }
 0xa05   :  { %4783 = vmatpush1.msra.mxu0 %v13356_v27  ;;  %6865 = vmatpush3.msra.mxu1 %v13357_v23  ;;  %v13391_v27 = vld [vmem:[#allocation74_spill] sm:$0xff]  ;;  %v13392_v23 = vld [vmem:[#allocation75_spill] sm:$0xff] }
 0xa06   :  { %4784 = vmatprep.subr.mxu0 %v13358_v26  ;;  %6866 = vmatprep.subr.mxu1 %v12485_v56  ;;  %v13393_v26 = vld [vmem:[#allocation76_spill] sm:$0xff] }
 0xa07   :  { %4785 = vmatpush1.msra.mxu0 %v13359_v2  ;;  %6867 = vmatpush3.msra.mxu1 %v13360_v4  ;;  %v13394_v2 = vld [vmem:[#allocation77_spill] sm:$0xff]  ;;  %v13395_v4 = vld [vmem:[#allocation78_spill] sm:$0xff] }
 0xa08   :  { %4786 = vmatprep.subr.mxu0 %v13361_v59  ;;  %6868 = vmatprep.subr.mxu1 %v12485_v56  ;;  %v13396_v59 = vld [vmem:[#allocation79_spill] sm:$0xff] }
 0xa09   :  { %4787 = vmatpush1.msra.mxu0 %v13362_v14  ;;  %6869 = vmatpush3.msra.mxu1 %v13363_v9  ;;  %v13397_v14 = vld [vmem:[#allocation80_spill] sm:$0xff]  ;;  %v13398_v9 = vld [vmem:[#allocation81_spill] sm:$0xff] }
 0xa0a   :  { %4788 = vmatprep.subr.mxu0 %v13364_v46  ;;  %6870 = vmatprep.subr.mxu1 %v12485_v56  ;;  %v13399_v46 = vld [vmem:[#allocation82_spill] sm:$0xff] }
 0xa0b   :  { %4789 = vmatpush1.msra.mxu0 %v13365_v55  ;;  %6871 = vmatpush3.msra.mxu1 %v13366_v24  ;;  %v13400_v55 = vld [vmem:[#allocation83_spill] sm:$0xff]  ;;  %v13401_v24 = vld [vmem:[#allocation84_spill] sm:$0xff] }
 0xa0c   :  { %4790 = vmatprep.subr.mxu0 %v13367_v50  ;;  %6872 = vmatprep.subr.mxu1 %v12485_v56  ;;  %v13402_v50 = vld [vmem:[#allocation85_spill] sm:$0xff] }
 0xa0d   :  { %4791 = vmatpush1.msra.mxu0 %v13368_v28  ;;  %6873 = vmatpush3.msra.mxu1 %v13369_v13  ;;  %v13403_v28 = vld [vmem:[#allocation86_spill] sm:$0xff]  ;;  %v13404_v13 = vld [vmem:[#allocation87_spill] sm:$0xff] }
 0xa0e   :  { %4792 = vmatprep.subr.mxu0 %v13370_v29  ;;  %6874 = vmatprep.subr.mxu1 %v12485_v56  ;;  %v13405_v29 = vld [vmem:[#allocation88_spill] sm:$0xff] }
 0xa0f   :  { %4793 = vmatpush1.msra.mxu0 %v13371_v6  ;;  %6875 = vmatpush3.msra.mxu1 %v13372_v63  ;;  %v13406_v6 = vld [vmem:[#allocation89_spill] sm:$0xff]  ;;  %v13407_v63 = vld [vmem:[#allocation90_spill] sm:$0xff] }
 0xa10   :  { %4794 = vmatprep.subr.mxu0 %v13373_v43  ;;  %6876 = vmatprep.subr.mxu1 %v12485_v56  ;;  %v13408_v43 = vld [vmem:[#allocation91_spill] sm:$0xff] }
 0xa11   :  { %4795 = vmatpush1.msra.mxu0 %v13374_v52  ;;  %6877 = vmatpush3.msra.mxu1 %v13375_v10  ;;  %v13409_v52 = vld [vmem:[#allocation92_spill] sm:$0xff]  ;;  %v13410_v10 = vld [vmem:[#allocation93_spill] sm:$0xff] }
 0xa12   :  { %4796 = vmatprep.subr.mxu0 %v13376_v44  ;;  %6878 = vmatprep.subr.mxu1 %v12485_v56  ;;  %v13411_v44 = vld [vmem:[#allocation94_spill] sm:$0xff] }
 0xa13   :  { %4797 = vmatpush1.msra.mxu0 %v13377_v18  ;;  %6879 = vmatpush3.msra.mxu1 %v13378_v38  ;;  %v13412_v18 = vld [vmem:[#allocation95_spill] sm:$0xff]  ;;  %v13413_v38 = vld [vmem:[#allocation96_spill] sm:$0xff] }
 0xa14   :  { %4798 = vmatprep.subr.mxu0 %v13379_v12  ;;  %6880 = vmatprep.subr.mxu1 %v12485_v56  ;;  %v13414_v12 = vld [vmem:[#allocation97_spill] sm:$0xff] }
 0xa15   :  { %4799 = vmatpush1.msra.mxu0 %v13380_v54  ;;  %6881 = vmatpush3.msra.mxu1 %v13381_v20  ;;  %v13415_v54 = vld [vmem:[#allocation98_spill] sm:$0xff]  ;;  %v13416_v20 = vld [vmem:[#allocation99_spill] sm:$0xff] }
 0xa16   :  { %4800 = vmatprep.subr.mxu0 %v13382_v41  ;;  %6882 = vmatprep.subr.mxu1 %v12485_v56  ;;  %v13417_v41 = vld [vmem:[#allocation100_spill] sm:$0xff] }
 0xa17   :  { %4801 = vmatpush1.msra.mxu0 %v13383_v40  ;;  %6883 = vmatpush3.msra.mxu1 %v13384_v36  ;;  %v13418_v40 = vld [vmem:[#allocation101_spill] sm:$0xff]  ;;  %v13419_v36 = vld [vmem:[#allocation102_spill] sm:$0xff] }
 0xa18   :  { %4802 = vmatprep.subr.mxu0 %v13385_v17  ;;  %6884 = vmatprep.subr.mxu1 %v12485_v56  ;;  %v13420_v17 = vld [vmem:[#allocation103_spill] sm:$0xff] }
 0xa19   :  { %4803 = vmatpush1.msra.mxu0 %v13386_v7  ;;  %6885 = vmatpush3.msra.mxu1 %v13387_v8  ;;  %v13421_v7 = vld [vmem:[#allocation104_spill] sm:$0xff]  ;;  %v13422_v8 = vld [vmem:[#allocation105_spill] sm:$0xff] }
 0xa1a   :  { %4804 = vmatprep.subr.mxu0 %v13388_v33  ;;  %6886 = vmatprep.subr.mxu1 %v12485_v56  ;;  %v13423_v33 = vld [vmem:[#allocation106_spill] sm:$0xff] }
 0xa1b   :  { %4805 = vmatpush1.msra.mxu0 %v13389_v31  ;;  %6887 = vmatpush3.msra.mxu1 %v13390_v25  ;;  %v13424_v31 = vld [vmem:[#allocation107_spill] sm:$0xff]  ;;  %v13425_v25 = vld [vmem:[#allocation108_spill] sm:$0xff] }
 0xa1c   :  { %4806 = vmatprep.subr.mxu0 %v13391_v27  ;;  %6888 = vmatprep.subr.mxu1 %v12485_v56  ;;  %v13426_v27 = vld [vmem:[#allocation109_spill] sm:$0xff] }
 0xa1d   :  { %4807 = vmatpush1.msra.mxu0 %v13392_v23  ;;  %4840 = vmatprep.mubr.f32.mxu0 %v12485_v56  ;;  %v13427_v23 = vld [vmem:[#allocation110_spill] sm:$0xff] }
 0xa1e   :  { %6889 = vmatpush3.msra.mxu1 %v13393_v26  ;;  %6890 = vmatprep.mubr.msk.f32.mxu1 %vm7863_vm0, %v12485_v56  ;;  %v13428_v26 = vld [vmem:[#allocation111_spill] sm:$0xff] }
 0xa1f   :  { %4841 = vmatmul.mubr.f32.vlgmr.msra.gmra.mxu0 %v11372_v42  ;;  %6891 = vmatmul.mubr.f32.vlgmr.msra.gmra.mxu1 %v11372_v42 }
 0xa20   :  { %4938 = vmatprep.subr.mxu0 %v13394_v2  ;;  %6893 = vmatprep.subr.mxu1 %v12485_v56  ;;  %v13429_v2 = vld [vmem:[#allocation112_spill] sm:$0xff] }
 0xa21   :  { %4939 = vmatpush1.msra.mxu0 %v13395_v4  ;;  %6894 = vmatpush3.msra.mxu1 %v13396_v59  ;;  %v13430_v4 = vld [vmem:[#allocation113_spill] sm:$0xff]  ;;  %v13431_v59 = vld [vmem:[#allocation114_spill] sm:$0xff] }
 0xa22   :  { %4940 = vmatprep.subr.mxu0 %v13397_v14  ;;  %6895 = vmatprep.subr.mxu1 %v12485_v56  ;;  %v13432_v14 = vld [vmem:[#allocation115_spill] sm:$0xff] }
 0xa23   :  { %4941 = vmatpush1.msra.mxu0 %v13398_v9  ;;  %6896 = vmatpush3.msra.mxu1 %v13399_v46  ;;  %v13433_v9 = vld [vmem:[#allocation116_spill] sm:$0xff]  ;;  %v13434_v46 = vld [vmem:[#allocation117_spill] sm:$0xff] }
 0xa24   :  { %4942 = vmatprep.subr.mxu0 %v13400_v55  ;;  %6897 = vmatprep.subr.mxu1 %v12485_v56  ;;  %v13435_v55 = vld [vmem:[#allocation118_spill] sm:$0xff] }
 0xa25   :  { %4943 = vmatpush1.msra.mxu0 %v13401_v24  ;;  %6898 = vmatpush3.msra.mxu1 %v13402_v50  ;;  %v13436_v24 = vld [vmem:[#allocation119_spill] sm:$0xff]  ;;  %v13437_v50 = vld [vmem:[#allocation120_spill] sm:$0xff] }
 0xa26   :  { %4944 = vmatprep.subr.mxu0 %v13403_v28  ;;  %6899 = vmatprep.subr.mxu1 %v12485_v56  ;;  %v13438_v28 = vld [vmem:[#allocation121_spill] sm:$0xff] }
 0xa27   :  { %4945 = vmatpush1.msra.mxu0 %v13404_v13  ;;  %6900 = vmatpush3.msra.mxu1 %v13405_v29  ;;  %v13439_v13 = vld [vmem:[#allocation122_spill] sm:$0xff]  ;;  %v13440_v29 = vld [vmem:[#allocation123_spill] sm:$0xff] }
 0xa28   :  { %4946 = vmatprep.subr.mxu0 %v13406_v6  ;;  %6901 = vmatprep.subr.mxu1 %v12485_v56  ;;  %v13441_v6 = vld [vmem:[#allocation124_spill] sm:$0xff] }
 0xa29   :  { %4947 = vmatpush1.msra.mxu0 %v13407_v63  ;;  %6902 = vmatpush3.msra.mxu1 %v13408_v43  ;;  %v13442_v63 = vld [vmem:[#allocation125_spill] sm:$0xff] }
 0xa2a   :  { %4948 = vmatprep.subr.mxu0 %v13409_v52  ;;  %6903 = vmatprep.subr.mxu1 %v12485_v56 }
 0xa2b   :  { %4949 = vmatpush1.msra.mxu0 %v13410_v10  ;;  %6904 = vmatpush3.msra.mxu1 %v13411_v44 }
 0xa2c   :  { %4950 = vmatprep.subr.mxu0 %v13412_v18  ;;  %6905 = vmatprep.subr.mxu1 %v12485_v56 }
 0xa2d   :  { %4951 = vmatpush1.msra.mxu0 %v13413_v38  ;;  %6906 = vmatpush3.msra.mxu1 %v13414_v12  ;;  %v13443_v12 = vld [vmem:[#allocation32_spill] sm:$0xff] }
 0xa2e   :  { %4952 = vmatprep.subr.mxu0 %v13415_v54  ;;  %6907 = vmatprep.subr.mxu1 %v12485_v56 }
 0xa2f   :  { %4953 = vmatpush1.msra.mxu0 %v13416_v20  ;;  %6908 = vmatpush3.msra.mxu1 %v13417_v41 }
 0xa30   :  { %4954 = vmatprep.subr.mxu0 %v13418_v40  ;;  %6909 = vmatprep.subr.mxu1 %v12485_v56 }
 0xa31   :  { %4955 = vmatpush1.msra.mxu0 %v13419_v36  ;;  %6910 = vmatpush3.msra.mxu1 %v13420_v17 }
 0xa32   :  { %4956 = vmatprep.subr.mxu0 %v13421_v7  ;;  %6911 = vmatprep.subr.mxu1 %v12485_v56 }
 0xa33   :  { %4957 = vmatpush1.msra.mxu0 %v13422_v8  ;;  %6912 = vmatpush3.msra.mxu1 %v13423_v33  ;;  %v13444_v8 = vld [vmem:[#allocation19_spill] sm:$0xff] }
 0xa34   :  { %4958 = vmatprep.subr.mxu0 %v13424_v31  ;;  %6913 = vmatprep.subr.mxu1 %v12485_v56 }
 0xa35   :  { %4959 = vmatpush1.msra.mxu0 %v13425_v25  ;;  %6914 = vmatpush3.msra.mxu1 %v13426_v27  ;;  %v13445_v27 = vld [vmem:[#allocation20_spill] sm:$0xff] }
 0xa36   :  { %4960 = vmatprep.subr.mxu0 %v13427_v23  ;;  %6915 = vmatprep.subr.mxu1 %v12485_v56 }
 0xa37   :  { %4961 = vmatpush1.msra.mxu0 %v13428_v26  ;;  %6916 = vmatpush3.msra.mxu1 %v13429_v2 }
 0xa38   :  { %4962 = vmatprep.subr.mxu0 %v13430_v4  ;;  %6917 = vmatprep.subr.mxu1 %v12485_v56 }
 0xa39   :  { %4963 = vmatpush1.msra.mxu0 %v13431_v59  ;;  %6918 = vmatpush3.msra.mxu1 %v13432_v14 }
 0xa3a   :  { %4964 = vmatprep.subr.mxu0 %v13433_v9  ;;  %6919 = vmatprep.subr.mxu1 %v12485_v56 }
 0xa3b   :  { %4965 = vmatpush1.msra.mxu0 %v13434_v46  ;;  %6920 = vmatpush3.msra.mxu1 %v13435_v55 }
 0xa3c   :  { %4966 = vmatprep.subr.mxu0 %v13436_v24  ;;  %6921 = vmatprep.subr.mxu1 %v12485_v56 }
 0xa3d   :  { %4967 = vmatpush1.msra.mxu0 %v13437_v50  ;;  %6922 = vmatpush3.msra.mxu1 %v13438_v28 }
 0xa3e   :  { %4968 = vmatprep.subr.mxu0 %v13439_v13  ;;  %6923 = vmatprep.subr.mxu1 %v12485_v56 }
 0xa3f   :  { %4969 = vmatpush1.msra.mxu0 %v13440_v29  ;;  %6924 = vmatpush3.msra.mxu1 %v13441_v6 }
 0xa40   :  { %5002 = vmatprep.mubr.f32.mxu0 %v12485_v56  ;;  %6925 = vmatprep.mubr.msk.f32.mxu1 %vm7863_vm0, %v12485_v56 }
 0xa41   :  { %5079 = vmatprep.subr.mxu0 %v13442_v63  ;;  %6928 = vmatprep.subr.mxu1 %v12485_v56 }
 0xa7a   :  { %v4466_v43 = vpop.f32.mrf.mxu1  ;;  %v4395_v10 = vpop.f32.mrf.mxu0 }
 0xa7b   :  { %v4396_v54 = vadd.f32 %v4395_v10, %v13443_v12  ;;  %v4467_v23 = vadd.f32 %v4466_v43, %v13445_v27 }
 0xa7c   :  { %v6787_v52 = vpop.f32.mrf.mxu1  ;;  %v4397_v44 = vpop.f32.mrf.mxu0 }
 0xa9b   :  { %v4536_v18 = vpop.f32.mrf.mxu0  ;;  %v4607_v38 = vpop.f32.mrf.mxu1 }
 0xa9c   :  { %v4537_v20 = vadd.f32 %v4536_v18, %v8839_v47  ;;  %v4608_v33 = vadd.f32 %v4607_v38, %v13444_v8 }
 0xa9d   :  { %v6822_v41 = vpop.f32.mrf.mxu1  ;;  %v4538_v59 = vpop.f32.mrf.mxu0 }
 0xa9e   :  { %v4611_v40 = vadd.f32 %v4537_v20, %v4396_v54  ;;  %v4539_v41 = vadd.f32 %v4538_v59, %v8858_v3  ;;  %v13461_v59 = vld [vmem:[#allocation141_spill] sm:$0xff] }
 0xaa0   :  { %v5293_v36 = vmul.f32 -1.442695, %v4611_v40 }
 0xaa2   :  { %7105 = vpow2.f32 %v5293_v36 }
 0xaaf   :  { %v7106_v17 = vpop.eup %7105 }
 0xab0   :  { %v4615_v7 = vadd.f32 1.0, %v7106_v17 }
 0xab2   :  { %7107 = vrcp.f32 %v4615_v7 }
 0xabc   :  { %v4701_v14 = vpop.f32.mrf.mxu0 }
 0xabd   :  { %v4702_v24 = vadd.f32 %v4701_v14, %v12619_v35  ;;  %v13462_v14 = vld [vmem:[#allocation142_spill] sm:$0xff] }
 0xabe   :  { %v4772_v31 = vpop.f32.mrf.mxu1  ;;  %v4703_v9 = vpop.f32.mrf.mxu0 }
 0xabf   :  { %v7108_v25 = vpop.eup %7107  ;;  %v4704_v43 = vadd.f32 %v4703_v9, %v8417_v16  ;;  %v4773_v40 = vadd.f32 %v4772_v31, %v8427_v58  ;;  %v13459_v31 = vld [vmem:[#allocation139_spill] sm:$0xff] }
 0xac0   :  { %v4625_v26 = vmul.f32 %v7108_v25, %v4608_v33  ;;  %v6857_v2 = vpop.f32.mrf.mxu1  ;;  %v13463_v9 = vld [vmem:[#allocation143_spill] sm:$0xff] }
 0xac2   :  { %v11736_v4 = vadd.f32 %v4625_v26, %v4467_v23 }
 0xadf   :  { %v4842_v46 = vpop.f32.mrf.mxu0  ;;  %v4913_v55 = vpop.f32.mrf.mxu1 }
 0xae0   :  { %v4843_v50 = vadd.f32 %v4842_v46, %v12620_v37  ;;  %v4914_v35 = vadd.f32 %v4913_v55, %v8424_v11  ;;  %v13464_v46 = vld [vmem:[#allocation144_spill] sm:$0xff]  ;;  %v13465_v55 = vld [vmem:[#allocation145_spill] sm:$0xff] }
 0xae1   :  { %v4844_v28 = vpop.f32.mrf.mxu0  ;;  %v6892_v13 = vpop.f32.mrf.mxu1 }
 0xae2   :  { %v4917_v29 = vadd.f32 %v4843_v50, %v4702_v24  ;;  %v4845_v63 = vadd.f32 %v4844_v28, %v8414_v61  ;;  %v4398_v61 = vadd.f32 %v4397_v44, %v8861_v21  ;;  %v13458_v44 = vld [vmem:[#allocation138_spill] sm:$0xff]  ;;  %v13467_v28 = vld [vmem:[#allocation147_spill] sm:$0xff]  ;;  %v13468_v13 = vld [vmem:[#allocation148_spill] sm:$0xff] }
 0xae3   :  { %v13466_v50 = vld [vmem:[#allocation146_spill] sm:$0xff] }
 0xae4   :  { %v5295_v6 = vmul.f32 -1.442695, %v4917_v29  ;;  %v4924_v52 = vadd.f32 %v4845_v63, %v4704_v43  ;;  %v4618_v17 = vadd.f32 %v4539_v41, %v4398_v61  ;;  %v13470_v63 = vld [vmem:[#allocation150_spill] sm:$0xff]  ;;  %v13471_v43 = vld [vmem:[#allocation151_spill] sm:$0xff] }
 0xae6   :  { %7109 = vpow2.f32 %v5295_v6  ;;  %v5296_v10 = vmul.f32 -1.442695, %v4924_v52  ;;  %v5294_v7 = vmul.f32 -1.442695, %v4618_v17  ;;  %v13469_v6 = vld [vmem:[#allocation149_spill] sm:$0xff] }
 0xae8   :  { %7111 = vpow2.f32 %v5296_v10  ;;  %v13472_v10 = vld [vmem:[#allocation152_spill] sm:$0xff] }
 0xaf3   :  { %v7110_v18 = vpop.eup %7109 }
 0xaf4   :  { %v4921_v38 = vadd.f32 1.0, %v7110_v18  ;;  %v13473_v18 = vld [vmem:[#allocation154_spill] sm:$0xff] }
 0xaf5   :  { %v7112_v54 = vpop.eup %7111 }
 0xaf6   :  { %7113 = vrcp.f32 %v4921_v38  ;;  %v4928_v20 = vadd.f32 1.0, %v7112_v54  ;;  %v13474_v54 = vld [vmem:[#allocation156_spill] sm:$0xff] }
 0xaf8   :  { %7115 = vrcp.f32 %v4928_v20 }
 0xb03   :  { %v7114_v37 = vpop.eup %7113 }
 0xb04   :  { %v4931_v36 = vmul.f32 %v7114_v37, %v4914_v35  ;;  %v13475_v35 = vld [vmem:[#allocation157_spill] sm:$0xff] }
 0xb05   :  { %v7116_v33 = vpop.eup %7115 }
 0xb06   :  { %v4932_v16 = vadd.f32 %v4931_v36, %v4773_v40  ;;  %v4934_v25 = vsub.f32 1.0, %v7116_v33  ;;  %v4936_v11 = vmul.f32 %v7116_v33, %v11372_v42 }
 0xb08   :  { %7117 = vtanh.f32 %v4932_v16 }
 0xb09   :  { %7119 = vpow2.f32 %v5294_v7 }
 0xb15   :  { %v7118_v23 = vpop.eup %7117 }
 0xb16   :  { %v4935_v26 = vmul.f32 %v7118_v23, %v4934_v25  ;;  %v7120_v58 = vpop.eup %7119 }
 0xb17   :  { %v4622_v42 = vadd.f32 1.0, %v7120_v58 }
 0xb18   :  { %v4937_v2 = vadd.f32 %v4936_v11, %v4935_v26 }
 0xb19   :  { %7121 = vrcp.f32 %v4622_v42 }
 0xb1a   :  { %5003 = vmatmul.mubr.f32.vlgmr.msra.gmra.mxu0 %v4937_v2  ;;  %6926 = vmatmul.mubr.f32.vlgmr.msra.gmra.mxu1 %v4937_v2  ;;  %7123 = vtanh.f32 %v11736_v4  ;;  %v13460_v4 = vld [vmem:[#allocation140_spill] sm:$0xff] }
 0xb1b   :  { %5080 = vmatpush1.msra.mxu0 %v11376_v0  ;;  %6929 = vmatpush3.msra.mxu1 %v11379_v39  ;;  %v13446_v0 = vld [vmem:[#allocation126_spill] sm:$0xff]  ;;  %v13447_v39 = vld [vmem:[#allocation127_spill] sm:$0xff] }
 0xb1c   :  { %5081 = vmatprep.subr.mxu0 %v11382_v51  ;;  %6930 = vmatprep.subr.mxu1 %v12485_v56  ;;  %v13448_v51 = vld [vmem:[#allocation128_spill] sm:$0xff] }
 0xb1d   :  { %5082 = vmatpush1.msra.mxu0 %v11386_v62  ;;  %6931 = vmatpush3.msra.mxu1 %v11389_v30  ;;  %v13449_v62 = vld [vmem:[#allocation129_spill] sm:$0xff]  ;;  %v13450_v30 = vld [vmem:[#allocation130_spill] sm:$0xff] }
 0xb1e   :  { %5083 = vmatprep.subr.mxu0 %v11392_v60  ;;  %6932 = vmatprep.subr.mxu1 %v12485_v56  ;;  %v13451_v60 = vld [vmem:[#allocation131_spill] sm:$0xff] }
 0xb1f   :  { %5084 = vmatpush1.msra.mxu0 %v11396_v49  ;;  %6933 = vmatpush3.msra.mxu1 %v11399_v19  ;;  %v13452_v49 = vld [vmem:[#allocation132_spill] sm:$0xff]  ;;  %v13453_v19 = vld [vmem:[#allocation133_spill] sm:$0xff] }
 0xb20   :  { %5085 = vmatprep.subr.mxu0 %v11402_v45  ;;  %6934 = vmatprep.subr.mxu1 %v12485_v56  ;;  %v13454_v45 = vld [vmem:[#allocation134_spill] sm:$0xff] }
 0xb21   :  { %5086 = vmatpush1.msra.mxu0 %v11406_v22  ;;  %6935 = vmatpush3.msra.mxu1 %v11409_v32  ;;  %v13455_v22 = vld [vmem:[#allocation135_spill] sm:$0xff]  ;;  %v13456_v32 = vld [vmem:[#allocation136_spill] sm:$0xff] }
 0xb22   :  { %5087 = vmatprep.subr.mxu0 %v11412_v15  ;;  %6936 = vmatprep.subr.mxu1 %v12485_v56  ;;  %v13457_v15 = vld [vmem:[#allocation137_spill] sm:$0xff] }
 0xb23   :  { %5088 = vmatpush1.msra.mxu0 %v13446_v0  ;;  %6937 = vmatpush3.msra.mxu1 %v13447_v39 }
 0xb24   :  { %5089 = vmatprep.subr.mxu0 %v13448_v51  ;;  %6938 = vmatprep.subr.mxu1 %v12485_v56 }
 0xb25   :  { %5090 = vmatpush1.msra.mxu0 %v13449_v62  ;;  %6939 = vmatpush3.msra.mxu1 %v13450_v30  ;;  %v13478_v62 = vld [vmem:[#allocation21_spill] sm:$0xff] }
 0xb26   :  { %5091 = vmatprep.subr.mxu0 %v13451_v60  ;;  %6940 = vmatprep.subr.mxu1 %v12485_v56  ;;  %v7122_v24 = vpop.eup %7121 }
 0xb27   :  { %5092 = vmatpush1.msra.mxu0 %v13452_v49  ;;  %6941 = vmatpush3.msra.mxu1 %v13453_v19  ;;  %v7124_v29 = vpop.eup %7123  ;;  %v4628_v52 = vsub.f32 1.0, %v7122_v24  ;;  %v4630_v20 = vmul.f32 %v7122_v24, %v11532_v1  ;;  %v13479_v49 = vld [vmem:[#allocation155_spill] sm:$0xff] }
 0xb28   :  { %5093 = vmatprep.subr.mxu0 %v13454_v45  ;;  %6942 = vmatprep.subr.mxu1 %v12485_v56  ;;  %v13480_v45 = vld [vmem:[#allocation22_spill] sm:$0xff] }
 0xb29   :  { %5094 = vmatpush1.msra.mxu0 %v13455_v22  ;;  %6943 = vmatpush3.msra.mxu1 %v13456_v32  ;;  %v4629_v38 = vmul.f32 %v7124_v29, %v4628_v52 }
 0xb2a   :  { %5095 = vmatprep.subr.mxu0 %v13457_v15  ;;  %6944 = vmatprep.subr.mxu1 %v12485_v56 }
 0xb2b   :  { %5096 = vmatpush1.msra.mxu0 %v13458_v44  ;;  %6945 = vmatpush3.msra.mxu1 %v13459_v31 }
 0xb2c   :  { %5097 = vmatprep.subr.mxu0 %v13460_v4  ;;  %6946 = vmatprep.subr.mxu1 %v12485_v56 }
 0xb2d   :  { %5098 = vmatpush1.msra.mxu0 %v13461_v59  ;;  %6947 = vmatpush3.msra.mxu1 %v13462_v14 }
 0xb2e   :  { %5099 = vmatprep.subr.mxu0 %v13463_v9  ;;  %6948 = vmatprep.subr.mxu1 %v12485_v56 }
 0xb2f   :  { %5100 = vmatpush1.msra.mxu0 %v13464_v46  ;;  %6949 = vmatpush3.msra.mxu1 %v13465_v55 }
 0xb30   :  { %5101 = vmatprep.subr.mxu0 %v13466_v50  ;;  %6950 = vmatprep.subr.mxu1 %v12485_v56 }
 0xb31   :  { %5102 = vmatpush1.msra.mxu0 %v13467_v28  ;;  %6951 = vmatpush3.msra.mxu1 %v13468_v13 }
 0xb32   :  { %5103 = vmatprep.subr.mxu0 %v13469_v6  ;;  %6952 = vmatprep.subr.mxu1 %v12485_v56 }
 0xb33   :  { %5104 = vmatpush1.msra.mxu0 %v13470_v63  ;;  %6953 = vmatpush3.msra.mxu1 %v13471_v43 }
 0xb34   :  { %5105 = vmatprep.subr.mxu0 %v13472_v10  ;;  %6954 = vmatprep.subr.mxu1 %v12485_v56 }
 0xb35   :  { %5106 = vmatpush1.msra.mxu0 %v13473_v18  ;;  %6955 = vmatpush3.msra.mxu1 %v11510_v34  ;;  %v4631_v34 = vadd.f32 %v4630_v20, %v4629_v38 }
 0xb36   :  { %5107 = vmatprep.subr.mxu0 %v11513_v5  ;;  %6956 = vmatprep.subr.mxu1 %v12485_v56 }
 0xb37   :  { %5108 = vmatpush1.msra.mxu0 %v13474_v54  ;;  %6957 = vmatpush3.msra.mxu1 %v11520_v57 }
 0xb38   :  { %5109 = vmatprep.subr.mxu0 %v11524_v53  ;;  %6958 = vmatprep.subr.mxu1 %v12485_v56 }
 0xb39   :  { %5110 = vmatpush1.msra.mxu0 %v11528_v48  ;;  %5143 = vmatprep.mubr.f32.mxu0 %v12485_v56 }
 0xb3a   :  { %6959 = vmatpush3.msra.mxu1 %v13475_v35  ;;  %6960 = vmatprep.mubr.msk.f32.mxu1 %vm7863_vm0, %v12485_v56 }
 0xb3b   :  { %5144 = vmatmul.mubr.f32.vlgmr.msra.gmra.mxu0 %v4631_v34  ;;  %6961 = vmatmul.mubr.f32.vlgmr.msra.gmra.mxu1 %v4631_v34 }
 0xbda   :  { %v5075_v5 = vpop.f32.mrf.mxu1  ;;  %v5004_v37 = vpop.f32.mrf.mxu0 }
 0xbdb   :  { %v5005_v36 = vadd.f32 %v5004_v37, %v13443_v12  ;;  %v5076_v42 = vadd.f32 %v5075_v5, %v13445_v27 }
 0xbdc   :  { %v6927_v57 = vpop.f32.mrf.mxu1  ;;  %v5006_v41 = vpop.f32.mrf.mxu0 }
 0xbdd   :  { %v5007_v56 = vadd.f32 %v5006_v41, %v8861_v21  ;;  %v13477_v21 = vld [vmem:[#allocation153_spill] sm:$0xff] }
 0xbfb   :  { %v5145_v40 = vpop.f32.mrf.mxu0  ;;  %v5216_v53 = vpop.f32.mrf.mxu1 }
 0xbfc   :  { %v5146_v48 = vadd.f32 %v5145_v40, %v8839_v47  ;;  %v5217_v12 = vadd.f32 %v5216_v53, %v13444_v8 }
 0xbfd   :  { %v5147_v61 = vpop.f32.mrf.mxu0  ;;  %v6962_v16 = vpop.f32.mrf.mxu1 }
 0xbfe   :  { %v5220_v17 = vadd.f32 %v5146_v48, %v5005_v36  ;;  %v5148_v33 = vadd.f32 %v5147_v61, %v8858_v3  ;;  %v13476_v3 = vld [vmem:[#allocation35_spill] sm:$0xff] }
 0xbff   :  { %v1587_v51 = vadd.f32 %v13477_v21, %v13476_v3 }
 0xc00   :  { %v5297_v7 = vmul.f32 -1.442695, %v5220_v17  ;;  %v5227_v25 = vadd.f32 %v5148_v33, %v5007_v56 }
 0xc01   :  { %v2196_v30 = vadd.f32 %v13478_v62, %v1587_v51 }
 0xc02   :  { %7125 = vpow2.f32 %v5297_v7  ;;  %v5298_v23 = vmul.f32 -1.442695, %v5227_v25 }
 0xc03   :  { %v2805_v19 = vadd.f32 %v13479_v49, %v2196_v30 }
 0xc04   :  { %7127 = vpow2.f32 %v5298_v23 }
 0xc05   :  { %v3414_v22 = vadd.f32 %v13480_v45, %v2805_v19 }
 0xc07   :  { %v4023_v8 = vadd.f32 %v11532_v1, %v3414_v22 }
 0xc09   :  { %v4632_v31 = vadd.f32 %v4631_v34, %v4023_v8 }
 0xc0f   :  { %v7126_v26 = vpop.eup %7125 }
 0xc10   :  { %v5224_v11 = vadd.f32 1.0, %v7126_v26 }
 0xc11   :  { %v7128_v2 = vpop.eup %7127 }
 0xc12   :  { %7129 = vrcp.f32 %v5224_v11  ;;  %v5231_v58 = vadd.f32 1.0, %v7128_v2 }
 0xc14   :  { %7131 = vrcp.f32 %v5231_v58 }
 0xc1f   :  { %v7130_v47 = vpop.eup %7129 }
 0xc20   :  { %v5234_v0 = vmul.f32 %v7130_v47, %v5217_v12 }
 0xc21   :  { %v7132_v60 = vpop.eup %7131 }
 0xc22   :  { %v5235_v39 = vadd.f32 %v5234_v0, %v5076_v42  ;;  %v5237_v32 = vsub.f32 1.0, %v7132_v60  ;;  %v5239_v27 = vmul.f32 %v7132_v60, %v4631_v34 }
 0xc24   :  { %7133 = vtanh.f32 %v5235_v39 }
 0xc31   :  { %v7134_v15 = vpop.eup %7133 }
 0xc32   :  { %v5238_v44 = vmul.f32 %v7134_v15, %v5237_v32 }
 0xc34   :  { %v5240_v4 = vadd.f32 %v5239_v27, %v5238_v44 }
 0xc36   :  { %v5241_v59 = vadd.f32 %v5240_v4, %v4632_v31 }
 0xc38   :  { %v5248_v14 = vmul.f32 0.125, %v5241_v59 }
 0xc3a   :  { %5249 = vst [vmem:[#allocation14] sm:$0xff] %v5248_v14 }
 0xc3b   :  { %7836 = shalt.err (!%p7833_p1)
}
 0xc3c   :  { %5259 = dma.vmem_to_hbm [thread:$0]  %s5257_s8, 128, %s11838_s9, [#allocation7]  }
 0xc3d   :  { %7851 = dma.done.wait [#allocation7], 128  }
 0xc3e   :  { %7852 = vsyncadd [#allocation7], 4294967168 }
 0xc3f   :  { %5263 = vsyncpa [#allocation6], 1 }
 0xc40   :  { %5264 = vsyncpa [#allocation9], 1 }
 0xc41   :  { %5265 = vsyncpa [#allocation12], 1 }
 0xc42   :  { %5266 = vsyncpa [#allocation7], 1 }

</bundles_post_ra>
